<compile_context>
chip_gen: v7x
topology: tpu7x:2x2x1
jax: 0.10.0
libtpu: 0.0.40
codegen_flags: <defaults>
</compile_context>

<pallas_src>
import functools

import jax
import jax.numpy as jnp
from jax.experimental import pallas as pl
from jax.experimental.pallas import tpu as pltpu

TM_STAGE1 = 1664   # M tile for conv stage 1 (Mp = 83*80 = 6640 -> padded 6656)
TM_STAGE2 = 384    # M tile for conv stage 2 (Mp = 27*26 = 702  -> padded 768)


def _pick_vmem_limit():
    """Per-generation scoped-VMEM limit (~3/4 of physical VMEM per core).

    v5e/v6e: 128 MiB -> ~96 MiB; v7x: 64 MiB -> 48 MiB.  Every block in this
    file is < 1 MiB, so the conservative fallback is always safe.
    """
    try:
        info = pltpu.get_tpu_info()
        cap = getattr(info, "vmem_capacity_bytes", None)
        if cap:
            return int(min(cap * 3 // 4, 128 * 1024 * 1024))
    except Exception:
        pass
    return 48 * 1024 * 1024


VMEM_LIMIT = _pick_vmem_limit()


# ----------------------------- Pallas kernels --------------------------------

def _conv_relu_pool_kernel(p_ref, w_ref, b_ref, o_ref, *, cin):
    """Fused Conv2d(k=3,s=1) + bias + ReLU + MaxPool2d(k=3,s=3), lane-dense.

    p_ref: (1, 25*Cin, TM) bf16 — dedup'd pool-phase patches for one batch
           element / one M tile.  Feature row (sy*5 + sx)*Cin + ci holds
           x[ci, 3*ph + sy, 3*pw + sx] for pooled pixel m = ph*Wp + pw (lanes).
    w_ref: (3, Cout, 3*Cin) bf16 — conv weight; w_ref[dy][co, dx*Cin+ci].
    b_ref: (Cout, 1) f32 — bias.
    o_ref: (1, Cout, TM) bf16 — pooled, ReLU'd activations, channel-major.

    pooled[c, m] = max_{py,px} relu( sum_{dy,dx,ci} w[c,ci,dy,dx] *
                                     patch[(py+dy, px+dx), ci, m] + b[c] )
    """
    bias = b_ref[...]                                   # (Cout, 1) f32
    best = None
    for py in range(3):                                 # 9 pooling taps, unrolled
        for px in range(3):
            acc = None
            for dy in range(3):                         # 3 conv rows per tap
                f0 = ((py + dy) * 5 + px) * cin         # static sublane offset
                z = jnp.dot(w_ref[dy],                  # (Cout, 3*Cin)
                            p_ref[0, f0:f0 + 3 * cin, :],   # (3*Cin, TM)
                            preferred_element_type=jnp.float32)
                acc = z if acc is None else acc + z
            t = jnp.maximum(acc + bias, 0.0)            # ReLU before max == relu∘pool
            best = t if best is None else jnp.maximum(best, t)
    o_ref[0] = best.astype(o_ref.dtype)


def _mlp_kernel(x_ref, w1_ref, b1_ref, w2_ref, b2_ref, o_ref):
    """fc1 (bf16 x / bf16 w1, f32 accum) + ReLU + fc2 (f32), fused."""
    h = jnp.dot(x_ref[...], w1_ref[...], preferred_element_type=jnp.float32)
    h = jnp.maximum(h + b1_ref[...], 0.0)
    o = jnp.dot(h, w2_ref[...], preferred_element_type=jnp.float32) + b2_ref[...]
    o_ref[...] = o.astype(o_ref.dtype)


# ------------------------------- wrappers -------------------------------------

def conv_relu_pool(patches, w_k, bias, *, cin, tm):
    """patches: (B, 25*Cin, Mp) bf16 -> (B, Cout, Mp) bf16 pooled activations."""
    B, F, Mp = patches.shape
    cout = w_k.shape[1]
    assert F == 25 * cin
    nm = pl.cdiv(Mp, tm)
    mp_pad = nm * tm
    if mp_pad != Mp:                                    # pad M to a 128-multiple tile
        patches = jnp.pad(patches, ((0, 0), (0, 0), (0, mp_pad - Mp)))

    out = pl.pallas_call(
        functools.partial(_conv_relu_pool_kernel, cin=cin),
        out_shape=jax.ShapeDtypeStruct((B, cout, mp_pad), jnp.bfloat16),
        grid=(B, nm),
        in_specs=[
            pl.BlockSpec((1, F, tm), lambda b, m: (b, 0, m)),
            pl.BlockSpec((3, cout, 3 * cin), lambda b, m: (0, 0, 0)),   # resident
            pl.BlockSpec((cout, 1), lambda b, m: (0, 0)),               # resident
        ],
        out_specs=pl.BlockSpec((1, cout, tm), lambda b, m: (b, 0, m)),
        compiler_params=pltpu.CompilerParams(
            dimension_semantics=("parallel", "parallel"),   # v7x: shard over 2 TCs
            vmem_limit_bytes=VMEM_LIMIT),
    )(patches, w_k, bias.reshape(cout, 1).astype(jnp.float32))
    return out[:, :, :Mp]


def mlp(x, w1, b1, w2, b2):
    """(B,K) -> relu(x@w1+b1) @ w2 + b2 in one kernel, full resident blocks."""
    B, K = x.shape
    N1, N2 = w1.shape[1], w2.shape[1]
    x = x.astype(jnp.bfloat16)
    w1 = w1.astype(jnp.bfloat16)        # 5.75 MB -> 2.87 MB HBM read
    # NOTE: K=11232 has no 128-multiple divisor; the bf16 weight is ~2.9 MB so a
    # single resident block is kept instead of K-tiling.
    return pl.pallas_call(
        _mlp_kernel,
        out_shape=jax.ShapeDtypeStruct((B, N2), jnp.float32),
        grid=(1,),
        in_specs=[
            pl.BlockSpec((B, K), lambda i: (0, 0)),
            pl.BlockSpec((K, N1), lambda i: (0, 0)),
            pl.BlockSpec((1, N1), lambda i: (0, 0)),
            pl.BlockSpec((N1, N2), lambda i: (0, 0)),
            pl.BlockSpec((1, N2), lambda i: (0, 0)),
        ],
        out_specs=pl.BlockSpec((B, N2), lambda i: (0, 0)),
        compiler_params=pltpu.CompilerParams(
            dimension_semantics=("arbitrary",),
            vmem_limit_bytes=VMEM_LIMIT),
    )(x, w1, b1.reshape(1, N1).astype(jnp.float32),
      w2.astype(jnp.float32), b2.reshape(1, N2).astype(jnp.float32))


# --------------------------- host-side (XLA) glue ------------------------------

def _pooled_patches(x_nchw, Hp, Wp):
    """Dedup'd pool-phase im2col for conv(k=3,s=1) + maxpool(k=3,s=3).

    The 81 (py+dy, px+dx) taps only touch 25 distinct offsets (sy, sx) in
    [0,5)^2, so only those are materialized (25/9 x input bytes instead of 9x).
    Returns (B, 25*Cin, Hp*Wp) with
      P[b, (sy*5+sx)*Cin + ci, ph*Wp+pw] = x[b, ci, 3*ph+sy, 3*pw+sx]
    i.e. M = pooled pixel index on the (lane) last axis.
    """
    B, Cin, H, W = x_nchw.shape
    feats = []
    for sy in range(5):
        for sx in range(5):
            sl = x_nchw[:, :, sy:sy + 3 * Hp:3, sx:sx + 3 * Wp:3]   # (B,Cin,Hp,Wp)
            feats.append(sl.reshape(B, Cin, Hp * Wp))
    return jnp.concatenate(feats, axis=1)               # (B, 25*Cin, Hp*Wp)


def _conv_weight(w):
    """torch (Cout, Cin, 3, 3) -> (3, Cout, 3*Cin) bf16 with cols = dx*Cin + ci."""
    cout, cin = w.shape[0], w.shape[1]
    return jnp.transpose(w, (2, 0, 3, 1)).reshape(3, cout, 3 * cin).astype(jnp.bfloat16)


# ------------------------------- forward --------------------------------------

def cnn_forward(x_nchw, params):
    B, _, H, W = x_nchw.shape
    x = x_nchw.astype(jnp.bfloat16)                      # mem-bound operand -> bf16

    # stage 1: conv1 (1->16, k3, s1) + ReLU + MaxPool2d(3), fused in one kernel
    Hp1, Wp1 = (H - 2) // 3, (W - 2) // 3                # 83, 80
    p1 = _pooled_patches(x, Hp1, Wp1)                    # (B, 25, 6640) bf16
    y1 = conv_relu_pool(p1, _conv_weight(params["conv1_w"]), params["conv1_b"],
                        cin=1, tm=TM_STAGE1)             # (B, 16, 6640) bf16
    y1 = y1.reshape(B, 16, Hp1, Wp1)                     # NCHW, channel-major

    # stage 2: conv2 (16->16, k3, s1) + ReLU + MaxPool2d(3), fused
    Hp2, Wp2 = (Hp1 - 2) // 3, (Wp1 - 2) // 3            # 27, 26
    p2 = _pooled_patches(y1, Hp2, Wp2)                   # (B, 400, 702) bf16
    y2 = conv_relu_pool(p2, _conv_weight(params["conv2_w"]), params["conv2_b"],
                        cin=16, tm=TM_STAGE2)            # (B, 16, 702) bf16

    # channel-major output IS torch's (C, H, W) flatten order -> no transpose.
    feat = y2.reshape(B, 16 * Hp2 * Wp2)                 # (B, 11232)
    # TODO(synk): 'batch_norm'/'layer_norm' branches of self.norm not implemented
    #             (module default norm='no_norm' -> nn.Identity, reproduced here).

    # fc1 + ReLU + fc2 (fused kernel)
    return mlp(feat, params["fc1_w"], params["fc1_b"],
               params["fc2_w"], params["fc2_b"])         # (B, num_classes) f32


# --------------------------- deterministic params ------------------------------

def init_params(key, num_classes):
    ks = jax.random.split(key, 8)

    def u(k, shape, scale):
        return jax.random.uniform(k, shape, jnp.float32, -1.0, 1.0) * scale

    return {
        # torch layouts: conv weight (Cout, Cin, kh, kw); fc stored as (in, out) = W.T
        # (a transpose would be needed if loading a real torch state_dict).
        "conv1_w": u(ks[0], (16, 1, 3, 3), 1.0 / 3.0),
        "conv1_b": u(ks[1], (16,), 1.0 / 3.0),
        "conv2_w": u(ks[2], (16, 16, 3, 3), 1.0 / 12.0),
        "conv2_b": u(ks[3], (16,), 1.0 / 12.0),
        "fc1_w":   u(ks[4], (11232, 128), 0.01),
        "fc1_b":   u(ks[5], (128,), 0.01),
        "fc2_w":   u(ks[6], (128, num_classes), 0.09),
        "fc2_b":   u(ks[7], (num_classes,), 0.09),
    }


if __name__ == "__main__":
    key = jax.random.PRNGKey(0)
    k_x, k_p = jax.random.split(key)
    # Spatial size 251x242 is what fc1.in_features=11232 implies for this module:
    # 251->249->83->81->27, 242->240->80->78->26, 16*27*26 = 11232.
    x = jax.random.normal(k_x, (2, 1, 251, 242), jnp.float32)     # NCHW, like PyTorch
    params = init_params(k_p, num_classes=10)

    fwd = jax.jit(cnn_forward)
    out = jax.block_until_ready(fwd(x, params))
    assert out.shape == (2, 10) and out.dtype == jnp.float32
    print("KERNEL_OK")
</pallas_src>

<mosaic_0001>
module attributes {stable_mosaic.version = 11 : i64} {
  func.func @_conv_relu_pool_kernel(%arg0: i32, %arg1: i32, %arg2: memref<1x25x1664xbf16, #tpu.memory_space<vmem>>, %arg3: memref<3x16x3xbf16, #tpu.memory_space<vmem>>, %arg4: memref<16x1xf32, #tpu.memory_space<vmem>>, %arg5: memref<1x16x1664xbf16, #tpu.memory_space<vmem>>) attributes {dimension_semantics = [#tpu.dimension_semantics<parallel>, #tpu.dimension_semantics<parallel>], iteration_bounds = array<i64: 2, 4>, scalar_prefetch = 0 : i64, scratch_operands = 0 : i64, tpu.core_type = #tpu.core_type<tc>, window_params = [{transform_indices = @transform_0, window_bounds = array<i64: 1, 25, 1664>}, {pipeline_mode = #tpu.pipeline_mode<synchronous>, transform_indices = @transform_1, window_bounds = array<i64: 3, 16, 3>}, {pipeline_mode = #tpu.pipeline_mode<synchronous>, transform_indices = @transform_2, window_bounds = array<i64: 16, 1>}, {transform_indices = @transform_3, window_bounds = array<i64: 1, 16, 1664>}]} {
    %c0 = arith.constant 0 : index
    %c0_0 = arith.constant 0 : index
    %0 = vector.load %arg4[%c0, %c0_0] : memref<16x1xf32, #tpu.memory_space<vmem>>, vector<16x1xf32>
    %c0_1 = arith.constant 0 : index
    %c0_2 = arith.constant 0 : index
    %c0_3 = arith.constant 0 : index
    %1 = vector.load %arg3[%c0_1, %c0_2, %c0_3] : memref<3x16x3xbf16, #tpu.memory_space<vmem>>, vector<1x16x3xbf16>
    %2 = vector.shape_cast %1 : vector<1x16x3xbf16> to vector<16x3xbf16>
    %c0_4 = arith.constant 0 : index
    %c0_5 = arith.constant 0 : index
    %c0_6 = arith.constant 0 : index
    %3 = vector.load %arg2[%c0_4, %c0_5, %c0_6] : memref<1x25x1664xbf16, #tpu.memory_space<vmem>>, vector<1x3x1664xbf16>
    %4 = vector.shape_cast %3 : vector<1x3x1664xbf16> to vector<3x1664xbf16>
    %cst = arith.constant dense<0.000000e+00> : vector<16x1664xf32>
    %5 = tpu.matmul %2, %4, %cst {dimension_numbers = #tpu.dot_dimension_numbers<[1], [0], [0], [1], [0, 0, 1, 1], [], []>} : vector<16x3xbf16>, vector<3x1664xbf16>, vector<16x1664xf32> -> vector<16x1664xf32>
    %c1 = arith.constant 1 : index
    %c0_7 = arith.constant 0 : index
    %c0_8 = arith.constant 0 : index
    %6 = vector.load %arg3[%c1, %c0_7, %c0_8] : memref<3x16x3xbf16, #tpu.memory_space<vmem>>, vector<1x16x3xbf16>
    %7 = vector.shape_cast %6 : vector<1x16x3xbf16> to vector<16x3xbf16>
    %c0_9 = arith.constant 0 : index
    %c5 = arith.constant 5 : index
    %c0_10 = arith.constant 0 : index
    %8 = vector.load %arg2[%c0_9, %c5, %c0_10] : memref<1x25x1664xbf16, #tpu.memory_space<vmem>>, vector<1x3x1664xbf16>
    %9 = vector.shape_cast %8 : vector<1x3x1664xbf16> to vector<3x1664xbf16>
    %cst_11 = arith.constant dense<0.000000e+00> : vector<16x1664xf32>
    %10 = tpu.matmul %7, %9, %cst_11 {dimension_numbers = #tpu.dot_dimension_numbers<[1], [0], [0], [1], [0, 0, 1, 1], [], []>} : vector<16x3xbf16>, vector<3x1664xbf16>, vector<16x1664xf32> -> vector<16x1664xf32>
    %11 = arith.addf %5, %10 : vector<16x1664xf32>
    %c2 = arith.constant 2 : index
    %c0_12 = arith.constant 0 : index
    %c0_13 = arith.constant 0 : index
    %12 = vector.load %arg3[%c2, %c0_12, %c0_13] : memref<3x16x3xbf16, #tpu.memory_space<vmem>>, vector<1x16x3xbf16>
    %13 = vector.shape_cast %12 : vector<1x16x3xbf16> to vector<16x3xbf16>
    %c0_14 = arith.constant 0 : index
    %c10 = arith.constant 10 : index
    %c0_15 = arith.constant 0 : index
    %14 = vector.load %arg2[%c0_14, %c10, %c0_15] : memref<1x25x1664xbf16, #tpu.memory_space<vmem>>, vector<1x3x1664xbf16>
    %15 = vector.shape_cast %14 : vector<1x3x1664xbf16> to vector<3x1664xbf16>
    %cst_16 = arith.constant dense<0.000000e+00> : vector<16x1664xf32>
    %16 = tpu.matmul %13, %15, %cst_16 {dimension_numbers = #tpu.dot_dimension_numbers<[1], [0], [0], [1], [0, 0, 1, 1], [], []>} : vector<16x3xbf16>, vector<3x1664xbf16>, vector<16x1664xf32> -> vector<16x1664xf32>
    %17 = arith.addf %11, %16 : vector<16x1664xf32>
    %18 = vector.broadcast %0 : vector<16x1xf32> to vector<16x1664xf32>
    %19 = arith.addf %17, %18 : vector<16x1664xf32>
    %cst_17 = arith.constant 0.000000e+00 : f32
    %20 = vector.broadcast %cst_17 : f32 to vector<16x1664xf32>
    %21 = arith.maximumf %19, %20 : vector<16x1664xf32>
    %c0_18 = arith.constant 0 : index
    %c0_19 = arith.constant 0 : index
    %c0_20 = arith.constant 0 : index
    %22 = vector.load %arg3[%c0_18, %c0_19, %c0_20] : memref<3x16x3xbf16, #tpu.memory_space<vmem>>, vector<1x16x3xbf16>
    %23 = vector.shape_cast %22 : vector<1x16x3xbf16> to vector<16x3xbf16>
    %c0_21 = arith.constant 0 : index
    %c1_22 = arith.constant 1 : index
    %c0_23 = arith.constant 0 : index
    %24 = vector.load %arg2[%c0_21, %c1_22, %c0_23] : memref<1x25x1664xbf16, #tpu.memory_space<vmem>>, vector<1x3x1664xbf16>
    %25 = vector.shape_cast %24 : vector<1x3x1664xbf16> to vector<3x1664xbf16>
    %cst_24 = arith.constant dense<0.000000e+00> : vector<16x1664xf32>
    %26 = tpu.matmul %23, %25, %cst_24 {dimension_numbers = #tpu.dot_dimension_numbers<[1], [0], [0], [1], [0, 0, 1, 1], [], []>} : vector<16x3xbf16>, vector<3x1664xbf16>, vector<16x1664xf32> -> vector<16x1664xf32>
    %c1_25 = arith.constant 1 : index
    %c0_26 = arith.constant 0 : index
    %c0_27 = arith.constant 0 : index
    %27 = vector.load %arg3[%c1_25, %c0_26, %c0_27] : memref<3x16x3xbf16, #tpu.memory_space<vmem>>, vector<1x16x3xbf16>
    %28 = vector.shape_cast %27 : vector<1x16x3xbf16> to vector<16x3xbf16>
    %c0_28 = arith.constant 0 : index
    %c6 = arith.constant 6 : index
    %c0_29 = arith.constant 0 : index
    %29 = vector.load %arg2[%c0_28, %c6, %c0_29] : memref<1x25x1664xbf16, #tpu.memory_space<vmem>>, vector<1x3x1664xbf16>
    %30 = vector.shape_cast %29 : vector<1x3x1664xbf16> to vector<3x1664xbf16>
    %cst_30 = arith.constant dense<0.000000e+00> : vector<16x1664xf32>
    %31 = tpu.matmul %28, %30, %cst_30 {dimension_numbers = #tpu.dot_dimension_numbers<[1], [0], [0], [1], [0, 0, 1, 1], [], []>} : vector<16x3xbf16>, vector<3x1664xbf16>, vector<16x1664xf32> -> vector<16x1664xf32>
    %32 = arith.addf %26, %31 : vector<16x1664xf32>
    %c2_31 = arith.constant 2 : index
    %c0_32 = arith.constant 0 : index
    %c0_33 = arith.constant 0 : index
    %33 = vector.load %arg3[%c2_31, %c0_32, %c0_33] : memref<3x16x3xbf16, #tpu.memory_space<vmem>>, vector<1x16x3xbf16>
    %34 = vector.shape_cast %33 : vector<1x16x3xbf16> to vector<16x3xbf16>
    %c0_34 = arith.constant 0 : index
    %c11 = arith.constant 11 : index
    %c0_35 = arith.constant 0 : index
    %35 = vector.load %arg2[%c0_34, %c11, %c0_35] : memref<1x25x1664xbf16, #tpu.memory_space<vmem>>, vector<1x3x1664xbf16>
    %36 = vector.shape_cast %35 : vector<1x3x1664xbf16> to vector<3x1664xbf16>
    %cst_36 = arith.constant dense<0.000000e+00> : vector<16x1664xf32>
    %37 = tpu.matmul %34, %36, %cst_36 {dimension_numbers = #tpu.dot_dimension_numbers<[1], [0], [0], [1], [0, 0, 1, 1], [], []>} : vector<16x3xbf16>, vector<3x1664xbf16>, vector<16x1664xf32> -> vector<16x1664xf32>
    %38 = arith.addf %32, %37 : vector<16x1664xf32>
    %39 = vector.broadcast %0 : vector<16x1xf32> to vector<16x1664xf32>
    %40 = arith.addf %38, %39 : vector<16x1664xf32>
    %cst_37 = arith.constant 0.000000e+00 : f32
    %41 = vector.broadcast %cst_37 : f32 to vector<16x1664xf32>
    %42 = arith.maximumf %40, %41 : vector<16x1664xf32>
    %43 = arith.maximumf %21, %42 : vector<16x1664xf32>
    %c0_38 = arith.constant 0 : index
    %c0_39 = arith.constant 0 : index
    %c0_40 = arith.constant 0 : index
    %44 = vector.load %arg3[%c0_38, %c0_39, %c0_40] : memref<3x16x3xbf16, #tpu.memory_space<vmem>>, vector<1x16x3xbf16>
    %45 = vector.shape_cast %44 : vector<1x16x3xbf16> to vector<16x3xbf16>
    %c0_41 = arith.constant 0 : index
    %c2_42 = arith.constant 2 : index
    %c0_43 = arith.constant 0 : index
    %46 = vector.load %arg2[%c0_41, %c2_42, %c0_43] : memref<1x25x1664xbf16, #tpu.memory_space<vmem>>, vector<1x3x1664xbf16>
    %47 = vector.shape_cast %46 : vector<1x3x1664xbf16> to vector<3x1664xbf16>
    %cst_44 = arith.constant dense<0.000000e+00> : vector<16x1664xf32>
    %48 = tpu.matmul %45, %47, %cst_44 {dimension_numbers = #tpu.dot_dimension_numbers<[1], [0], [0], [1], [0, 0, 1, 1], [], []>} : vector<16x3xbf16>, vector<3x1664xbf16>, vector<16x1664xf32> -> vector<16x1664xf32>
    %c1_45 = arith.constant 1 : index
    %c0_46 = arith.constant 0 : index
    %c0_47 = arith.constant 0 : index
    %49 = vector.load %arg3[%c1_45, %c0_46, %c0_47] : memref<3x16x3xbf16, #tpu.memory_space<vmem>>, vector<1x16x3xbf16>
    %50 = vector.shape_cast %49 : vector<1x16x3xbf16> to vector<16x3xbf16>
    %c0_48 = arith.constant 0 : index
    %c7 = arith.constant 7 : index
    %c0_49 = arith.constant 0 : index
    %51 = vector.load %arg2[%c0_48, %c7, %c0_49] : memref<1x25x1664xbf16, #tpu.memory_space<vmem>>, vector<1x3x1664xbf16>
    %52 = vector.shape_cast %51 : vector<1x3x1664xbf16> to vector<3x1664xbf16>
    %cst_50 = arith.constant dense<0.000000e+00> : vector<16x1664xf32>
    %53 = tpu.matmul %50, %52, %cst_50 {dimension_numbers = #tpu.dot_dimension_numbers<[1], [0], [0], [1], [0, 0, 1, 1], [], []>} : vector<16x3xbf16>, vector<3x1664xbf16>, vector<16x1664xf32> -> vector<16x1664xf32>
    %54 = arith.addf %48, %53 : vector<16x1664xf32>
    %c2_51 = arith.constant 2 : index
    %c0_52 = arith.constant 0 : index
    %c0_53 = arith.constant 0 : index
    %55 = vector.load %arg3[%c2_51, %c0_52, %c0_53] : memref<3x16x3xbf16, #tpu.memory_space<vmem>>, vector<1x16x3xbf16>
    %56 = vector.shape_cast %55 : vector<1x16x3xbf16> to vector<16x3xbf16>
    %c0_54 = arith.constant 0 : index
    %c12 = arith.constant 12 : index
    %c0_55 = arith.constant 0 : index
    %57 = vector.load %arg2[%c0_54, %c12, %c0_55] : memref<1x25x1664xbf16, #tpu.memory_space<vmem>>, vector<1x3x1664xbf16>
    %58 = vector.shape_cast %57 : vector<1x3x1664xbf16> to vector<3x1664xbf16>
    %cst_56 = arith.constant dense<0.000000e+00> : vector<16x1664xf32>
    %59 = tpu.matmul %56, %58, %cst_56 {dimension_numbers = #tpu.dot_dimension_numbers<[1], [0], [0], [1], [0, 0, 1, 1], [], []>} : vector<16x3xbf16>, vector<3x1664xbf16>, vector<16x1664xf32> -> vector<16x1664xf32>
    %60 = arith.addf %54, %59 : vector<16x1664xf32>
    %61 = vector.broadcast %0 : vector<16x1xf32> to vector<16x1664xf32>
    %62 = arith.addf %60, %61 : vector<16x1664xf32>
    %cst_57 = arith.constant 0.000000e+00 : f32
    %63 = vector.broadcast %cst_57 : f32 to vector<16x1664xf32>
    %64 = arith.maximumf %62, %63 : vector<16x1664xf32>
    %65 = arith.maximumf %43, %64 : vector<16x1664xf32>
    %c0_58 = arith.constant 0 : index
    %c0_59 = arith.constant 0 : index
    %c0_60 = arith.constant 0 : index
    %66 = vector.load %arg3[%c0_58, %c0_59, %c0_60] : memref<3x16x3xbf16, #tpu.memory_space<vmem>>, vector<1x16x3xbf16>
    %67 = vector.shape_cast %66 : vector<1x16x3xbf16> to vector<16x3xbf16>
    %c0_61 = arith.constant 0 : index
    %c5_62 = arith.constant 5 : index
    %c0_63 = arith.constant 0 : index
    %68 = vector.load %arg2[%c0_61, %c5_62, %c0_63] : memref<1x25x1664xbf16, #tpu.memory_space<vmem>>, vector<1x3x1664xbf16>
    %69 = vector.shape_cast %68 : vector<1x3x1664xbf16> to vector<3x1664xbf16>
    %cst_64 = arith.constant dense<0.000000e+00> : vector<16x1664xf32>
    %70 = tpu.matmul %67, %69, %cst_64 {dimension_numbers = #tpu.dot_dimension_numbers<[1], [0], [0], [1], [0, 0, 1, 1], [], []>} : vector<16x3xbf16>, vector<3x1664xbf16>, vector<16x1664xf32> -> vector<16x1664xf32>
    %c1_65 = arith.constant 1 : index
    %c0_66 = arith.constant 0 : index
    %c0_67 = arith.constant 0 : index
    %71 = vector.load %arg3[%c1_65, %c0_66, %c0_67] : memref<3x16x3xbf16, #tpu.memory_space<vmem>>, vector<1x16x3xbf16>
    %72 = vector.shape_cast %71 : vector<1x16x3xbf16> to vector<16x3xbf16>
    %c0_68 = arith.constant 0 : index
    %c10_69 = arith.constant 10 : index
    %c0_70 = arith.constant 0 : index
    %73 = vector.load %arg2[%c0_68, %c10_69, %c0_70] : memref<1x25x1664xbf16, #tpu.memory_space<vmem>>, vector<1x3x1664xbf16>
    %74 = vector.shape_cast %73 : vector<1x3x1664xbf16> to vector<3x1664xbf16>
    %cst_71 = arith.constant dense<0.000000e+00> : vector<16x1664xf32>
    %75 = tpu.matmul %72, %74, %cst_71 {dimension_numbers = #tpu.dot_dimension_numbers<[1], [0], [0], [1], [0, 0, 1, 1], [], []>} : vector<16x3xbf16>, vector<3x1664xbf16>, vector<16x1664xf32> -> vector<16x1664xf32>
    %76 = arith.addf %70, %75 : vector<16x1664xf32>
    %c2_72 = arith.constant 2 : index
    %c0_73 = arith.constant 0 : index
    %c0_74 = arith.constant 0 : index
    %77 = vector.load %arg3[%c2_72, %c0_73, %c0_74] : memref<3x16x3xbf16, #tpu.memory_space<vmem>>, vector<1x16x3xbf16>
    %78 = vector.shape_cast %77 : vector<1x16x3xbf16> to vector<16x3xbf16>
    %c0_75 = arith.constant 0 : index
    %c15 = arith.constant 15 : index
    %c0_76 = arith.constant 0 : index
    %79 = vector.load %arg2[%c0_75, %c15, %c0_76] : memref<1x25x1664xbf16, #tpu.memory_space<vmem>>, vector<1x3x1664xbf16>
    %80 = vector.shape_cast %79 : vector<1x3x1664xbf16> to vector<3x1664xbf16>
    %cst_77 = arith.constant dense<0.000000e+00> : vector<16x1664xf32>
    %81 = tpu.matmul %78, %80, %cst_77 {dimension_numbers = #tpu.dot_dimension_numbers<[1], [0], [0], [1], [0, 0, 1, 1], [], []>} : vector<16x3xbf16>, vector<3x1664xbf16>, vector<16x1664xf32> -> vector<16x1664xf32>
    %82 = arith.addf %76, %81 : vector<16x1664xf32>
    %83 = vector.broadcast %0 : vector<16x1xf32> to vector<16x1664xf32>
    %84 = arith.addf %82, %83 : vector<16x1664xf32>
    %cst_78 = arith.constant 0.000000e+00 : f32
    %85 = vector.broadcast %cst_78 : f32 to vector<16x1664xf32>
    %86 = arith.maximumf %84, %85 : vector<16x1664xf32>
    %87 = arith.maximumf %65, %86 : vector<16x1664xf32>
    %c0_79 = arith.constant 0 : index
    %c0_80 = arith.constant 0 : index
    %c0_81 = arith.constant 0 : index
    %88 = vector.load %arg3[%c0_79, %c0_80, %c0_81] : memref<3x16x3xbf16, #tpu.memory_space<vmem>>, vector<1x16x3xbf16>
    %89 = vector.shape_cast %88 : vector<1x16x3xbf16> to vector<16x3xbf16>
    %c0_82 = arith.constant 0 : index
    %c6_83 = arith.constant 6 : index
    %c0_84 = arith.constant 0 : index
    %90 = vector.load %arg2[%c0_82, %c6_83, %c0_84] : memref<1x25x1664xbf16, #tpu.memory_space<vmem>>, vector<1x3x1664xbf16>
    %91 = vector.shape_cast %90 : vector<1x3x1664xbf16> to vector<3x1664xbf16>
    %cst_85 = arith.constant dense<0.000000e+00> : vector<16x1664xf32>
    %92 = tpu.matmul %89, %91, %cst_85 {dimension_numbers = #tpu.dot_dimension_numbers<[1], [0], [0], [1], [0, 0, 1, 1], [], []>} : vector<16x3xbf16>, vector<3x1664xbf16>, vector<16x1664xf32> -> vector<16x1664xf32>
    %c1_86 = arith.constant 1 : index
    %c0_87 = arith.constant 0 : index
    %c0_88 = arith.constant 0 : index
    %93 = vector.load %arg3[%c1_86, %c0_87, %c0_88] : memref<3x16x3xbf16, #tpu.memory_space<vmem>>, vector<1x16x3xbf16>
    %94 = vector.shape_cast %93 : vector<1x16x3xbf16> to vector<16x3xbf16>
    %c0_89 = arith.constant 0 : index
    %c11_90 = arith.constant 11 : index
    %c0_91 = arith.constant 0 : index
    %95 = vector.load %arg2[%c0_89, %c11_90, %c0_91] : memref<1x25x1664xbf16, #tpu.memory_space<vmem>>, vector<1x3x1664xbf16>
    %96 = vector.shape_cast %95 : vector<1x3x1664xbf16> to vector<3x1664xbf16>
    %cst_92 = arith.constant dense<0.000000e+00> : vector<16x1664xf32>
    %97 = tpu.matmul %94, %96, %cst_92 {dimension_numbers = #tpu.dot_dimension_numbers<[1], [0], [0], [1], [0, 0, 1, 1], [], []>} : vector<16x3xbf16>, vector<3x1664xbf16>, vector<16x1664xf32> -> vector<16x1664xf32>
    %98 = arith.addf %92, %97 : vector<16x1664xf32>
    %c2_93 = arith.constant 2 : index
    %c0_94 = arith.constant 0 : index
    %c0_95 = arith.constant 0 : index
    %99 = vector.load %arg3[%c2_93, %c0_94, %c0_95] : memref<3x16x3xbf16, #tpu.memory_space<vmem>>, vector<1x16x3xbf16>
    %100 = vector.shape_cast %99 : vector<1x16x3xbf16> to vector<16x3xbf16>
    %c0_96 = arith.constant 0 : index
    %c16 = arith.constant 16 : index
    %c0_97 = arith.constant 0 : index
    %101 = vector.load %arg2[%c0_96, %c16, %c0_97] : memref<1x25x1664xbf16, #tpu.memory_space<vmem>>, vector<1x3x1664xbf16>
    %102 = vector.shape_cast %101 : vector<1x3x1664xbf16> to vector<3x1664xbf16>
    %cst_98 = arith.constant dense<0.000000e+00> : vector<16x1664xf32>
    %103 = tpu.matmul %100, %102, %cst_98 {dimension_numbers = #tpu.dot_dimension_numbers<[1], [0], [0], [1], [0, 0, 1, 1], [], []>} : vector<16x3xbf16>, vector<3x1664xbf16>, vector<16x1664xf32> -> vector<16x1664xf32>
    %104 = arith.addf %98, %103 : vector<16x1664xf32>
    %105 = vector.broadcast %0 : vector<16x1xf32> to vector<16x1664xf32>
    %106 = arith.addf %104, %105 : vector<16x1664xf32>
    %cst_99 = arith.constant 0.000000e+00 : f32
    %107 = vector.broadcast %cst_99 : f32 to vector<16x1664xf32>
    %108 = arith.maximumf %106, %107 : vector<16x1664xf32>
    %109 = arith.maximumf %87, %108 : vector<16x1664xf32>
    %c0_100 = arith.constant 0 : index
    %c0_101 = arith.constant 0 : index
    %c0_102 = arith.constant 0 : index
    %110 = vector.load %arg3[%c0_100, %c0_101, %c0_102] : memref<3x16x3xbf16, #tpu.memory_space<vmem>>, vector<1x16x3xbf16>
    %111 = vector.shape_cast %110 : vector<1x16x3xbf16> to vector<16x3xbf16>
    %c0_103 = arith.constant 0 : index
    %c7_104 = arith.constant 7 : index
    %c0_105 = arith.constant 0 : index
    %112 = vector.load %arg2[%c0_103, %c7_104, %c0_105] : memref<1x25x1664xbf16, #tpu.memory_space<vmem>>, vector<1x3x1664xbf16>
    %113 = vector.shape_cast %112 : vector<1x3x1664xbf16> to vector<3x1664xbf16>
    %cst_106 = arith.constant dense<0.000000e+00> : vector<16x1664xf32>
    %114 = tpu.matmul %111, %113, %cst_106 {dimension_numbers = #tpu.dot_dimension_numbers<[1], [0], [0], [1], [0, 0, 1, 1], [], []>} : vector<16x3xbf16>, vector<3x1664xbf16>, vector<16x1664xf32> -> vector<16x1664xf32>
    %c1_107 = arith.constant 1 : index
    %c0_108 = arith.constant 0 : index
    %c0_109 = arith.constant 0 : index
    %115 = vector.load %arg3[%c1_107, %c0_108, %c0_109] : memref<3x16x3xbf16, #tpu.memory_space<vmem>>, vector<1x16x3xbf16>
    %116 = vector.shape_cast %115 : vector<1x16x3xbf16> to vector<16x3xbf16>
    %c0_110 = arith.constant 0 : index
    %c12_111 = arith.constant 12 : index
    %c0_112 = arith.constant 0 : index
    %117 = vector.load %arg2[%c0_110, %c12_111, %c0_112] : memref<1x25x1664xbf16, #tpu.memory_space<vmem>>, vector<1x3x1664xbf16>
    %118 = vector.shape_cast %117 : vector<1x3x1664xbf16> to vector<3x1664xbf16>
    %cst_113 = arith.constant dense<0.000000e+00> : vector<16x1664xf32>
    %119 = tpu.matmul %116, %118, %cst_113 {dimension_numbers = #tpu.dot_dimension_numbers<[1], [0], [0], [1], [0, 0, 1, 1], [], []>} : vector<16x3xbf16>, vector<3x1664xbf16>, vector<16x1664xf32> -> vector<16x1664xf32>
    %120 = arith.addf %114, %119 : vector<16x1664xf32>
    %c2_114 = arith.constant 2 : index
    %c0_115 = arith.constant 0 : index
    %c0_116 = arith.constant 0 : index
    %121 = vector.load %arg3[%c2_114, %c0_115, %c0_116] : memref<3x16x3xbf16, #tpu.memory_space<vmem>>, vector<1x16x3xbf16>
    %122 = vector.shape_cast %121 : vector<1x16x3xbf16> to vector<16x3xbf16>
    %c0_117 = arith.constant 0 : index
    %c17 = arith.constant 17 : index
    %c0_118 = arith.constant 0 : index
    %123 = vector.load %arg2[%c0_117, %c17, %c0_118] : memref<1x25x1664xbf16, #tpu.memory_space<vmem>>, vector<1x3x1664xbf16>
    %124 = vector.shape_cast %123 : vector<1x3x1664xbf16> to vector<3x1664xbf16>
    %cst_119 = arith.constant dense<0.000000e+00> : vector<16x1664xf32>
    %125 = tpu.matmul %122, %124, %cst_119 {dimension_numbers = #tpu.dot_dimension_numbers<[1], [0], [0], [1], [0, 0, 1, 1], [], []>} : vector<16x3xbf16>, vector<3x1664xbf16>, vector<16x1664xf32> -> vector<16x1664xf32>
    %126 = arith.addf %120, %125 : vector<16x1664xf32>
    %127 = vector.broadcast %0 : vector<16x1xf32> to vector<16x1664xf32>
    %128 = arith.addf %126, %127 : vector<16x1664xf32>
    %cst_120 = arith.constant 0.000000e+00 : f32
    %129 = vector.broadcast %cst_120 : f32 to vector<16x1664xf32>
    %130 = arith.maximumf %128, %129 : vector<16x1664xf32>
    %131 = arith.maximumf %109, %130 : vector<16x1664xf32>
    %c0_121 = arith.constant 0 : index
    %c0_122 = arith.constant 0 : index
    %c0_123 = arith.constant 0 : index
    %132 = vector.load %arg3[%c0_121, %c0_122, %c0_123] : memref<3x16x3xbf16, #tpu.memory_space<vmem>>, vector<1x16x3xbf16>
    %133 = vector.shape_cast %132 : vector<1x16x3xbf16> to vector<16x3xbf16>
    %c0_124 = arith.constant 0 : index
    %c10_125 = arith.constant 10 : index
    %c0_126 = arith.constant 0 : index
    %134 = vector.load %arg2[%c0_124, %c10_125, %c0_126] : memref<1x25x1664xbf16, #tpu.memory_space<vmem>>, vector<1x3x1664xbf16>
    %135 = vector.shape_cast %134 : vector<1x3x1664xbf16> to vector<3x1664xbf16>
    %cst_127 = arith.constant dense<0.000000e+00> : vector<16x1664xf32>
    %136 = tpu.matmul %133, %135, %cst_127 {dimension_numbers = #tpu.dot_dimension_numbers<[1], [0], [0], [1], [0, 0, 1, 1], [], []>} : vector<16x3xbf16>, vector<3x1664xbf16>, vector<16x1664xf32> -> vector<16x1664xf32>
    %c1_128 = arith.constant 1 : index
    %c0_129 = arith.constant 0 : index
    %c0_130 = arith.constant 0 : index
    %137 = vector.load %arg3[%c1_128, %c0_129, %c0_130] : memref<3x16x3xbf16, #tpu.memory_space<vmem>>, vector<1x16x3xbf16>
    %138 = vector.shape_cast %137 : vector<1x16x3xbf16> to vector<16x3xbf16>
    %c0_131 = arith.constant 0 : index
    %c15_132 = arith.constant 15 : index
    %c0_133 = arith.constant 0 : index
    %139 = vector.load %arg2[%c0_131, %c15_132, %c0_133] : memref<1x25x1664xbf16, #tpu.memory_space<vmem>>, vector<1x3x1664xbf16>
    %140 = vector.shape_cast %139 : vector<1x3x1664xbf16> to vector<3x1664xbf16>
    %cst_134 = arith.constant dense<0.000000e+00> : vector<16x1664xf32>
    %141 = tpu.matmul %138, %140, %cst_134 {dimension_numbers = #tpu.dot_dimension_numbers<[1], [0], [0], [1], [0, 0, 1, 1], [], []>} : vector<16x3xbf16>, vector<3x1664xbf16>, vector<16x1664xf32> -> vector<16x1664xf32>
    %142 = arith.addf %136, %141 : vector<16x1664xf32>
    %c2_135 = arith.constant 2 : index
    %c0_136 = arith.constant 0 : index
    %c0_137 = arith.constant 0 : index
    %143 = vector.load %arg3[%c2_135, %c0_136, %c0_137] : memref<3x16x3xbf16, #tpu.memory_space<vmem>>, vector<1x16x3xbf16>
    %144 = vector.shape_cast %143 : vector<1x16x3xbf16> to vector<16x3xbf16>
    %c0_138 = arith.constant 0 : index
    %c20 = arith.constant 20 : index
    %c0_139 = arith.constant 0 : index
    %145 = vector.load %arg2[%c0_138, %c20, %c0_139] : memref<1x25x1664xbf16, #tpu.memory_space<vmem>>, vector<1x3x1664xbf16>
    %146 = vector.shape_cast %145 : vector<1x3x1664xbf16> to vector<3x1664xbf16>
    %cst_140 = arith.constant dense<0.000000e+00> : vector<16x1664xf32>
    %147 = tpu.matmul %144, %146, %cst_140 {dimension_numbers = #tpu.dot_dimension_numbers<[1], [0], [0], [1], [0, 0, 1, 1], [], []>} : vector<16x3xbf16>, vector<3x1664xbf16>, vector<16x1664xf32> -> vector<16x1664xf32>
    %148 = arith.addf %142, %147 : vector<16x1664xf32>
    %149 = vector.broadcast %0 : vector<16x1xf32> to vector<16x1664xf32>
    %150 = arith.addf %148, %149 : vector<16x1664xf32>
    %cst_141 = arith.constant 0.000000e+00 : f32
    %151 = vector.broadcast %cst_141 : f32 to vector<16x1664xf32>
    %152 = arith.maximumf %150, %151 : vector<16x1664xf32>
    %153 = arith.maximumf %131, %152 : vector<16x1664xf32>
    %c0_142 = arith.constant 0 : index
    %c0_143 = arith.constant 0 : index
    %c0_144 = arith.constant 0 : index
    %154 = vector.load %arg3[%c0_142, %c0_143, %c0_144] : memref<3x16x3xbf16, #tpu.memory_space<vmem>>, vector<1x16x3xbf16>
    %155 = vector.shape_cast %154 : vector<1x16x3xbf16> to vector<16x3xbf16>
    %c0_145 = arith.constant 0 : index
    %c11_146 = arith.constant 11 : index
    %c0_147 = arith.constant 0 : index
    %156 = vector.load %arg2[%c0_145, %c11_146, %c0_147] : memref<1x25x1664xbf16, #tpu.memory_space<vmem>>, vector<1x3x1664xbf16>
    %157 = vector.shape_cast %156 : vector<1x3x1664xbf16> to vector<3x1664xbf16>
    %cst_148 = arith.constant dense<0.000000e+00> : vector<16x1664xf32>
    %158 = tpu.matmul %155, %157, %cst_148 {dimension_numbers = #tpu.dot_dimension_numbers<[1], [0], [0], [1], [0, 0, 1, 1], [], []>} : vector<16x3xbf16>, vector<3x1664xbf16>, vector<16x1664xf32> -> vector<16x1664xf32>
    %c1_149 = arith.constant 1 : index
    %c0_150 = arith.constant 0 : index
    %c0_151 = arith.constant 0 : index
    %159 = vector.load %arg3[%c1_149, %c0_150, %c0_151] : memref<3x16x3xbf16, #tpu.memory_space<vmem>>, vector<1x16x3xbf16>
    %160 = vector.shape_cast %159 : vector<1x16x3xbf16> to vector<16x3xbf16>
    %c0_152 = arith.constant 0 : index
    %c16_153 = arith.constant 16 : index
    %c0_154 = arith.constant 0 : index
    %161 = vector.load %arg2[%c0_152, %c16_153, %c0_154] : memref<1x25x1664xbf16, #tpu.memory_space<vmem>>, vector<1x3x1664xbf16>
    %162 = vector.shape_cast %161 : vector<1x3x1664xbf16> to vector<3x1664xbf16>
    %cst_155 = arith.constant dense<0.000000e+00> : vector<16x1664xf32>
    %163 = tpu.matmul %160, %162, %cst_155 {dimension_numbers = #tpu.dot_dimension_numbers<[1], [0], [0], [1], [0, 0, 1, 1], [], []>} : vector<16x3xbf16>, vector<3x1664xbf16>, vector<16x1664xf32> -> vector<16x1664xf32>
    %164 = arith.addf %158, %163 : vector<16x1664xf32>
    %c2_156 = arith.constant 2 : index
    %c0_157 = arith.constant 0 : index
    %c0_158 = arith.constant 0 : index
    %165 = vector.load %arg3[%c2_156, %c0_157, %c0_158] : memref<3x16x3xbf16, #tpu.memory_space<vmem>>, vector<1x16x3xbf16>
    %166 = vector.shape_cast %165 : vector<1x16x3xbf16> to vector<16x3xbf16>
    %c0_159 = arith.constant 0 : index
    %c21 = arith.constant 21 : index
    %c0_160 = arith.constant 0 : index
    %167 = vector.load %arg2[%c0_159, %c21, %c0_160] : memref<1x25x1664xbf16, #tpu.memory_space<vmem>>, vector<1x3x1664xbf16>
    %168 = vector.shape_cast %167 : vector<1x3x1664xbf16> to vector<3x1664xbf16>
    %cst_161 = arith.constant dense<0.000000e+00> : vector<16x1664xf32>
    %169 = tpu.matmul %166, %168, %cst_161 {dimension_numbers = #tpu.dot_dimension_numbers<[1], [0], [0], [1], [0, 0, 1, 1], [], []>} : vector<16x3xbf16>, vector<3x1664xbf16>, vector<16x1664xf32> -> vector<16x1664xf32>
    %170 = arith.addf %164, %169 : vector<16x1664xf32>
    %171 = vector.broadcast %0 : vector<16x1xf32> to vector<16x1664xf32>
    %172 = arith.addf %170, %171 : vector<16x1664xf32>
    %cst_162 = arith.constant 0.000000e+00 : f32
    %173 = vector.broadcast %cst_162 : f32 to vector<16x1664xf32>
    %174 = arith.maximumf %172, %173 : vector<16x1664xf32>
    %175 = arith.maximumf %153, %174 : vector<16x1664xf32>
    %c0_163 = arith.constant 0 : index
    %c0_164 = arith.constant 0 : index
    %c0_165 = arith.constant 0 : index
    %176 = vector.load %arg3[%c0_163, %c0_164, %c0_165] : memref<3x16x3xbf16, #tpu.memory_space<vmem>>, vector<1x16x3xbf16>
    %177 = vector.shape_cast %176 : vector<1x16x3xbf16> to vector<16x3xbf16>
    %c0_166 = arith.constant 0 : index
    %c12_167 = arith.constant 12 : index
    %c0_168 = arith.constant 0 : index
    %178 = vector.load %arg2[%c0_166, %c12_167, %c0_168] : memref<1x25x1664xbf16, #tpu.memory_space<vmem>>, vector<1x3x1664xbf16>
    %179 = vector.shape_cast %178 : vector<1x3x1664xbf16> to vector<3x1664xbf16>
    %cst_169 = arith.constant dense<0.000000e+00> : vector<16x1664xf32>
    %180 = tpu.matmul %177, %179, %cst_169 {dimension_numbers = #tpu.dot_dimension_numbers<[1], [0], [0], [1], [0, 0, 1, 1], [], []>} : vector<16x3xbf16>, vector<3x1664xbf16>, vector<16x1664xf32> -> vector<16x1664xf32>
    %c1_170 = arith.constant 1 : index
    %c0_171 = arith.constant 0 : index
    %c0_172 = arith.constant 0 : index
    %181 = vector.load %arg3[%c1_170, %c0_171, %c0_172] : memref<3x16x3xbf16, #tpu.memory_space<vmem>>, vector<1x16x3xbf16>
    %182 = vector.shape_cast %181 : vector<1x16x3xbf16> to vector<16x3xbf16>
    %c0_173 = arith.constant 0 : index
    %c17_174 = arith.constant 17 : index
    %c0_175 = arith.constant 0 : index
    %183 = vector.load %arg2[%c0_173, %c17_174, %c0_175] : memref<1x25x1664xbf16, #tpu.memory_space<vmem>>, vector<1x3x1664xbf16>
    %184 = vector.shape_cast %183 : vector<1x3x1664xbf16> to vector<3x1664xbf16>
    %cst_176 = arith.constant dense<0.000000e+00> : vector<16x1664xf32>
    %185 = tpu.matmul %182, %184, %cst_176 {dimension_numbers = #tpu.dot_dimension_numbers<[1], [0], [0], [1], [0, 0, 1, 1], [], []>} : vector<16x3xbf16>, vector<3x1664xbf16>, vector<16x1664xf32> -> vector<16x1664xf32>
    %186 = arith.addf %180, %185 : vector<16x1664xf32>
    %c2_177 = arith.constant 2 : index
    %c0_178 = arith.constant 0 : index
    %c0_179 = arith.constant 0 : index
    %187 = vector.load %arg3[%c2_177, %c0_178, %c0_179] : memref<3x16x3xbf16, #tpu.memory_space<vmem>>, vector<1x16x3xbf16>
    %188 = vector.shape_cast %187 : vector<1x16x3xbf16> to vector<16x3xbf16>
    %c0_180 = arith.constant 0 : index
    %c22 = arith.constant 22 : index
    %c0_181 = arith.constant 0 : index
    %189 = vector.load %arg2[%c0_180, %c22, %c0_181] : memref<1x25x1664xbf16, #tpu.memory_space<vmem>>, vector<1x3x1664xbf16>
    %190 = vector.shape_cast %189 : vector<1x3x1664xbf16> to vector<3x1664xbf16>
    %cst_182 = arith.constant dense<0.000000e+00> : vector<16x1664xf32>
    %191 = tpu.matmul %188, %190, %cst_182 {dimension_numbers = #tpu.dot_dimension_numbers<[1], [0], [0], [1], [0, 0, 1, 1], [], []>} : vector<16x3xbf16>, vector<3x1664xbf16>, vector<16x1664xf32> -> vector<16x1664xf32>
    %192 = arith.addf %186, %191 : vector<16x1664xf32>
    %193 = vector.broadcast %0 : vector<16x1xf32> to vector<16x1664xf32>
    %194 = arith.addf %192, %193 : vector<16x1664xf32>
    %cst_183 = arith.constant 0.000000e+00 : f32
    %195 = vector.broadcast %cst_183 : f32 to vector<16x1664xf32>
    %196 = arith.maximumf %194, %195 : vector<16x1664xf32>
    %197 = arith.maximumf %175, %196 : vector<16x1664xf32>
    %198 = arith.truncf %197 : vector<16x1664xf32> to vector<16x1664xbf16>
    %c0_184 = arith.constant 0 : index
    %c0_185 = arith.constant 0 : index
    %c0_186 = arith.constant 0 : index
    %199 = vector.load %arg5[%c0_184, %c0_185, %c0_186] : memref<1x16x1664xbf16, #tpu.memory_space<vmem>>, vector<1x16x1664xbf16>
    %200 = vector.shape_cast %199 : vector<1x16x1664xbf16> to vector<16x1664xbf16>
    %201 = vector.shape_cast %198 : vector<16x1664xbf16> to vector<1x16x1664xbf16>
    tpu.vector_store %arg5[%c0_184, %c0_185, %c0_186], %201 {strides = array<i32>} : memref<1x16x1664xbf16, #tpu.memory_space<vmem>>, vector<1x16x1664xbf16>,
    return
  }
  func.func @transform_0(%arg0: i32, %arg1: i32) -> (i32, i32, i32) {
    %c0_i32 = arith.constant 0 : i32
    %c0_i32_0 = arith.constant 0 : i32
    return %arg0, %c0_i32, %arg1 : i32, i32, i32
  }
  func.func @transform_1(%arg0: i32, %arg1: i32) -> (i32, i32, i32) {
    %c0_i32 = arith.constant 0 : i32
    %c0_i32_0 = arith.constant 0 : i32
    %c0_i32_1 = arith.constant 0 : i32
    %c0_i32_2 = arith.constant 0 : i32
    return %c0_i32, %c0_i32_0, %c0_i32_1 : i32, i32, i32
  }
  func.func @transform_2(%arg0: i32, %arg1: i32) -> (i32, i32) {
    %c0_i32 = arith.constant 0 : i32
    %c0_i32_0 = arith.constant 0 : i32
    %c0_i32_1 = arith.constant 0 : i32
    return %c0_i32, %c0_i32_0 : i32, i32
  }
  func.func @transform_3(%arg0: i32, %arg1: i32) -> (i32, i32, i32) {
    %c0_i32 = arith.constant 0 : i32
    %c0_i32_0 = arith.constant 0 : i32
    return %arg0, %c0_i32, %arg1 : i32, i32, i32
  }
}

module attributes {stable_mosaic.version = 11 : i64} {
  func.func @_conv_relu_pool_kernel(%arg0: i32, %arg1: i32, %arg2: memref<1x400x384xbf16, #tpu.memory_space<vmem>>, %arg3: memref<3x16x48xbf16, #tpu.memory_space<vmem>>, %arg4: memref<16x1xf32, #tpu.memory_space<vmem>>, %arg5: memref<1x16x384xbf16, #tpu.memory_space<vmem>>) attributes {dimension_semantics = [#tpu.dimension_semantics<parallel>, #tpu.dimension_semantics<parallel>], iteration_bounds = array<i64: 2, 2>, scalar_prefetch = 0 : i64, scratch_operands = 0 : i64, tpu.core_type = #tpu.core_type<tc>, window_params = [{transform_indices = @transform_0, window_bounds = array<i64: 1, 400, 384>}, {pipeline_mode = #tpu.pipeline_mode<synchronous>, transform_indices = @transform_1, window_bounds = array<i64: 3, 16, 48>}, {pipeline_mode = #tpu.pipeline_mode<synchronous>, transform_indices = @transform_2, window_bounds = array<i64: 16, 1>}, {transform_indices = @transform_3, window_bounds = array<i64: 1, 16, 384>}]} {
    %c0 = arith.constant 0 : index
    %c0_0 = arith.constant 0 : index
    %0 = vector.load %arg4[%c0, %c0_0] : memref<16x1xf32, #tpu.memory_space<vmem>>, vector<16x1xf32>
    %c0_1 = arith.constant 0 : index
    %c0_2 = arith.constant 0 : index
    %c0_3 = arith.constant 0 : index
    %1 = vector.load %arg3[%c0_1, %c0_2, %c0_3] : memref<3x16x48xbf16, #tpu.memory_space<vmem>>, vector<1x16x48xbf16>
    %2 = vector.shape_cast %1 : vector<1x16x48xbf16> to vector<16x48xbf16>
    %c0_4 = arith.constant 0 : index
    %c0_5 = arith.constant 0 : index
    %c0_6 = arith.constant 0 : index
    %3 = vector.load %arg2[%c0_4, %c0_5, %c0_6] : memref<1x400x384xbf16, #tpu.memory_space<vmem>>, vector<1x48x384xbf16>
    %4 = vector.shape_cast %3 : vector<1x48x384xbf16> to vector<48x384xbf16>
    %cst = arith.constant dense<0.000000e+00> : vector<16x384xf32>
    %5 = tpu.matmul %2, %4, %cst {dimension_numbers = #tpu.dot_dimension_numbers<[1], [0], [0], [1], [0, 0, 1, 1], [], []>} : vector<16x48xbf16>, vector<48x384xbf16>, vector<16x384xf32> -> vector<16x384xf32>
    %c1 = arith.constant 1 : index
    %c0_7 = arith.constant 0 : index
    %c0_8 = arith.constant 0 : index
    %6 = vector.load %arg3[%c1, %c0_7, %c0_8] : memref<3x16x48xbf16, #tpu.memory_space<vmem>>, vector<1x16x48xbf16>
    %7 = vector.shape_cast %6 : vector<1x16x48xbf16> to vector<16x48xbf16>
    %c0_9 = arith.constant 0 : index
    %c80 = arith.constant 80 : index
    %c0_10 = arith.constant 0 : index
    %8 = vector.load %arg2[%c0_9, %c80, %c0_10] : memref<1x400x384xbf16, #tpu.memory_space<vmem>>, vector<1x48x384xbf16>
    %9 = vector.shape_cast %8 : vector<1x48x384xbf16> to vector<48x384xbf16>
    %cst_11 = arith.constant dense<0.000000e+00> : vector<16x384xf32>
    %10 = tpu.matmul %7, %9, %cst_11 {dimension_numbers = #tpu.dot_dimension_numbers<[1], [0], [0], [1], [0, 0, 1, 1], [], []>} : vector<16x48xbf16>, vector<48x384xbf16>, vector<16x384xf32> -> vector<16x384xf32>
    %11 = arith.addf %5, %10 : vector<16x384xf32>
    %c2 = arith.constant 2 : index
    %c0_12 = arith.constant 0 : index
    %c0_13 = arith.constant 0 : index
    %12 = vector.load %arg3[%c2, %c0_12, %c0_13] : memref<3x16x48xbf16, #tpu.memory_space<vmem>>, vector<1x16x48xbf16>
    %13 = vector.shape_cast %12 : vector<1x16x48xbf16> to vector<16x48xbf16>
    %c0_14 = arith.constant 0 : index
    %c160 = arith.constant 160 : index
    %c0_15 = arith.constant 0 : index
    %14 = vector.load %arg2[%c0_14, %c160, %c0_15] : memref<1x400x384xbf16, #tpu.memory_space<vmem>>, vector<1x48x384xbf16>
    %15 = vector.shape_cast %14 : vector<1x48x384xbf16> to vector<48x384xbf16>
    %cst_16 = arith.constant dense<0.000000e+00> : vector<16x384xf32>
    %16 = tpu.matmul %13, %15, %cst_16 {dimension_numbers = #tpu.dot_dimension_numbers<[1], [0], [0], [1], [0, 0, 1, 1], [], []>} : vector<16x48xbf16>, vector<48x384xbf16>, vector<16x384xf32> -> vector<16x384xf32>
    %17 = arith.addf %11, %16 : vector<16x384xf32>
    %18 = vector.broadcast %0 : vector<16x1xf32> to vector<16x384xf32>
    %19 = arith.addf %17, %18 : vector<16x384xf32>
    %cst_17 = arith.constant 0.000000e+00 : f32
    %20 = vector.broadcast %cst_17 : f32 to vector<16x384xf32>
    %21 = arith.maximumf %19, %20 : vector<16x384xf32>
    %c0_18 = arith.constant 0 : index
    %c0_19 = arith.constant 0 : index
    %c0_20 = arith.constant 0 : index
    %22 = vector.load %arg3[%c0_18, %c0_19, %c0_20] : memref<3x16x48xbf16, #tpu.memory_space<vmem>>, vector<1x16x48xbf16>
    %23 = vector.shape_cast %22 : vector<1x16x48xbf16> to vector<16x48xbf16>
    %c0_21 = arith.constant 0 : index
    %c16 = arith.constant 16 : index
    %c0_22 = arith.constant 0 : index
    %24 = vector.load %arg2[%c0_21, %c16, %c0_22] : memref<1x400x384xbf16, #tpu.memory_space<vmem>>, vector<1x48x384xbf16>
    %25 = vector.shape_cast %24 : vector<1x48x384xbf16> to vector<48x384xbf16>
    %cst_23 = arith.constant dense<0.000000e+00> : vector<16x384xf32>
    %26 = tpu.matmul %23, %25, %cst_23 {dimension_numbers = #tpu.dot_dimension_numbers<[1], [0], [0], [1], [0, 0, 1, 1], [], []>} : vector<16x48xbf16>, vector<48x384xbf16>, vector<16x384xf32> -> vector<16x384xf32>
    %c1_24 = arith.constant 1 : index
    %c0_25 = arith.constant 0 : index
    %c0_26 = arith.constant 0 : index
    %27 = vector.load %arg3[%c1_24, %c0_25, %c0_26] : memref<3x16x48xbf16, #tpu.memory_space<vmem>>, vector<1x16x48xbf16>
    %28 = vector.shape_cast %27 : vector<1x16x48xbf16> to vector<16x48xbf16>
    %c0_27 = arith.constant 0 : index
    %c96 = arith.constant 96 : index
    %c0_28 = arith.constant 0 : index
    %29 = vector.load %arg2[%c0_27, %c96, %c0_28] : memref<1x400x384xbf16, #tpu.memory_space<vmem>>, vector<1x48x384xbf16>
    %30 = vector.shape_cast %29 : vector<1x48x384xbf16> to vector<48x384xbf16>
    %cst_29 = arith.constant dense<0.000000e+00> : vector<16x384xf32>
    %31 = tpu.matmul %28, %30, %cst_29 {dimension_numbers = #tpu.dot_dimension_numbers<[1], [0], [0], [1], [0, 0, 1, 1], [], []>} : vector<16x48xbf16>, vector<48x384xbf16>, vector<16x384xf32> -> vector<16x384xf32>
    %32 = arith.addf %26, %31 : vector<16x384xf32>
    %c2_30 = arith.constant 2 : index
    %c0_31 = arith.constant 0 : index
    %c0_32 = arith.constant 0 : index
    %33 = vector.load %arg3[%c2_30, %c0_31, %c0_32] : memref<3x16x48xbf16, #tpu.memory_space<vmem>>, vector<1x16x48xbf16>
    %34 = vector.shape_cast %33 : vector<1x16x48xbf16> to vector<16x48xbf16>
    %c0_33 = arith.constant 0 : index
    %c176 = arith.constant 176 : index
    %c0_34 = arith.constant 0 : index
    %35 = vector.load %arg2[%c0_33, %c176, %c0_34] : memref<1x400x384xbf16, #tpu.memory_space<vmem>>, vector<1x48x384xbf16>
    %36 = vector.shape_cast %35 : vector<1x48x384xbf16> to vector<48x384xbf16>
    %cst_35 = arith.constant dense<0.000000e+00> : vector<16x384xf32>
    %37 = tpu.matmul %34, %36, %cst_35 {dimension_numbers = #tpu.dot_dimension_numbers<[1], [0], [0], [1], [0, 0, 1, 1], [], []>} : vector<16x48xbf16>, vector<48x384xbf16>, vector<16x384xf32> -> vector<16x384xf32>
    %38 = arith.addf %32, %37 : vector<16x384xf32>
    %39 = vector.broadcast %0 : vector<16x1xf32> to vector<16x384xf32>
    %40 = arith.addf %38, %39 : vector<16x384xf32>
    %cst_36 = arith.constant 0.000000e+00 : f32
    %41 = vector.broadcast %cst_36 : f32 to vector<16x384xf32>
    %42 = arith.maximumf %40, %41 : vector<16x384xf32>
    %43 = arith.maximumf %21, %42 : vector<16x384xf32>
    %c0_37 = arith.constant 0 : index
    %c0_38 = arith.constant 0 : index
    %c0_39 = arith.constant 0 : index
    %44 = vector.load %arg3[%c0_37, %c0_38, %c0_39] : memref<3x16x48xbf16, #tpu.memory_space<vmem>>, vector<1x16x48xbf16>
    %45 = vector.shape_cast %44 : vector<1x16x48xbf16> to vector<16x48xbf16>
    %c0_40 = arith.constant 0 : index
    %c32 = arith.constant 32 : index
    %c0_41 = arith.constant 0 : index
    %46 = vector.load %arg2[%c0_40, %c32, %c0_41] : memref<1x400x384xbf16, #tpu.memory_space<vmem>>, vector<1x48x384xbf16>
    %47 = vector.shape_cast %46 : vector<1x48x384xbf16> to vector<48x384xbf16>
    %cst_42 = arith.constant dense<0.000000e+00> : vector<16x384xf32>
    %48 = tpu.matmul %45, %47, %cst_42 {dimension_numbers = #tpu.dot_dimension_numbers<[1], [0], [0], [1], [0, 0, 1, 1], [], []>} : vector<16x48xbf16>, vector<48x384xbf16>, vector<16x384xf32> -> vector<16x384xf32>
    %c1_43 = arith.constant 1 : index
    %c0_44 = arith.constant 0 : index
    %c0_45 = arith.constant 0 : index
    %49 = vector.load %arg3[%c1_43, %c0_44, %c0_45] : memref<3x16x48xbf16, #tpu.memory_space<vmem>>, vector<1x16x48xbf16>
    %50 = vector.shape_cast %49 : vector<1x16x48xbf16> to vector<16x48xbf16>
    %c0_46 = arith.constant 0 : index
    %c112 = arith.constant 112 : index
    %c0_47 = arith.constant 0 : index
    %51 = vector.load %arg2[%c0_46, %c112, %c0_47] : memref<1x400x384xbf16, #tpu.memory_space<vmem>>, vector<1x48x384xbf16>
    %52 = vector.shape_cast %51 : vector<1x48x384xbf16> to vector<48x384xbf16>
    %cst_48 = arith.constant dense<0.000000e+00> : vector<16x384xf32>
    %53 = tpu.matmul %50, %52, %cst_48 {dimension_numbers = #tpu.dot_dimension_numbers<[1], [0], [0], [1], [0, 0, 1, 1], [], []>} : vector<16x48xbf16>, vector<48x384xbf16>, vector<16x384xf32> -> vector<16x384xf32>
    %54 = arith.addf %48, %53 : vector<16x384xf32>
    %c2_49 = arith.constant 2 : index
    %c0_50 = arith.constant 0 : index
    %c0_51 = arith.constant 0 : index
    %55 = vector.load %arg3[%c2_49, %c0_50, %c0_51] : memref<3x16x48xbf16, #tpu.memory_space<vmem>>, vector<1x16x48xbf16>
    %56 = vector.shape_cast %55 : vector<1x16x48xbf16> to vector<16x48xbf16>
    %c0_52 = arith.constant 0 : index
    %c192 = arith.constant 192 : index
    %c0_53 = arith.constant 0 : index
    %57 = vector.load %arg2[%c0_52, %c192, %c0_53] : memref<1x400x384xbf16, #tpu.memory_space<vmem>>, vector<1x48x384xbf16>
    %58 = vector.shape_cast %57 : vector<1x48x384xbf16> to vector<48x384xbf16>
    %cst_54 = arith.constant dense<0.000000e+00> : vector<16x384xf32>
    %59 = tpu.matmul %56, %58, %cst_54 {dimension_numbers = #tpu.dot_dimension_numbers<[1], [0], [0], [1], [0, 0, 1, 1], [], []>} : vector<16x48xbf16>, vector<48x384xbf16>, vector<16x384xf32> -> vector<16x384xf32>
    %60 = arith.addf %54, %59 : vector<16x384xf32>
    %61 = vector.broadcast %0 : vector<16x1xf32> to vector<16x384xf32>
    %62 = arith.addf %60, %61 : vector<16x384xf32>
    %cst_55 = arith.constant 0.000000e+00 : f32
    %63 = vector.broadcast %cst_55 : f32 to vector<16x384xf32>
    %64 = arith.maximumf %62, %63 : vector<16x384xf32>
    %65 = arith.maximumf %43, %64 : vector<16x384xf32>
    %c0_56 = arith.constant 0 : index
    %c0_57 = arith.constant 0 : index
    %c0_58 = arith.constant 0 : index
    %66 = vector.load %arg3[%c0_56, %c0_57, %c0_58] : memref<3x16x48xbf16, #tpu.memory_space<vmem>>, vector<1x16x48xbf16>
    %67 = vector.shape_cast %66 : vector<1x16x48xbf16> to vector<16x48xbf16>
    %c0_59 = arith.constant 0 : index
    %c80_60 = arith.constant 80 : index
    %c0_61 = arith.constant 0 : index
    %68 = vector.load %arg2[%c0_59, %c80_60, %c0_61] : memref<1x400x384xbf16, #tpu.memory_space<vmem>>, vector<1x48x384xbf16>
    %69 = vector.shape_cast %68 : vector<1x48x384xbf16> to vector<48x384xbf16>
    %cst_62 = arith.constant dense<0.000000e+00> : vector<16x384xf32>
    %70 = tpu.matmul %67, %69, %cst_62 {dimension_numbers = #tpu.dot_dimension_numbers<[1], [0], [0], [1], [0, 0, 1, 1], [], []>} : vector<16x48xbf16>, vector<48x384xbf16>, vector<16x384xf32> -> vector<16x384xf32>
    %c1_63 = arith.constant 1 : index
    %c0_64 = arith.constant 0 : index
    %c0_65 = arith.constant 0 : index
    %71 = vector.load %arg3[%c1_63, %c0_64, %c0_65] : memref<3x16x48xbf16, #tpu.memory_space<vmem>>, vector<1x16x48xbf16>
    %72 = vector.shape_cast %71 : vector<1x16x48xbf16> to vector<16x48xbf16>
    %c0_66 = arith.constant 0 : index
    %c160_67 = arith.constant 160 : index
    %c0_68 = arith.constant 0 : index
    %73 = vector.load %arg2[%c0_66, %c160_67, %c0_68] : memref<1x400x384xbf16, #tpu.memory_space<vmem>>, vector<1x48x384xbf16>
    %74 = vector.shape_cast %73 : vector<1x48x384xbf16> to vector<48x384xbf16>
    %cst_69 = arith.constant dense<0.000000e+00> : vector<16x384xf32>
    %75 = tpu.matmul %72, %74, %cst_69 {dimension_numbers = #tpu.dot_dimension_numbers<[1], [0], [0], [1], [0, 0, 1, 1], [], []>} : vector<16x48xbf16>, vector<48x384xbf16>, vector<16x384xf32> -> vector<16x384xf32>
    %76 = arith.addf %70, %75 : vector<16x384xf32>
    %c2_70 = arith.constant 2 : index
    %c0_71 = arith.constant 0 : index
    %c0_72 = arith.constant 0 : index
    %77 = vector.load %arg3[%c2_70, %c0_71, %c0_72] : memref<3x16x48xbf16, #tpu.memory_space<vmem>>, vector<1x16x48xbf16>
    %78 = vector.shape_cast %77 : vector<1x16x48xbf16> to vector<16x48xbf16>
    %c0_73 = arith.constant 0 : index
    %c240 = arith.constant 240 : index
    %c0_74 = arith.constant 0 : index
    %79 = vector.load %arg2[%c0_73, %c240, %c0_74] : memref<1x400x384xbf16, #tpu.memory_space<vmem>>, vector<1x48x384xbf16>
    %80 = vector.shape_cast %79 : vector<1x48x384xbf16> to vector<48x384xbf16>
    %cst_75 = arith.constant dense<0.000000e+00> : vector<16x384xf32>
    %81 = tpu.matmul %78, %80, %cst_75 {dimension_numbers = #tpu.dot_dimension_numbers<[1], [0], [0], [1], [0, 0, 1, 1], [], []>} : vector<16x48xbf16>, vector<48x384xbf16>, vector<16x384xf32> -> vector<16x384xf32>
    %82 = arith.addf %76, %81 : vector<16x384xf32>
    %83 = vector.broadcast %0 : vector<16x1xf32> to vector<16x384xf32>
    %84 = arith.addf %82, %83 : vector<16x384xf32>
    %cst_76 = arith.constant 0.000000e+00 : f32
    %85 = vector.broadcast %cst_76 : f32 to vector<16x384xf32>
    %86 = arith.maximumf %84, %85 : vector<16x384xf32>
    %87 = arith.maximumf %65, %86 : vector<16x384xf32>
    %c0_77 = arith.constant 0 : index
    %c0_78 = arith.constant 0 : index
    %c0_79 = arith.constant 0 : index
    %88 = vector.load %arg3[%c0_77, %c0_78, %c0_79] : memref<3x16x48xbf16, #tpu.memory_space<vmem>>, vector<1x16x48xbf16>
    %89 = vector.shape_cast %88 : vector<1x16x48xbf16> to vector<16x48xbf16>
    %c0_80 = arith.constant 0 : index
    %c96_81 = arith.constant 96 : index
    %c0_82 = arith.constant 0 : index
    %90 = vector.load %arg2[%c0_80, %c96_81, %c0_82] : memref<1x400x384xbf16, #tpu.memory_space<vmem>>, vector<1x48x384xbf16>
    %91 = vector.shape_cast %90 : vector<1x48x384xbf16> to vector<48x384xbf16>
    %cst_83 = arith.constant dense<0.000000e+00> : vector<16x384xf32>
    %92 = tpu.matmul %89, %91, %cst_83 {dimension_numbers = #tpu.dot_dimension_numbers<[1], [0], [0], [1], [0, 0, 1, 1], [], []>} : vector<16x48xbf16>, vector<48x384xbf16>, vector<16x384xf32> -> vector<16x384xf32>
    %c1_84 = arith.constant 1 : index
    %c0_85 = arith.constant 0 : index
    %c0_86 = arith.constant 0 : index
    %93 = vector.load %arg3[%c1_84, %c0_85, %c0_86] : memref<3x16x48xbf16, #tpu.memory_space<vmem>>, vector<1x16x48xbf16>
    %94 = vector.shape_cast %93 : vector<1x16x48xbf16> to vector<16x48xbf16>
    %c0_87 = arith.constant 0 : index
    %c176_88 = arith.constant 176 : index
    %c0_89 = arith.constant 0 : index
    %95 = vector.load %arg2[%c0_87, %c176_88, %c0_89] : memref<1x400x384xbf16, #tpu.memory_space<vmem>>, vector<1x48x384xbf16>
    %96 = vector.shape_cast %95 : vector<1x48x384xbf16> to vector<48x384xbf16>
    %cst_90 = arith.constant dense<0.000000e+00> : vector<16x384xf32>
    %97 = tpu.matmul %94, %96, %cst_90 {dimension_numbers = #tpu.dot_dimension_numbers<[1], [0], [0], [1], [0, 0, 1, 1], [], []>} : vector<16x48xbf16>, vector<48x384xbf16>, vector<16x384xf32> -> vector<16x384xf32>
    %98 = arith.addf %92, %97 : vector<16x384xf32>
    %c2_91 = arith.constant 2 : index
    %c0_92 = arith.constant 0 : index
    %c0_93 = arith.constant 0 : index
    %99 = vector.load %arg3[%c2_91, %c0_92, %c0_93] : memref<3x16x48xbf16, #tpu.memory_space<vmem>>, vector<1x16x48xbf16>
    %100 = vector.shape_cast %99 : vector<1x16x48xbf16> to vector<16x48xbf16>
    %c0_94 = arith.constant 0 : index
    %c256 = arith.constant 256 : index
    %c0_95 = arith.constant 0 : index
    %101 = vector.load %arg2[%c0_94, %c256, %c0_95] : memref<1x400x384xbf16, #tpu.memory_space<vmem>>, vector<1x48x384xbf16>
    %102 = vector.shape_cast %101 : vector<1x48x384xbf16> to vector<48x384xbf16>
    %cst_96 = arith.constant dense<0.000000e+00> : vector<16x384xf32>
    %103 = tpu.matmul %100, %102, %cst_96 {dimension_numbers = #tpu.dot_dimension_numbers<[1], [0], [0], [1], [0, 0, 1, 1], [], []>} : vector<16x48xbf16>, vector<48x384xbf16>, vector<16x384xf32> -> vector<16x384xf32>
    %104 = arith.addf %98, %103 : vector<16x384xf32>
    %105 = vector.broadcast %0 : vector<16x1xf32> to vector<16x384xf32>
    %106 = arith.addf %104, %105 : vector<16x384xf32>
    %cst_97 = arith.constant 0.000000e+00 : f32
    %107 = vector.broadcast %cst_97 : f32 to vector<16x384xf32>
    %108 = arith.maximumf %106, %107 : vector<16x384xf32>
    %109 = arith.maximumf %87, %108 : vector<16x384xf32>
    %c0_98 = arith.constant 0 : index
    %c0_99 = arith.constant 0 : index
    %c0_100 = arith.constant 0 : index
    %110 = vector.load %arg3[%c0_98, %c0_99, %c0_100] : memref<3x16x48xbf16, #tpu.memory_space<vmem>>, vector<1x16x48xbf16>
    %111 = vector.shape_cast %110 : vector<1x16x48xbf16> to vector<16x48xbf16>
    %c0_101 = arith.constant 0 : index
    %c112_102 = arith.constant 112 : index
    %c0_103 = arith.constant 0 : index
    %112 = vector.load %arg2[%c0_101, %c112_102, %c0_103] : memref<1x400x384xbf16, #tpu.memory_space<vmem>>, vector<1x48x384xbf16>
    %113 = vector.shape_cast %112 : vector<1x48x384xbf16> to vector<48x384xbf16>
    %cst_104 = arith.constant dense<0.000000e+00> : vector<16x384xf32>
    %114 = tpu.matmul %111, %113, %cst_104 {dimension_numbers = #tpu.dot_dimension_numbers<[1], [0], [0], [1], [0, 0, 1, 1], [], []>} : vector<16x48xbf16>, vector<48x384xbf16>, vector<16x384xf32> -> vector<16x384xf32>
    %c1_105 = arith.constant 1 : index
    %c0_106 = arith.constant 0 : index
    %c0_107 = arith.constant 0 : index
    %115 = vector.load %arg3[%c1_105, %c0_106, %c0_107] : memref<3x16x48xbf16, #tpu.memory_space<vmem>>, vector<1x16x48xbf16>
    %116 = vector.shape_cast %115 : vector<1x16x48xbf16> to vector<16x48xbf16>
    %c0_108 = arith.constant 0 : index
    %c192_109 = arith.constant 192 : index
    %c0_110 = arith.constant 0 : index
    %117 = vector.load %arg2[%c0_108, %c192_109, %c0_110] : memref<1x400x384xbf16, #tpu.memory_space<vmem>>, vector<1x48x384xbf16>
    %118 = vector.shape_cast %117 : vector<1x48x384xbf16> to vector<48x384xbf16>
    %cst_111 = arith.constant dense<0.000000e+00> : vector<16x384xf32>
    %119 = tpu.matmul %116, %118, %cst_111 {dimension_numbers = #tpu.dot_dimension_numbers<[1], [0], [0], [1], [0, 0, 1, 1], [], []>} : vector<16x48xbf16>, vector<48x384xbf16>, vector<16x384xf32> -> vector<16x384xf32>
    %120 = arith.addf %114, %119 : vector<16x384xf32>
    %c2_112 = arith.constant 2 : index
    %c0_113 = arith.constant 0 : index
    %c0_114 = arith.constant 0 : index
    %121 = vector.load %arg3[%c2_112, %c0_113, %c0_114] : memref<3x16x48xbf16, #tpu.memory_space<vmem>>, vector<1x16x48xbf16>
    %122 = vector.shape_cast %121 : vector<1x16x48xbf16> to vector<16x48xbf16>
    %c0_115 = arith.constant 0 : index
    %c272 = arith.constant 272 : index
    %c0_116 = arith.constant 0 : index
    %123 = vector.load %arg2[%c0_115, %c272, %c0_116] : memref<1x400x384xbf16, #tpu.memory_space<vmem>>, vector<1x48x384xbf16>
    %124 = vector.shape_cast %123 : vector<1x48x384xbf16> to vector<48x384xbf16>
    %cst_117 = arith.constant dense<0.000000e+00> : vector<16x384xf32>
    %125 = tpu.matmul %122, %124, %cst_117 {dimension_numbers = #tpu.dot_dimension_numbers<[1], [0], [0], [1], [0, 0, 1, 1], [], []>} : vector<16x48xbf16>, vector<48x384xbf16>, vector<16x384xf32> -> vector<16x384xf32>
    %126 = arith.addf %120, %125 : vector<16x384xf32>
    %127 = vector.broadcast %0 : vector<16x1xf32> to vector<16x384xf32>
    %128 = arith.addf %126, %127 : vector<16x384xf32>
    %cst_118 = arith.constant 0.000000e+00 : f32
    %129 = vector.broadcast %cst_118 : f32 to vector<16x384xf32>
    %130 = arith.maximumf %128, %129 : vector<16x384xf32>
    %131 = arith.maximumf %109, %130 : vector<16x384xf32>
    %c0_119 = arith.constant 0 : index
    %c0_120 = arith.constant 0 : index
    %c0_121 = arith.constant 0 : index
    %132 = vector.load %arg3[%c0_119, %c0_120, %c0_121] : memref<3x16x48xbf16, #tpu.memory_space<vmem>>, vector<1x16x48xbf16>
    %133 = vector.shape_cast %132 : vector<1x16x48xbf16> to vector<16x48xbf16>
    %c0_122 = arith.constant 0 : index
    %c160_123 = arith.constant 160 : index
    %c0_124 = arith.constant 0 : index
    %134 = vector.load %arg2[%c0_122, %c160_123, %c0_124] : memref<1x400x384xbf16, #tpu.memory_space<vmem>>, vector<1x48x384xbf16>
    %135 = vector.shape_cast %134 : vector<1x48x384xbf16> to vector<48x384xbf16>
    %cst_125 = arith.constant dense<0.000000e+00> : vector<16x384xf32>
    %136 = tpu.matmul %133, %135, %cst_125 {dimension_numbers = #tpu.dot_dimension_numbers<[1], [0], [0], [1], [0, 0, 1, 1], [], []>} : vector<16x48xbf16>, vector<48x384xbf16>, vector<16x384xf32> -> vector<16x384xf32>
    %c1_126 = arith.constant 1 : index
    %c0_127 = arith.constant 0 : index
    %c0_128 = arith.constant 0 : index
    %137 = vector.load %arg3[%c1_126, %c0_127, %c0_128] : memref<3x16x48xbf16, #tpu.memory_space<vmem>>, vector<1x16x48xbf16>
    %138 = vector.shape_cast %137 : vector<1x16x48xbf16> to vector<16x48xbf16>
    %c0_129 = arith.constant 0 : index
    %c240_130 = arith.constant 240 : index
    %c0_131 = arith.constant 0 : index
    %139 = vector.load %arg2[%c0_129, %c240_130, %c0_131] : memref<1x400x384xbf16, #tpu.memory_space<vmem>>, vector<1x48x384xbf16>
    %140 = vector.shape_cast %139 : vector<1x48x384xbf16> to vector<48x384xbf16>
    %cst_132 = arith.constant dense<0.000000e+00> : vector<16x384xf32>
    %141 = tpu.matmul %138, %140, %cst_132 {dimension_numbers = #tpu.dot_dimension_numbers<[1], [0], [0], [1], [0, 0, 1, 1], [], []>} : vector<16x48xbf16>, vector<48x384xbf16>, vector<16x384xf32> -> vector<16x384xf32>
    %142 = arith.addf %136, %141 : vector<16x384xf32>
    %c2_133 = arith.constant 2 : index
    %c0_134 = arith.constant 0 : index
    %c0_135 = arith.constant 0 : index
    %143 = vector.load %arg3[%c2_133, %c0_134, %c0_135] : memref<3x16x48xbf16, #tpu.memory_space<vmem>>, vector<1x16x48xbf16>
    %144 = vector.shape_cast %143 : vector<1x16x48xbf16> to vector<16x48xbf16>
    %c0_136 = arith.constant 0 : index
    %c320 = arith.constant 320 : index
    %c0_137 = arith.constant 0 : index
    %145 = vector.load %arg2[%c0_136, %c320, %c0_137] : memref<1x400x384xbf16, #tpu.memory_space<vmem>>, vector<1x48x384xbf16>
    %146 = vector.shape_cast %145 : vector<1x48x384xbf16> to vector<48x384xbf16>
    %cst_138 = arith.constant dense<0.000000e+00> : vector<16x384xf32>
    %147 = tpu.matmul %144, %146, %cst_138 {dimension_numbers = #tpu.dot_dimension_numbers<[1], [0], [0], [1], [0, 0, 1, 1], [], []>} : vector<16x48xbf16>, vector<48x384xbf16>, vector<16x384xf32> -> vector<16x384xf32>
    %148 = arith.addf %142, %147 : vector<16x384xf32>
    %149 = vector.broadcast %0 : vector<16x1xf32> to vector<16x384xf32>
    %150 = arith.addf %148, %149 : vector<16x384xf32>
    %cst_139 = arith.constant 0.000000e+00 : f32
    %151 = vector.broadcast %cst_139 : f32 to vector<16x384xf32>
    %152 = arith.maximumf %150, %151 : vector<16x384xf32>
    %153 = arith.maximumf %131, %152 : vector<16x384xf32>
    %c0_140 = arith.constant 0 : index
    %c0_141 = arith.constant 0 : index
    %c0_142 = arith.constant 0 : index
    %154 = vector.load %arg3[%c0_140, %c0_141, %c0_142] : memref<3x16x48xbf16, #tpu.memory_space<vmem>>, vector<1x16x48xbf16>
    %155 = vector.shape_cast %154 : vector<1x16x48xbf16> to vector<16x48xbf16>
    %c0_143 = arith.constant 0 : index
    %c176_144 = arith.constant 176 : index
    %c0_145 = arith.constant 0 : index
    %156 = vector.load %arg2[%c0_143, %c176_144, %c0_145] : memref<1x400x384xbf16, #tpu.memory_space<vmem>>, vector<1x48x384xbf16>
    %157 = vector.shape_cast %156 : vector<1x48x384xbf16> to vector<48x384xbf16>
    %cst_146 = arith.constant dense<0.000000e+00> : vector<16x384xf32>
    %158 = tpu.matmul %155, %157, %cst_146 {dimension_numbers = #tpu.dot_dimension_numbers<[1], [0], [0], [1], [0, 0, 1, 1], [], []>} : vector<16x48xbf16>, vector<48x384xbf16>, vector<16x384xf32> -> vector<16x384xf32>
    %c1_147 = arith.constant 1 : index
    %c0_148 = arith.constant 0 : index
    %c0_149 = arith.constant 0 : index
    %159 = vector.load %arg3[%c1_147, %c0_148, %c0_149] : memref<3x16x48xbf16, #tpu.memory_space<vmem>>, vector<1x16x48xbf16>
    %160 = vector.shape_cast %159 : vector<1x16x48xbf16> to vector<16x48xbf16>
    %c0_150 = arith.constant 0 : index
    %c256_151 = arith.constant 256 : index
    %c0_152 = arith.constant 0 : index
    %161 = vector.load %arg2[%c0_150, %c256_151, %c0_152] : memref<1x400x384xbf16, #tpu.memory_space<vmem>>, vector<1x48x384xbf16>
    %162 = vector.shape_cast %161 : vector<1x48x384xbf16> to vector<48x384xbf16>
    %cst_153 = arith.constant dense<0.000000e+00> : vector<16x384xf32>
    %163 = tpu.matmul %160, %162, %cst_153 {dimension_numbers = #tpu.dot_dimension_numbers<[1], [0], [0], [1], [0, 0, 1, 1], [], []>} : vector<16x48xbf16>, vector<48x384xbf16>, vector<16x384xf32> -> vector<16x384xf32>
    %164 = arith.addf %158, %163 : vector<16x384xf32>
    %c2_154 = arith.constant 2 : index
    %c0_155 = arith.constant 0 : index
    %c0_156 = arith.constant 0 : index
    %165 = vector.load %arg3[%c2_154, %c0_155, %c0_156] : memref<3x16x48xbf16, #tpu.memory_space<vmem>>, vector<1x16x48xbf16>
    %166 = vector.shape_cast %165 : vector<1x16x48xbf16> to vector<16x48xbf16>
    %c0_157 = arith.constant 0 : index
    %c336 = arith.constant 336 : index
    %c0_158 = arith.constant 0 : index
    %167 = vector.load %arg2[%c0_157, %c336, %c0_158] : memref<1x400x384xbf16, #tpu.memory_space<vmem>>, vector<1x48x384xbf16>
    %168 = vector.shape_cast %167 : vector<1x48x384xbf16> to vector<48x384xbf16>
    %cst_159 = arith.constant dense<0.000000e+00> : vector<16x384xf32>
    %169 = tpu.matmul %166, %168, %cst_159 {dimension_numbers = #tpu.dot_dimension_numbers<[1], [0], [0], [1], [0, 0, 1, 1], [], []>} : vector<16x48xbf16>, vector<48x384xbf16>, vector<16x384xf32> -> vector<16x384xf32>
    %170 = arith.addf %164, %169 : vector<16x384xf32>
    %171 = vector.broadcast %0 : vector<16x1xf32> to vector<16x384xf32>
    %172 = arith.addf %170, %171 : vector<16x384xf32>
    %cst_160 = arith.constant 0.000000e+00 : f32
    %173 = vector.broadcast %cst_160 : f32 to vector<16x384xf32>
    %174 = arith.maximumf %172, %173 : vector<16x384xf32>
    %175 = arith.maximumf %153, %174 : vector<16x384xf32>
    %c0_161 = arith.constant 0 : index
    %c0_162 = arith.constant 0 : index
    %c0_163 = arith.constant 0 : index
    %176 = vector.load %arg3[%c0_161, %c0_162, %c0_163] : memref<3x16x48xbf16, #tpu.memory_space<vmem>>, vector<1x16x48xbf16>
    %177 = vector.shape_cast %176 : vector<1x16x48xbf16> to vector<16x48xbf16>
    %c0_164 = arith.constant 0 : index
    %c192_165 = arith.constant 192 : index
    %c0_166 = arith.constant 0 : index
    %178 = vector.load %arg2[%c0_164, %c192_165, %c0_166] : memref<1x400x384xbf16, #tpu.memory_space<vmem>>, vector<1x48x384xbf16>
    %179 = vector.shape_cast %178 : vector<1x48x384xbf16> to vector<48x384xbf16>
    %cst_167 = arith.constant dense<0.000000e+00> : vector<16x384xf32>
    %180 = tpu.matmul %177, %179, %cst_167 {dimension_numbers = #tpu.dot_dimension_numbers<[1], [0], [0], [1], [0, 0, 1, 1], [], []>} : vector<16x48xbf16>, vector<48x384xbf16>, vector<16x384xf32> -> vector<16x384xf32>
    %c1_168 = arith.constant 1 : index
    %c0_169 = arith.constant 0 : index
    %c0_170 = arith.constant 0 : index
    %181 = vector.load %arg3[%c1_168, %c0_169, %c0_170] : memref<3x16x48xbf16, #tpu.memory_space<vmem>>, vector<1x16x48xbf16>
    %182 = vector.shape_cast %181 : vector<1x16x48xbf16> to vector<16x48xbf16>
    %c0_171 = arith.constant 0 : index
    %c272_172 = arith.constant 272 : index
    %c0_173 = arith.constant 0 : index
    %183 = vector.load %arg2[%c0_171, %c272_172, %c0_173] : memref<1x400x384xbf16, #tpu.memory_space<vmem>>, vector<1x48x384xbf16>
    %184 = vector.shape_cast %183 : vector<1x48x384xbf16> to vector<48x384xbf16>
    %cst_174 = arith.constant dense<0.000000e+00> : vector<16x384xf32>
    %185 = tpu.matmul %182, %184, %cst_174 {dimension_numbers = #tpu.dot_dimension_numbers<[1], [0], [0], [1], [0, 0, 1, 1], [], []>} : vector<16x48xbf16>, vector<48x384xbf16>, vector<16x384xf32> -> vector<16x384xf32>
    %186 = arith.addf %180, %185 : vector<16x384xf32>
    %c2_175 = arith.constant 2 : index
    %c0_176 = arith.constant 0 : index
    %c0_177 = arith.constant 0 : index
    %187 = vector.load %arg3[%c2_175, %c0_176, %c0_177] : memref<3x16x48xbf16, #tpu.memory_space<vmem>>, vector<1x16x48xbf16>
    %188 = vector.shape_cast %187 : vector<1x16x48xbf16> to vector<16x48xbf16>
    %c0_178 = arith.constant 0 : index
    %c352 = arith.constant 352 : index
    %c0_179 = arith.constant 0 : index
    %189 = vector.load %arg2[%c0_178, %c352, %c0_179] : memref<1x400x384xbf16, #tpu.memory_space<vmem>>, vector<1x48x384xbf16>
    %190 = vector.shape_cast %189 : vector<1x48x384xbf16> to vector<48x384xbf16>
    %cst_180 = arith.constant dense<0.000000e+00> : vector<16x384xf32>
    %191 = tpu.matmul %188, %190, %cst_180 {dimension_numbers = #tpu.dot_dimension_numbers<[1], [0], [0], [1], [0, 0, 1, 1], [], []>} : vector<16x48xbf16>, vector<48x384xbf16>, vector<16x384xf32> -> vector<16x384xf32>
    %192 = arith.addf %186, %191 : vector<16x384xf32>
    %193 = vector.broadcast %0 : vector<16x1xf32> to vector<16x384xf32>
    %194 = arith.addf %192, %193 : vector<16x384xf32>
    %cst_181 = arith.constant 0.000000e+00 : f32
    %195 = vector.broadcast %cst_181 : f32 to vector<16x384xf32>
    %196 = arith.maximumf %194, %195 : vector<16x384xf32>
    %197 = arith.maximumf %175, %196 : vector<16x384xf32>
    %198 = arith.truncf %197 : vector<16x384xf32> to vector<16x384xbf16>
    %c0_182 = arith.constant 0 : index
    %c0_183 = arith.constant 0 : index
    %c0_184 = arith.constant 0 : index
    %199 = vector.load %arg5[%c0_182, %c0_183, %c0_184] : memref<1x16x384xbf16, #tpu.memory_space<vmem>>, vector<1x16x384xbf16>
    %200 = vector.shape_cast %199 : vector<1x16x384xbf16> to vector<16x384xbf16>
    %201 = vector.shape_cast %198 : vector<16x384xbf16> to vector<1x16x384xbf16>
    tpu.vector_store %arg5[%c0_182, %c0_183, %c0_184], %201 {strides = array<i32>} : memref<1x16x384xbf16, #tpu.memory_space<vmem>>, vector<1x16x384xbf16>,
    return
  }
  func.func @transform_0(%arg0: i32, %arg1: i32) -> (i32, i32, i32) {
    %c0_i32 = arith.constant 0 : i32
    %c0_i32_0 = arith.constant 0 : i32
    return %arg0, %c0_i32, %arg1 : i32, i32, i32
  }
  func.func @transform_1(%arg0: i32, %arg1: i32) -> (i32, i32, i32) {
    %c0_i32 = arith.constant 0 : i32
    %c0_i32_0 = arith.constant 0 : i32
    %c0_i32_1 = arith.constant 0 : i32
    %c0_i32_2 = arith.constant 0 : i32
    return %c0_i32, %c0_i32_0, %c0_i32_1 : i32, i32, i32
  }
  func.func @transform_2(%arg0: i32, %arg1: i32) -> (i32, i32) {
    %c0_i32 = arith.constant 0 : i32
    %c0_i32_0 = arith.constant 0 : i32
    %c0_i32_1 = arith.constant 0 : i32
    return %c0_i32, %c0_i32_0 : i32, i32
  }
  func.func @transform_3(%arg0: i32, %arg1: i32) -> (i32, i32, i32) {
    %c0_i32 = arith.constant 0 : i32
    %c0_i32_0 = arith.constant 0 : i32
    return %arg0, %c0_i32, %arg1 : i32, i32, i32
  }
}

module attributes {stable_mosaic.version = 11 : i64} {
  func.func @_mlp_kernel(%arg0: i32, %arg1: memref<2x11232xbf16, #tpu.memory_space<vmem>>, %arg2: memref<11232x128xbf16, #tpu.memory_space<vmem>>, %arg3: memref<1x128xf32, #tpu.memory_space<vmem>>, %arg4: memref<128x10xf32, #tpu.memory_space<vmem>>, %arg5: memref<1x10xf32, #tpu.memory_space<vmem>>, %arg6: memref<2x10xf32, #tpu.memory_space<vmem>>) attributes {dimension_semantics = [#tpu.dimension_semantics<arbitrary>], iteration_bounds = array<i64: 1>, scalar_prefetch = 0 : i64, scratch_operands = 0 : i64, tpu.core_type = #tpu.core_type<tc>, window_params = [{pipeline_mode = #tpu.pipeline_mode<synchronous>, transform_indices = @transform_0, window_bounds = array<i64: 2, 11232>}, {pipeline_mode = #tpu.pipeline_mode<synchronous>, transform_indices = @transform_1, window_bounds = array<i64: 11232, 128>}, {pipeline_mode = #tpu.pipeline_mode<synchronous>, transform_indices = @transform_2, window_bounds = array<i64: 1, 128>}, {pipeline_mode = #tpu.pipeline_mode<synchronous>, transform_indices = @transform_3, window_bounds = array<i64: 128, 10>}, {pipeline_mode = #tpu.pipeline_mode<synchronous>, transform_indices = @transform_4, window_bounds = array<i64: 1, 10>}, {pipeline_mode = #tpu.pipeline_mode<synchronous>, transform_indices = @transform_5, window_bounds = array<i64: 2, 10>}]} {
    %c0 = arith.constant 0 : index
    %c0_0 = arith.constant 0 : index
    %0 = vector.load %arg1[%c0, %c0_0] : memref<2x11232xbf16, #tpu.memory_space<vmem>>, vector<2x11232xbf16>
    %c0_1 = arith.constant 0 : index
    %c0_2 = arith.constant 0 : index
    %1 = vector.load %arg2[%c0_1, %c0_2] : memref<11232x128xbf16, #tpu.memory_space<vmem>>, vector<11232x128xbf16>
    %cst = arith.constant dense<0.000000e+00> : vector<2x128xf32>
    %2 = tpu.matmul %0, %1, %cst {dimension_numbers = #tpu.dot_dimension_numbers<[1], [0], [0], [1], [0, 0, 1, 1], [], []>} : vector<2x11232xbf16>, vector<11232x128xbf16>, vector<2x128xf32> -> vector<2x128xf32>
    %c0_3 = arith.constant 0 : index
    %c0_4 = arith.constant 0 : index
    %3 = vector.load %arg3[%c0_3, %c0_4] : memref<1x128xf32, #tpu.memory_space<vmem>>, vector<1x128xf32>
    %4 = vector.broadcast %3 : vector<1x128xf32> to vector<2x128xf32>
    %5 = arith.addf %2, %4 : vector<2x128xf32>
    %cst_5 = arith.constant 0.000000e+00 : f32
    %6 = vector.broadcast %cst_5 : f32 to vector<2x128xf32>
    %7 = arith.maximumf %5, %6 : vector<2x128xf32>
    %c0_6 = arith.constant 0 : index
    %c0_7 = arith.constant 0 : index
    %8 = vector.load %arg4[%c0_6, %c0_7] : memref<128x10xf32, #tpu.memory_space<vmem>>, vector<128x10xf32>
    %cst_8 = arith.constant dense<0.000000e+00> : vector<2x10xf32>
    %9 = tpu.matmul %7, %8, %cst_8 {dimension_numbers = #tpu.dot_dimension_numbers<[1], [0], [0], [1], [0, 0, 1, 1], [], []>} : vector<2x128xf32>, vector<128x10xf32>, vector<2x10xf32> -> vector<2x10xf32>
    %c0_9 = arith.constant 0 : index
    %c0_10 = arith.constant 0 : index
    %10 = vector.load %arg5[%c0_9, %c0_10] : memref<1x10xf32, #tpu.memory_space<vmem>>, vector<1x10xf32>
    %11 = vector.broadcast %10 : vector<1x10xf32> to vector<2x10xf32>
    %12 = arith.addf %9, %11 : vector<2x10xf32>
    %c0_11 = arith.constant 0 : index
    %c0_12 = arith.constant 0 : index
    %13 = vector.load %arg6[%c0_11, %c0_12] : memref<2x10xf32, #tpu.memory_space<vmem>>, vector<2x10xf32>
    tpu.vector_store %arg6[%c0_11, %c0_12], %12 {strides = array<i32>} : memref<2x10xf32, #tpu.memory_space<vmem>>, vector<2x10xf32>,
    return
  }
  func.func @transform_0(%arg0: i32) -> (i32, i32) {
    %c0_i32 = arith.constant 0 : i32
    %c0_i32_0 = arith.constant 0 : i32
    %c0_i32_1 = arith.constant 0 : i32
    return %c0_i32, %c0_i32_0 : i32, i32
  }
  func.func @transform_1(%arg0: i32) -> (i32, i32) {
    %c0_i32 = arith.constant 0 : i32
    %c0_i32_0 = arith.constant 0 : i32
    %c0_i32_1 = arith.constant 0 : i32
    return %c0_i32, %c0_i32_0 : i32, i32
  }
  func.func @transform_2(%arg0: i32) -> (i32, i32) {
    %c0_i32 = arith.constant 0 : i32
    %c0_i32_0 = arith.constant 0 : i32
    %c0_i32_1 = arith.constant 0 : i32
    return %c0_i32, %c0_i32_0 : i32, i32
  }
  func.func @transform_3(%arg0: i32) -> (i32, i32) {
    %c0_i32 = arith.constant 0 : i32
    %c0_i32_0 = arith.constant 0 : i32
    %c0_i32_1 = arith.constant 0 : i32
    return %c0_i32, %c0_i32_0 : i32, i32
  }
  func.func @transform_4(%arg0: i32) -> (i32, i32) {
    %c0_i32 = arith.constant 0 : i32
    %c0_i32_0 = arith.constant 0 : i32
    %c0_i32_1 = arith.constant 0 : i32
    return %c0_i32, %c0_i32_0 : i32, i32
  }
  func.func @transform_5(%arg0: i32) -> (i32, i32) {
    %c0_i32 = arith.constant 0 : i32
    %c0_i32_0 = arith.constant 0 : i32
    %c0_i32_1 = arith.constant 0 : i32
    return %c0_i32, %c0_i32_0 : i32, i32
  }
}

</mosaic_0001>

<bundles_post_ra>
// kernel: cnn_forward.3
= control target key start
LH: loop header
LB: loop body
LE: loop exit
PB: predicated region body
PF: predicated region fallthrough
CT: control target
= control target key end

     0   :  { %s12693_s12 = smov 0   ;;  %s12695_s13 = smov 0   ;;  %s15724_s0 = inlined_call_operand.vmem [shape: bf16[2,25,6656], index: 0, kind: input, shape index: {}]   ;;  %s15725_s1 = inlined_call_operand.vmem [shape: bf16[3,16,3], index: 1, kind: input, shape index: {}]   ;;  %s15726_s2 = inlined_call_operand.vmem [shape: f32[16,1], index: 2, kind: input, shape index: {}]   ;;  %s15727_s3 = inlined_call_operand.vmem [shape: bf16[2,16,6656], index: 3, kind: output, shape index: {}]  }
   0x1   :  { %s12697_s14 = smov 0   ;;  %s12699_s15 = smov 0  }
   0x2   :  { %s12701_s16 = smov 0   ;;  %s12703_s17 = smov 0  }
   0x3   :  { %s12705_s18 = smov 0  }
   0x4 LB: > { %s22_s19 = sadd.s32 1, %s12659_s16  ;;  %s25_s20 = sadd.s32 1, %s12663_s17  ;;  %s12667_s18 = sphi %s12705_s18, %s13_s18   ;;  %s12663_s17 = sphi %s12703_s17, %s16218_s17   ;;  %s12659_s16 = sphi %s12701_s16, %s16217_s16   ;;  %s12655_s15 = sphi %s12699_s15, %s16216_s15   ;;  %s12651_s14 = sphi %s12697_s14, %s16215_s14   ;;  %s12647_s13 = sphi %s12695_s13, %s16214_s13   ;;  %s12643_s12 = sphi %s12693_s12, %s16213_s12  }
   0x5   : > { %p23_p0 = scmp.ge.s32.totalorder %s22_s19, 4  ;;  %s11361_s21 = sadd.s32 4294967295, %s12667_s18  }
   0x6   : > { %p41_p1 = scmp.ne.s32.totalorder %s12647_s13, %s12643_s12  ;;  %p42_p2 = scmp.eq.s32.totalorder %s12667_s18, 0 }
   0x7   : > { %s16220_s19 = smov (%p23_p0, %s22_s19), 0  ;;  %s16222_s20 = smov (!%p23_p0, %s25_s20), %s12663_s17 }
   0x8   : > { %p27_p3 = scmp.ge.s32.totalorder %s16222_s20, 2  ;;  %p115_p4 = scmp.eq.s32.totalorder %s11361_s21, 7 }
   0x9   : > { %s30_s22 = ssub.s32 %s12659_s16, %s16220_s19  ;;  %p43_p5 = por %p42_p2, %p41_p1 }
   0xa   : > { %s16224_s20 = smov (%p27_p3, %s16222_s20), 0  ;;  %p12741_p6 = por %p115_p4, %p41_p1 }
   0xb   : > { %s29_s24 = ssub.s32 %s12663_s17, %s16224_s20  ;;  %s34_s26 = sadd.s32 1, %s12647_s13 }
   0xc   : > { %s31_s25 = sor.u32 %s30_s22, %s29_s24  ;;  %p11364_p8 = scmp.ge.s32.totalorder %s12667_s18, 8 }
   0xd   : > { %p32_p7 = scmp.eq.s32.totalorder %s31_s25, 0 }
   0xe   : > { %143 = sbr.rel (%p11364_p8) target bundleno = 44 (0x2c), region = 24 }
   0xf   : > { %s12749_s27 = scalar_select %p32_p7, %s12647_s13, %s34_s26  }
  0x15   : > { %146 = sbr.rel (!%p43_p5) target bundleno = 44 (0x2c), region = 28  ;;  %s148_s28 = sand.u32 (%p43_p5), 1, %s12647_s13  }
  0x16   : > { %s151_s29 = smul.u32 (%p43_p5), 13, %s12659_s16 }
  0x17   : > { %s12384_s30 = smul.u32 (%p43_p5), 208, %s148_s28 }
  0x18   : > { %s12385_s4 = smul.u32 (%p43_p5), 208, %s12663_s17 }
  0x19   : > { %s12763_s10 = scalar_lea.vmem (%p43_p5), [#allocation2], %s12384_s30 }
  0x1a   : > { %s153_s5 = sadd.s32 (%p43_p5), %s12385_s4, %s151_s29 }
  0x1b   : > { %s11365_s6 = sshll.u32 (%p43_p5), %s153_s5, 2 }
  0x1c   : > { %s12758_s9 = scalar_lea.vmem %s15724_s0, %s11365_s6 }
  0x1d   : > { %v170_v0 = vld [vmem:[%s12758_s9] sm:$0xff]  ;;  %v172_v1 = vld [vmem:[%s12758_s9 + $0x8] sm:$0xff]  ;;  %v174_v2 = vld [vmem:[%s12758_s9 + $0x10] sm:$0xff] }
  0x1e   : > { %171 = vst [vmem:[%s12763_s10] sm:$0xff] %v170_v0  ;;  %173 = vst [vmem:[%s12763_s10 + $0x8] sm:$0xff] %v172_v1  ;;  %v176_v3 = vld [vmem:[%s12758_s9 + $0x18] sm:$0xff]  ;;  %v178_v4 = vld [vmem:[%s12758_s9 + $0x20] sm:$0xff] }
  0x1f   : > { %175 = vst [vmem:[%s12763_s10 + $0x10] sm:$0xff] %v174_v2  ;;  %v180_v5 = vld [vmem:[%s12758_s9 + $0x28] sm:$0xff]  ;;  %177 = vst [vmem:[%s12763_s10 + $0x18] sm:$0xff] %v176_v3  ;;  %v182_v6 = vld [vmem:[%s12758_s9 + $0xd0] sm:$0xff] }
  0x20   : > { %179 = vst [vmem:[%s12763_s10 + $0x20] sm:$0xff] %v178_v4  ;;  %181 = vst [vmem:[%s12763_s10 + $0x28] sm:$0xff] %v180_v5  ;;  %v184_v7 = vld [vmem:[%s12758_s9 + $0xd8] sm:$0xff]  ;;  %v186_v8 = vld [vmem:[%s12758_s9 + $0xe0] sm:$0xff] }
  0x21   : > { %183 = vst [vmem:[%s12763_s10 + $0x34] sm:$0xff] %v182_v6  ;;  %185 = vst [vmem:[%s12763_s10 + $0x3c] sm:$0xff] %v184_v7  ;;  %v188_v9 = vld [vmem:[%s12758_s9 + $0xe8] sm:$0xff]  ;;  %v190_v10 = vld [vmem:[%s12758_s9 + $0xf0] sm:$0xff] }
  0x22   : > { %187 = vst [vmem:[%s12763_s10 + $0x44] sm:$0xff] %v186_v8  ;;  %v192_v11 = vld [vmem:[%s12758_s9 + $0xf8] sm:$0xff]  ;;  %189 = vst [vmem:[%s12763_s10 + $0x4c] sm:$0xff] %v188_v9  ;;  %v194_v12 = vld [vmem:[%s12758_s9 + $0x1a0] sm:$0xff] }
  0x23   : > { %191 = vst [vmem:[%s12763_s10 + $0x54] sm:$0xff] %v190_v10  ;;  %193 = vst [vmem:[%s12763_s10 + $0x5c] sm:$0xff] %v192_v11  ;;  %v196_v13 = vld [vmem:[%s12758_s9 + $0x1a8] sm:$0xff]  ;;  %v198_v14 = vld [vmem:[%s12758_s9 + $0x1b0] sm:$0xff] }
  0x24   : > { %195 = vst [vmem:[%s12763_s10 + $0x68] sm:$0xff] %v194_v12  ;;  %197 = vst [vmem:[%s12763_s10 + $0x70] sm:$0xff] %v196_v13  ;;  %v200_v15 = vld [vmem:[%s12758_s9 + $0x1b8] sm:$0xff]  ;;  %v202_v16 = vld [vmem:[%s12758_s9 + $0x1c0] sm:$0xff] }
  0x25   : > { %199 = vst [vmem:[%s12763_s10 + $0x78] sm:$0xff] %v198_v14  ;;  %v204_v17 = vld [vmem:[%s12758_s9 + $0x1c8] sm:$0xff]  ;;  %201 = vst [vmem:[%s12763_s10 + $0x80] sm:$0xff] %v200_v15  ;;  %v206_v18 = vld [vmem:[%s12758_s9 + $0x270] sm:$0xff] }
  0x26   : > { %203 = vst [vmem:[%s12763_s10 + $0x88] sm:$0xff] %v202_v16  ;;  %205 = vst [vmem:[%s12763_s10 + $0x90] sm:$0xff] %v204_v17  ;;  %v208_v19 = vld [vmem:[%s12758_s9 + $0x278] sm:$0xff]  ;;  %v210_v20 = vld [vmem:[%s12758_s9 + $0x280] sm:$0xff] }
  0x27   : > { %207 = vst [vmem:[%s12763_s10 + $0x9c] sm:$0xff] %v206_v18  ;;  %209 = vst [vmem:[%s12763_s10 + $0xa4] sm:$0xff] %v208_v19  ;;  %v212_v21 = vld [vmem:[%s12758_s9 + $0x288] sm:$0xff]  ;;  %v214_v22 = vld [vmem:[%s12758_s9 + $0x290] sm:$0xff] }
  0x28   : > { %211 = vst [vmem:[%s12763_s10 + $0xac] sm:$0xff] %v210_v20  ;;  %v216_v23 = vld [vmem:[%s12758_s9 + $0x298] sm:$0xff]  ;;  %213 = vst [vmem:[%s12763_s10 + $0xb4] sm:$0xff] %v212_v21  ;;  %v11366_v24 = vld [vmem:[%s12758_s9 + $0x30] sm:$0xf] }
  0x29   : > { %215 = vst [vmem:[%s12763_s10 + $0xbc] sm:$0xff] %v214_v22  ;;  %217 = vst [vmem:[%s12763_s10 + $0xc4] sm:$0xff] %v216_v23  ;;  %v11368_v25 = vld [vmem:[%s12758_s9 + $0x100] sm:$0xf]  ;;  %v11370_v26 = vld [vmem:[%s12758_s9 + $0x1d0] sm:$0xf] }
  0x2a   : > { %11367 = vst [vmem:[%s12763_s10 + $0x30] sm:$0xf] %v11366_v24  ;;  %11369 = vst [vmem:[%s12763_s10 + $0x64] sm:$0xf] %v11368_v25  ;;  %v11372_v27 = vld [vmem:[%s12758_s9 + $0x2a0] sm:$0xf] }
  0x2b   : > { %11371 = vst [vmem:[%s12763_s10 + $0x98] sm:$0xf] %v11370_v26  ;;  %11373 = vst [vmem:[%s12763_s10 + $0xcc] sm:$0xf] %v11372_v27 }
  0x2c PF: > { %p11374_p9 = scmp.ge.s32.totalorder %s12667_s18, 1  ;;  %p237_p10 = scmp.lt.s32.totalorder %s12667_s18, 9 }
  0x2e   : > { %p238_p11 = pnand %p11374_p9, %p237_p10 }
  0x30   : > { %241 = sbr.rel (%p238_p11) target bundleno = 1059 (0x423), region = 54 }
  0x37   : > { %s244_s11 = sand.u32 1, %s12643_s12   ;;  %vm436_vm0 = vcmask 1040384   ;;  %vm437_vm1 = vcmask 1041408   ;;  %v12669_v28 = vmov 65535   ;;  %v15736_v30 = vmov 0   ;;  %v12852_v13 = vld [vmem:[%s15725_s1 + $0x8] sm:$0xff]  }
  0x38   : > { %s12386_s21 = smul.u32 208, %s244_s11  ;;  %v438_v29 = vsel %vm436_vm0, 4294967295, %v12669_v28  ;;  %511 = vmatprep.mubr.bf16.mxu0 %v15736_v30  ;;  %554 = vmatprep.mubr.bf16.mxu1 %v15736_v30  ;;  %vm432_vm2 = vcmask 23552   ;;  %vm12672_vm3 = vmmov 0  }
  0x39   : > { %12449 = vset.pattern.permute.xlu0 %v15736_v30  ;;  %v12826_v31 = vsel %vm437_vm1, %v438_v29, 0  ;;  %s12388_s4 = smul.u32 (%p12741_p6), 104, %s12655_s15 }
  0x3a   : > { %s12828_s22 = scalar_lea.vmem [#allocation2], %s12386_s21 }
  0x3b   : > { %v283_v32 = vld [vmem:[%s12828_s22] sm:$0xcc]  ;;  %v284_v33 = vld [vmem:[%s12828_s22 + $0x8] sm:$0xcc]  ;;  %v285_v34 = vld [vmem:[%s12828_s22 + $0x10] sm:$0xcc] }
  0x3c   : > { %v11379_v35 = vcombine.high %v283_v32, %v283_v32  ;;  %v11381_v36 = vcombine.high %v284_v33, %v284_v33  ;;  %v11378_v37 = vcombine.low %v283_v32, %v283_v32  ;;  %v11380_v38 = vcombine.low %v284_v33, %v284_v33  ;;  %v286_v39 = vld [vmem:[%s12828_s22 + $0x18] sm:$0xcc]  ;;  %v287_v8 = vld [vmem:[%s12828_s22 + $0x20] sm:$0xcc]  ;;  %v288_v22 = vld [vmem:[%s12828_s22 + $0x28] sm:$0xcc] }
  0x3d   : > { %v11382_v40 = vcombine.low %v285_v34, %v285_v34  ;;  %v11383_v41 = vcombine.high %v285_v34, %v285_v34  ;;  %v11384_v42 = vcombine.low %v286_v39, %v286_v39  ;;  %v11385_v43 = vcombine.high %v286_v39, %v286_v39 }
  0x3e   : > { %v337_v44 = vshrl.u32 %v11379_v35, 16  ;;  %v340_v45 = vshll.u32 %v11379_v35, 16  ;;  %v353_v46 = vshrl.u32 %v11381_v36, 16  ;;  %v356_v47 = vshll.u32 %v11381_v36, 16 }
  0x3f   : > { %v329_v48 = vshrl.u32 %v11378_v37, 16  ;;  %v332_v49 = vshll.u32 %v11378_v37, 16  ;;  %v345_v50 = vshrl.u32 %v11380_v38, 16  ;;  %v348_v51 = vshll.u32 %v11380_v38, 16 }
  0x40   : > { %v339_v52 = vrot.slane %v337_v44, 2  ;;  %v342_v53 = vrot.slane %v340_v45, 3  ;;  %v355_v54 = vrot.slane %v353_v46, 2  ;;  %v358_v55 = vrot.slane %v356_v47, 3 }
  0x41   : > { %v331_v56 = vrot.slane %v329_v48, 2  ;;  %v334_v57 = vrot.slane %v332_v49, 3  ;;  %v347_v58 = vrot.slane %v345_v50, 2  ;;  %v350_v59 = vrot.slane %v348_v51, 3  ;;  %v274_v50 = vld [vmem:[%s12828_s22 + $0x8] sm:$0x33] }
  0x42   : > { %v343_v60 = vor.u32 %v342_v53, %v339_v52  ;;  %v359_v61 = vor.u32 %v358_v55, %v355_v54  ;;  %v369_v62 = vshrl.u32 %v11383_v41, 16  ;;  %v372_v63 = vshll.u32 %v11383_v41, 16  ;;  %v12463_v37 = vld [vmem:[%s12828_s22 + $0x30] ss:$0 sps:$4 sm:$0xcc]  }
  0x43   : > { %v335_v0 = vor.u32 %v334_v57, %v331_v56  ;;  %v351_v1 = vor.u32 %v350_v59, %v347_v58  ;;  %v361_v2 = vshrl.u32 %v11382_v40, 16  ;;  %v364_v3 = vshll.u32 %v11382_v40, 16 }
  0x44   : > { %v12835_v4 = vand.u32 %v12826_v31, %v343_v60  ;;  %v12838_v5 = vand.u32 %v12826_v31, %v359_v61  ;;  %v371_v6 = vrot.slane %v369_v62, 2  ;;  %v374_v7 = vrot.slane %v372_v63, 3 }
  0x45   : > { %v12842_v9 = vand.u32 %v12826_v31, %v335_v0  ;;  %v12845_v10 = vand.u32 %v12826_v31, %v351_v1  ;;  %v363_v11 = vrot.slane %v361_v2, 2  ;;  %v366_v12 = vrot.slane %v364_v3, 3  ;;  %v273_v3 = vld [vmem:[%s12828_s22] sm:$0x33] }
  0x46   : > { %15895 = vst [vmem:[#allocation4_spill] sm:$0xff] %v12835_v4  ;;  %15896 = vst [vmem:[#allocation5_spill] sm:$0xff] %v12838_v5  ;;  %479 = vmatprep.subr.bf16.mxu0 %v12835_v4  ;;  %522 = vmatprep.subr.bf16.mxu1 %v12838_v5  ;;  %v375_v14 = vor.u32 %v374_v7, %v371_v6  ;;  %v385_v15 = vshrl.u32 %v11385_v43, 16  ;;  %v388_v16 = vshll.u32 %v11385_v43, 16  ;;  %v377_v17 = vshrl.u32 %v11384_v42, 16 }
  0x47   : > { %15897 = vst [vmem:[#allocation6_spill] sm:$0xff] %v12842_v9  ;;  %15898 = vst [vmem:[#allocation7_spill] sm:$0xff] %v12845_v10  ;;  %480 = vmatpush1.bf16.msra.mxu0 %v12842_v9  ;;  %523 = vmatpush1.bf16.msra.mxu1 %v12845_v10  ;;  %v367_v18 = vor.u32 %v366_v12, %v363_v11  ;;  %v380_v19 = vshll.u32 %v11384_v42, 16  ;;  %v11386_v20 = vcombine.low %v287_v8, %v287_v8  ;;  %v276_v6 = vld [vmem:[%s12828_s22 + $0x18] sm:$0x33] }
  0x48   : > { %v11387_v21 = vcombine.high %v287_v8, %v287_v8  ;;  %v12858_v23 = vand.u32 %v12826_v31, %v375_v14  ;;  %v387_v24 = vrot.slane %v385_v15, 2  ;;  %v390_v25 = vrot.slane %v388_v16, 3  ;;  %v13188_v10 = vld [vmem:[%s12828_s22 + $0x18] ss:$52 sps:$4 sm:$0x18]  }
  0x49   : > { %v379_v26 = vrot.slane %v377_v17, 2  ;;  %v12861_v27 = vand.u32 %v12826_v31, %v367_v18  ;;  %v382_v28 = vrot.slane %v380_v19, 3  ;;  %v393_v34 = vshrl.u32 %v11386_v20, 16  ;;  %v269_v17 = vld [vmem:[%s15726_s2] sm:$0xff] }
  0x4a   : > { %15899 = vst [vmem:[#allocation8_spill] sm:$0xff] %v12858_v23  ;;  %v401_v29 = vshrl.u32 %v11387_v21, 16  ;;  %v404_v32 = vshll.u32 %v11387_v21, 16  ;;  %11391 = vmatmul.mubr.msk.bf16.vlgmr.msra.gmra.mrb[0].mxu0 %vm432_vm2, %v12852_v13  ;;  %11392 = vmatmul.mubr.msk.bf16.vlgmr.msra.gmra.mrb[0].mxu1 %vm432_vm2, %v12852_v13  ;;  %v391_v33 = vor.u32 %v390_v25, %v387_v24  ;;  %v396_v35 = vshll.u32 %v11386_v20, 16  ;;  %v278_v24 = vld [vmem:[%s12828_s22 + $0x28] sm:$0x33] }
  0x4b   : > { %15900 = vst [vmem:[#allocation9_spill] sm:$0xff] %v12861_v27  ;;  %v11388_v36 = vcombine.low %v288_v22, %v288_v22  ;;  %565 = vmatprep.subr.bf16.mxu0 %v12858_v23  ;;  %v383_v38 = vor.u32 %v382_v28, %v379_v26  ;;  %597 = vmatprep.mubr.bf16.mxu0 %v15736_v30  ;;  %v395_v43 = vrot.slane %v393_v34, 2  ;;  %v425_v54 = vshrl.u32 %v12463_v37, 16  ;;  %v270_v28 = vld [vmem:[%s15726_s2 + $0x8] sm:$0xff] }
  0x4c   : > { %v403_v39 = vrot.slane %v401_v29, 2  ;;  %v406_v40 = vrot.slane %v404_v32, 3  ;;  %v11389_v41 = vcombine.high %v288_v22, %v288_v22  ;;  %566 = vmatpush1.bf16.msra.mxu0 %v12861_v27  ;;  %v12872_v42 = vand.u32 %v12826_v31, %v391_v33  ;;  %640 = vmatprep.mubr.bf16.mxu1 %v15736_v30  ;;  %v275_v22 = vld [vmem:[%s12828_s22 + $0x10] sm:$0x33] }
  0x4d   : > { %v398_v44 = vrot.slane %v396_v35, 3  ;;  %v409_v45 = vshrl.u32 %v11388_v36, 16  ;;  %v12876_v46 = vand.u32 %v12826_v31, %v383_v38  ;;  %v412_v53 = vshll.u32 %v11388_v36, 16  ;;  %1587 = vperm.xlu0 %12449, %v269_v17   ;;  %v12952_v33 = vld [vmem:[%s15725_s1] sm:$0xff]  }
  0x4e   : > { %15901 = vst [vmem:[#allocation10_spill] sm:$0xff] %v12872_v42  ;;  %v407_v47 = vor.u32 %v406_v40, %v403_v39  ;;  %v417_v48 = vshrl.u32 %v11389_v41, 16  ;;  %v420_v49 = vshll.u32 %v11389_v41, 16  ;;  %608 = vmatprep.subr.bf16.mxu1 %v12872_v42  ;;  %v428_v58 = vshll.u32 %v12463_v37, 16  ;;  %v277_v38 = vld [vmem:[%s12828_s22 + $0x20] sm:$0x33] }
  0x4f   : > { %15902 = vst [vmem:[#allocation11_spill] sm:$0xff] %v12876_v46  ;;  %v399_v51 = vor.u32 %v398_v44, %v395_v43  ;;  %v411_v52 = vrot.slane %v409_v45, 2  ;;  %609 = vmatpush1.bf16.msra.mxu1 %v12876_v46  ;;  %v414_v60 = vrot.slane %v412_v53, 3  ;;  %v427_v61 = vrot.slane %v425_v54, 2  ;;  %v1160_v43 = vld [vmem:[%s12828_s22 + $0x34] sm:$0x66] }
  0x50   : > { %v12882_v55 = vand.u32 %v12826_v31, %v407_v47  ;;  %v419_v56 = vrot.slane %v417_v48, 2  ;;  %v422_v57 = vrot.slane %v420_v49, 3  ;;  %v430_v63 = vrot.slane %v428_v58, 3  ;;  %v1161_v44 = vld [vmem:[%s12828_s22 + $0x3c] sm:$0x66] }
  0x51   : > { %v12885_v59 = vand.u32 %v12826_v31, %v399_v51  ;;  %v12888_v0 = vcombine.high %v274_v50, %v274_v50  ;;  %v415_v1 = vor.u32 %v414_v60, %v411_v52  ;;  %v12894_v2 = vcombine.low %v274_v50, %v274_v50  ;;  %1592 = vperm.xlu0 %12449, %v270_v28   ;;  %v12994_v52 = vld [vmem:[%s12828_s22 + $0x30] ss:$0 sps:$4 sm:$0x33]   ;;  %v13152_v27 = vld [vmem:[%s12828_s22 + $0x10] ss:$52 sps:$4 sm:$0x18]  }
  0x52   : > { %15903 = vst [vmem:[#allocation12_spill] sm:$0xff] %v12882_v55  ;;  %651 = vmatprep.subr.bf16.mxu0 %v12882_v55  ;;  %v423_v62 = vor.u32 %v422_v57, %v419_v56  ;;  %11393 = vmatmul.mubr.msk.bf16.vlgmr.msra.gmra.mrb[4].mxu0 %vm432_vm2, %v12852_v13  ;;  %v431_v8 = vor.u32 %v430_v63, %v427_v61  ;;  %v15728_v14 = vmov 0.0   ;;  %v1162_v56 = vld [vmem:[%s12828_s22 + $0x44] sm:$0x66]  ;;  %v1163_v57 = vld [vmem:[%s12828_s22 + $0x4c] sm:$0x66] }
  0x53   : > { %15904 = vst [vmem:[#allocation13_spill] sm:$0xff] %v12885_v59  ;;  %11394 = vmatmul.mubr.msk.bf16.vlgmr.msra.gmra.mrb[4].mxu1 %vm432_vm2, %v12852_v13  ;;  %652 = vmatpush1.bf16.msra.mxu0 %v12885_v59  ;;  %v829_v11 = vand.u32 %v12888_v0, %v12826_v31  ;;  %v12906_v12 = vand.u32 %v12826_v31, %v415_v1  ;;  %v13164_v23 = vld [vmem:[%s12828_s22 + $0x24] ss:$52 sps:$4 sm:$0x18]  }
  0x54   : > { %v12900_v7 = vand.u32 %v12826_v31, %v423_v62  ;;  %683 = vmatprep.mubr.bf16.mxu0 %v15736_v30  ;;  %726 = vmatprep.mubr.bf16.mxu1 %v15736_v30  ;;  %v12911_v15 = vcombine.high %v273_v3, %v273_v3  ;;  %v12913_v16 = vcombine.high %v276_v6, %v276_v6  ;;  %v1723_v42 = vrot.slane %v13164_v23, 3  ;;  %v13191_v4 = vld [vmem:[%s12828_s22 + $0x20] ss:$52 sps:$4 sm:$0x18]  }
  0x55   : > { %15906 = vst [vmem:[#allocation15_spill] sm:$0xff] %v12906_v12  ;;  %11790 = vmatprep.subr.bf16.mxu0 %v15728_v14  ;;  %v12920_v18 = vand.u32 %v12826_v31, %v431_v8  ;;  %v826_v19 = vand.u32 %v12894_v2, %v12826_v31  ;;  %v12935_v25 = vcombine.low %v273_v3, %v273_v3 }
  0x56   : > { %15905 = vst [vmem:[#allocation14_spill] sm:$0xff] %v12900_v7  ;;  %694 = vmatprep.subr.bf16.mxu1 %v12900_v7  ;;  %v823_v20 = vand.u32 %v12911_v15, %v12826_v31  ;;  %v841_v21 = vand.u32 %v12913_v16, %v12826_v31  ;;  %v12937_v26 = vcombine.low %v276_v6, %v276_v6  ;;  %v13149_v7 = vld [vmem:[%s12828_s22 + $0x8] ss:$52 sps:$4 sm:$0x18]  }
  0x57   : > { %695 = vmatpush1.bf16.msra.mxu1 %v12906_v12  ;;  %15907 = vst [vmem:[#allocation16_spill] sm:$0xff] %v12920_v18  ;;  %v12945_v29 = vcombine.high %v275_v22, %v275_v22  ;;  %v12947_v32 = vcombine.high %v278_v24, %v278_v24  ;;  %v820_v34 = vand.u32 %v12935_v25, %v12826_v31 }
  0x58   : > { %901 = vmatprep.subr.bf16.mxu1 %v829_v11  ;;  %v838_v35 = vand.u32 %v12937_v26, %v12826_v31  ;;  %v12967_v39 = vcombine.low %v275_v22, %v275_v22  ;;  %v12969_v40 = vcombine.low %v278_v24, %v278_v24  ;;  %v12973_v41 = vcombine.high %v277_v38, %v277_v38 }
  0x59   : > { %v835_v36 = vand.u32 %v12945_v29, %v12826_v31  ;;  %v853_v37 = vand.u32 %v12947_v32, %v12826_v31  ;;  %v12983_v49 = vcombine.high %v1160_v43, %v1160_v43  ;;  %v12985_v50 = vcombine.high %v1161_v44, %v1161_v44 }
  0x5a   : > { %11395 = vmatmul.mubr.msk.bf16.vlgmr.msra.gmra.mrb[8].mxu0 %vm432_vm2, %v12852_v13  ;;  %v832_v45 = vand.u32 %v12967_v39, %v12826_v31  ;;  %v850_v47 = vand.u32 %v12969_v40, %v12826_v31  ;;  %v847_v48 = vand.u32 %v12973_v41, %v12826_v31  ;;  %v12991_v51 = vcombine.low %v277_v38, %v277_v38 }
  0x5b   : > { %11396 = vmatmul.mubr.msk.bf16.vlgmr.msra.gmra.mrb[8].mxu1 %vm432_vm2, %v12852_v13  ;;  %11791 = vmatpush3.bf16.msra.mxu0 %v12920_v18  ;;  %v1206_v53 = vrot.slane %v12983_v49, 1  ;;  %v1208_v54 = vrot.slane %v12985_v50, 1  ;;  %v856_v60 = vand.u32 %v12994_v52, %v12826_v31  ;;  %v13007_v61 = vcombine.low %v1160_v43, %v1160_v43 }
  0x5c   : > { %902 = vmatpush1.bf16.msra.mxu1 %v826_v19  ;;  %11792 = vmatprep.mubr.msk.bf16.mxu0 %vm12672_vm3, %v15728_v14  ;;  %v844_v58 = vand.u32 %v12991_v51, %v12826_v31  ;;  %v13009_v62 = vcombine.low %v1161_v44, %v1161_v44  ;;  %v13017_v3 = vcombine.high %v1162_v56, %v1162_v56 }
  0x5d   : > { %933 = vmatprep.mubr.bf16.mxu1 %v15736_v30  ;;  %858 = vmatprep.subr.bf16.mxu0 %v823_v20  ;;  %v13012_v63 = vand.u32 %v1206_v53, %v12826_v31  ;;  %v13015_v1 = vand.u32 %v1208_v54, %v12826_v31  ;;  %v13019_v6 = vcombine.high %v1163_v57, %v1163_v57  ;;  %v1205_v8 = vrot.slane %v13007_v61, 1  ;;  %v1164_v20 = vld [vmem:[%s12828_s22 + $0x54] sm:$0x66] }
  0x5e   : > { %987 = vmatprep.subr.bf16.mxu1 %v841_v21  ;;  %v1207_v11 = vrot.slane %v13009_v62, 1  ;;  %v1210_v17 = vrot.slane %v13017_v3, 1  ;;  %v1165_v21 = vld [vmem:[%s12828_s22 + $0x5c] sm:$0x66]  ;;  %v13042_v28 = vcombine.low %v1162_v56, %v1162_v56  ;;  %v13081_v56 = vcombine.low %v1164_v20, %v1164_v20 }
  0x5f   : > { %15908 = vst [vmem:[#allocation17_spill] sm:$0xff] %v13012_v63  ;;  %15909 = vst [vmem:[#allocation18_spill] sm:$0xff] %v13015_v1  ;;  %v1212_v19 = vrot.slane %v13019_v6, 1  ;;  %v13037_v22 = vand.u32 %v1205_v8, %v12826_v31  ;;  %v13054_v38 = vcombine.high %v1165_v21, %v1165_v21  ;;  %v13092_v8 = vld [vmem:[%s12828_s22 + $0x4] ss:$52 sps:$4 sm:$0x18]  }
  0x60   : > { %v13040_v24 = vand.u32 %v1207_v11, %v12826_v31  ;;  %v1209_v43 = vrot.slane %v13042_v28, 1  ;;  %v1213_v11 = vrot.slane %v13081_v56, 1 }
  0x61   : > { %15910 = vst [vmem:[#allocation19_spill] sm:$0xff] %v13037_v22 }
  0x62   : > { %11793 = vmatmul.mubr.msk.bf16.vlgmr.msra.gmra.mrb[12].mxu0 %vm432_vm2, %v12852_v13  ;;  %15911 = vst [vmem:[#allocation20_spill] sm:$0xff] %v13040_v24  ;;  %v13076_v53 = vand.u32 %v1209_v43, %v12826_v31  ;;  %v13114_v43 = vld [vmem:[%s12828_s22 + $0x64] ss:$0 sps:$4 sm:$0x66]  }
  0x63   : > { %11413 = vmatmul.mubr.msk.bf16.vlgmr.msra.gmra.mrb[0].mxu1 %vm432_vm2, %v12952_v33  ;;  %859 = vmatpush1.bf16.msra.mxu0 %v820_v34  ;;  %v13044_v34 = vcombine.low %v1163_v57, %v1163_v57  ;;  %v13083_v57 = vcombine.low %v1165_v21, %v1165_v21 }
  0x64   : > { %988 = vmatpush1.bf16.msra.mxu1 %v838_v35  ;;  %890 = vmatprep.mubr.bf16.mxu0 %v15736_v30  ;;  %v13047_v35 = vand.u32 %v1210_v17, %v12826_v31  ;;  %15914 = vst [vmem:[#allocation23_spill] sm:$0xff] %v13076_v53 }
  0x65   : > { %1019 = vmatprep.mubr.bf16.mxu1 %v15736_v30  ;;  %944 = vmatprep.subr.bf16.mxu0 %v835_v36  ;;  %v13050_v36 = vand.u32 %v1212_v19, %v12826_v31  ;;  %v1211_v44 = vrot.slane %v13044_v34, 1  ;;  %v1215_v17 = vrot.slane %v13083_v57, 1  ;;  %v1715_v19 = vrot.slane %v13092_v8, 3 }
  0x66   : > { %1073 = vmatprep.subr.bf16.mxu1 %v853_v37  ;;  %15912 = vst [vmem:[#allocation21_spill] sm:$0xff] %v13047_v35  ;;  %v13052_v37 = vcombine.high %v1164_v20, %v1164_v20  ;;  %v13108_v20 = vand.u32 %v1213_v11, %v12826_v31  ;;  %v1217_v11 = vrot.slane %v13114_v43, 1 }
  0x67   : > { %15913 = vst [vmem:[#allocation22_spill] sm:$0xff] %v13050_v36  ;;  %v13079_v54 = vand.u32 %v1211_v44, %v12826_v31  ;;  %v13111_v21 = vand.u32 %v1215_v17, %v12826_v31  ;;  %v13117_v44 = vld [vmem:[%s12828_s22] ss:$52 sps:$4 sm:$0x18]  }
  0x68   : > { %15918 = vst [vmem:[#allocation27_spill] sm:$0xff] %v13108_v20  ;;  %v1714_v17 = vrot.slane %v13117_v44, 3  ;;  %v13143_v12 = vand.u32 %v1217_v11, %v12826_v31  ;;  %v15926_v11 = vmov 0  }
  0x69   : > { %15915 = vst [vmem:[#allocation24_spill] sm:$0xff] %v13079_v54  ;;  %15919 = vst [vmem:[#allocation28_spill] sm:$0xff] %v13111_v21 }
  0x6a   : > { %11412 = vmatmul.mubr.msk.bf16.vlgmr.msra.gmra.mrb[0].mxu0 %vm432_vm2, %v12952_v33  ;;  %15922 = vst [vmem:[#allocation30_spill] sm:$0xff] %v13143_v12  ;;  %v13146_v55 = vand.u32 %v1714_v17, %v12826_v31 }
  0x6b   : > { %11415 = vmatmul.mubr.msk.bf16.vlgmr.msra.gmra.mrb[4].mxu1 %vm432_vm2, %v12952_v33  ;;  %945 = vmatpush1.bf16.msra.mxu0 %v832_v45  ;;  %v1214_v45 = vrot.slane %v13052_v37, 1 }
  0x6c   : > { %1074 = vmatpush1.bf16.msra.mxu1 %v850_v47  ;;  %976 = vmatprep.mubr.bf16.mxu0 %v15736_v30  ;;  %v1216_v47 = vrot.slane %v13054_v38, 1  ;;  %15923 = vst [vmem:[#allocation31_spill] sm:$0xff] %v13146_v55 }
  0x6d   : > { %1105 = vmatprep.mubr.bf16.mxu1 %v15736_v30  ;;  %1030 = vmatprep.subr.bf16.mxu0 %v847_v48  ;;  %v13073_v48 = vld [vmem:[%s15725_s1 + $0x10] sm:$0xff]  }
  0x6e   : > { %11796 = vmatprep.subr.bf16.mxu1 %v15728_v14 }
  0x72   : > { %11414 = vmatmul.mubr.msk.bf16.vlgmr.msra.gmra.mrb[4].mxu0 %vm432_vm2, %v12952_v33 }
  0x73   : > { %11417 = vmatmul.mubr.msk.bf16.vlgmr.msra.gmra.mrb[8].mxu1 %vm432_vm2, %v12952_v33  ;;  %1031 = vmatpush1.bf16.msra.mxu0 %v844_v58  ;;  %v13086_v58 = vand.u32 %v1214_v45, %v12826_v31  ;;  %v13120_v45 = vand.u32 %v1715_v19, %v12826_v31  ;;  %v15921_v19 = vmov 0.0  }
  0x74   : > { %11797 = vmatpush3.bf16.msra.mxu1 %v856_v60  ;;  %1062 = vmatprep.mubr.bf16.mxu0 %v15736_v30  ;;  %v13089_v60 = vand.u32 %v1216_v47, %v12826_v31  ;;  %v13123_v47 = vld [vmem:[%s12828_s22 + $0xc] ss:$52 sps:$4 sm:$0x18]  }
  0x75   : > { %11798 = vmatprep.mubr.msk.bf16.mxu1 %vm12672_vm3, %v15728_v14  ;;  %1260 = vmatprep.subr.bf16.mxu0 %v13012_v63  ;;  %15916 = vst [vmem:[#allocation25_spill] sm:$0xff] %v13086_v58  ;;  %15920 = vst [vmem:[#allocation29_spill] sm:$0xff] %v13120_v45  ;;  %v13126_v14 = vld [vmem:[%s12828_s22 + $0x14] ss:$52 sps:$4 sm:$0x18]   ;;  %v1717_v18 = vrot.slane %v13123_v47, 3 }
  0x76   : > { %1303 = vmatprep.subr.bf16.mxu1 %v13015_v1  ;;  %15917 = vst [vmem:[#allocation26_spill] sm:$0xff] %v13089_v60  ;;  %v1719_v59 = vrot.slane %v13126_v14, 3 }
  0x78   : > { %v13158_v46 = vand.u32 %v1719_v59, %v12826_v31  ;;  %v1716_v59 = vrot.slane %v13149_v7, 3 }
  0x7a   : > { %11416 = vmatmul.mubr.msk.bf16.vlgmr.msra.gmra.mrb[8].mxu0 %vm432_vm2, %v12952_v33  ;;  %15925 = vst [vmem:[#allocation33_spill] sm:$0xff] %v13158_v46  ;;  %v13182_v9 = vand.u32 %v1716_v59, %v12826_v31  ;;  %v1720_v59 = vrot.slane %v13188_v10, 3 }
  0x7b   : > { %11799 = vmatmul.mubr.msk.bf16.vlgmr.msra.gmra.mrb[12].mxu1 %vm432_vm2, %v12952_v33  ;;  %1261 = vmatpush1.bf16.msra.mxu0 %v13037_v22 }
  0x7c   : > { %1304 = vmatpush1.bf16.msra.mxu1 %v13040_v24  ;;  %1292 = vmatprep.mubr.bf16.mxu0 %v15736_v30  ;;  %15927 = vst [vmem:[#allocation34_spill] sm:$0xff] %v13182_v9 }
  0x7d   : > { %1335 = vmatprep.mubr.bf16.mxu1 %v15736_v30  ;;  %1346 = vmatprep.subr.bf16.mxu0 %v13047_v35  ;;  %v2065_v35 = vshrl.u32 %v12935_v25, 16 }
  0x7e   : > { %1389 = vmatprep.subr.bf16.mxu1 %v13050_v36 }
  0x82   : > { %11435 = vmatmul.mubr.msk.bf16.vlgmr.msra.gmra.mrb[0].mxu0 %vm432_vm2, %v13073_v48 }
  0x83   : > { %11436 = vmatmul.mubr.msk.bf16.vlgmr.msra.gmra.mrb[0].mxu1 %vm432_vm2, %v13073_v48  ;;  %1347 = vmatpush1.bf16.msra.mxu0 %v13076_v53  ;;  %v2077_v53 = vshrl.u32 %v12894_v2, 16 }
  0x84   : > { %1390 = vmatpush1.bf16.msra.mxu1 %v13079_v54  ;;  %1378 = vmatprep.mubr.bf16.mxu0 %v15736_v30  ;;  %v2071_v54 = vshrl.u32 %v12911_v15, 16 }
  0x85   : > { %1421 = vmatprep.mubr.bf16.mxu1 %v15736_v30  ;;  %1432 = vmatprep.subr.bf16.mxu0 %v13086_v58 }
  0x86   : > { %1475 = vmatprep.subr.bf16.mxu1 %v13089_v60 }
  0x8a   : > { %11437 = vmatmul.mubr.msk.bf16.vlgmr.msra.gmra.mrb[4].mxu0 %vm432_vm2, %v13073_v48 }
  0x8b   : > { %11438 = vmatmul.mubr.msk.bf16.vlgmr.msra.gmra.mrb[4].mxu1 %vm432_vm2, %v13073_v48  ;;  %1433 = vmatpush1.bf16.msra.mxu0 %v13108_v20 }
  0x8c   : > { %1476 = vmatpush1.bf16.msra.mxu1 %v13111_v21  ;;  %1464 = vmatprep.mubr.bf16.mxu0 %v15736_v30  ;;  %v13224_v21 = vand.u32 %v1720_v59, %v12826_v31 }
  0x8d   : > { %1507 = vmatprep.mubr.bf16.mxu1 %v15736_v30  ;;  %11802 = vmatprep.subr.bf16.mxu0 %v15921_v19  ;;  %v13155_v30 = vand.u32 %v1717_v18, %v12826_v31  ;;  %v1718_v18 = vrot.slane %v13152_v27, 3 }
  0x8e   : > { %1766 = vmatprep.subr.bf16.mxu1 %v13120_v45  ;;  %v13161_v45 = vld [vmem:[%s12828_s22 + $0x1c] ss:$52 sps:$4 sm:$0x18]   ;;  %15931 = vst [vmem:[#allocation38_spill] sm:$0xff] %v13224_v21 }
  0x8f   : > { %15924 = vst [vmem:[#allocation32_spill] sm:$0xff] %v13155_v30  ;;  %v1721_v17 = vrot.slane %v13161_v45, 3 }
  0x91   : > { %v13194_v5 = vand.u32 %v1721_v17, %v12826_v31  ;;  %v2085_v17 = vshll.u32 %v12888_v0, 16 }
  0x92   : > { %11439 = vmatmul.mubr.msk.bf16.vlgmr.msra.gmra.mrb[8].mxu0 %vm432_vm2, %v13073_v48 }
  0x93   : > { %11440 = vmatmul.mubr.msk.bf16.vlgmr.msra.gmra.mrb[8].mxu1 %vm432_vm2, %v13073_v48  ;;  %11803 = vmatpush3.bf16.msra.mxu0 %v13143_v12  ;;  %15929 = vst [vmem:[#allocation36_spill] sm:$0xff] %v13194_v5  ;;  %v13218_v12 = vld [vmem:[%s12828_s22 + $0x28] ss:$52 sps:$4 sm:$0x18]   ;;  %v2087_v20 = vrot.slane %v2085_v17, 1 }
  0x94   : > { %1767 = vmatpush1.bf16.msra.mxu1 %v13146_v55  ;;  %11804 = vmatprep.mubr.msk.bf16.mxu0 %vm12672_vm3, %v15921_v19  ;;  %v13185_v55 = vand.u32 %v1718_v18, %v12826_v31  ;;  %v1722_v18 = vrot.slane %v13191_v4, 3  ;;  %v1724_v59 = vrot.slane %v13218_v12, 3 }
  0x95   : > { %1798 = vmatprep.mubr.bf16.mxu1 %v15926_v11  ;;  %1809 = vmatprep.subr.bf16.mxu0 %v13155_v30  ;;  %v13200_v30 = vld [vmem:[%s12828_s22 + $0x2c] ss:$52 sps:$4 sm:$0x18]  }
  0x96   : > { %1852 = vmatprep.subr.bf16.mxu1 %v13158_v46  ;;  %15928 = vst [vmem:[#allocation35_spill] sm:$0xff] %v13185_v55  ;;  %v13197_v46 = vand.u32 %v1723_v42, %v12826_v31  ;;  %v1725_v42 = vrot.slane %v13200_v30, 3  ;;  %v13227_v60 = vand.u32 %v1722_v18, %v12826_v31 }
  0x98   : > { %15930 = vst [vmem:[#allocation37_spill] sm:$0xff] %v13197_v46  ;;  %15932 = vst [vmem:[#allocation39_spill] sm:$0xff] %v13227_v60 }
  0x9a   : > { %11805 = vmatmul.mubr.msk.bf16.vlgmr.msra.gmra.mrb[16].mxu0 %vm432_vm2, %v13073_v48 }
  0x9b   : > { %11455 = vmatmul.mubr.msk.bf16.vlgmr.msra.gmra.mrb[16].mxu1 %vm432_vm2, %v12852_v13  ;;  %1810 = vmatpush1.bf16.msra.mxu0 %v13182_v9  ;;  %v2073_v9 = vshll.u32 %v12911_v15, 16 }
  0x9c   : > { %1853 = vmatpush1.bf16.msra.mxu1 %v13185_v55  ;;  %1841 = vmatprep.mubr.bf16.mxu0 %v15926_v11  ;;  %v13221_v55 = vld [vmem:[%s12828_s22 + $0x30] ss:$52 sps:$4 sm:$0x18]  }
  0x9d   : > { %1884 = vmatprep.mubr.bf16.mxu1 %v15926_v11  ;;  %1895 = vmatprep.subr.bf16.mxu0 %v13194_v5  ;;  %v2083_v5 = vshrl.u32 %v12888_v0, 16  ;;  %v2075_v58 = vrot.slane %v2073_v9, 1  ;;  %v1726_v18 = vrot.slane %v13221_v55, 3  ;;  %v2079_v0 = vshll.u32 %v12894_v2, 16 }
  0x9e   : > { %1938 = vmatprep.subr.bf16.mxu1 %v13197_v46  ;;  %v13231_v46 = vand.u32 %v1725_v42, %v12826_v31  ;;  %v2067_v42 = vshll.u32 %v12935_v25, 16  ;;  %v2109_v9 = vshll.u32 %v12913_v16, 16  ;;  %v2103_v2 = vshll.u32 %v12937_v26, 16 }
  0x9f   : > { %v2088_v15 = vor.u32 %v2087_v20, %v2083_v5  ;;  %v2076_v17 = vor.u32 %v2075_v58, %v2071_v54  ;;  %v13254_v36 = vand.u32 %v1726_v18, %v12826_v31  ;;  %v2081_v24 = vrot.slane %v2079_v0, 1 }
  0xa0   : > { %15933 = vst [vmem:[#allocation40_spill] sm:$0xff] %v13231_v46  ;;  %v2069_v1 = vrot.slane %v2067_v42, 1  ;;  %v2111_v22 = vrot.slane %v2109_v9, 1  ;;  %v2095_v58 = vshrl.u32 %v12945_v29, 16  ;;  %v2133_v18 = vshll.u32 %v12947_v32, 16 }
  0xa1   : > { %15935 = vst [vmem:[#allocation42_spill] sm:$0xff] %v13254_v36  ;;  %v2153_v5 = vand.u32 %v2088_v15, %v12826_v31  ;;  %v2147_v54 = vand.u32 %v2076_v17, %v12826_v31  ;;  %v2121_v0 = vshll.u32 %v12973_v41, 16  ;;  %v2101_v42 = vshrl.u32 %v12937_v26, 16 }
  0xa2   : > { %11456 = vmatmul.mubr.msk.bf16.vlgmr.msra.gmra.mrb[20].mxu0 %vm432_vm2, %v12852_v13  ;;  %v2070_v25 = vor.u32 %v2069_v1, %v2065_v35  ;;  %v2105_v9 = vrot.slane %v2103_v2, 1  ;;  %v2089_v35 = vshrl.u32 %v12967_v39, 16  ;;  %v2135_v17 = vrot.slane %v2133_v18, 1 }
  0xa3   : > { %11457 = vmatmul.mubr.msk.bf16.vlgmr.msra.gmra.mrb[20].mxu1 %vm432_vm2, %v12852_v13  ;;  %1896 = vmatpush1.bf16.msra.mxu0 %v13224_v21  ;;  %v2097_v21 = vshll.u32 %v12945_v29, 16  ;;  %v2490_v2 = vshrl.u32 %v12983_v49, 16 }
  0xa4   : > { %1939 = vmatpush1.bf16.msra.mxu1 %v13227_v60  ;;  %1927 = vmatprep.mubr.bf16.mxu0 %v15926_v11  ;;  %v13251_v60 = vand.u32 %v1724_v59, %v12826_v31  ;;  %v2091_v59 = vshll.u32 %v12967_v39, 16  ;;  %v2106_v26 = vor.u32 %v2105_v9, %v2101_v42 }
  0xa5   : > { %1970 = vmatprep.mubr.bf16.mxu1 %v15926_v11  ;;  %1981 = vmatprep.subr.bf16.mxu0 %v13231_v46  ;;  %v2107_v46 = vshrl.u32 %v12913_v16, 16  ;;  %v2099_v20 = vrot.slane %v2097_v21, 1  ;;  %v2082_v16 = vor.u32 %v2081_v24, %v2077_v53  ;;  %v2144_v24 = vand.u32 %v2070_v25, %v12826_v31 }
  0xa6   : > { %11808 = vmatprep.subr.bf16.mxu1 %v15921_v19  ;;  %15934 = vst [vmem:[#allocation41_spill] sm:$0xff] %v13251_v60  ;;  %v2093_v53 = vrot.slane %v2091_v59, 1  ;;  %v2125_v25 = vshrl.u32 %v12969_v40, 16  ;;  %v2492_v9 = vrot.slane %v2490_v2, 1 }
  0xa7   : > { %v2112_v29 = vor.u32 %v2111_v22, %v2107_v46  ;;  %v2100_v21 = vor.u32 %v2099_v20, %v2095_v58  ;;  %v2150_v1 = vand.u32 %v2082_v16, %v12826_v31  ;;  %v2131_v46 = vshrl.u32 %v12947_v32, 16 }
  0xa8   : > { %v2094_v39 = vor.u32 %v2093_v53, %v2089_v35  ;;  %v2127_v58 = vshll.u32 %v12969_v40, 16  ;;  %v2115_v32 = vshll.u32 %v12991_v51, 16  ;;  %v2162_v16 = vand.u32 %v2106_v26, %v12826_v31 }
  0xa9   : > { %v2165_v15 = vand.u32 %v2112_v29, %v12826_v31  ;;  %v2159_v22 = vand.u32 %v2100_v21, %v12826_v31  ;;  %v2113_v21 = vshrl.u32 %v12991_v51, 16  ;;  %v2139_v40 = vshll.u32 %v12994_v52, 16 }
  0xaa   : > { %11458 = vmatmul.mubr.msk.bf16.vlgmr.msra.gmra.mrb[24].mxu0 %vm432_vm2, %v12852_v13  ;;  %v2156_v59 = vand.u32 %v2094_v39, %v12826_v31  ;;  %v2129_v29 = vrot.slane %v2127_v58, 1  ;;  %v2117_v18 = vrot.slane %v2115_v32, 1  ;;  %v2482_v51 = vshrl.u32 %v13007_v61, 16 }
  0xab   : > { %11459 = vmatmul.mubr.msk.bf16.vlgmr.msra.gmra.mrb[24].mxu1 %vm432_vm2, %v12852_v13  ;;  %1982 = vmatpush1.bf16.msra.mxu0 %v13251_v60  ;;  %v2485_v35 = vshll.u32 %v13007_v61, 16  ;;  %v2506_v53 = vshrl.u32 %v12985_v50, 16 }
  0xac   : > { %11809 = vmatpush3.bf16.msra.mxu1 %v13254_v36  ;;  %2013 = vmatprep.mubr.bf16.mxu0 %v15926_v11  ;;  %v2484_v39 = vrot.slane %v2482_v51, 1  ;;  %v16007_v36 = vld [vmem:[#allocation13_spill] sm:$0xff] }
  0xad   : > { %11810 = vmatprep.mubr.msk.bf16.mxu1 %vm12672_vm3, %v15921_v19  ;;  %2225 = vmatprep.subr.bf16.mxu0 %v2153_v5  ;;  %v2119_v5 = vshrl.u32 %v12973_v41, 16  ;;  %v2136_v41 = vor.u32 %v2135_v17, %v2131_v46  ;;  %v2525_v17 = vshll.u32 %v13017_v3, 16  ;;  %v2487_v58 = vrot.slane %v2485_v35, 2 }
  0xae   : > { %2182 = vmatprep.subr.bf16.mxu1 %v2147_v54  ;;  %v2123_v54 = vrot.slane %v2121_v0, 1  ;;  %v2508_v32 = vrot.slane %v2506_v53, 1 }
  0xaf   : > { %v2177_v0 = vand.u32 %v2136_v41, %v12826_v31  ;;  %v2527_v2 = vrot.slane %v2525_v17, 2 }
  0xb0   : > { %v2124_v20 = vor.u32 %v2123_v54, %v2119_v5  ;;  %v2137_v5 = vshrl.u32 %v12994_v52, 16  ;;  %v2141_v54 = vrot.slane %v2139_v40, 1  ;;  %v2498_v52 = vshrl.u32 %v13009_v62, 16 }
  0xb2   : > { %11460 = vmatmul.mubr.msk.bf16.vlgmr.msra.gmra.mrb[28].mxu0 %vm432_vm2, %v12852_v13  ;;  %v2171_v42 = vand.u32 %v2124_v20, %v12826_v31 }
  0xb3   : > { %11811 = vmatmul.mubr.msk.bf16.vlgmr.msra.gmra.mrb[28].mxu1 %vm432_vm2, %v12852_v13  ;;  %2226 = vmatpush1.bf16.msra.mxu0 %v2150_v1  ;;  %v2493_v13 = vshll.u32 %v12983_v49, 16  ;;  %v2130_v49 = vor.u32 %v2129_v29, %v2125_v25  ;;  %v2514_v25 = vshrl.u32 %v13042_v28, 16 }
  0xb4   : > { %2183 = vmatpush1.bf16.msra.mxu1 %v2144_v24  ;;  %2214 = vmatprep.mubr.bf16.mxu1 %v15926_v11  ;;  %v2118_v24 = vor.u32 %v2117_v18, %v2113_v21  ;;  %v2538_v21 = vshrl.u32 %v13019_v6, 16  ;;  %v2541_v18 = vshll.u32 %v13019_v6, 16 }
  0xb5   : > { %2257 = vmatprep.mubr.bf16.mxu0 %v15926_v11  ;;  %2311 = vmatprep.subr.bf16.mxu0 %v2165_v15  ;;  %v2495_v1 = vrot.slane %v2493_v13, 2  ;;  %v2509_v15 = vshll.u32 %v12985_v50, 16  ;;  %v2174_v61 = vand.u32 %v2130_v49, %v12826_v31  ;;  %v2142_v13 = vor.u32 %v2141_v54, %v2137_v5 }
  0xb6   : > { %2268 = vmatprep.subr.bf16.mxu1 %v2159_v22  ;;  %v2522_v22 = vshrl.u32 %v13017_v3, 16  ;;  %v2168_v26 = vand.u32 %v2118_v24, %v12826_v31  ;;  %v2501_v3 = vshll.u32 %v13009_v62, 16  ;;  %v2516_v49 = vrot.slane %v2514_v25, 1 }
  0xb7   : > { %v2496_v46 = vor.u32 %v2495_v1, %v2492_v9  ;;  %v2511_v41 = vrot.slane %v2509_v15, 2  ;;  %v2500_v9 = vrot.slane %v2498_v52, 1  ;;  %v2180_v1 = vand.u32 %v2142_v13, %v12826_v31 }
  0xb8   : > { %v2524_v20 = vrot.slane %v2522_v22, 1  ;;  %v2540_v35 = vrot.slane %v2538_v21, 1  ;;  %v2543_v6 = vrot.slane %v2541_v18, 2  ;;  %v2530_v22 = vshrl.u32 %v13044_v34, 16 }
  0xb9   : > { %v13316_v50 = vand.u32 %v2496_v46, %v12826_v31  ;;  %v2512_v29 = vor.u32 %v2511_v41, %v2508_v32  ;;  %v2533_v5 = vshll.u32 %v13044_v34, 16  ;;  %v2546_v54 = vshrl.u32 %v13081_v56, 16 }
  0xba   : > { %11463 = vmatmul.mubr.msk.bf16.vlgmr.msra.gmra.mrb[20].mxu0 %vm432_vm2, %v12952_v33  ;;  %v2528_v62 = vor.u32 %v2527_v2, %v2524_v20  ;;  %v2532_v41 = vrot.slane %v2530_v22, 1  ;;  %v2562_v25 = vshrl.u32 %v13083_v57, 16  ;;  %v2581_v18 = vshll.u32 %v13114_v43, 16 }
  0xbb   : > { %11462 = vmatmul.mubr.msk.bf16.vlgmr.msra.gmra.mrb[16].mxu1 %vm432_vm2, %v12952_v33  ;;  %2312 = vmatpush1.bf16.msra.mxu0 %v2162_v16  ;;  %15936 = vst [vmem:[#allocation43_spill] sm:$0xff] %v13316_v50  ;;  %v2488_v16 = vor.u32 %v2487_v58, %v2484_v39  ;;  %v13339_v51 = vand.u32 %v2512_v29, %v12826_v31  ;;  %v2573_v39 = vshll.u32 %v13054_v38, 16  ;;  %v2535_v20 = vrot.slane %v2533_v5, 2 }
  0xbc   : > { %2269 = vmatpush1.bf16.msra.mxu1 %v2156_v59  ;;  %2300 = vmatprep.mubr.bf16.mxu1 %v15926_v11  ;;  %v2517_v59 = vshll.u32 %v13042_v28, 16  ;;  %v2503_v28 = vrot.slane %v2501_v3, 2  ;;  %v13342_v53 = vand.u32 %v2528_v62, %v12826_v31  ;;  %v2544_v58 = vor.u32 %v2543_v6, %v2540_v35 }
  0xbd   : > { %2343 = vmatprep.mubr.bf16.mxu0 %v15926_v11  ;;  %2397 = vmatprep.subr.bf16.mxu0 %v2177_v0  ;;  %v2554_v0 = vshrl.u32 %v13052_v37, 16  ;;  %v13336_v40 = vand.u32 %v2488_v16, %v12826_v31  ;;  %15938 = vst [vmem:[#allocation45_spill] sm:$0xff] %v13339_v51  ;;  %v2548_v2 = vrot.slane %v2546_v54, 1  ;;  %v2575_v13 = vrot.slane %v2573_v39, 2 }
  0xbe   : > { %2354 = vmatprep.subr.bf16.mxu1 %v2171_v42  ;;  %v2557_v42 = vshll.u32 %v13052_v37, 16  ;;  %v2519_v24 = vrot.slane %v2517_v59, 2  ;;  %15939 = vst [vmem:[#allocation46_spill] sm:$0xff] %v13342_v53  ;;  %v2504_v37 = vor.u32 %v2503_v28, %v2500_v9  ;;  %v2565_v59 = vshll.u32 %v13083_v57, 16 }
  0xbf   : > { %15937 = vst [vmem:[#allocation44_spill] sm:$0xff] %v13336_v40  ;;  %v2556_v15 = vrot.slane %v2554_v0, 1  ;;  %v2536_v29 = vor.u32 %v2535_v20, %v2532_v41  ;;  %v2578_v62 = vshrl.u32 %v13114_v43, 16  ;;  %v3043_v57 = vshrl.u32 %v13092_v8, 16 }
  0xc0   : > { %v2559_v46 = vrot.slane %v2557_v42, 2  ;;  %v2520_v17 = vor.u32 %v2519_v24, %v2516_v49  ;;  %v13361_v34 = vand.u32 %v2504_v37, %v12826_v31  ;;  %v3046_v0 = vshll.u32 %v13092_v8, 16 }
  0xc1   : > { %v3059_v42 = vshrl.u32 %v13123_v47, 16  ;;  %v3062_v9 = vshll.u32 %v13123_v47, 16  ;;  %v2564_v28 = vrot.slane %v2562_v25, 1  ;;  %v13391_v43 = vand.u32 %v2536_v29, %v12826_v31 }
  0xc2   : > { %11465 = vmatmul.mubr.msk.bf16.vlgmr.msra.gmra.mrb[24].mxu0 %vm432_vm2, %v12952_v33  ;;  %v2560_v32 = vor.u32 %v2559_v46, %v2556_v15  ;;  %15940 = vst [vmem:[#allocation47_spill] sm:$0xff] %v13361_v34  ;;  %v2580_v24 = vrot.slane %v2578_v62, 1  ;;  %v2583_v35 = vrot.slane %v2581_v18, 2  ;;  %v3045_v15 = vrot.slane %v3043_v57, 3 }
  0xc3   : > { %11464 = vmatmul.mubr.msk.bf16.vlgmr.msra.gmra.mrb[20].mxu1 %vm432_vm2, %v12952_v33  ;;  %2398 = vmatpush1.bf16.msra.mxu0 %v2174_v61  ;;  %v2549_v61 = vshll.u32 %v13081_v56, 16  ;;  %v13364_v56 = vand.u32 %v2520_v17, %v12826_v31  ;;  %15944 = vst [vmem:[#allocation51_spill] sm:$0xff] %v13391_v43  ;;  %v3048_v46 = vrot.slane %v3046_v0, 4  ;;  %v3061_v8 = vrot.slane %v3059_v42, 3 }
  0xc4   : > { %2355 = vmatpush1.bf16.msra.mxu1 %v2168_v26  ;;  %2386 = vmatprep.mubr.bf16.mxu1 %v15926_v11  ;;  %v2570_v26 = vshrl.u32 %v13054_v38, 16  ;;  %v13367_v38 = vand.u32 %v2544_v58, %v12826_v31  ;;  %v13370_v16 = vand.u32 %v2560_v32, %v12826_v31  ;;  %v3064_v37 = vrot.slane %v3062_v9, 4 }
  0xc5   : > { %2429 = vmatprep.mubr.bf16.mxu0 %v15926_v11  ;;  %11814 = vmatprep.subr.bf16.mxu0 %v15921_v19  ;;  %15941 = vst [vmem:[#allocation48_spill] sm:$0xff] %v13364_v56  ;;  %v2551_v52 = vrot.slane %v2549_v61, 2  ;;  %v3035_v22 = vshrl.u32 %v13117_v44, 16  ;;  %v2584_v17 = vor.u32 %v2583_v35, %v2580_v24  ;;  %v3038_v5 = vshll.u32 %v13117_v44, 16 }
  0xc6   : > { %2624 = vmatprep.subr.bf16.mxu1 %v13316_v50  ;;  %v2572_v3 = vrot.slane %v2570_v26, 1  ;;  %15942 = vst [vmem:[#allocation49_spill] sm:$0xff] %v13367_v38  ;;  %15943 = vst [vmem:[#allocation50_spill] sm:$0xff] %v13370_v16  ;;  %v3051_v54 = vshrl.u32 %v13149_v7, 16  ;;  %v3054_v61 = vshll.u32 %v13149_v7, 16  ;;  %v3075_v26 = vshrl.u32 %v13126_v14, 16 }
  0xc7   : > { %v2552_v21 = vor.u32 %v2551_v52, %v2548_v2  ;;  %v3078_v39 = vshll.u32 %v13126_v14, 16  ;;  %v3049_v58 = vor.u32 %v3048_v46, %v3045_v15  ;;  %v3065_v32 = vor.u32 %v3064_v37, %v3061_v8 }
  0xc8   : > { %v3091_v44 = vshrl.u32 %v13161_v45, 16  ;;  %v3094_v41 = vshll.u32 %v13161_v45, 16  ;;  %v3037_v20 = vrot.slane %v3035_v22, 3  ;;  %v13421_v2 = vand.u32 %v2584_v17, %v12826_v31 }
  0xc9   : > { %v13394_v49 = vand.u32 %v2552_v21, %v12826_v31  ;;  %v3040_v52 = vrot.slane %v3038_v5, 4  ;;  %v3056_v14 = vrot.slane %v3054_v61, 4  ;;  %v3080_v25 = vrot.slane %v3078_v39, 4 }
  0xca   : > { %11467 = vmatmul.mubr.msk.bf16.vlgmr.msra.gmra.mrb[28].mxu0 %vm432_vm2, %v12952_v33  ;;  %15948 = vst [vmem:[#allocation55_spill] sm:$0xff] %v13421_v2  ;;  %v13427_v29 = vand.u32 %v3065_v32, %v12826_v31  ;;  %v3093_v21 = vrot.slane %v3091_v44, 3  ;;  %v3096_v45 = vrot.slane %v3094_v41, 4  ;;  %v3067_v62 = vshrl.u32 %v13152_v27, 16 }
  0xcb   : > { %11466 = vmatmul.mubr.msk.bf16.vlgmr.msra.gmra.mrb[24].mxu1 %vm432_vm2, %v12952_v33  ;;  %11815 = vmatpush3.bf16.msra.mxu0 %v2180_v1  ;;  %v2567_v1 = vrot.slane %v2565_v59, 2  ;;  %15945 = vst [vmem:[#allocation52_spill] sm:$0xff] %v13394_v49  ;;  %v13424_v59 = vand.u32 %v3049_v58, %v12826_v31  ;;  %v3070_v18 = vshll.u32 %v13152_v27, 16  ;;  %v3083_v0 = vshrl.u32 %v13188_v10, 16 }
  0xcc   : > { %2625 = vmatpush1.bf16.msra.mxu1 %v13336_v40  ;;  %11816 = vmatprep.mubr.msk.bf16.mxu0 %vm12672_vm3, %v15921_v19  ;;  %15950 = vst [vmem:[#allocation57_spill] sm:$0xff] %v13427_v29  ;;  %v3086_v42 = vshll.u32 %v13188_v10, 16  ;;  %v3097_v27 = vor.u32 %v3096_v45, %v3093_v21  ;;  %v3123_v24 = vshrl.u32 %v13200_v30, 16  ;;  %v3126_v35 = vshll.u32 %v13200_v30, 16 }
  0xcd   : > { %2656 = vmatprep.mubr.bf16.mxu1 %v15926_v11  ;;  %2667 = vmatprep.subr.bf16.mxu0 %v13339_v51  ;;  %v2568_v47 = vor.u32 %v2567_v1, %v2564_v28  ;;  %15949 = vst [vmem:[#allocation56_spill] sm:$0xff] %v13424_v59  ;;  %v3107_v28 = vshrl.u32 %v13164_v23, 16  ;;  %v3110_v1 = vshll.u32 %v13164_v23, 16  ;;  %v3069_v10 = vrot.slane %v3067_v62, 3  ;;  %v13490_v62 = vld [vmem:[%s15725_s1 + $0x8] sm:$0xff]  }
  0xce   : > { %2710 = vmatprep.subr.bf16.mxu1 %v13342_v53  ;;  %v3072_v15 = vrot.slane %v3070_v18, 4  ;;  %v3085_v37 = vrot.slane %v3083_v0, 3  ;;  %v13458_v23 = vand.u32 %v3097_v27, %v12826_v31  ;;  %v3128_v30 = vrot.slane %v3126_v35, 4  ;;  %v3030_v27 = vld [vmem:[%s12828_s22 + $0x18] sm:$0x66] }
  0xcf   : > { %v13418_v7 = vand.u32 %v2568_v47, %v12826_v31  ;;  %v3088_v47 = vrot.slane %v3086_v42, 4  ;;  %v3109_v17 = vrot.slane %v3107_v28, 3  ;;  %v3112_v5 = vrot.slane %v3110_v1, 4  ;;  %v3027_v28 = vld [vmem:[%s12828_s22] sm:$0x66] }
  0xd0   : > { %15954 = vst [vmem:[#allocation61_spill] sm:$0xff] %v13458_v23  ;;  %v3073_v61 = vor.u32 %v3072_v15, %v3069_v10  ;;  %v3102_v58 = vshll.u32 %v13191_v4, 16  ;;  %v3115_v32 = vshrl.u32 %v13218_v12, 16  ;;  %v3118_v44 = vshll.u32 %v13218_v12, 16 }
  0xd1   : > { %15947 = vst [vmem:[#allocation54_spill] sm:$0xff] %v13418_v7  ;;  %v3089_v39 = vor.u32 %v3088_v47, %v3085_v37  ;;  %v3134_v0 = vshll.u32 %v13221_v55, 16  ;;  %v11484_v15 = vcombine.high %v3027_v28, %v3027_v28  ;;  %v11490_v37 = vcombine.high %v3030_v27, %v3030_v27 }
  0xd2   : > { %11817 = vmatmul.mubr.msk.bf16.vlgmr.msra.gmra.mrb[32].mxu0 %vm432_vm2, %v12952_v33  ;;  %v2576_v33 = vor.u32 %v2575_v13, %v2572_v3  ;;  %v3053_v3 = vrot.slane %v3051_v54, 3  ;;  %v3077_v13 = vrot.slane %v3075_v26, 3  ;;  %v3125_v54 = vrot.slane %v3123_v24, 3 }
  0xd3   : > { %11469 = vmatmul.mubr.msk.bf16.vlgmr.msra.gmra.mrb[16].mxu1 %vm432_vm2, %v13073_v48  ;;  %2668 = vmatpush1.bf16.msra.mxu0 %v13361_v34  ;;  %v3099_v26 = vshrl.u32 %v13191_v4, 16  ;;  %v13479_v4 = vand.u32 %v3089_v39, %v12826_v31  ;;  %v3117_v12 = vrot.slane %v3115_v32, 3  ;;  %v11489_v32 = vcombine.low %v3030_v27, %v3030_v27  ;;  %v13548_v27 = vld [vmem:[%s15725_s1] sm:$0xff]  }
  0xd4   : > { %2711 = vmatpush1.bf16.msra.mxu1 %v13364_v56  ;;  %2699 = vmatprep.mubr.bf16.mxu0 %v15926_v11  ;;  %v13397_v6 = vand.u32 %v2576_v33, %v12826_v31  ;;  %v3041_v33 = vor.u32 %v3040_v52, %v3037_v20  ;;  %v3057_v57 = vor.u32 %v3056_v14, %v3053_v3  ;;  %v3028_v3 = vld [vmem:[%s12828_s22 + $0x8] sm:$0x66]  ;;  %v3104_v14 = vrot.slane %v3102_v58, 4 }
  0xd5   : > { %2742 = vmatprep.mubr.bf16.mxu1 %v15926_v11  ;;  %2753 = vmatprep.subr.bf16.mxu0 %v13367_v38  ;;  %v3081_v9 = vor.u32 %v3080_v25, %v3077_v13  ;;  %v3129_v41 = vor.u32 %v3128_v30, %v3125_v54  ;;  %v13475_v20 = vand.u32 %v3073_v61, %v12826_v31  ;;  %v3101_v52 = vrot.slane %v3099_v26, 3  ;;  %v3029_v30 = vld [vmem:[%s12828_s22 + $0x10] sm:$0x66]  ;;  %v3032_v61 = vld [vmem:[%s12828_s22 + $0x28] sm:$0x66] }
  0xd6   : > { %2796 = vmatprep.subr.bf16.mxu1 %v13370_v16  ;;  %15946 = vst [vmem:[#allocation53_spill] sm:$0xff] %v13397_v6  ;;  %v13449_v46 = vand.u32 %v3041_v33, %v12826_v31  ;;  %v13452_v8 = vand.u32 %v3057_v57, %v12826_v31  ;;  %15956 = vst [vmem:[#allocation63_spill] sm:$0xff] %v13479_v4  ;;  %v3120_v13 = vrot.slane %v3118_v44, 4  ;;  %v3131_v57 = vshrl.u32 %v13221_v55, 16 }
  0xd7   : > { %v13455_v22 = vand.u32 %v3081_v9, %v12826_v31  ;;  %15955 = vst [vmem:[#allocation62_spill] sm:$0xff] %v13475_v20  ;;  %v13485_v21 = vand.u32 %v3129_v41, %v12826_v31  ;;  %v11486_v45 = vcombine.high %v3028_v3, %v3028_v3  ;;  %v3105_v18 = vor.u32 %v3104_v14, %v3101_v52 }
  0xd8   : > { %15951 = vst [vmem:[#allocation58_spill] sm:$0xff] %v13449_v46  ;;  %15952 = vst [vmem:[#allocation59_spill] sm:$0xff] %v13452_v8  ;;  %v3121_v33 = vor.u32 %v3120_v13, %v3117_v12  ;;  %v11485_v9 = vcombine.low %v3028_v3, %v3028_v3  ;;  %v3133_v35 = vrot.slane %v3131_v57, 3  ;;  %v3136_v55 = vrot.slane %v3134_v0, 4 }
  0xd9   : > { %15953 = vst [vmem:[#allocation60_spill] sm:$0xff] %v13455_v22  ;;  %15958 = vst [vmem:[#allocation65_spill] sm:$0xff] %v13485_v21  ;;  %v3512_v42 = vrot.slane %v11486_v45, 1  ;;  %v13507_v1 = vand.u32 %v3105_v18, %v12826_v31  ;;  %v3516_v54 = vrot.slane %v11490_v37, 1  ;;  %v11483_v58 = vcombine.low %v3027_v28, %v3027_v28  ;;  %v3031_v45 = vld [vmem:[%s12828_s22 + $0x20] sm:$0x66] }
  0xda   : > { %11470 = vmatmul.mubr.msk.bf16.vlgmr.msra.gmra.mrb[20].mxu0 %vm432_vm2, %v13073_v48  ;;  %v13510_v24 = vand.u32 %v3121_v33, %v12826_v31  ;;  %v3137_v47 = vor.u32 %v3136_v55, %v3133_v35  ;;  %v11488_v41 = vcombine.high %v3029_v30, %v3029_v30  ;;  %v11494_v52 = vcombine.high %v3032_v61, %v3032_v61  ;;  %v3861_v37 = vld [vmem:[%s12828_s22 + $0x3c] sm:$0xcc] }
  0xdb   : > { %11471 = vmatmul.mubr.msk.bf16.vlgmr.msra.gmra.mrb[20].mxu1 %vm432_vm2, %v13073_v48  ;;  %2754 = vmatpush1.bf16.msra.mxu0 %v13391_v43  ;;  %15959 = vst [vmem:[#allocation66_spill] sm:$0xff] %v13507_v1  ;;  %v3532_v10 = vand.u32 %v3512_v42, %v12826_v31  ;;  %v3509_v3 = vrot.slane %v11483_v58, 1  ;;  %v3515_v14 = vrot.slane %v11489_v32, 1  ;;  %v11487_v57 = vcombine.low %v3029_v30, %v3029_v30 }
  0xdc   : > { %2797 = vmatpush1.bf16.msra.mxu1 %v13394_v49  ;;  %2785 = vmatprep.mubr.bf16.mxu0 %v15926_v11  ;;  %15960 = vst [vmem:[#allocation67_spill] sm:$0xff] %v13510_v24  ;;  %v13525_v26 = vand.u32 %v3137_v47, %v12826_v31  ;;  %v3514_v12 = vrot.slane %v11488_v41, 1  ;;  %v3520_v13 = vrot.slane %v11494_v52, 1  ;;  %v11493_v0 = vcombine.low %v3032_v61, %v3032_v61  ;;  %v3862_v41 = vld [vmem:[%s12828_s22 + $0x44] sm:$0xcc] }
  0xdd   : > { %2828 = vmatprep.mubr.bf16.mxu1 %v15926_v11  ;;  %2839 = vmatprep.subr.bf16.mxu0 %v13397_v6  ;;  %v3523_v18 = vand.u32 %v3509_v3, %v12826_v31  ;;  %v3541_v33 = vand.u32 %v3515_v14, %v12826_v31  ;;  %v11492_v28 = vcombine.high %v3031_v45, %v3031_v45  ;;  %v3513_v35 = vrot.slane %v11487_v57, 1  ;;  %v3863_v52 = vld [vmem:[%s12828_s22 + $0x4c] sm:$0xcc] }
  0xde   : > { %11820 = vmatprep.subr.bf16.mxu1 %v15921_v19  ;;  %15961 = vst [vmem:[#allocation68_spill] sm:$0xff] %v13525_v26  ;;  %v3538_v42 = vand.u32 %v3514_v12, %v12826_v31  ;;  %v3519_v55 = vrot.slane %v11493_v0, 1  ;;  %v11510_v57 = vcombine.high %v3863_v52, %v3863_v52 }
  0xdf   : > { %v3535_v47 = vand.u32 %v3513_v35, %v12826_v31  ;;  %v3864_v35 = vld [vmem:[%s12828_s22 + $0x54] sm:$0xcc] }
  0xe2   : > { %11472 = vmatmul.mubr.msk.bf16.vlgmr.msra.gmra.mrb[24].mxu0 %vm432_vm2, %v13073_v48 }
  0xe3   : > { %11473 = vmatmul.mubr.msk.bf16.vlgmr.msra.gmra.mrb[24].mxu1 %vm432_vm2, %v13073_v48  ;;  %2840 = vmatpush1.bf16.msra.mxu0 %v13418_v7 }
  0xe4   : > { %11821 = vmatpush3.bf16.msra.mxu1 %v13421_v2  ;;  %2871 = vmatprep.mubr.bf16.mxu0 %v15926_v11 }
  0xe5   : > { %11822 = vmatprep.mubr.msk.bf16.mxu1 %vm12672_vm3, %v15921_v19  ;;  %3177 = vmatprep.subr.bf16.mxu0 %v13424_v59  ;;  %v15994_v59 = vld [vmem:[#allocation9_spill] sm:$0xff] }
  0xe6   : > { %3220 = vmatprep.subr.bf16.mxu1 %v13427_v29 }
  0xea   : > { %11474 = vmatmul.mubr.msk.bf16.vlgmr.msra.gmra.mrb[28].mxu0 %vm432_vm2, %v13073_v48 }
  0xeb   : > { %11823 = vmatmul.mubr.msk.bf16.vlgmr.msra.gmra.mrb[32].mxu1 %vm432_vm2, %v13073_v48  ;;  %3178 = vmatpush1.bf16.msra.mxu0 %v13449_v46  ;;  %v3113_v48 = vor.u32 %v3112_v5, %v3109_v17  ;;  %v3511_v17 = vrot.slane %v11485_v9, 1  ;;  %v3510_v5 = vrot.slane %v11484_v15, 1  ;;  %v3556_v9 = vand.u32 %v3520_v13, %v12826_v31  ;;  %v3860_v15 = vld [vmem:[%s12828_s22 + $0x34] sm:$0xcc] }
  0xec   : > { %3221 = vmatpush1.bf16.msra.mxu1 %v13452_v8  ;;  %3209 = vmatprep.mubr.bf16.mxu0 %v15926_v11  ;;  %v11504_v61 = vcombine.high %v3860_v15, %v3860_v15  ;;  %v11503_v12 = vcombine.low %v3860_v15, %v3860_v15  ;;  %v11505_v13 = vcombine.low %v3861_v37, %v3861_v37  ;;  %v12545_v8 = vld [vmem:[%s12828_s22 + $0x48] ss:$52 sps:$4 sm:$0x18]  }
  0xed   : > { %3252 = vmatprep.mubr.bf16.mxu1 %v15926_v11  ;;  %3263 = vmatprep.subr.bf16.mxu0 %v13455_v22  ;;  %v13482_v25 = vand.u32 %v3113_v48, %v12826_v31  ;;  %v3529_v39 = vand.u32 %v3511_v17, %v12826_v31  ;;  %v3526_v44 = vand.u32 %v3510_v5, %v12826_v31 }
  0xee   : > { %3306 = vmatprep.subr.bf16.mxu1 %v13458_v23  ;;  %v3544_v48 = vand.u32 %v3516_v54, %v12826_v31  ;;  %v3553_v17 = vand.u32 %v3519_v55, %v12826_v31  ;;  %v11491_v5 = vcombine.low %v3031_v45, %v3031_v45  ;;  %v12523_v54 = vld [vmem:[%s12828_s22 + $0x30] ss:$0 sps:$4 sm:$0x66]   ;;  %v3900_v0 = vrot.slane %v11503_v12, 2  ;;  %v3865_v55 = vld [vmem:[%s12828_s22 + $0x5c] sm:$0xcc] }
  0xef   : > { %15957 = vst [vmem:[#allocation64_spill] sm:$0xff] %v13482_v25  ;;  %v3521_v32 = vrot.slane %v12523_v54, 1  ;;  %v11512_v54 = vcombine.high %v3864_v35, %v3864_v35  ;;  %v13625_v12 = vld [vmem:[%s15725_s1 + $0x10] sm:$0xff]  }
  0xf0   : > { %v3517_v58 = vrot.slane %v11491_v5, 1 }
  0xf1   : > { %v3559_v14 = vand.u32 %v3521_v32, %v12826_v31 }
  0xf2   : > { %11476 = vmatmul.mubr.msk.bf16.vlgmr.msra.gmra.mrb[36].mxu0 %vm432_vm2, %v13490_v62  ;;  %v3547_v3 = vand.u32 %v3517_v58, %v12826_v31  ;;  %v3909_v58 = vrot.slane %v11512_v54, 2  ;;  %v15975_v54 = vld [vmem:[#allocation19_spill] sm:$0xff] }
  0xf3   : > { %11477 = vmatmul.mubr.msk.bf16.vlgmr.msra.gmra.mrb[36].mxu1 %vm432_vm2, %v13490_v62  ;;  %3264 = vmatpush1.bf16.msra.mxu0 %v13475_v20  ;;  %v12542_v20 = vld [vmem:[%s12828_s22 + $0x40] ss:$52 sps:$4 sm:$0x18]  }
  0xf4   : > { %3307 = vmatpush1.bf16.msra.mxu1 %v13479_v4  ;;  %3295 = vmatprep.mubr.bf16.mxu0 %v15926_v11  ;;  %v5045_v29 = vshrl.u32 %v12542_v20, 16 }
  0xf5   : > { %3338 = vmatprep.mubr.bf16.mxu1 %v15926_v11  ;;  %3349 = vmatprep.subr.bf16.mxu0 %v13482_v25 }
  0xf6   : > { %3392 = vmatprep.subr.bf16.mxu1 %v13485_v21 }
  0xfa   : > { %11478 = vmatmul.mubr.msk.bf16.vlgmr.msra.gmra.mrb[40].mxu0 %vm432_vm2, %v13490_v62 }
  0xfb   : > { %11479 = vmatmul.mubr.msk.bf16.vlgmr.msra.gmra.mrb[40].mxu1 %vm432_vm2, %v13490_v62  ;;  %3350 = vmatpush1.bf16.msra.mxu0 %v13507_v1 }
  0xfc   : > { %3393 = vmatpush1.bf16.msra.mxu1 %v13510_v24  ;;  %3381 = vmatprep.mubr.bf16.mxu0 %v15926_v11 }
  0xfd   : > { %3424 = vmatprep.mubr.bf16.mxu1 %v15926_v11  ;;  %11826 = vmatprep.subr.bf16.mxu0 %v15921_v19 }
  0xfe   : > { %3604 = vmatprep.subr.bf16.mxu1 %v3532_v10  ;;  %v3518_v10 = vrot.slane %v11492_v28, 1  ;;  %v3907_v28 = vrot.slane %v11510_v57, 2 }
 0x100   : > { %v3550_v30 = vand.u32 %v3518_v10, %v12826_v31  ;;  %v13589_v10 = vand.u32 %v3900_v0, %v12826_v31  ;;  %v13598_v5 = vand.u32 %v3907_v28, %v12826_v31 }
 0x102   : > { %11480 = vmatmul.mubr.msk.bf16.vlgmr.msra.gmra.mrb[44].mxu0 %vm432_vm2, %v13490_v62  ;;  %15964 = vst [vmem:[#allocation71_spill] sm:$0xff] %v13589_v10  ;;  %15967 = vst [vmem:[#allocation74_spill] sm:$0xff] %v13598_v5 }
 0x103   : > { %11481 = vmatmul.mubr.msk.bf16.vlgmr.msra.gmra.mrb[44].mxu1 %vm432_vm2, %v13490_v62  ;;  %11827 = vmatpush3.bf16.msra.mxu0 %v13525_v26  ;;  %v15992_v26 = vld [vmem:[#allocation8_spill] sm:$0xff] }
 0x104   : > { %3605 = vmatpush1.bf16.msra.mxu1 %v3529_v39  ;;  %11828 = vmatprep.mubr.msk.bf16.mxu0 %vm12672_vm3, %v15921_v19  ;;  %v11506_v39 = vcombine.high %v3861_v37, %v3861_v37  ;;  %v11507_v37 = vcombine.low %v3862_v41, %v3862_v41 }
 0x105   : > { %3636 = vmatprep.mubr.bf16.mxu1 %v15926_v11  ;;  %3561 = vmatprep.subr.bf16.mxu0 %v3526_v44  ;;  %v3901_v44 = vrot.slane %v11504_v61, 2 }
 0x106   : > { %3690 = vmatprep.subr.bf16.mxu1 %v3544_v48  ;;  %v3903_v48 = vrot.slane %v11506_v39, 2  ;;  %v3904_v61 = vrot.slane %v11507_v37, 2 }
 0x107   : > { %v13572_v45 = vand.u32 %v3901_v44, %v12826_v31 }
 0x108   : > { %v13611_v44 = vand.u32 %v3904_v61, %v12826_v31  ;;  %v15977_v61 = vld [vmem:[#allocation21_spill] sm:$0xff] }
 0x109   : > { %15962 = vst [vmem:[#allocation69_spill] sm:$0xff] %v13572_v45 }
 0x10a   : > { %11829 = vmatmul.mubr.msk.bf16.vlgmr.msra.gmra.mrb[48].mxu0 %vm432_vm2, %v13490_v62  ;;  %15968 = vst [vmem:[#allocation75_spill] sm:$0xff] %v13611_v44 }
 0x10b   : > { %11497 = vmatmul.mubr.msk.bf16.vlgmr.msra.gmra.mrb[36].mxu1 %vm432_vm2, %v13548_v27  ;;  %3562 = vmatpush1.bf16.msra.mxu0 %v3523_v18  ;;  %v13575_v18 = vand.u32 %v3903_v48, %v12826_v31 }
 0x10c   : > { %3691 = vmatpush1.bf16.msra.mxu1 %v3541_v33  ;;  %3593 = vmatprep.mubr.bf16.mxu0 %v15926_v11  ;;  %v11508_v33 = vcombine.high %v3862_v41, %v3862_v41  ;;  %v11511_v41 = vcombine.low %v3864_v35, %v3864_v35 }
 0x10d   : > { %3722 = vmatprep.mubr.bf16.mxu1 %v15926_v11  ;;  %3647 = vmatprep.subr.bf16.mxu0 %v3538_v42  ;;  %15963 = vst [vmem:[#allocation70_spill] sm:$0xff] %v13575_v18  ;;  %v3902_v42 = vrot.slane %v11505_v13, 2 }
 0x10e   : > { %3776 = vmatprep.subr.bf16.mxu1 %v3556_v9  ;;  %v3905_v9 = vrot.slane %v11508_v33, 2  ;;  %v3908_v13 = vrot.slane %v11511_v41, 2  ;;  %v15981_v41 = vld [vmem:[#allocation25_spill] sm:$0xff] }
 0x10f   : > { %v13592_v15 = vand.u32 %v3902_v42, %v12826_v31  ;;  %v12536_v42 = vld [vmem:[%s12828_s22 + $0x64] ss:$0 sps:$4 sm:$0xcc]  }
 0x110   : > { %v13638_v57 = vand.u32 %v3908_v13, %v12826_v31  ;;  %v15983_v13 = vld [vmem:[#allocation27_spill] sm:$0xff] }
 0x111   : > { %15965 = vst [vmem:[#allocation72_spill] sm:$0xff] %v13592_v15 }
 0x112   : > { %11496 = vmatmul.mubr.msk.bf16.vlgmr.msra.gmra.mrb[36].mxu0 %vm432_vm2, %v13548_v27  ;;  %15972 = vst [vmem:[#allocation79_spill] sm:$0xff] %v13638_v57 }
 0x113   : > { %11499 = vmatmul.mubr.msk.bf16.vlgmr.msra.gmra.mrb[40].mxu1 %vm432_vm2, %v13548_v27  ;;  %3648 = vmatpush1.bf16.msra.mxu0 %v3535_v47  ;;  %v11509_v47 = vcombine.low %v3863_v52, %v3863_v52  ;;  %v11513_v52 = vcombine.low %v3865_v55, %v3865_v55 }
 0x114   : > { %3777 = vmatpush1.bf16.msra.mxu1 %v3553_v17  ;;  %3679 = vmatprep.mubr.bf16.mxu0 %v15926_v11  ;;  %v13595_v17 = vand.u32 %v3905_v9, %v12826_v31  ;;  %v3912_v9 = vrot.slane %v12536_v42, 2  ;;  %v15984_v42 = vld [vmem:[#allocation26_spill] sm:$0xff] }
 0x115   : > { %3808 = vmatprep.mubr.bf16.mxu1 %v15926_v11  ;;  %3733 = vmatprep.subr.bf16.mxu0 %v3550_v30  ;;  %v11514_v30 = vcombine.high %v3865_v55, %v3865_v55  ;;  %v3906_v39 = vrot.slane %v11509_v47, 2  ;;  %v3910_v33 = vrot.slane %v11513_v52, 2  ;;  %v15982_v52 = vld [vmem:[#allocation24_spill] sm:$0xff] }
 0x116   : > { %11832 = vmatprep.subr.bf16.mxu1 %v15921_v19  ;;  %15966 = vst [vmem:[#allocation73_spill] sm:$0xff] %v13595_v17  ;;  %v13655_v37 = vand.u32 %v3912_v9, %v12826_v31 }
 0x117   : > { %v3911_v32 = vrot.slane %v11514_v30, 2  ;;  %v13614_v48 = vand.u32 %v3906_v39, %v12826_v31  ;;  %v13641_v0 = vand.u32 %v3910_v33, %v12826_v31  ;;  %v15976_v30 = vld [vmem:[#allocation18_spill] sm:$0xff]  ;;  %v15978_v39 = vld [vmem:[#allocation20_spill] sm:$0xff] }
 0x118   : > { %15974 = vst [vmem:[#allocation81_spill] sm:$0xff] %v13655_v37 }
 0x119   : > { %15969 = vst [vmem:[#allocation76_spill] sm:$0xff] %v13614_v48  ;;  %15973 = vst [vmem:[#allocation80_spill] sm:$0xff] %v13641_v0 }
 0x11a   : > { %11498 = vmatmul.mubr.msk.bf16.vlgmr.msra.gmra.mrb[40].mxu0 %vm432_vm2, %v13548_v27 }
 0x11b   : > { %11501 = vmatmul.mubr.msk.bf16.vlgmr.msra.gmra.mrb[44].mxu1 %vm432_vm2, %v13548_v27  ;;  %3734 = vmatpush1.bf16.msra.mxu0 %v3547_v3  ;;  %v13617_v3 = vand.u32 %v3909_v58, %v12826_v31  ;;  %v15979_v58 = vld [vmem:[#allocation23_spill] sm:$0xff] }
 0x11c   : > { %11833 = vmatpush3.bf16.msra.mxu1 %v3559_v14  ;;  %3765 = vmatprep.mubr.bf16.mxu0 %v15926_v11  ;;  %v13620_v14 = vand.u32 %v3911_v32, %v12826_v31  ;;  %v15980_v32 = vld [vmem:[#allocation22_spill] sm:$0xff] }
 0x11d   : > { %11834 = vmatprep.mubr.msk.bf16.mxu1 %vm12672_vm3, %v15921_v19  ;;  %3952 = vmatprep.subr.bf16.mxu0 %v13572_v45  ;;  %15970 = vst [vmem:[#allocation77_spill] sm:$0xff] %v13617_v3  ;;  %v16006_v45 = vld [vmem:[#allocation15_spill] sm:$0xff] }
 0x11e   : > { %3995 = vmatprep.subr.bf16.mxu1 %v13575_v18  ;;  %15971 = vst [vmem:[#allocation78_spill] sm:$0xff] %v13620_v14 }
 0x122   : > { %11500 = vmatmul.mubr.msk.bf16.vlgmr.msra.gmra.mrb[44].mxu0 %vm432_vm2, %v13548_v27 }
 0x123   : > { %11835 = vmatmul.mubr.msk.bf16.vlgmr.msra.gmra.mrb[48].mxu1 %vm432_vm2, %v13548_v27  ;;  %3953 = vmatpush1.bf16.msra.mxu0 %v13589_v10 }
 0x124   : > { %3996 = vmatpush1.bf16.msra.mxu1 %v13592_v15  ;;  %3984 = vmatprep.mubr.bf16.mxu0 %v15926_v11 }
 0x125   : > { %4027 = vmatprep.mubr.bf16.mxu1 %v15926_v11  ;;  %4038 = vmatprep.subr.bf16.mxu0 %v13595_v17  ;;  %v5047_v17 = vrot.slane %v5045_v29, 3 }
 0x126   : > { %4081 = vmatprep.subr.bf16.mxu1 %v13598_v5  ;;  %v12540_v5 = vld [vmem:[%s12828_s22 + $0x3c] ss:$52 sps:$4 sm:$0x18]  }
 0x12a   : > { %11516 = vmatmul.mubr.msk.bf16.vlgmr.msra.gmra.mrb[36].mxu0 %vm432_vm2, %v13625_v12 }
 0x12b   : > { %11517 = vmatmul.mubr.msk.bf16.vlgmr.msra.gmra.mrb[36].mxu1 %vm432_vm2, %v13625_v12  ;;  %4039 = vmatpush1.bf16.msra.mxu0 %v13611_v44 }
 0x12c   : > { %4082 = vmatpush1.bf16.msra.mxu1 %v13614_v48  ;;  %4070 = vmatprep.mubr.bf16.mxu0 %v15926_v11 }
 0x12d   : > { %4113 = vmatprep.mubr.bf16.mxu1 %v15926_v11  ;;  %4124 = vmatprep.subr.bf16.mxu0 %v13617_v3 }
 0x12e   : > { %4167 = vmatprep.subr.bf16.mxu1 %v13620_v14  ;;  %v15998_v14 = vld [vmem:[#allocation12_spill] sm:$0xff] }
 0x132   : > { %11518 = vmatmul.mubr.msk.bf16.vlgmr.msra.gmra.mrb[40].mxu0 %vm432_vm2, %v13625_v12 }
 0x133   : > { %11519 = vmatmul.mubr.msk.bf16.vlgmr.msra.gmra.mrb[40].mxu1 %vm432_vm2, %v13625_v12  ;;  %4125 = vmatpush1.bf16.msra.mxu0 %v13638_v57  ;;  %v5064_v57 = vshll.u32 %v12545_v8, 16 }
 0x134   : > { %4168 = vmatpush1.bf16.msra.mxu1 %v13641_v0  ;;  %4156 = vmatprep.mubr.bf16.mxu0 %v15926_v11  ;;  %v15997_v0 = vld [vmem:[#allocation14_spill] sm:$0xff] }
 0x135   : > { %4199 = vmatprep.mubr.bf16.mxu1 %v15926_v11  ;;  %v771_v28 = vpop.f32.mrb[12].mxu0  ;;  %11838 = vmatprep.subr.bf16.mxu0 %v15921_v19  ;;  %v5066_v10 = vrot.slane %v5064_v57, 4 }
 0x136   : > { %4355 = vmatprep.subr.bf16.mxu1 %v13012_v63  ;;  %v11794_v35 = vpop.f32.mrb[13].mxu0 }
 0x137   : > { %v774_v55 = vpop.f32.mrb[14].mxu0 }
 0x138   : > { %v11795_v47 = vpop.f32.mrb[15].mxu0 }
 0x13a   : > { %11520 = vmatmul.mubr.msk.bf16.vlgmr.msra.gmra.mrb[44].mxu0 %vm432_vm2, %v13625_v12 }
 0x13b   : > { %11521 = vmatmul.mubr.msk.bf16.vlgmr.msra.gmra.mrb[44].mxu1 %vm432_vm2, %v13625_v12  ;;  %11839 = vmatpush3.bf16.msra.mxu0 %v13655_v37 }
 0x13c   : > { %4356 = vmatpush1.bf16.msra.mxu1 %v15975_v54  ;;  %11840 = vmatprep.mubr.msk.bf16.mxu0 %vm12672_vm3, %v15921_v19  ;;  %v12539_v54 = vld [vmem:[%s12828_s22 + $0x38] ss:$52 sps:$4 sm:$0x18]  }
 0x13d   : > { %4387 = vmatprep.mubr.bf16.mxu1 %v15926_v11  ;;  %4398 = vmatprep.subr.bf16.mxu0 %v15976_v30  ;;  %v15991_v30 = vld [vmem:[#allocation10_spill] sm:$0xff]  ;;  %v5029_v1 = vshrl.u32 %v12539_v54, 16  ;;  %v5032_v24 = vshll.u32 %v12539_v54, 16  ;;  %v15993_v54 = vld [vmem:[#allocation11_spill] sm:$0xff] }
 0x13e   : > { %4441 = vmatprep.subr.bf16.mxu1 %v15977_v61  ;;  %v15986_v61 = vld [vmem:[#allocation30_spill] sm:$0xff] }
 0x13f   : > { %v5031_v23 = vrot.slane %v5029_v1, 3  ;;  %v5034_v46 = vrot.slane %v5032_v24, 4  ;;  %v5048_v1 = vshll.u32 %v12542_v20, 16 }
 0x142   : > { %11841 = vmatmul.mubr.msk.bf16.vlgmr.msra.gmra.mrb[52].mxu0 %vm432_vm2, %v13625_v12 }
 0x143   : > { %11523 = vmatmul.mubr.msk.bf16.vlgmr.msra.gmra.mrb[52].mxu1 %vm432_vm2, %v13490_v62  ;;  %4399 = vmatpush1.bf16.msra.mxu0 %v15978_v39 }
 0x144   : > { %4442 = vmatpush1.bf16.msra.mxu1 %v15979_v58  ;;  %4430 = vmatprep.mubr.bf16.mxu0 %v15926_v11 }
 0x145   : > { %4473 = vmatprep.mubr.bf16.mxu1 %v15926_v11  ;;  %4484 = vmatprep.subr.bf16.mxu0 %v15980_v32  ;;  %v12537_v32 = vld [vmem:[%s12828_s22 + $0x34] ss:$52 sps:$4 sm:$0x18]  }
 0x146   : > { %4527 = vmatprep.subr.bf16.mxu1 %v15981_v41 }
 0x14a   : > { %11524 = vmatmul.mubr.msk.bf16.vlgmr.msra.gmra.mrb[56].mxu0 %vm432_vm2, %v13490_v62 }
 0x14b   : > { %11525 = vmatmul.mubr.msk.bf16.vlgmr.msra.gmra.mrb[56].mxu1 %vm432_vm2, %v13490_v62  ;;  %4485 = vmatpush1.bf16.msra.mxu0 %v15982_v52 }
 0x14c   : > { %4528 = vmatpush1.bf16.msra.mxu1 %v15983_v13  ;;  %4516 = vmatprep.mubr.bf16.mxu0 %v15926_v11  ;;  %v15985_v13 = vld [vmem:[#allocation28_spill] sm:$0xff] }
 0x14d   : > { %4559 = vmatprep.mubr.bf16.mxu1 %v15926_v11  ;;  %4570 = vmatprep.subr.bf16.mxu0 %v15984_v42 }
 0x14e   : > { %v1150_v33 = vpop.f32.mrb[12].mxu1  ;;  %11844 = vmatprep.subr.bf16.mxu1 %v15921_v19 }
 0x14f   : > { %v13688_v9 = vadd.f32 %v1150_v33, %v771_v28  ;;  %v11800_v35 = vpop.f32.mrb[13].mxu1  ;;  %v15988_v33 = vld [vmem:[#allocation4_spill] sm:$0xff] }
 0x150   : > { %v1153_v47 = vpop.f32.mrb[14].mxu1 }
 0x151   : > { %v13690_v41 = vadd.f32 %v1153_v47, %v774_v55  ;;  %v11801_v58 = vpop.f32.mrb[15].mxu1 }
 0x152   : > { %11526 = vmatmul.mubr.msk.bf16.vlgmr.msra.gmra.mrb[60].mxu0 %vm432_vm2, %v13490_v62  ;;  %v15987_v58 = vld [vmem:[#allocation5_spill] sm:$0xff] }
 0x153   : > { %11527 = vmatmul.mubr.msk.bf16.vlgmr.msra.gmra.mrb[60].mxu1 %vm432_vm2, %v13490_v62  ;;  %4571 = vmatpush1.bf16.msra.mxu0 %v15985_v13 }
 0x154   : > { %11845 = vmatpush3.bf16.msra.mxu1 %v15986_v61  ;;  %4602 = vmatprep.mubr.bf16.mxu0 %v15926_v11 }
 0x155   : > { %11846 = vmatprep.mubr.msk.bf16.mxu1 %vm12672_vm3, %v15921_v19  ;;  %v13701_v28 = vpop.f32.mrb[0].mxu0  ;;  %4697 = vmatprep.subr.bf16.mxu0 %v15987_v58  ;;  %v15989_v58 = vld [vmem:[#allocation7_spill] sm:$0xff] }
 0x156   : > { %v13703_v55 = vpop.f32.mrb[0].mxu1  ;;  %4654 = vmatprep.subr.bf16.mxu1 %v15988_v33  ;;  %v13707_v35 = vpop.f32.mrb[1].mxu0  ;;  %v15990_v33 = vld [vmem:[#allocation6_spill] sm:$0xff] }
 0x157   : > { %v13709_v47 = vpop.f32.mrb[1].mxu1  ;;  %v13711_v13 = vpop.f32.mrb[2].mxu0 }
 0x158   : > { %v13713_v61 = vpop.f32.mrb[2].mxu1  ;;  %v13715_v42 = vpop.f32.mrb[3].mxu0 }
 0x159   : > { %v13717_v52 = vpop.f32.mrb[3].mxu1 }
 0x15a   : > { %11528 = vmatmul.mubr.msk.bf16.vlgmr.msra.gmra.mrb[64].mxu0 %vm432_vm2, %v13490_v62 }
 0x15b   : > { %11847 = vmatmul.mubr.msk.bf16.vlgmr.msra.gmra.mrb[64].mxu1 %vm432_vm2, %v13490_v62  ;;  %4698 = vmatpush1.bf16.msra.mxu0 %v15989_v58 }
 0x15c   : > { %4655 = vmatpush1.bf16.msra.mxu1 %v15990_v33  ;;  %4686 = vmatprep.mubr.bf16.mxu1 %v15926_v11 }
 0x15d   : > { %4729 = vmatprep.mubr.bf16.mxu0 %v15926_v11  ;;  %v13729_v63 = vpop.f32.mrb[4].mxu0  ;;  %4783 = vmatprep.subr.bf16.mxu0 %v15991_v30  ;;  %v5021_v30 = vshrl.u32 %v12537_v32, 16 }
 0x15e   : > { %v13731_v39 = vpop.f32.mrb[4].mxu1  ;;  %4740 = vmatprep.subr.bf16.mxu1 %v15992_v26  ;;  %v13735_v25 = vpop.f32.mrb[5].mxu0  ;;  %v5024_v26 = vshll.u32 %v12537_v32, 16  ;;  %v5035_v32 = vor.u32 %v5034_v46, %v5031_v23  ;;  %v5050_v46 = vrot.slane %v5048_v1, 4  ;;  %v5037_v1 = vshrl.u32 %v12540_v5, 16 }
 0x15f   : > { %v13737_v58 = vpop.f32.mrb[5].mxu1  ;;  %v13739_v33 = vpop.f32.mrb[6].mxu0  ;;  %v12548_v23 = vld [vmem:[%s12828_s22 + $0x50] ss:$52 sps:$4 sm:$0x18]  }
 0x160   : > { %v13741_v21 = vpop.f32.mrb[6].mxu1  ;;  %v13744_v4 = vpop.f32.mrb[7].mxu0  ;;  %v5026_v20 = vrot.slane %v5024_v26, 4  ;;  %v12551_v26 = vld [vmem:[%s12828_s22 + $0x58] ss:$52 sps:$4 sm:$0x18]   ;;  %v5051_v57 = vor.u32 %v5050_v46, %v5047_v17 }
 0x161   : > { %v13746_v22 = vpop.f32.mrb[7].mxu1  ;;  %v5077_v60 = vshrl.u32 %v12548_v23, 16  ;;  %v12549_v17 = vld [vmem:[%s12828_s22 + $0x54] ss:$52 sps:$4 sm:$0x18]  }
 0x162   : > { %11531 = vmatmul.mubr.msk.bf16.vlgmr.msra.gmra.mrb[56].mxu0 %vm432_vm2, %v13548_v27 }
 0x163   : > { %11530 = vmatmul.mubr.msk.bf16.vlgmr.msra.gmra.mrb[52].mxu1 %vm432_vm2, %v13548_v27  ;;  %4784 = vmatpush1.bf16.msra.mxu0 %v15993_v54  ;;  %v5023_v54 = vrot.slane %v5021_v30, 3 }
 0x164   : > { %4741 = vmatpush1.bf16.msra.mxu1 %v15994_v59  ;;  %4772 = vmatprep.mubr.bf16.mxu1 %v15926_v11  ;;  %v5061_v59 = vshrl.u32 %v12545_v8, 16  ;;  %v13779_v8 = vand.u32 %v5035_v32, %v12826_v31 }
 0x165   : > { %4815 = vmatprep.mubr.bf16.mxu0 %v15926_v11  ;;  %v13757_v24 = vpop.f32.mrb[8].mxu0  ;;  %4869 = vmatprep.subr.bf16.mxu0 %v15997_v0  ;;  %v12543_v0 = vld [vmem:[%s12828_s22 + $0x44] ss:$52 sps:$4 sm:$0x18]   ;;  %v5027_v29 = vor.u32 %v5026_v20, %v5023_v54  ;;  %v5080_v54 = vshll.u32 %v12548_v23, 16  ;;  %v5096_v20 = vshll.u32 %v12551_v26, 16  ;;  %v13804_v23 = vand.u32 %v5051_v57, %v12826_v31 }
 0x166   : > { %15995 = vst [vmem:[#allocation5_spill] sm:$0xff] %v13757_v24  ;;  %v13759_v37 = vpop.f32.mrb[8].mxu1  ;;  %4826 = vmatprep.subr.bf16.mxu1 %v15998_v14  ;;  %v13763_v48 = vpop.f32.mrb[9].mxu0  ;;  %16005 = vst [vmem:[#allocation14_spill] sm:$0xff] %v13779_v8  ;;  %v5063_v30 = vrot.slane %v5061_v59, 3  ;;  %v5056_v32 = vshll.u32 %v12543_v0, 16 }
 0x167   : > { %15996 = vst [vmem:[#allocation4_spill] sm:$0xff] %v13759_v37  ;;  %15999 = vst [vmem:[#allocation7_spill] sm:$0xff] %v13763_v48  ;;  %v13765_v3 = vpop.f32.mrb[9].mxu1  ;;  %v13768_v44 = vpop.f32.mrb[10].mxu0  ;;  %v13797_v37 = vand.u32 %v5027_v29, %v12826_v31  ;;  %v5098_v29 = vrot.slane %v5096_v20, 4 }
 0x168   : > { %16000 = vst [vmem:[#allocation6_spill] sm:$0xff] %v13765_v3  ;;  %16001 = vst [vmem:[#allocation10_spill] sm:$0xff] %v13768_v44  ;;  %v13770_v15 = vpop.f32.mrb[10].mxu1  ;;  %v13773_v18 = vpop.f32.mrb[11].mxu0  ;;  %v5058_v24 = vrot.slane %v5056_v32, 4  ;;  %v16011_v32 = vld [vmem:[#allocation16_spill] sm:$0xff] }
 0x169   : > { %16002 = vst [vmem:[#allocation8_spill] sm:$0xff] %v13770_v15  ;;  %16003 = vst [vmem:[#allocation11_spill] sm:$0xff] %v13773_v18  ;;  %v13775_v14 = vpop.f32.mrb[11].mxu1  ;;  %v5053_v15 = vshrl.u32 %v12543_v0, 16  ;;  %v5039_v18 = vrot.slane %v5037_v1, 3  ;;  %v5088_v1 = vshll.u32 %v12549_v17, 16 }
 0x16a   : > { %16004 = vst [vmem:[#allocation9_spill] sm:$0xff] %v13775_v14  ;;  %11533 = vmatmul.mubr.msk.bf16.vlgmr.msra.gmra.mrb[60].mxu0 %vm432_vm2, %v13548_v27  ;;  %v5040_v14 = vshll.u32 %v12540_v5, 16  ;;  %v12546_v59 = vld [vmem:[%s12828_s22 + $0x4c] ss:$52 sps:$4 sm:$0x18]   ;;  %16008 = vst [vmem:[#allocation12_spill] sm:$0xff] %v13797_v37 }
 0x16b   : > { %11532 = vmatmul.mubr.msk.bf16.vlgmr.msra.gmra.mrb[56].mxu1 %vm432_vm2, %v13548_v27  ;;  %4870 = vmatpush1.bf16.msra.mxu0 %v16006_v45  ;;  %v5067_v45 = vor.u32 %v5066_v10, %v5063_v30  ;;  %v5055_v48 = vrot.slane %v5053_v15, 3  ;;  %16009 = vst [vmem:[#allocation15_spill] sm:$0xff] %v13804_v23  ;;  %v5082_v30 = vrot.slane %v5080_v54, 4  ;;  %v5069_v15 = vshrl.u32 %v12546_v59, 16 }
 0x16c   : > { %4827 = vmatpush1.bf16.msra.mxu1 %v16007_v36  ;;  %4858 = vmatprep.mubr.bf16.mxu1 %v15926_v11  ;;  %v5093_v36 = vshrl.u32 %v12551_v26, 16  ;;  %v5042_v44 = vrot.slane %v5040_v14, 4  ;;  %v5085_v14 = vshrl.u32 %v12549_v17, 16 }
 0x16d   : > { %4901 = vmatprep.mubr.bf16.mxu0 %v15926_v11  ;;  %v1552_v3 = vpop.f32.mrb[16].mxu0  ;;  %11850 = vmatprep.subr.bf16.mxu0 %v15921_v19  ;;  %v5059_v57 = vor.u32 %v5058_v24, %v5055_v48  ;;  %v5071_v20 = vrot.slane %v5069_v15, 3  ;;  %v12552_v24 = vld [vmem:[%s12828_s22 + $0x5c] ss:$52 sps:$4 sm:$0x18]  }
 0x16e   : > { %5163 = vmatprep.subr.bf16.mxu1 %v13779_v8  ;;  %v13794_v5 = vadd.f32 %v1552_v3, %v13688_v9  ;;  %v11806_v0 = vpop.f32.mrb[17].mxu0  ;;  %v5079_v3 = vrot.slane %v5077_v60, 3  ;;  %v13807_v9 = vand.u32 %v5067_v45, %v12826_v31  ;;  %v5095_v26 = vrot.slane %v5093_v36, 3 }
 0x16f   : > { %v1555_v46 = vpop.f32.mrb[18].mxu0  ;;  %v12554_v0 = vld [vmem:[%s12828_s22 + $0x60] ss:$52 sps:$4 sm:$0x18]   ;;  %v5043_v60 = vor.u32 %v5042_v44, %v5039_v18  ;;  %v5090_v18 = vrot.slane %v5088_v1, 4  ;;  %v13825_v48 = vand.u32 %v5059_v57, %v12826_v31  ;;  %v5101_v15 = vshrl.u32 %v12552_v24, 16 }
 0x170   : > { %v13801_v8 = vadd.f32 %v1555_v46, %v13690_v41  ;;  %v11807_v10 = vpop.f32.mrb[19].mxu0  ;;  %16010 = vst [vmem:[#allocation13_spill] sm:$0xff] %v13807_v9  ;;  %v5072_v41 = vshll.u32 %v12546_v59, 16  ;;  %v5083_v59 = vor.u32 %v5082_v30, %v5079_v3  ;;  %v5099_v45 = vor.u32 %v5098_v29, %v5095_v26 }
 0x171   : > { %v5109_v54 = vshrl.u32 %v12554_v0, 16  ;;  %v5112_v36 = vshll.u32 %v12554_v0, 16  ;;  %v5087_v46 = vrot.slane %v5085_v14, 3  ;;  %v13822_v44 = vand.u32 %v5043_v60, %v12826_v31  ;;  %16013 = vst [vmem:[#allocation82_spill] sm:$0xff] %v13825_v48 }
 0x172   : > { %11535 = vmatmul.mubr.msk.bf16.vlgmr.msra.gmra.mrb[64].mxu0 %vm432_vm2, %v13548_v27  ;;  %v5074_v17 = vrot.slane %v5072_v41, 4  ;;  %v12555_v10 = vld [vmem:[%s12828_s22 + $0x64] ss:$52 sps:$4 sm:$0x18]   ;;  %v13833_v3 = vand.u32 %v5099_v45, %v12826_v31  ;;  %v5104_v41 = vshll.u32 %v12552_v24, 16  ;;  %v5103_v45 = vrot.slane %v5101_v15, 3  ;;  %v13895_v15 = vpop.permute.xlu0 %1587 }
 0x173   : > { %11534 = vmatmul.mubr.msk.bf16.vlgmr.msra.gmra.mrb[60].mxu1 %vm432_vm2, %v13548_v27  ;;  %11851 = vmatpush3.bf16.msra.mxu0 %v16011_v32  ;;  %16012 = vst [vmem:[#allocation16_spill] sm:$0xff] %v13822_v44  ;;  %v13830_v32 = vand.u32 %v5083_v59, %v12826_v31  ;;  %v5111_v30 = vrot.slane %v5109_v54, 3  ;;  %v5114_v26 = vrot.slane %v5112_v36, 4  ;;  %v5091_v0 = vor.u32 %v5090_v18, %v5087_v46 }
 0x174   : > { %5164 = vmatpush1.bf16.msra.mxu1 %v13797_v37  ;;  %11852 = vmatprep.mubr.msk.bf16.mxu0 %vm12672_vm3, %v15921_v19  ;;  %16015 = vst [vmem:[#allocation84_spill] sm:$0xff] %v13833_v3  ;;  %v5075_v29 = vor.u32 %v5074_v17, %v5071_v20  ;;  %v5117_v14 = vshrl.u32 %v12555_v10, 16  ;;  %v5120_v1 = vshll.u32 %v12555_v10, 16  ;;  %v5106_v54 = vrot.slane %v5104_v41, 4  ;;  %v6164_v41 = vld [vmem:[%s12828_s22 + $0x68] sm:$0x33] }
 0x175   : > { %5195 = vmatprep.mubr.bf16.mxu1 %v15926_v11  ;;  %5206 = vmatprep.subr.bf16.mxu0 %v13804_v23  ;;  %16014 = vst [vmem:[#allocation83_spill] sm:$0xff] %v13830_v32  ;;  %v5115_v60 = vor.u32 %v5114_v26, %v5111_v30  ;;  %v13849_v59 = vand.u32 %v5091_v0, %v12826_v31 }
 0x176   : > { %5249 = vmatprep.subr.bf16.mxu1 %v13807_v9  ;;  %v13846_v57 = vand.u32 %v5075_v29, %v12826_v31  ;;  %v5119_v36 = vrot.slane %v5117_v14, 3  ;;  %v5122_v20 = vrot.slane %v5120_v1, 4  ;;  %v5107_v46 = vor.u32 %v5106_v54, %v5103_v45  ;;  %v13908_v14 = vpop.permute.xlu0 %1592 }
 0x177   : > { %16017 = vst [vmem:[#allocation86_spill] sm:$0xff] %v13849_v59  ;;  %v13852_v17 = vand.u32 %v5115_v60, %v12826_v31  ;;  %v1595_v1 = vadd.f32 %v13895_v15, %v13701_v28  ;;  %v13914_v60 = vadd.f32 %v13895_v15, %v13703_v55  ;;  %v13916_v45 = vcombine.high %v6164_v41, %v6164_v41 }
 0x178   : > { %16016 = vst [vmem:[#allocation85_spill] sm:$0xff] %v13846_v57  ;;  %v5123_v18 = vor.u32 %v5122_v20, %v5119_v36  ;;  %v13867_v30 = vand.u32 %v5107_v46, %v12826_v31  ;;  %v1596_v54 = vadd.f32 %v13895_v15, %v13707_v35  ;;  %v13922_v36 = vadd.f32 %v13895_v15, %v13709_v47  ;;  %v13925_v20 = vld [vmem:[%s12828_s22 + $0x70] sm:$0x33] }
 0x179   : > { %16018 = vst [vmem:[#allocation87_spill] sm:$0xff] %v13852_v17  ;;  %v1608_v46 = vadd.f32 %v13908_v14, %v13711_v13  ;;  %v13931_v28 = vadd.f32 %v13908_v14, %v13713_v61  ;;  %v13939_v55 = vcombine.low %v6164_v41, %v6164_v41  ;;  %v1621_v35 = vmax.f32 %v1595_v1, 0.0 }
 0x17a   : > { %11853 = vmatmul.mubr.msk.bf16.vlgmr.msra.gmra.mrb[68].mxu0 %vm432_vm2, %v13548_v27  ;;  %16019 = vst [vmem:[#allocation88_spill] sm:$0xff] %v13867_v30  ;;  %v13872_v29 = vand.u32 %v5123_v18, %v12826_v31  ;;  %v13946_v61 = vand.u32 %v13916_v45, %v12826_v31  ;;  %v13950_v13 = vcombine.high %v13925_v20, %v13925_v20  ;;  %v1622_v18 = vmax.f32 %v1596_v54, 0.0 }
 0x17b   : > { %11550 = vmatmul.mubr.msk.bf16.vlgmr.msra.gmra.mrb[52].mxu1 %vm432_vm2, %v13625_v12  ;;  %5207 = vmatpush1.bf16.msra.mxu0 %v13822_v44  ;;  %v13957_v41 = vadd.f32 %v13908_v14, %v13717_v52  ;;  %v13968_v52 = vadd.f32 %v13895_v15, %v13729_v63 }
 0x17c   : > { %5250 = vmatpush1.bf16.msra.mxu1 %v13825_v48  ;;  %5238 = vmatprep.mubr.bf16.mxu0 %v15926_v11  ;;  %16020 = vst [vmem:[#allocation89_spill] sm:$0xff] %v13872_v29  ;;  %16021 = vst [vmem:[#allocation90_spill] sm:$0xff] %v13946_v61 }
 0x17d   : > { %5281 = vmatprep.mubr.bf16.mxu1 %v15926_v11  ;;  %5292 = vmatprep.subr.bf16.mxu0 %v13830_v32  ;;  %v7246_v32 = vshll.u32 %v13939_v55, 16 }
 0x17e   : > { %5335 = vmatprep.subr.bf16.mxu1 %v13833_v3 }
 0x182   : > { %11551 = vmatmul.mubr.msk.bf16.vlgmr.msra.gmra.mrb[56].mxu0 %vm432_vm2, %v13625_v12 }
 0x183   : > { %11552 = vmatmul.mubr.msk.bf16.vlgmr.msra.gmra.mrb[56].mxu1 %vm432_vm2, %v13625_v12  ;;  %5293 = vmatpush1.bf16.msra.mxu0 %v13846_v57 }
 0x184   : > { %5336 = vmatpush1.bf16.msra.mxu1 %v13849_v59  ;;  %5324 = vmatprep.mubr.bf16.mxu0 %v15926_v11 }
 0x185   : > { %5367 = vmatprep.mubr.bf16.mxu1 %v15926_v11  ;;  %5378 = vmatprep.subr.bf16.mxu0 %v13852_v17 }
 0x186   : > { %v13863_v24 = vpop.f32.mrb[28].mxu1  ;;  %11856 = vmatprep.subr.bf16.mxu1 %v15921_v19 }
 0x187   : > { %v11812_v10 = vpop.f32.mrb[29].mxu1 }
 0x188   : > { %v13869_v26 = vpop.f32.mrb[30].mxu1 }
 0x189   : > { %v11813_v0 = vpop.f32.mrb[31].mxu1 }
 0x18a   : > { %11553 = vmatmul.mubr.msk.bf16.vlgmr.msra.gmra.mrb[60].mxu0 %vm432_vm2, %v13625_v12  ;;  %v1609_v0 = vadd.f32 %v13908_v14, %v13715_v42 }
 0x18b   : > { %11554 = vmatmul.mubr.msk.bf16.vlgmr.msra.gmra.mrb[60].mxu1 %vm432_vm2, %v13625_v12  ;;  %5379 = vmatpush1.bf16.msra.mxu0 %v13867_v30 }
 0x18c   : > { %11857 = vmatpush3.bf16.msra.mxu1 %v13872_v29  ;;  %5410 = vmatprep.mubr.bf16.mxu0 %v15926_v11 }
 0x18d   : > { %11858 = vmatprep.mubr.msk.bf16.mxu1 %vm12672_vm3, %v15921_v19  ;;  %5566 = vmatprep.subr.bf16.mxu0 %v13316_v50 }
 0x18e   : > { %5609 = vmatprep.subr.bf16.mxu1 %v13339_v51 }
 0x192   : > { %11555 = vmatmul.mubr.msk.bf16.vlgmr.msra.gmra.mrb[64].mxu0 %vm432_vm2, %v13625_v12 }
 0x193   : > { %11859 = vmatmul.mubr.msk.bf16.vlgmr.msra.gmra.mrb[68].mxu1 %vm432_vm2, %v13625_v12  ;;  %5567 = vmatpush1.bf16.msra.mxu0 %v13336_v40 }
 0x194   : > { %5610 = vmatpush1.bf16.msra.mxu1 %v13361_v34  ;;  %5598 = vmatprep.mubr.bf16.mxu0 %v15926_v11 }
 0x195   : > { %5641 = vmatprep.mubr.bf16.mxu1 %v15926_v11  ;;  %5652 = vmatprep.subr.bf16.mxu0 %v13342_v53 }
 0x196   : > { %5695 = vmatprep.subr.bf16.mxu1 %v13367_v38  ;;  %v1635_v38 = vmax.f32 %v1609_v0, 0.0  ;;  %v14013_v0 = vadd.f32 %v13908_v14, %v13741_v21 }
 0x19a   : > { %11557 = vmatmul.mubr.msk.bf16.vlgmr.msra.gmra.mrb[72].mxu0 %vm432_vm2, %v13490_v62 }
 0x19b   : > { %11558 = vmatmul.mubr.msk.bf16.vlgmr.msra.gmra.mrb[72].mxu1 %vm432_vm2, %v13490_v62  ;;  %5653 = vmatpush1.bf16.msra.mxu0 %v13364_v56  ;;  %v13972_v56 = vadd.f32 %v13895_v15, %v13731_v39 }
 0x19c   : > { %5696 = vmatpush1.bf16.msra.mxu1 %v13391_v43  ;;  %5684 = vmatprep.mubr.bf16.mxu0 %v15926_v11 }
 0x19d   : > { %5727 = vmatprep.mubr.bf16.mxu1 %v15926_v11  ;;  %5738 = vmatprep.subr.bf16.mxu0 %v13370_v16 }
 0x19e   : > { %5781 = vmatprep.subr.bf16.mxu1 %v13397_v6 }
 0x1a2   : > { %11559 = vmatmul.mubr.msk.bf16.vlgmr.msra.gmra.mrb[76].mxu0 %vm432_vm2, %v13490_v62 }
 0x1a3   : > { %11560 = vmatmul.mubr.msk.bf16.vlgmr.msra.gmra.mrb[76].mxu1 %vm432_vm2, %v13490_v62  ;;  %5739 = vmatpush1.bf16.msra.mxu0 %v13394_v49  ;;  %v16022_v49 = vld [vmem:[#allocation32_spill] sm:$0xff] }
 0x1a4   : > { %5782 = vmatpush1.bf16.msra.mxu1 %v13418_v7  ;;  %5770 = vmatprep.mubr.bf16.mxu0 %v15926_v11  ;;  %v1634_v7 = vmax.f32 %v1608_v46, 0.0 }
 0x1a5   : > { %5813 = vmatprep.mubr.bf16.mxu1 %v15926_v11  ;;  %v2474_v1 = vpop.f32.mrb[32].mxu0  ;;  %11862 = vmatprep.subr.bf16.mxu0 %v15921_v19 }
 0x1a6   : > { %v2658_v47 = vpop.f32.mrb[16].mxu1  ;;  %5908 = vmatprep.subr.bf16.mxu1 %v16022_v49  ;;  %v13963_v54 = vadd.f32 %v2474_v1, %v13863_v24  ;;  %v11818_v6 = vpop.f32.mrb[33].mxu0  ;;  %v13976_v49 = vadd.f32 %v13895_v15, %v13735_v25  ;;  %v13989_v25 = vadd.f32 %v13908_v14, %v13739_v33  ;;  %v1625_v33 = vmax.f32 %v13968_v52, 0.0 }
 0x1a7   : > { %v2949_v10 = vadd.f32 %v2658_v47, %v13895_v15  ;;  %v2660_v42 = vpop.f32.mrb[17].mxu1  ;;  %v2477_v24 = vpop.f32.mrb[34].mxu0  ;;  %v13981_v6 = vadd.f32 %v13895_v15, %v13737_v58  ;;  %v14024_v52 = vadd.f32 %v13908_v14, %v13746_v22 }
 0x1a8   : > { %v2950_v46 = vadd.f32 %v2660_v42, %v13895_v15  ;;  %v2662_v1 = vpop.f32.mrb[18].mxu1  ;;  %v13984_v63 = vadd.f32 %v2477_v24, %v13869_v26  ;;  %v11819_v39 = vpop.f32.mrb[35].mxu0  ;;  %v13993_v42 = vadd.f32 %v13908_v14, %v13744_v4 }
 0x1a9   : > { %v2975_v47 = vmax.f32 %v2949_v10, 0.0  ;;  %v2962_v16 = vadd.f32 %v2662_v1, %v13908_v14  ;;  %v2664_v43 = vpop.f32.mrb[19].mxu1  ;;  %v16024_v39 = vld [vmem:[#allocation29_spill] sm:$0xff] }
 0x1aa   : > { %v2976_v53 = vmax.f32 %v2950_v46, 0.0  ;;  %v2963_v58 = vadd.f32 %v2664_v43, %v13908_v14  ;;  %11561 = vmatmul.mubr.msk.bf16.vlgmr.msra.gmra.mrb[80].mxu0 %vm432_vm2, %v13490_v62  ;;  %v16023_v43 = vld [vmem:[#allocation34_spill] sm:$0xff] }
 0x1ab   : > { %v13997_v26 = vmax.f32 %v1621_v35, %v2975_v47  ;;  %v2988_v24 = vmax.f32 %v2962_v16, 0.0  ;;  %11562 = vmatmul.mubr.msk.bf16.vlgmr.msra.gmra.mrb[80].mxu1 %vm432_vm2, %v13490_v62  ;;  %11863 = vmatpush3.bf16.msra.mxu0 %v13421_v2  ;;  %v1626_v35 = vmax.f32 %v13976_v49, 0.0  ;;  %v16028_v16 = vld [vmem:[#allocation10_spill] sm:$0xff] }
 0x1ac   : > { %v14005_v1 = vmax.f32 %v1622_v18, %v2976_v53  ;;  %v2989_v46 = vmax.f32 %v2963_v58, 0.0  ;;  %5909 = vmatpush1.bf16.msra.mxu1 %v16023_v43  ;;  %11864 = vmatprep.mubr.msk.bf16.mxu0 %vm12672_vm3, %v15921_v19  ;;  %v1638_v53 = vmax.f32 %v13989_v25, 0.0  ;;  %v1639_v18 = vmax.f32 %v13993_v42, 0.0  ;;  %v16026_v58 = vld [vmem:[#allocation5_spill] sm:$0xff]  ;;  %v16027_v43 = vld [vmem:[#allocation7_spill] sm:$0xff] }
 0x1ad   : > { %v14015_v62 = vmax.f32 %v1634_v7, %v2988_v24  ;;  %5940 = vmatprep.mubr.bf16.mxu1 %v15926_v11  ;;  %v2701_v47 = vpop.f32.mrb[20].mxu0  ;;  %5865 = vmatprep.subr.bf16.mxu0 %v16024_v39  ;;  %v16025_v7 = vld [vmem:[#allocation36_spill] sm:$0xff]  ;;  %v14032_v24 = vadd.f32 %v13895_v15, %v16026_v58  ;;  %v14036_v25 = vadd.f32 %v13895_v15, %v16027_v43  ;;  %v16029_v39 = vld [vmem:[#allocation11_spill] sm:$0xff] }
 0x1ae   : > { %v14026_v49 = vmax.f32 %v1635_v38, %v2989_v46  ;;  %v2744_v21 = vpop.f32.mrb[20].mxu1  ;;  %5994 = vmatprep.subr.bf16.mxu1 %v16025_v7  ;;  %v2951_v42 = vadd.f32 %v2701_v47, %v13895_v15  ;;  %v2703_v38 = vpop.f32.mrb[21].mxu0  ;;  %v14042_v4 = vadd.f32 %v13908_v14, %v16028_v16  ;;  %v14046_v7 = vadd.f32 %v13908_v14, %v16029_v39 }
 0x1af   : > { %v2953_v22 = vadd.f32 %v2744_v21, %v13895_v15  ;;  %v2746_v46 = vpop.f32.mrb[21].mxu1  ;;  %v2952_v58 = vadd.f32 %v2703_v38, %v13895_v15  ;;  %v2705_v43 = vpop.f32.mrb[22].mxu0  ;;  %v16030_v38 = vmax.f32 %v13914_v60, 0.0 }
 0x1b0   : > { %v2954_v10 = vadd.f32 %v2746_v46, %v13895_v15  ;;  %v2748_v2 = vpop.f32.mrb[22].mxu1  ;;  %v2977_v40 = vmax.f32 %v2951_v42, 0.0  ;;  %v2964_v21 = vadd.f32 %v2705_v43, %v13908_v14  ;;  %v2707_v50 = vpop.f32.mrb[23].mxu0  ;;  %v16034_v43 = vld [vmem:[#allocation4_spill] sm:$0xff] }
 0x1b1   : > { %v2979_v47 = vmax.f32 %v2953_v22, 0.0  ;;  %v2966_v34 = vadd.f32 %v2748_v2, %v13908_v14  ;;  %v2750_v51 = vpop.f32.mrb[23].mxu1  ;;  %v2978_v16 = vmax.f32 %v2952_v58, 0.0  ;;  %v2965_v30 = vadd.f32 %v2707_v50, %v13908_v14  ;;  %v14063_v2 = vld [vmem:[%s15725_s1 + $0x8] sm:$0xff]  }
 0x1b2   : > { %v2980_v29 = vmax.f32 %v2954_v10, 0.0  ;;  %v2967_v39 = vadd.f32 %v2750_v51, %v13908_v14  ;;  %v14056_v59 = vmax.f32 %v16030_v38, %v2977_v40  ;;  %v2990_v42 = vmax.f32 %v2964_v21, 0.0  ;;  %11865 = vmatmul.mubr.msk.bf16.vlgmr.msra.gmra.mrb[84].mxu0 %vm432_vm2, %v14063_v2 }
 0x1b3   : > { %v14058_v46 = vmax.f32 %v1625_v33, %v2979_v47  ;;  %v2992_v22 = vmax.f32 %v2966_v34, 0.0  ;;  %11565 = vmatmul.mubr.msk.bf16.vlgmr.msra.gmra.mrb[72].mxu1 %vm432_vm2, %v13548_v27  ;;  %v16031_v50 = vmax.f32 %v13922_v36, 0.0  ;;  %v2991_v60 = vmax.f32 %v2965_v30, 0.0  ;;  %v16032_v34 = vld [vmem:[#allocation31_spill] sm:$0xff]  ;;  %v16033_v33 = vld [vmem:[#allocation38_spill] sm:$0xff]  ;;  %5897 = vmatprep.mubr.bf16.mxu0 %v15926_v11 }
 0x1b4   : > { %v14073_v40 = vmax.f32 %v1626_v35, %v2980_v29  ;;  %v2993_v10 = vmax.f32 %v2967_v39, 0.0  ;;  %5866 = vmatpush1.bf16.msra.mxu0 %v16032_v34  ;;  %5995 = vmatpush1.bf16.msra.mxu1 %v16033_v33  ;;  %v1640_v58 = vmax.f32 %v14013_v0, 0.0  ;;  %v14080_v47 = vadd.f32 %v13895_v15, %v16034_v43  ;;  %v16036_v29 = vld [vmem:[#allocation6_spill] sm:$0xff] }
 0x1b5   : > { %v14071_v51 = vmax.f32 %v16031_v50, %v2978_v16  ;;  %v16035_v21 = vmax.f32 %v13931_v28, 0.0  ;;  %v14086_v36 = vmax.f32 %v1638_v53, %v2992_v22  ;;  %6026 = vmatprep.mubr.bf16.mxu1 %v15926_v11  ;;  %v1641_v30 = vmax.f32 %v14024_v52, 0.0  ;;  %v2787_v28 = vpop.f32.mrb[24].mxu0  ;;  %v16038_v53 = vld [vmem:[#allocation33_spill] sm:$0xff]  ;;  %v16039_v22 = vld [vmem:[#allocation40_spill] sm:$0xff] }
 0x1b6   : > { %v14093_v35 = vadd.f32 %v13895_v15, %v16036_v29  ;;  %v16037_v0 = vmax.f32 %v13957_v41, 0.0  ;;  %v14099_v39 = vmax.f32 %v1639_v18, %v2993_v10  ;;  %5951 = vmatprep.subr.bf16.mxu0 %v16038_v53  ;;  %6080 = vmatprep.subr.bf16.mxu1 %v16039_v22  ;;  %v1629_v50 = vmax.f32 %v14032_v24, 0.0  ;;  %v2789_v43 = vpop.f32.mrb[25].mxu0 }
 0x1b7   : > { %v14084_v38 = vmax.f32 %v16035_v21, %v2990_v42  ;;  %v2830_v42 = vpop.f32.mrb[24].mxu1  ;;  %v1630_v52 = vmax.f32 %v14036_v25, 0.0  ;;  %v2955_v34 = vadd.f32 %v2787_v28, %v13895_v15  ;;  %v1643_v18 = vmax.f32 %v14046_v7, 0.0  ;;  %v2791_v29 = vpop.f32.mrb[26].mxu0 }
 0x1b8   : > { %v14097_v16 = vmax.f32 %v16037_v0, %v2991_v60  ;;  %v2957_v33 = vadd.f32 %v2830_v42, %v13895_v15  ;;  %v2832_v41 = vpop.f32.mrb[25].mxu1  ;;  %v1642_v60 = vmax.f32 %v14042_v4, 0.0  ;;  %v2956_v10 = vadd.f32 %v2789_v43, %v13895_v15  ;;  %v2793_v22 = vpop.f32.mrb[27].mxu0 }
 0x1b9   : > { %v2958_v21 = vadd.f32 %v2832_v41, %v13895_v15  ;;  %v2834_v0 = vpop.f32.mrb[26].mxu1  ;;  %v2981_v53 = vmax.f32 %v2955_v34, 0.0  ;;  %v2968_v25 = vadd.f32 %v2791_v29, %v13908_v14  ;;  %v2969_v4 = vadd.f32 %v2793_v22, %v13908_v14 }
 0x1ba   : > { %v2983_v24 = vmax.f32 %v2957_v33, 0.0  ;;  %v2970_v28 = vadd.f32 %v2834_v0, %v13908_v14  ;;  %v2836_v42 = vpop.f32.mrb[27].mxu1  ;;  %v2982_v17 = vmax.f32 %v2956_v10, 0.0  ;;  %v16040_v43 = vmax.f32 %v13972_v56, 0.0  ;;  %11564 = vmatmul.mubr.msk.bf16.vlgmr.msra.gmra.mrb[72].mxu0 %vm432_vm2, %v13548_v27 }
 0x1bb   : > { %v2984_v3 = vmax.f32 %v2958_v21, 0.0  ;;  %v2971_v7 = vadd.f32 %v2836_v42, %v13908_v14  ;;  %v2994_v34 = vmax.f32 %v2968_v25, 0.0  ;;  %11567 = vmatmul.mubr.msk.bf16.vlgmr.msra.gmra.mrb[76].mxu1 %vm432_vm2, %v13548_v27  ;;  %v16041_v10 = vmax.f32 %v13981_v6, 0.0  ;;  %5983 = vmatprep.mubr.bf16.mxu0 %v15926_v11  ;;  %v16045_v42 = vld [vmem:[#allocation37_spill] sm:$0xff] }
 0x1bc   : > { %v14117_v57 = vmax.f32 %v16040_v43, %v2981_v53  ;;  %v14119_v41 = vmax.f32 %v1629_v50, %v2983_v24  ;;  %v2996_v33 = vmax.f32 %v2970_v28, 0.0  ;;  %v2995_v0 = vmax.f32 %v2969_v4, 0.0  ;;  %v16042_v53 = vld [vmem:[#allocation35_spill] sm:$0xff]  ;;  %v16043_v50 = vld [vmem:[#allocation41_spill] sm:$0xff]  ;;  %v16044_v24 = vld [vmem:[#allocation8_spill] sm:$0xff]  ;;  %6112 = vmatprep.mubr.bf16.mxu1 %v15926_v11 }
 0x1bd   : > { %v14127_v21 = vmax.f32 %v16041_v10, %v2982_v17  ;;  %v14129_v29 = vmax.f32 %v1630_v52, %v2984_v3  ;;  %v2997_v56 = vmax.f32 %v2971_v7, 0.0  ;;  %5952 = vmatpush1.bf16.msra.mxu0 %v16042_v53  ;;  %6081 = vmatpush1.bf16.msra.mxu1 %v16043_v50  ;;  %v1618_v25 = vadd.f32 %v13908_v14, %v16044_v24  ;;  %v2873_v6 = vpop.f32.mrb[28].mxu0 }
 0x1be   : > { %v14135_v28 = vmax.f32 %v1640_v58, %v2994_v34  ;;  %v14137_v22 = vmax.f32 %v1642_v60, %v2996_v33  ;;  %v1607_v27 = vadd.f32 %v13895_v15, %v13794_v5  ;;  %v14143_v3 = vmax.f32 %v1641_v30, %v2995_v0  ;;  %v2916_v52 = vpop.f32.mrb[32].mxu1  ;;  %6037 = vmatprep.subr.bf16.mxu0 %v16045_v42  ;;  %v2875_v7 = vpop.f32.mrb[29].mxu0 }
 0x1bf   : > { %v14145_v17 = vmax.f32 %v1643_v18, %v2997_v56  ;;  %11868 = vmatprep.subr.bf16.mxu1 %v15921_v19  ;;  %v1631_v58 = vmax.f32 %v14080_v47, 0.0  ;;  %v2959_v60 = vadd.f32 %v2873_v6, %v13895_v15  ;;  %v2935_v4 = vadd.f32 %v2916_v52, %v13963_v54  ;;  %v11824_v43 = vpop.f32.mrb[33].mxu1  ;;  %v16047_v18 = vld [vmem:[#allocation9_spill] sm:$0xff]  ;;  %v2877_v10 = vpop.f32.mrb[30].mxu0 }
 0x1c0   : > { %v14154_v5 = vand.u32 %v13950_v13, %v12826_v31  ;;  %v1632_v30 = vmax.f32 %v14093_v35, 0.0  ;;  %v1619_v34 = vadd.f32 %v13908_v14, %v16047_v18  ;;  %v1620_v33 = vadd.f32 %v13908_v14, %v13801_v8  ;;  %v2919_v0 = vpop.f32.mrb[34].mxu1  ;;  %v2879_v35 = vpop.f32.mrb[31].mxu0 }
 0x1c1   : > { %v2960_v47 = vadd.f32 %v2875_v7, %v13895_v15  ;;  %v2985_v56 = vmax.f32 %v2959_v60, 0.0  ;;  %v2961_v54 = vadd.f32 %v2935_v4, %v13895_v15  ;;  %v2972_v53 = vadd.f32 %v2877_v10, %v13908_v14  ;;  %v11825_v24 = vpop.f32.mrb[35].mxu1  ;;  %v14172_v4 = vld [vmem:[%s15725_s1] sm:$0xff]   ;;  %v16048_v10 = vld [vmem:[#allocation39_spill] sm:$0xff] }
 0x1c2   : > { %16046 = vst [vmem:[#allocation32_spill] sm:$0xff] %v14154_v5  ;;  %v2948_v50 = vadd.f32 %v2919_v0, %v13984_v63  ;;  %v1644_v6 = vmax.f32 %v1618_v25, 0.0  ;;  %v1633_v52 = vmax.f32 %v1607_v27, 0.0  ;;  %v2973_v8 = vadd.f32 %v2879_v35, %v13908_v14  ;;  %11566 = vmatmul.mubr.msk.bf16.vlgmr.msra.gmra.mrb[76].mxu0 %vm432_vm2, %v14172_v4  ;;  %v6166_v63 = vld [vmem:[%s12828_s22 + $0x78] sm:$0x33]  ;;  %v16049_v0 = vld [vmem:[#allocation42_spill] sm:$0xff] }
 0x1c3   : > { %v2986_v42 = vmax.f32 %v2960_v47, 0.0  ;;  %v14166_v43 = vmax.f32 %v1631_v58, %v2985_v56  ;;  %v2987_v7 = vmax.f32 %v2961_v54, 0.0  ;;  %v2998_v18 = vmax.f32 %v2972_v53, 0.0  ;;  %11569 = vmatmul.mubr.msk.bf16.vlgmr.msra.gmra.mrb[80].mxu1 %vm432_vm2, %v14172_v4  ;;  %v6167_v25 = vld [vmem:[%s12828_s22 + $0x80] sm:$0x33]  ;;  %6038 = vmatpush1.bf16.msra.mxu0 %v16048_v10 }
 0x1c4   : > { %v2974_v60 = vadd.f32 %v2948_v50, %v13908_v14  ;;  %v1645_v27 = vmax.f32 %v1619_v34, 0.0  ;;  %v2999_v47 = vmax.f32 %v2973_v8, 0.0  ;;  %11869 = vmatpush3.bf16.msra.mxu1 %v16049_v0  ;;  %v14186_v56 = vcombine.low %v13925_v20, %v13925_v20  ;;  %6069 = vmatprep.mubr.bf16.mxu0 %v15926_v11  ;;  %v6168_v8 = vld [vmem:[%s12828_s22 + $0x88] sm:$0x33] }
 0x1c5   : > { %v14180_v58 = vmax.f32 %v1632_v30, %v2986_v42  ;;  %v1646_v54 = vmax.f32 %v1620_v33, 0.0  ;;  %v14188_v53 = vmax.f32 %v1633_v52, %v2987_v7  ;;  %v14190_v50 = vmax.f32 %v1644_v6, %v2998_v18  ;;  %11870 = vmatprep.mubr.msk.bf16.mxu1 %vm12672_vm3, %v15921_v19  ;;  %6243 = vmatprep.subr.bf16.mxu0 %v13946_v61  ;;  %v6169_v7 = vld [vmem:[%s12828_s22 + $0x90] sm:$0x33] }
 0x1c6   : > { %v3000_v35 = vmax.f32 %v2974_v60, 0.0  ;;  %v14195_v30 = vmax.f32 %v1645_v27, %v2999_v47  ;;  %6286 = vmatprep.subr.bf16.mxu1 %v14154_v5  ;;  %v14199_v20 = vcombine.high %v6166_v63, %v6166_v63  ;;  %v14201_v34 = vcombine.high %v6167_v25, %v6167_v25 }
 0x1c7   : > { %16050 = vst [vmem:[#allocation34_spill] sm:$0xff] %v14188_v53  ;;  %v14207_v24 = vand.u32 %v13939_v55, %v12826_v31  ;;  %v14211_v6 = vand.u32 %v14186_v56, %v12826_v31  ;;  %v14229_v18 = vcombine.low %v6166_v63, %v6166_v63  ;;  %v14231_v60 = vcombine.low %v6167_v25, %v6167_v25 }
 0x1c8   : > { %v14203_v33 = vmax.f32 %v1646_v54, %v3000_v35  ;;  %v14215_v52 = vand.u32 %v14199_v20, %v12826_v31  ;;  %v14219_v42 = vand.u32 %v14201_v34, %v12826_v31  ;;  %v14237_v27 = vcombine.high %v6168_v8, %v6168_v8 }
 0x1c9   : > { %16052 = vst [vmem:[#allocation36_spill] sm:$0xff] %v14207_v24  ;;  %16053 = vst [vmem:[#allocation5_spill] sm:$0xff] %v14211_v6  ;;  %v14239_v47 = vcombine.high %v6169_v7, %v6169_v7  ;;  %v14243_v10 = vand.u32 %v14229_v18, %v12826_v31  ;;  %v14247_v63 = vand.u32 %v14231_v60, %v12826_v31 }
 0x1ca   : > { %16051 = vst [vmem:[#allocation29_spill] sm:$0xff] %v14203_v33  ;;  %16054 = vst [vmem:[#allocation7_spill] sm:$0xff] %v14215_v52  ;;  %11568 = vmatmul.mubr.msk.bf16.vlgmr.msra.gmra.mrb[80].mxu0 %vm432_vm2, %v14172_v4  ;;  %v14251_v25 = vand.u32 %v14237_v27, %v12826_v31  ;;  %v14263_v54 = vcombine.low %v6168_v8, %v6168_v8  ;;  %v14265_v35 = vcombine.low %v6169_v7, %v6169_v7  ;;  %v14282_v8 = vld [vmem:[%s15725_s1 + $0x10] sm:$0xff]   ;;  %v14291_v7 = vld [vmem:[%s12828_s22 + $0x98] ss:$0 sps:$4 sm:$0x33]  }
 0x1cb   : > { %16055 = vst [vmem:[#allocation10_spill] sm:$0xff] %v14219_v42  ;;  %11871 = vmatmul.mubr.msk.bf16.vlgmr.msra.gmra.mrb[84].mxu1 %vm432_vm2, %v14172_v4  ;;  %6244 = vmatpush1.bf16.msra.mxu0 %v14207_v24  ;;  %16056 = vst [vmem:[#allocation11_spill] sm:$0xff] %v14239_v47  ;;  %v14255_v0 = vand.u32 %v14239_v47, %v12826_v31 }
 0x1cc   : > { %6287 = vmatpush1.bf16.msra.mxu1 %v14211_v6  ;;  %6275 = vmatprep.mubr.bf16.mxu0 %v15926_v11  ;;  %16057 = vst [vmem:[#allocation31_spill] sm:$0xff] %v14243_v10  ;;  %16058 = vst [vmem:[#allocation38_spill] sm:$0xff] %v14247_v63  ;;  %v14299_v6 = vand.u32 %v14291_v7, %v12826_v31 }
 0x1cd   : > { %6318 = vmatprep.mubr.bf16.mxu1 %v15926_v11  ;;  %6329 = vmatprep.subr.bf16.mxu0 %v14215_v52  ;;  %16059 = vst [vmem:[#allocation4_spill] sm:$0xff] %v14251_v25  ;;  %16060 = vst [vmem:[#allocation6_spill] sm:$0xff] %v14255_v0  ;;  %v16074_v52 = vld [vmem:[#allocation77_spill] sm:$0xff] }
 0x1ce   : > { %6372 = vmatprep.subr.bf16.mxu1 %v14219_v42  ;;  %16061 = vst [vmem:[#allocation33_spill] sm:$0xff] %v14265_v35  ;;  %v14277_v42 = vand.u32 %v14265_v35, %v12826_v31  ;;  %16064 = vst [vmem:[#allocation41_spill] sm:$0xff] %v14282_v8 }
 0x1cf   : > { %16065 = vst [vmem:[#allocation8_spill] sm:$0xff] %v14291_v7  ;;  %16067 = vst [vmem:[#allocation37_spill] sm:$0xff] %v14299_v6 }
 0x1d0   : > { %16063 = vst [vmem:[#allocation35_spill] sm:$0xff] %v14277_v42 }
 0x1d2   : > { %11584 = vmatmul.mubr.msk.bf16.vlgmr.msra.gmra.mrb[72].mxu0 %vm432_vm2, %v13625_v12 }
 0x1d3   : > { %11585 = vmatmul.mubr.msk.bf16.vlgmr.msra.gmra.mrb[72].mxu1 %vm432_vm2, %v13625_v12  ;;  %6330 = vmatpush1.bf16.msra.mxu0 %v14243_v10  ;;  %v14273_v12 = vand.u32 %v14263_v54, %v12826_v31 }
 0x1d4   : > { %6373 = vmatpush1.bf16.msra.mxu1 %v14247_v63  ;;  %6361 = vmatprep.mubr.bf16.mxu0 %v15926_v11  ;;  %v16066_v63 = vld [vmem:[#allocation69_spill] sm:$0xff] }
 0x1d5   : > { %6404 = vmatprep.mubr.bf16.mxu1 %v15926_v11  ;;  %6415 = vmatprep.subr.bf16.mxu0 %v14251_v25  ;;  %16062 = vst [vmem:[#allocation40_spill] sm:$0xff] %v14273_v12 }
 0x1d6   : > { %6458 = vmatprep.subr.bf16.mxu1 %v14255_v0 }
 0x1da   : > { %11586 = vmatmul.mubr.msk.bf16.vlgmr.msra.gmra.mrb[76].mxu0 %vm432_vm2, %v14282_v8 }
 0x1db   : > { %11587 = vmatmul.mubr.msk.bf16.vlgmr.msra.gmra.mrb[76].mxu1 %vm432_vm2, %v14282_v8  ;;  %6416 = vmatpush1.bf16.msra.mxu0 %v14273_v12 }
 0x1dc   : > { %6459 = vmatpush1.bf16.msra.mxu1 %v14277_v42  ;;  %6447 = vmatprep.mubr.bf16.mxu0 %v15926_v11  ;;  %v16068_v42 = vld [vmem:[#allocation71_spill] sm:$0xff] }
 0x1dd   : > { %6490 = vmatprep.mubr.bf16.mxu1 %v15926_v11  ;;  %v3469_v0 = vpop.f32.mrb[48].mxu0  ;;  %11874 = vmatprep.subr.bf16.mxu0 %v15921_v19 }
 0x1de   : > { %6646 = vmatprep.subr.bf16.mxu1 %v16066_v63  ;;  %v11830_v25 = vpop.f32.mrb[49].mxu0  ;;  %v16070_v63 = vld [vmem:[#allocation73_spill] sm:$0xff] }
 0x1df   : > { %v3472_v10 = vpop.f32.mrb[50].mxu0  ;;  %v16069_v25 = vld [vmem:[#allocation70_spill] sm:$0xff] }
 0x1e0   : > { %v11831_v12 = vpop.f32.mrb[51].mxu0 }
 0x1e1   : > { %v16071_v12 = vld [vmem:[#allocation72_spill] sm:$0xff] }
 0x1e2   : > { %11588 = vmatmul.mubr.msk.bf16.vlgmr.msra.gmra.mrb[80].mxu0 %vm432_vm2, %v14282_v8 }
 0x1e3   : > { %11589 = vmatmul.mubr.msk.bf16.vlgmr.msra.gmra.mrb[80].mxu1 %vm432_vm2, %v14282_v8  ;;  %11875 = vmatpush3.bf16.msra.mxu0 %v14299_v6  ;;  %v16072_v6 = vld [vmem:[#allocation75_spill] sm:$0xff] }
 0x1e4   : > { %6647 = vmatpush1.bf16.msra.mxu1 %v16068_v42  ;;  %11876 = vmatprep.mubr.msk.bf16.mxu0 %vm12672_vm3, %v15921_v19  ;;  %v16073_v42 = vld [vmem:[#allocation74_spill] sm:$0xff] }
 0x1e5   : > { %6678 = vmatprep.mubr.bf16.mxu1 %v15926_v11  ;;  %6689 = vmatprep.subr.bf16.mxu0 %v16069_v25  ;;  %v16076_v25 = vld [vmem:[#allocation79_spill] sm:$0xff] }
 0x1e6   : > { %6732 = vmatprep.subr.bf16.mxu1 %v16070_v63  ;;  %v16075_v63 = vld [vmem:[#allocation76_spill] sm:$0xff] }
 0x1ea   : > { %11877 = vmatmul.mubr.msk.bf16.vlgmr.msra.gmra.mrb[88].mxu0 %vm432_vm2, %v14282_v8 }
 0x1eb   : > { %11591 = vmatmul.mubr.msk.bf16.vlgmr.msra.gmra.mrb[88].mxu1 %vm432_vm2, %v14063_v2  ;;  %6690 = vmatpush1.bf16.msra.mxu0 %v16071_v12  ;;  %v16077_v12 = vld [vmem:[#allocation78_spill] sm:$0xff] }
 0x1ec   : > { %6733 = vmatpush1.bf16.msra.mxu1 %v16072_v6  ;;  %6721 = vmatprep.mubr.bf16.mxu0 %v15926_v11 }
 0x1ed   : > { %6764 = vmatprep.mubr.bf16.mxu1 %v15926_v11  ;;  %6775 = vmatprep.subr.bf16.mxu0 %v16073_v42 }
 0x1ee   : > { %6818 = vmatprep.subr.bf16.mxu1 %v16074_v52 }
 0x1f2   : > { %11592 = vmatmul.mubr.msk.bf16.vlgmr.msra.gmra.mrb[92].mxu0 %vm432_vm2, %v14063_v2 }
 0x1f3   : > { %11593 = vmatmul.mubr.msk.bf16.vlgmr.msra.gmra.mrb[92].mxu1 %vm432_vm2, %v14063_v2  ;;  %6776 = vmatpush1.bf16.msra.mxu0 %v16075_v63  ;;  %v16079_v63 = vld [vmem:[#allocation81_spill] sm:$0xff] }
 0x1f4   : > { %6819 = vmatpush1.bf16.msra.mxu1 %v16076_v25  ;;  %6807 = vmatprep.mubr.bf16.mxu0 %v15926_v11  ;;  %v16078_v25 = vld [vmem:[#allocation80_spill] sm:$0xff] }
 0x1f5   : > { %6850 = vmatprep.mubr.bf16.mxu1 %v15926_v11  ;;  %6861 = vmatprep.subr.bf16.mxu0 %v16077_v12  ;;  %v7252_v12 = vshll.u32 %v13916_v45, 16 }
 0x1f6   : > { %v3853_v6 = vpop.f32.mrb[48].mxu1  ;;  %11880 = vmatprep.subr.bf16.mxu1 %v15921_v19 }
 0x1f7   : > { %v14332_v52 = vadd.f32 %v3853_v6, %v3469_v0  ;;  %v11836_v42 = vpop.f32.mrb[49].mxu1  ;;  %v7254_v7 = vrot.slane %v7252_v12, 1 }
 0x1f8   : > { %v3856_v5 = vpop.f32.mrb[50].mxu1  ;;  %v16081_v42 = vld [vmem:[#allocation56_spill] sm:$0xff] }
 0x1f9   : > { %v14334_v24 = vadd.f32 %v3856_v5, %v3472_v10  ;;  %v11837_v61 = vpop.f32.mrb[51].mxu1 }
 0x1fa   : > { %11594 = vmatmul.mubr.msk.bf16.vlgmr.msra.gmra.mrb[96].mxu0 %vm432_vm2, %v14063_v2  ;;  %v16080_v61 = vld [vmem:[#allocation57_spill] sm:$0xff] }
 0x1fb   : > { %11595 = vmatmul.mubr.msk.bf16.vlgmr.msra.gmra.mrb[96].mxu1 %vm432_vm2, %v14063_v2  ;;  %6862 = vmatpush1.bf16.msra.mxu0 %v16078_v25 }
 0x1fc   : > { %11881 = vmatpush3.bf16.msra.mxu1 %v16079_v63  ;;  %6893 = vmatprep.mubr.bf16.mxu0 %v15926_v11  ;;  %v7250_v63 = vshrl.u32 %v13916_v45, 16 }
 0x1fd   : > { %11882 = vmatprep.mubr.msk.bf16.mxu1 %vm12672_vm3, %v15921_v19  ;;  %v3986_v5 = vpop.f32.mrb[36].mxu0  ;;  %6988 = vmatprep.subr.bf16.mxu0 %v16080_v61  ;;  %v7264_v61 = vshll.u32 %v13950_v13, 16 }
 0x1fe   : > { %v4029_v6 = vpop.f32.mrb[36].mxu1  ;;  %6945 = vmatprep.subr.bf16.mxu1 %v16081_v42  ;;  %v4277_v10 = vadd.f32 %v3986_v5, %v13895_v15  ;;  %v3988_v25 = vpop.f32.mrb[37].mxu0 }
 0x1ff   : > { %v4279_v0 = vadd.f32 %v4029_v6, %v13895_v15  ;;  %v4031_v48 = vpop.f32.mrb[37].mxu1  ;;  %v4278_v9 = vadd.f32 %v3988_v25, %v13895_v15  ;;  %v3990_v37 = vpop.f32.mrb[38].mxu0 }
 0x200   : > { %v4280_v44 = vadd.f32 %v4031_v48, %v13895_v15  ;;  %v4033_v23 = vpop.f32.mrb[38].mxu1  ;;  %v4303_v42 = vmax.f32 %v4277_v10, 0.0  ;;  %v4290_v5 = vadd.f32 %v3990_v37, %v13908_v14  ;;  %v3992_v8 = vpop.f32.mrb[39].mxu0 }
 0x201   : > { %v4305_v35 = vmax.f32 %v4279_v0, 0.0  ;;  %v4292_v6 = vadd.f32 %v4033_v23, %v13908_v14  ;;  %v4035_v33 = vpop.f32.mrb[39].mxu1  ;;  %v4304_v45 = vmax.f32 %v4278_v9, 0.0  ;;  %v4291_v53 = vadd.f32 %v3992_v8, %v13908_v14  ;;  %v16085_v8 = vld [vmem:[#allocation61_spill] sm:$0xff] }
 0x202   : > { %v4306_v47 = vmax.f32 %v4280_v44, 0.0  ;;  %v4293_v25 = vadd.f32 %v4035_v33, %v13908_v14  ;;  %v14360_v48 = vmax.f32 %v13997_v26, %v4303_v42  ;;  %v4316_v10 = vmax.f32 %v4290_v5, 0.0  ;;  %11596 = vmatmul.mubr.msk.bf16.vlgmr.msra.gmra.mrb[100].mxu0 %vm432_vm2, %v14063_v2  ;;  %v16082_v26 = vld [vmem:[#allocation59_spill] sm:$0xff]  ;;  %v16086_v42 = vld [vmem:[#allocation60_spill] sm:$0xff] }
 0x203   : > { %v14363_v12 = vmax.f32 %v14056_v59, %v4305_v35  ;;  %v4318_v0 = vmax.f32 %v4292_v6, 0.0  ;;  %11883 = vmatmul.mubr.msk.bf16.vlgmr.msra.gmra.mrb[100].mxu1 %vm432_vm2, %v14063_v2  ;;  %v14370_v37 = vmax.f32 %v14005_v1, %v4304_v45  ;;  %v4317_v9 = vmax.f32 %v4291_v53, 0.0  ;;  %6989 = vmatpush1.bf16.msra.mxu0 %v16082_v26  ;;  %v16083_v59 = vld [vmem:[#allocation58_spill] sm:$0xff] }
 0x204   : > { %v14373_v23 = vmax.f32 %v14071_v51, %v4306_v47  ;;  %v4319_v44 = vmax.f32 %v4293_v25, 0.0  ;;  %6946 = vmatpush1.bf16.msra.mxu1 %v16083_v59  ;;  %v14378_v33 = vmax.f32 %v14015_v62, %v4316_v10  ;;  %6977 = vmatprep.mubr.bf16.mxu1 %v15926_v11  ;;  %v7244_v62 = vshrl.u32 %v13939_v55, 16 }
 0x205   : > { %v14381_v35 = vmax.f32 %v14084_v38, %v4318_v0  ;;  %7020 = vmatprep.mubr.bf16.mxu0 %v15926_v11  ;;  %v14386_v1 = vmax.f32 %v14026_v49, %v4317_v9  ;;  %v4072_v53 = vpop.f32.mrb[40].mxu0  ;;  %7074 = vmatprep.subr.bf16.mxu0 %v16085_v8  ;;  %v7248_v38 = vrot.slane %v7246_v32, 1  ;;  %v7255_v49 = vor.u32 %v7254_v7, %v7250_v63 }
 0x206   : > { %v14389_v51 = vmax.f32 %v14097_v16, %v4319_v44  ;;  %v4115_v47 = vpop.f32.mrb[40].mxu1  ;;  %7031 = vmatprep.subr.bf16.mxu1 %v16086_v42  ;;  %v4281_v5 = vadd.f32 %v4072_v53, %v13895_v15  ;;  %v4074_v45 = vpop.f32.mrb[41].mxu0  ;;  %v7276_v10 = vshll.u32 %v14199_v20, 16  ;;  %v7262_v26 = vshrl.u32 %v13950_v13, 16 }
 0x207   : > { %v4283_v6 = vadd.f32 %v4115_v47, %v13895_v15  ;;  %v4117_v25 = vpop.f32.mrb[41].mxu1  ;;  %v4282_v16 = vadd.f32 %v4074_v45, %v13895_v15  ;;  %v4076_v9 = vpop.f32.mrb[42].mxu0  ;;  %v7266_v59 = vrot.slane %v7264_v61, 1 }
 0x208   : > { %16084 = vst [vmem:[#allocation9_spill] sm:$0xff] %v14389_v51  ;;  %v4284_v0 = vadd.f32 %v4117_v25, %v13895_v15  ;;  %v4119_v44 = vpop.f32.mrb[42].mxu1  ;;  %v4307_v55 = vmax.f32 %v4281_v5, 0.0  ;;  %v4294_v53 = vadd.f32 %v4076_v9, %v13908_v14  ;;  %v4078_v8 = vpop.f32.mrb[43].mxu0  ;;  %v16087_v9 = vld [vmem:[#allocation63_spill] sm:$0xff] }
 0x209   : > { %v4309_v32 = vmax.f32 %v4283_v6, 0.0  ;;  %v4296_v47 = vadd.f32 %v4119_v44, %v13908_v14  ;;  %v4121_v42 = vpop.f32.mrb[43].mxu1  ;;  %v4308_v63 = vmax.f32 %v4282_v16, 0.0  ;;  %v4295_v51 = vadd.f32 %v4078_v8, %v13908_v14 }
 0x20a   : > { %v4310_v7 = vmax.f32 %v4284_v0, 0.0  ;;  %v4297_v45 = vadd.f32 %v4121_v42, %v13908_v14  ;;  %v14405_v25 = vmax.f32 %v14058_v46, %v4307_v55  ;;  %v4320_v61 = vmax.f32 %v4294_v53, 0.0  ;;  %11599 = vmatmul.mubr.msk.bf16.vlgmr.msra.gmra.mrb[92].mxu0 %vm432_vm2, %v14172_v4 }
 0x20b   : > { %v14408_v13 = vmax.f32 %v14117_v57, %v4309_v32  ;;  %v4322_v5 = vmax.f32 %v4296_v47, 0.0  ;;  %11598 = vmatmul.mubr.msk.bf16.vlgmr.msra.gmra.mrb[88].mxu1 %vm432_vm2, %v14172_v4  ;;  %v14415_v6 = vmax.f32 %v14073_v40, %v4308_v63  ;;  %v4321_v0 = vmax.f32 %v4295_v51, 0.0  ;;  %7075 = vmatpush1.bf16.msra.mxu0 %v16087_v9  ;;  %v16088_v57 = vld [vmem:[#allocation62_spill] sm:$0xff]  ;;  %v16090_v47 = vld [vmem:[#allocation65_spill] sm:$0xff] }
 0x20c   : > { %v14418_v16 = vmax.f32 %v14127_v21, %v4310_v7  ;;  %v4323_v46 = vmax.f32 %v4297_v45, 0.0  ;;  %7032 = vmatpush1.bf16.msra.mxu1 %v16088_v57  ;;  %v14423_v44 = vmax.f32 %v14086_v36, %v4320_v61  ;;  %7063 = vmatprep.mubr.bf16.mxu1 %v15926_v11  ;;  %v7249_v40 = vor.u32 %v7248_v38, %v7244_v62  ;;  %v16091_v36 = vld [vmem:[#allocation64_spill] sm:$0xff] }
 0x20d   : > { %v14426_v55 = vmax.f32 %v14135_v28, %v4322_v5  ;;  %7106 = vmatprep.mubr.bf16.mxu0 %v15926_v11  ;;  %v14431_v21 = vmax.f32 %v14099_v39, %v4321_v0  ;;  %v4158_v32 = vpop.f32.mrb[44].mxu0  ;;  %7160 = vmatprep.subr.bf16.mxu0 %v16090_v47  ;;  %v14439_v28 = vand.u32 %v7255_v49, %v12826_v31  ;;  %v7258_v8 = vshll.u32 %v14186_v56, 16 }
 0x20e   : > { %v14434_v51 = vmax.f32 %v14143_v3, %v4323_v46  ;;  %v4201_v53 = vpop.f32.mrb[44].mxu1  ;;  %7117 = vmatprep.subr.bf16.mxu1 %v16091_v36  ;;  %v4285_v42 = vadd.f32 %v4158_v32, %v13895_v15  ;;  %v4160_v39 = vpop.f32.mrb[45].mxu0  ;;  %v7274_v3 = vshrl.u32 %v14199_v20, 16  ;;  %v7270_v63 = vshll.u32 %v14229_v18, 16 }
 0x20f   : > { %16092 = vst [vmem:[#allocation42_spill] sm:$0xff] %v14439_v28  ;;  %v4287_v62 = vadd.f32 %v4201_v53, %v13895_v15  ;;  %v4203_v38 = vpop.f32.mrb[45].mxu1  ;;  %v4286_v7 = vadd.f32 %v4160_v39, %v13895_v15  ;;  %v4162_v61 = vpop.f32.mrb[46].mxu0  ;;  %v7267_v49 = vor.u32 %v7266_v59, %v7262_v26  ;;  %v7278_v0 = vrot.slane %v7276_v10, 1 }
 0x210   : > { %16089 = vst [vmem:[#allocation39_spill] sm:$0xff] %v14434_v51  ;;  %v4288_v45 = vadd.f32 %v4203_v38, %v13895_v15  ;;  %v4205_v5 = vpop.f32.mrb[46].mxu1  ;;  %v4311_v46 = vmax.f32 %v4285_v42, 0.0  ;;  %v4298_v57 = vadd.f32 %v4162_v61, %v13908_v14  ;;  %v4164_v53 = vpop.f32.mrb[47].mxu0 }
 0x211   : > { %v4313_v9 = vmax.f32 %v4287_v62, 0.0  ;;  %v4300_v32 = vadd.f32 %v4205_v5, %v13908_v14  ;;  %v4207_v47 = vpop.f32.mrb[47].mxu1  ;;  %v4312_v36 = vmax.f32 %v4286_v7, 0.0  ;;  %v4299_v51 = vadd.f32 %v4164_v53, %v13908_v14 }
 0x212   : > { %v4314_v20 = vmax.f32 %v4288_v45, 0.0  ;;  %v4301_v39 = vadd.f32 %v4207_v47, %v13908_v14  ;;  %v14453_v38 = vmax.f32 %v14119_v41, %v4311_v46  ;;  %v4324_v10 = vmax.f32 %v4298_v57, 0.0  ;;  %11601 = vmatmul.mubr.msk.bf16.vlgmr.msra.gmra.mrb[96].mxu0 %vm432_vm2, %v14172_v4  ;;  %v16093_v45 = vld [vmem:[#allocation67_spill] sm:$0xff] }
 0x213   : > { %v14456_v26 = vmax.f32 %v14166_v43, %v4313_v9  ;;  %v4326_v59 = vmax.f32 %v4300_v32, 0.0  ;;  %11600 = vmatmul.mubr.msk.bf16.vlgmr.msra.gmra.mrb[92].mxu1 %vm432_vm2, %v14172_v4  ;;  %v14463_v42 = vmax.f32 %v14129_v29, %v4312_v36  ;;  %v4325_v7 = vmax.f32 %v4299_v51, 0.0  ;;  %7161 = vmatpush1.bf16.msra.mxu0 %v16093_v45  ;;  %v16094_v43 = vld [vmem:[#allocation66_spill] sm:$0xff] }
 0x214   : > { %v14466_v62 = vmax.f32 %v14180_v58, %v4314_v20  ;;  %v4327_v41 = vmax.f32 %v4301_v39, 0.0  ;;  %7118 = vmatpush1.bf16.msra.mxu1 %v16094_v43  ;;  %v14471_v61 = vmax.f32 %v14137_v22, %v4324_v10  ;;  %7149 = vmatprep.mubr.bf16.mxu1 %v15926_v11  ;;  %v7279_v29 = vor.u32 %v7278_v0, %v7274_v3 }
 0x215   : > { %v14474_v5 = vmax.f32 %v14190_v50, %v4326_v59  ;;  %7192 = vmatprep.mubr.bf16.mxu0 %v15926_v11  ;;  %v14479_v58 = vmax.f32 %v14145_v17, %v4325_v7  ;;  %v4244_v46 = vpop.f32.mrb[52].mxu0  ;;  %11886 = vmatprep.subr.bf16.mxu0 %v15921_v19  ;;  %v7288_v22 = vshll.u32 %v14201_v34, 16  ;;  %v7300_v50 = vshll.u32 %v14237_v27, 16  ;;  %v16099_v7 = vld [vmem:[#allocation34_spill] sm:$0xff] }
 0x216   : > { %v14482_v51 = vmax.f32 %v14195_v30, %v4327_v41  ;;  %7361 = vmatprep.subr.bf16.mxu1 %v14439_v28  ;;  %v4263_v9 = vadd.f32 %v4244_v46, %v14332_v52  ;;  %v11842_v57 = vpop.f32.mrb[53].mxu0  ;;  %v14490_v3 = vand.u32 %v7249_v40, %v12826_v31  ;;  %v7256_v0 = vshrl.u32 %v14186_v56, 16 }
 0x217   : > { %v4247_v17 = vpop.f32.mrb[54].mxu0  ;;  %v7260_v30 = vrot.slane %v7258_v8, 1  ;;  %v7268_v32 = vshrl.u32 %v14229_v18, 16  ;;  %v7272_v53 = vrot.slane %v7270_v63, 1  ;;  %v14497_v39 = vand.u32 %v7267_v49, %v12826_v31  ;;  %v16098_v49 = vld [vmem:[#allocation68_spill] sm:$0xff] }
 0x218   : > { %16095 = vst [vmem:[#allocation57_spill] sm:$0xff] %v14490_v3  ;;  %v4289_v47 = vadd.f32 %v4263_v9, %v13895_v15  ;;  %v4276_v36 = vadd.f32 %v4247_v17, %v14334_v24  ;;  %v11843_v20 = vpop.f32.mrb[55].mxu0  ;;  %v14500_v52 = vand.u32 %v7279_v29, %v12826_v31  ;;  %v7286_v40 = vshrl.u32 %v14201_v34, 16  ;;  %v16101_v9 = vld [vmem:[#allocation29_spill] sm:$0xff] }
 0x219   : > { %16096 = vst [vmem:[#allocation56_spill] sm:$0xff] %v14497_v39  ;;  %v7290_v10 = vrot.slane %v7288_v22, 1  ;;  %v7298_v56 = vshrl.u32 %v14237_v27, 16  ;;  %v7302_v8 = vrot.slane %v7300_v50, 1  ;;  %v7282_v24 = vshll.u32 %v14231_v60, 16  ;;  %v16100_v22 = vld [vmem:[#allocation11_spill] sm:$0xff] }
 0x21a   : > { %16097 = vst [vmem:[#allocation59_spill] sm:$0xff] %v14500_v52  ;;  %v4315_v59 = vmax.f32 %v4289_v47, 0.0  ;;  %v4302_v18 = vadd.f32 %v4276_v36, %v13908_v14  ;;  %11603 = vmatmul.mubr.msk.bf16.vlgmr.msra.gmra.mrb[100].mxu0 %vm432_vm2, %v14172_v4  ;;  %v7294_v63 = vshll.u32 %v14263_v54, 16  ;;  %v7261_v34 = vor.u32 %v7260_v30, %v7256_v0 }
 0x21b   : > { %11602 = vmatmul.mubr.msk.bf16.vlgmr.msra.gmra.mrb[96].mxu1 %vm432_vm2, %v14172_v4  ;;  %11887 = vmatpush3.bf16.msra.mxu0 %v16098_v49  ;;  %v7273_v27 = vor.u32 %v7272_v53, %v7268_v32  ;;  %v7291_v43 = vor.u32 %v7290_v10, %v7286_v40  ;;  %v7280_v29 = vshrl.u32 %v14231_v60, 16  ;;  %v7303_v46 = vor.u32 %v7302_v8, %v7298_v56  ;;  %v16107_v56 = vld [vmem:[#allocation33_spill] sm:$0xff] }
 0x21c   : > { %7362 = vmatpush1.bf16.msra.mxu1 %v14490_v3  ;;  %v14514_v41 = vmax.f32 %v16099_v7, %v4315_v59  ;;  %v4328_v45 = vmax.f32 %v4302_v18, 0.0  ;;  %11888 = vmatprep.mubr.msk.bf16.mxu0 %vm12672_vm3, %v15921_v19  ;;  %v7312_v50 = vshll.u32 %v16100_v22, 16  ;;  %v7284_v17 = vrot.slane %v7282_v24, 1  ;;  %v16108_v59 = vld [vmem:[#allocation8_spill] sm:$0xff] }
 0x21d   : > { %7393 = vmatprep.mubr.bf16.mxu1 %v15926_v11  ;;  %7404 = vmatprep.subr.bf16.mxu0 %v14497_v39  ;;  %v7292_v0 = vshrl.u32 %v14263_v54, 16  ;;  %v7296_v30 = vrot.slane %v7294_v63, 1  ;;  %v14528_v32 = vand.u32 %v7261_v34, %v12826_v31  ;;  %v14531_v53 = vand.u32 %v7273_v27, %v12826_v31  ;;  %v16106_v54 = vld [vmem:[#allocation41_spill] sm:$0xff] }
 0x21e   : > { %7447 = vmatprep.subr.bf16.mxu1 %v14500_v52  ;;  %v14524_v57 = vmax.f32 %v16101_v9, %v4328_v45  ;;  %v14534_v47 = vand.u32 %v7291_v43, %v12826_v31  ;;  %v14537_v60 = vand.u32 %v7303_v46, %v12826_v31  ;;  %v7310_v36 = vshrl.u32 %v16100_v22, 16 }
 0x21f   : > { %16102 = vst [vmem:[#allocation58_spill] sm:$0xff] %v14528_v32  ;;  %16103 = vst [vmem:[#allocation61_spill] sm:$0xff] %v14531_v53  ;;  %v7314_v20 = vrot.slane %v7312_v50, 1  ;;  %v7285_v40 = vor.u32 %v7284_v17, %v7280_v29  ;;  %v7297_v10 = vor.u32 %v7296_v30, %v7292_v0  ;;  %v7306_v8 = vshll.u32 %v16107_v56, 16 }
 0x220   : > { %16104 = vst [vmem:[#allocation60_spill] sm:$0xff] %v14534_v47  ;;  %16105 = vst [vmem:[#allocation63_spill] sm:$0xff] %v14537_v60  ;;  %v7318_v18 = vshll.u32 %v16108_v59, 16  ;;  %v7304_v34 = vshrl.u32 %v16107_v56, 16  ;;  %v7316_v7 = vshrl.u32 %v16108_v59, 16  ;;  %v16118_v56 = vld [vmem:[#allocation13_spill] sm:$0xff] }
 0x221   : > { %v7315_v24 = vor.u32 %v7314_v20, %v7310_v36  ;;  %v14553_v63 = vand.u32 %v7285_v40, %v12826_v31  ;;  %v14556_v49 = vand.u32 %v7297_v10, %v12826_v31  ;;  %v7308_v27 = vrot.slane %v7306_v8, 1  ;;  %v16114_v36 = vld [vmem:[#allocation14_spill] sm:$0xff]  ;;  %v16115_v20 = vld [vmem:[#allocation15_spill] sm:$0xff]  ;;  %v16116_v40 = vld [vmem:[#allocation12_spill] sm:$0xff] }
 0x222   : > { %11889 = vmatmul.mubr.msk.bf16.vlgmr.msra.gmra.mrb[104].mxu0 %vm432_vm2, %v14172_v4  ;;  %v7320_v45 = vrot.slane %v7318_v18, 1  ;;  %v16117_v10 = vld [vmem:[#allocation16_spill] sm:$0xff]  ;;  %v16119_v8 = vld [vmem:[#allocation83_spill] sm:$0xff]  ;;  %v16120_v59 = vld [vmem:[#allocation82_spill] sm:$0xff] }
 0x223   : > { %11605 = vmatmul.mubr.msk.bf16.vlgmr.msra.gmra.mrb[88].mxu1 %vm432_vm2, %v16106_v54  ;;  %7405 = vmatpush1.bf16.msra.mxu0 %v14528_v32  ;;  %16109 = vst [vmem:[#allocation62_spill] sm:$0xff] %v14553_v63  ;;  %16110 = vst [vmem:[#allocation65_spill] sm:$0xff] %v14556_v49  ;;  %v14561_v43 = vand.u32 %v7315_v24, %v12826_v31  ;;  %v7309_v29 = vor.u32 %v7308_v27, %v7304_v34  ;;  %v16121_v18 = vld [vmem:[#allocation85_spill] sm:$0xff]  ;;  %v16122_v24 = vld [vmem:[#allocation84_spill] sm:$0xff] }
 0x224   : > { %7448 = vmatpush1.bf16.msra.mxu1 %v14531_v53  ;;  %7436 = vmatprep.mubr.bf16.mxu0 %v15926_v11  ;;  %v7321_v46 = vor.u32 %v7320_v45, %v7316_v7  ;;  %v16123_v34 = vld [vmem:[#allocation87_spill] sm:$0xff]  ;;  %v16124_v27 = vld [vmem:[#allocation86_spill] sm:$0xff]  ;;  %v16125_v7 = vld [vmem:[#allocation88_spill] sm:$0xff] }
 0x225   : > { %7479 = vmatprep.mubr.bf16.mxu1 %v15926_v11  ;;  %7490 = vmatprep.subr.bf16.mxu0 %v14534_v47  ;;  %16111 = vst [vmem:[#allocation64_spill] sm:$0xff] %v14561_v43  ;;  %v14574_v9 = vand.u32 %v7309_v29, %v12826_v31 }
 0x226   : > { %7533 = vmatprep.subr.bf16.mxu1 %v14537_v60  ;;  %v14577_v0 = vand.u32 %v7321_v46, %v12826_v31  ;;  %v16126_v46 = vld [vmem:[#allocation18_spill] sm:$0xff] }
 0x227   : > { %16112 = vst [vmem:[#allocation67_spill] sm:$0xff] %v14574_v9 }
 0x228   : > { %16113 = vst [vmem:[#allocation66_spill] sm:$0xff] %v14577_v0 }
 0x22a   : > { %11606 = vmatmul.mubr.msk.bf16.vlgmr.msra.gmra.mrb[92].mxu0 %vm432_vm2, %v16106_v54 }
 0x22b   : > { %11607 = vmatmul.mubr.msk.bf16.vlgmr.msra.gmra.mrb[92].mxu1 %vm432_vm2, %v16106_v54  ;;  %7491 = vmatpush1.bf16.msra.mxu0 %v14553_v63 }
 0x22c   : > { %7534 = vmatpush1.bf16.msra.mxu1 %v14556_v49  ;;  %7522 = vmatprep.mubr.bf16.mxu0 %v15926_v11 }
 0x22d   : > { %7565 = vmatprep.mubr.bf16.mxu1 %v15926_v11  ;;  %7576 = vmatprep.subr.bf16.mxu0 %v14561_v43 }
 0x22e   : > { %v4647_v22 = vpop.f32.mrb[64].mxu1  ;;  %11892 = vmatprep.subr.bf16.mxu1 %v15921_v19 }
 0x22f   : > { %v11848_v50 = vpop.f32.mrb[65].mxu1 }
 0x230   : > { %v4650_v17 = vpop.f32.mrb[66].mxu1 }
 0x231   : > { %v11849_v30 = vpop.f32.mrb[67].mxu1 }
 0x232   : > { %11608 = vmatmul.mubr.msk.bf16.vlgmr.msra.gmra.mrb[96].mxu0 %vm432_vm2, %v16106_v54 }
 0x233   : > { %11609 = vmatmul.mubr.msk.bf16.vlgmr.msra.gmra.mrb[96].mxu1 %vm432_vm2, %v16106_v54  ;;  %7577 = vmatpush1.bf16.msra.mxu0 %v14574_v9 }
 0x234   : > { %11893 = vmatpush3.bf16.msra.mxu1 %v14577_v0  ;;  %7608 = vmatprep.mubr.bf16.mxu0 %v15926_v11 }
 0x235   : > { %11894 = vmatprep.mubr.msk.bf16.mxu1 %vm12672_vm3, %v15921_v19  ;;  %7764 = vmatprep.subr.bf16.mxu0 %v16114_v36 }
 0x236   : > { %7807 = vmatprep.subr.bf16.mxu1 %v16115_v20 }
 0x23a   : > { %11610 = vmatmul.mubr.msk.bf16.vlgmr.msra.gmra.mrb[100].mxu0 %vm432_vm2, %v16106_v54 }
 0x23b   : > { %11895 = vmatmul.mubr.msk.bf16.vlgmr.msra.gmra.mrb[104].mxu1 %vm432_vm2, %v16106_v54  ;;  %7765 = vmatpush1.bf16.msra.mxu0 %v16116_v40 }
 0x23c   : > { %7808 = vmatpush1.bf16.msra.mxu1 %v16117_v10  ;;  %7796 = vmatprep.mubr.bf16.mxu0 %v15926_v11 }
 0x23d   : > { %7839 = vmatprep.mubr.bf16.mxu1 %v15926_v11  ;;  %7850 = vmatprep.subr.bf16.mxu0 %v16118_v56 }
 0x23e   : > { %7893 = vmatprep.subr.bf16.mxu1 %v16119_v8 }
 0x242   : > { %11612 = vmatmul.mubr.msk.bf16.vlgmr.msra.gmra.mrb[108].mxu0 %vm432_vm2, %v14063_v2 }
 0x243   : > { %11613 = vmatmul.mubr.msk.bf16.vlgmr.msra.gmra.mrb[108].mxu1 %vm432_vm2, %v14063_v2  ;;  %7851 = vmatpush1.bf16.msra.mxu0 %v16120_v59 }
 0x244   : > { %7894 = vmatpush1.bf16.msra.mxu1 %v16121_v18  ;;  %7882 = vmatprep.mubr.bf16.mxu0 %v15926_v11 }
 0x245   : > { %7925 = vmatprep.mubr.bf16.mxu1 %v15926_v11  ;;  %7936 = vmatprep.subr.bf16.mxu0 %v16122_v24 }
 0x246   : > { %7979 = vmatprep.subr.bf16.mxu1 %v16123_v34 }
 0x24a   : > { %11614 = vmatmul.mubr.msk.bf16.vlgmr.msra.gmra.mrb[112].mxu0 %vm432_vm2, %v14063_v2 }
 0x24b   : > { %11615 = vmatmul.mubr.msk.bf16.vlgmr.msra.gmra.mrb[112].mxu1 %vm432_vm2, %v14063_v2  ;;  %7937 = vmatpush1.bf16.msra.mxu0 %v16124_v27 }
 0x24c   : > { %7980 = vmatpush1.bf16.msra.mxu1 %v16125_v7  ;;  %7968 = vmatprep.mubr.bf16.mxu0 %v15926_v11 }
 0x24d   : > { %8011 = vmatprep.mubr.bf16.mxu1 %v15926_v11  ;;  %v4946_v45 = vpop.f32.mrb[68].mxu0  ;;  %11898 = vmatprep.subr.bf16.mxu0 %v15921_v19 }
 0x24e   : > { %v5197_v29 = vpop.f32.mrb[52].mxu1  ;;  %8106 = vmatprep.subr.bf16.mxu1 %v16126_v46  ;;  %v14620_v50 = vadd.f32 %v4946_v45, %v4647_v22  ;;  %v11854_v36 = vpop.f32.mrb[69].mxu0  ;;  %v16127_v46 = vld [vmem:[#allocation89_spill] sm:$0xff] }
 0x24f   : > { %v5488_v30 = vadd.f32 %v5197_v29, %v13895_v15  ;;  %v5199_v20 = vpop.f32.mrb[53].mxu1  ;;  %v4949_v10 = vpop.f32.mrb[70].mxu0 }
 0x250   : > { %v5489_v40 = vadd.f32 %v5199_v20, %v13895_v15  ;;  %v5201_v56 = vpop.f32.mrb[54].mxu1  ;;  %v14624_v59 = vadd.f32 %v4949_v10, %v4650_v17  ;;  %v11855_v24 = vpop.f32.mrb[71].mxu0  ;;  %v14650_v20 = vld [vmem:[%s12828_s22 + $0x70] sm:$0xcc]  ;;  %v16129_v10 = vld [vmem:[#allocation17_spill] sm:$0xff] }
 0x251   : > { %v5514_v8 = vmax.f32 %v5488_v30, 0.0  ;;  %v5501_v18 = vadd.f32 %v5201_v56, %v13908_v14  ;;  %v5203_v34 = vpop.f32.mrb[55].mxu1  ;;  %v16128_v30 = vld [vmem:[#allocation20_spill] sm:$0xff]  ;;  %v16130_v56 = vld [vmem:[#allocation22_spill] sm:$0xff] }
 0x252   : > { %v5515_v27 = vmax.f32 %v5489_v40, 0.0  ;;  %v5502_v22 = vadd.f32 %v5203_v34, %v13908_v14  ;;  %11616 = vmatmul.mubr.msk.bf16.vlgmr.msra.gmra.mrb[116].mxu0 %vm432_vm2, %v14063_v2 }
 0x253   : > { %v14629_v7 = vmax.f32 %v14360_v48, %v5514_v8  ;;  %v5527_v45 = vmax.f32 %v5501_v18, 0.0  ;;  %11617 = vmatmul.mubr.msk.bf16.vlgmr.msra.gmra.mrb[116].mxu1 %vm432_vm2, %v14063_v2  ;;  %11899 = vmatpush3.bf16.msra.mxu0 %v16127_v46  ;;  %v14647_v48 = vld [vmem:[%s12828_s22 + $0x68] sm:$0xcc] }
 0x254   : > { %v14636_v17 = vmax.f32 %v14370_v37, %v5515_v27  ;;  %v5528_v29 = vmax.f32 %v5502_v22, 0.0  ;;  %8107 = vmatpush1.bf16.msra.mxu1 %v16128_v30  ;;  %11900 = vmatprep.mubr.msk.bf16.mxu0 %vm12672_vm3, %v15921_v19 }
 0x255   : > { %v14641_v36 = vmax.f32 %v14378_v33, %v5527_v45  ;;  %8138 = vmatprep.mubr.bf16.mxu1 %v15926_v11  ;;  %v5240_v37 = vpop.f32.mrb[56].mxu0  ;;  %8063 = vmatprep.subr.bf16.mxu0 %v16129_v10 }
 0x256   : > { %v14653_v2 = vmax.f32 %v14386_v1, %v5528_v29  ;;  %v5283_v40 = vpop.f32.mrb[56].mxu1  ;;  %8192 = vmatprep.subr.bf16.mxu1 %v16130_v56  ;;  %v5490_v33 = vadd.f32 %v5240_v37, %v13895_v15  ;;  %v5242_v18 = vpop.f32.mrb[57].mxu0  ;;  %v14663_v1 = vcombine.high %v14647_v48, %v14647_v48  ;;  %v14667_v29 = vcombine.high %v14650_v20, %v14650_v20 }
 0x257   : > { %v5492_v8 = vadd.f32 %v5283_v40, %v13895_v15  ;;  %v5285_v24 = vpop.f32.mrb[57].mxu1  ;;  %v5491_v34 = vadd.f32 %v5242_v18, %v13895_v15  ;;  %v5244_v22 = vpop.f32.mrb[58].mxu0 }
 0x258   : > { %v5493_v27 = vadd.f32 %v5285_v24, %v13895_v15  ;;  %v5287_v45 = vpop.f32.mrb[58].mxu1  ;;  %v5516_v46 = vmax.f32 %v5490_v33, 0.0  ;;  %v5503_v37 = vadd.f32 %v5244_v22, %v13908_v14  ;;  %v5246_v10 = vpop.f32.mrb[59].mxu0  ;;  %v14682_v22 = vld [vmem:[%s15725_s1 + $0x8] sm:$0xff]   ;;  %v9480_v28 = vshrl.u32 %v14667_v29, 16 }
 0x259   : > { %v5518_v30 = vmax.f32 %v5492_v8, 0.0  ;;  %v5505_v40 = vadd.f32 %v5287_v45, %v13908_v14  ;;  %v5289_v56 = vpop.f32.mrb[59].mxu1  ;;  %v5517_v18 = vmax.f32 %v5491_v34, 0.0  ;;  %v5504_v0 = vadd.f32 %v5246_v10, %v13908_v14  ;;  %v16131_v45 = vld [vmem:[#allocation19_spill] sm:$0xff]  ;;  %v16134_v10 = vld [vmem:[#allocation21_spill] sm:$0xff] }
 0x25a   : > { %v5519_v24 = vmax.f32 %v5493_v27, 0.0  ;;  %v5506_v9 = vadd.f32 %v5289_v56, %v13908_v14  ;;  %v14674_v49 = vmax.f32 %v14363_v12, %v5516_v46  ;;  %v5529_v33 = vmax.f32 %v5503_v37, 0.0  ;;  %11901 = vmatmul.mubr.msk.bf16.vlgmr.msra.gmra.mrb[120].mxu0 %vm432_vm2, %v14682_v22  ;;  %v16132_v46 = vld [vmem:[#allocation24_spill] sm:$0xff]  ;;  %v16135_v56 = vld [vmem:[#allocation26_spill] sm:$0xff] }
 0x25b   : > { %v14677_v43 = vmax.f32 %v14405_v25, %v5518_v30  ;;  %v5531_v8 = vmax.f32 %v5505_v40, 0.0  ;;  %11620 = vmatmul.mubr.msk.bf16.vlgmr.msra.gmra.mrb[108].mxu1 %vm432_vm2, %v14172_v4  ;;  %v14689_v34 = vmax.f32 %v14373_v23, %v5517_v18  ;;  %v5530_v25 = vmax.f32 %v5504_v0, 0.0  ;;  %8064 = vmatpush1.bf16.msra.mxu0 %v16131_v45  ;;  %v16133_v23 = vld [vmem:[#allocation9_spill] sm:$0xff] }
 0x25c   : > { %v14692_v12 = vmax.f32 %v14415_v6, %v5519_v24  ;;  %v5532_v27 = vmax.f32 %v5506_v9, 0.0  ;;  %8193 = vmatpush1.bf16.msra.mxu1 %v16132_v46  ;;  %v14697_v30 = vmax.f32 %v14381_v35, %v5529_v33  ;;  %8095 = vmatprep.mubr.bf16.mxu0 %v15926_v11 }
 0x25d   : > { %v14700_v37 = vmax.f32 %v14423_v44, %v5531_v8  ;;  %8224 = vmatprep.mubr.bf16.mxu1 %v15926_v11  ;;  %v14705_v40 = vmax.f32 %v16133_v23, %v5530_v25  ;;  %v5326_v9 = vpop.f32.mrb[60].mxu0  ;;  %8149 = vmatprep.subr.bf16.mxu0 %v16134_v10 }
 0x25e   : > { %v14708_v6 = vmax.f32 %v14431_v21, %v5532_v27  ;;  %v5369_v0 = vpop.f32.mrb[60].mxu1  ;;  %8278 = vmatprep.subr.bf16.mxu1 %v16135_v56  ;;  %v5494_v35 = vadd.f32 %v5326_v9, %v13895_v15  ;;  %v5328_v18 = vpop.f32.mrb[61].mxu0  ;;  %v8403_v21 = vrot.slane %v14663_v1, 2  ;;  %v8405_v27 = vrot.slane %v14667_v29, 2 }
 0x25f   : > { %v5496_v44 = vadd.f32 %v5369_v0, %v13895_v15  ;;  %v5371_v24 = vpop.f32.mrb[61].mxu1  ;;  %v5495_v33 = vadd.f32 %v5328_v18, %v13895_v15  ;;  %v5330_v25 = vpop.f32.mrb[62].mxu0 }
 0x260   : > { %v5497_v8 = vadd.f32 %v5371_v24, %v13895_v15  ;;  %v5373_v45 = vpop.f32.mrb[62].mxu1  ;;  %v5520_v46 = vmax.f32 %v5494_v35, 0.0  ;;  %v5507_v10 = vadd.f32 %v5330_v25, %v13908_v14  ;;  %v5332_v56 = vpop.f32.mrb[63].mxu0 }
 0x261   : > { %v5522_v23 = vmax.f32 %v5496_v44, 0.0  ;;  %v5509_v9 = vadd.f32 %v5373_v45, %v13908_v14  ;;  %v5375_v0 = vpop.f32.mrb[63].mxu1  ;;  %v5521_v60 = vmax.f32 %v5495_v33, 0.0  ;;  %v5508_v18 = vadd.f32 %v5332_v56, %v13908_v14  ;;  %v16136_v45 = vld [vmem:[#allocation23_spill] sm:$0xff] }
 0x262   : > { %v5523_v63 = vmax.f32 %v5497_v8, 0.0  ;;  %v5510_v24 = vadd.f32 %v5375_v0, %v13908_v14  ;;  %v14723_v53 = vmax.f32 %v14408_v13, %v5520_v46  ;;  %v5533_v35 = vmax.f32 %v5507_v10, 0.0  ;;  %11619 = vmatmul.mubr.msk.bf16.vlgmr.msra.gmra.mrb[108].mxu0 %vm432_vm2, %v14172_v4 }
 0x263   : > { %v14726_v47 = vmax.f32 %v14453_v38, %v5522_v23  ;;  %v5535_v44 = vmax.f32 %v5509_v9, 0.0  ;;  %11622 = vmatmul.mubr.msk.bf16.vlgmr.msra.gmra.mrb[112].mxu1 %vm432_vm2, %v14172_v4  ;;  %v14733_v33 = vmax.f32 %v14418_v16, %v5521_v60  ;;  %v5534_v25 = vmax.f32 %v5508_v18, 0.0  ;;  %8150 = vmatpush1.bf16.msra.mxu0 %v16136_v45  ;;  %v16137_v38 = vld [vmem:[#allocation28_spill] sm:$0xff]  ;;  %v16138_v16 = vld [vmem:[#allocation39_spill] sm:$0xff]  ;;  %v16139_v9 = vld [vmem:[#allocation25_spill] sm:$0xff] }
 0x264   : > { %v14736_v8 = vmax.f32 %v14463_v42, %v5523_v63  ;;  %v5536_v13 = vmax.f32 %v5510_v24, 0.0  ;;  %8279 = vmatpush1.bf16.msra.mxu1 %v16137_v38  ;;  %v14741_v46 = vmax.f32 %v14426_v55, %v5533_v35  ;;  %8181 = vmatprep.mubr.bf16.mxu0 %v15926_v11  ;;  %v14760_v18 = vcombine.low %v14647_v48, %v14647_v48  ;;  %v8364_v24 = vld [vmem:[%s12828_s22 + $0x78] sm:$0xcc]  ;;  %v8365_v35 = vld [vmem:[%s12828_s22 + $0x80] sm:$0xcc] }
 0x265   : > { %v14744_v23 = vmax.f32 %v14471_v61, %v5535_v44  ;;  %8310 = vmatprep.mubr.bf16.mxu1 %v15926_v11  ;;  %v14749_v42 = vmax.f32 %v16138_v16, %v5534_v25  ;;  %v5412_v63 = vpop.f32.mrb[64].mxu0  ;;  %8235 = vmatprep.subr.bf16.mxu0 %v16139_v9  ;;  %v14768_v45 = vcombine.low %v14650_v20, %v14650_v20 }
 0x266   : > { %v14752_v60 = vmax.f32 %v14479_v58, %v5536_v13  ;;  %v5455_v10 = vpop.f32.mrb[68].mxu1  ;;  %11904 = vmatprep.subr.bf16.mxu1 %v15921_v19  ;;  %v5498_v55 = vadd.f32 %v5412_v63, %v13895_v15  ;;  %v5414_v56 = vpop.f32.mrb[65].mxu0  ;;  %v8419_v13 = vand.u32 %v8403_v21, %v12826_v31  ;;  %v14775_v52 = vcombine.high %v8364_v24, %v8364_v24 }
 0x267   : > { %v5474_v61 = vadd.f32 %v5455_v10, %v14620_v50  ;;  %v11860_v0 = vpop.f32.mrb[69].mxu1  ;;  %v5499_v58 = vadd.f32 %v5414_v56, %v13895_v15  ;;  %v5416_v44 = vpop.f32.mrb[66].mxu0  ;;  %v8425_v50 = vand.u32 %v8405_v27, %v12826_v31  ;;  %v14777_v21 = vcombine.high %v8365_v35, %v8365_v35 }
 0x268   : > { %v5458_v25 = vpop.f32.mrb[70].mxu1  ;;  %v5524_v38 = vmax.f32 %v5498_v55, 0.0  ;;  %v5511_v48 = vadd.f32 %v5416_v44, %v13908_v14  ;;  %v5418_v10 = vpop.f32.mrb[67].mxu0  ;;  %v16140_v44 = vld [vmem:[#allocation27_spill] sm:$0xff] }
 0x269   : > { %v5500_v16 = vadd.f32 %v5474_v61, %v13895_v15  ;;  %v5487_v63 = vadd.f32 %v5458_v25, %v14624_v59  ;;  %v11861_v9 = vpop.f32.mrb[71].mxu1  ;;  %v5525_v56 = vmax.f32 %v5499_v58, 0.0  ;;  %v5512_v0 = vadd.f32 %v5418_v10, %v13908_v14  ;;  %v16141_v25 = vld [vmem:[#allocation30_spill] sm:$0xff] }
 0x26a   : > { %v14780_v20 = vmax.f32 %v14456_v26, %v5524_v38  ;;  %v5537_v55 = vmax.f32 %v5511_v48, 0.0  ;;  %11621 = vmatmul.mubr.msk.bf16.vlgmr.msra.gmra.mrb[112].mxu0 %vm432_vm2, %v14172_v4  ;;  %v8402_v26 = vrot.slane %v14760_v18, 2  ;;  %v8404_v38 = vrot.slane %v14768_v45, 2  ;;  %v8367_v9 = vld [vmem:[%s12828_s22 + $0x90] sm:$0xcc] }
 0x26b   : > { %v5526_v27 = vmax.f32 %v5500_v16, 0.0  ;;  %v5513_v61 = vadd.f32 %v5487_v63, %v13908_v14  ;;  %11624 = vmatmul.mubr.msk.bf16.vlgmr.msra.gmra.mrb[116].mxu1 %vm432_vm2, %v14172_v4  ;;  %v14788_v59 = vmax.f32 %v14466_v62, %v5525_v56  ;;  %v5538_v58 = vmax.f32 %v5512_v0, 0.0  ;;  %8236 = vmatpush1.bf16.msra.mxu0 %v16140_v44 }
 0x26c   : > { %11905 = vmatpush3.bf16.msra.mxu1 %v16141_v25  ;;  %v14798_v48 = vmax.f32 %v14474_v5, %v5537_v55  ;;  %8267 = vmatprep.mubr.bf16.mxu0 %v15926_v11  ;;  %v8407_v63 = vrot.slane %v14775_v52, 2  ;;  %v8409_v10 = vrot.slane %v14777_v21, 2  ;;  %v8366_v5 = vld [vmem:[%s12828_s22 + $0x88] sm:$0xcc]  ;;  %v8416_v56 = vand.u32 %v8402_v26, %v12826_v31 }
 0x26d   : > { %v14795_v16 = vmax.f32 %v14514_v41, %v5526_v27  ;;  %v5539_v4 = vmax.f32 %v5513_v61, 0.0  ;;  %11906 = vmatprep.mubr.msk.bf16.mxu1 %vm12672_vm3, %v15921_v19  ;;  %v14804_v62 = vmax.f32 %v14482_v51, %v5538_v58  ;;  %8454 = vmatprep.subr.bf16.mxu0 %v8419_v13  ;;  %v8422_v0 = vand.u32 %v8404_v38, %v12826_v31 }
 0x26e   : > { %8497 = vmatprep.subr.bf16.mxu1 %v8425_v50  ;;  %v14815_v27 = vcombine.low %v8364_v24, %v8364_v24  ;;  %v14817_v55 = vcombine.low %v8365_v35, %v8365_v35  ;;  %v8431_v51 = vand.u32 %v8407_v63, %v12826_v31  ;;  %v8437_v13 = vand.u32 %v8409_v10, %v12826_v31 }
 0x26f   : > { %16142 = vst [vmem:[#allocation68_spill] sm:$0xff] %v14795_v16  ;;  %v14809_v41 = vmax.f32 %v14524_v57, %v5539_v4  ;;  %v14821_v50 = vcombine.high %v8366_v5, %v8366_v5  ;;  %v14823_v61 = vcombine.high %v8367_v9, %v8367_v9  ;;  %v14828_v57 = vld [vmem:[%s15725_s1] sm:$0xff]   ;;  %v14842_v38 = vcombine.low %v8366_v5, %v8366_v5 }
 0x270   : > { %16144 = vst [vmem:[#allocation11_spill] sm:$0xff] %v14817_v55  ;;  %v8406_v24 = vrot.slane %v14815_v27, 2  ;;  %v8408_v35 = vrot.slane %v14817_v55, 2  ;;  %v14844_v4 = vcombine.low %v8367_v9, %v8367_v9 }
 0x271   : > { %16143 = vst [vmem:[#allocation34_spill] sm:$0xff] %v14809_v41  ;;  %16145 = vst [vmem:[#allocation29_spill] sm:$0xff] %v14823_v61  ;;  %v8411_v58 = vrot.slane %v14821_v50, 2  ;;  %v8413_v44 = vrot.slane %v14823_v61, 2 }
 0x272   : > { %11623 = vmatmul.mubr.msk.bf16.vlgmr.msra.gmra.mrb[116].mxu0 %vm432_vm2, %v14828_v57  ;;  %v8428_v25 = vand.u32 %v8406_v24, %v12826_v31  ;;  %v8434_v26 = vand.u32 %v8408_v35, %v12826_v31  ;;  %16146 = vst [vmem:[#allocation41_spill] sm:$0xff] %v14842_v38  ;;  %16147 = vst [vmem:[#allocation33_spill] sm:$0xff] %v14844_v4  ;;  %v8412_v5 = vrot.slane %v14844_v4, 2  ;;  %v16150_v35 = vld [vmem:[#allocation90_spill] sm:$0xff] }
 0x273   : > { %11907 = vmatmul.mubr.msk.bf16.vlgmr.msra.gmra.mrb[120].mxu1 %vm432_vm2, %v14828_v57  ;;  %8455 = vmatpush1.bf16.msra.mxu0 %v8416_v56  ;;  %v8443_v63 = vand.u32 %v8411_v58, %v12826_v31  ;;  %v8449_v10 = vand.u32 %v8413_v44, %v12826_v31  ;;  %v8410_v56 = vrot.slane %v14842_v38, 2 }
 0x274   : > { %8498 = vmatpush1.bf16.msra.mxu1 %v8422_v0  ;;  %8486 = vmatprep.mubr.bf16.mxu0 %v15926_v11  ;;  %v8446_v0 = vand.u32 %v8412_v5, %v12826_v31  ;;  %v16154_v5 = vld [vmem:[#allocation5_spill] sm:$0xff] }
 0x275   : > { %8529 = vmatprep.mubr.bf16.mxu1 %v15926_v11  ;;  %8540 = vmatprep.subr.bf16.mxu0 %v8431_v51  ;;  %v8440_v9 = vand.u32 %v8410_v56, %v12826_v31  ;;  %v14859_v51 = vld [vmem:[%s12828_s22 + $0x98] ss:$0 sps:$4 sm:$0xcc]  }
 0x276   : > { %8583 = vmatprep.subr.bf16.mxu1 %v8437_v13  ;;  %16148 = vst [vmem:[#allocation8_spill] sm:$0xff] %v14859_v51  ;;  %v8414_v13 = vrot.slane %v14859_v51, 2  ;;  %v16153_v56 = vld [vmem:[#allocation7_spill] sm:$0xff] }
 0x27a   : > { %11639 = vmatmul.mubr.msk.bf16.vlgmr.msra.gmra.mrb[108].mxu0 %vm432_vm2, %v16106_v54 }
 0x27b   : > { %11640 = vmatmul.mubr.msk.bf16.vlgmr.msra.gmra.mrb[108].mxu1 %vm432_vm2, %v16106_v54  ;;  %8541 = vmatpush1.bf16.msra.mxu0 %v8428_v25  ;;  %v14864_v54 = vld [vmem:[%s15725_s1 + $0x10] sm:$0xff]   ;;  %v8452_v25 = vand.u32 %v8414_v13, %v12826_v31 }
 0x27c   : > { %8584 = vmatpush1.bf16.msra.mxu1 %v8434_v26  ;;  %8572 = vmatprep.mubr.bf16.mxu0 %v15926_v11  ;;  %16149 = vst [vmem:[#allocation14_spill] sm:$0xff] %v14864_v54  ;;  %v16157_v13 = vld [vmem:[#allocation4_spill] sm:$0xff] }
 0x27d   : > { %8615 = vmatprep.mubr.bf16.mxu1 %v15926_v11  ;;  %8626 = vmatprep.subr.bf16.mxu0 %v8443_v63  ;;  %v16151_v63 = vld [vmem:[#allocation36_spill] sm:$0xff] }
 0x27e   : > { %8669 = vmatprep.subr.bf16.mxu1 %v8449_v10  ;;  %v16152_v10 = vld [vmem:[#allocation32_spill] sm:$0xff] }
 0x282   : > { %11641 = vmatmul.mubr.msk.bf16.vlgmr.msra.gmra.mrb[112].mxu0 %vm432_vm2, %v14864_v54 }
 0x283   : > { %11642 = vmatmul.mubr.msk.bf16.vlgmr.msra.gmra.mrb[112].mxu1 %vm432_vm2, %v14864_v54  ;;  %8627 = vmatpush1.bf16.msra.mxu0 %v8440_v9  ;;  %v16155_v9 = vld [vmem:[#allocation31_spill] sm:$0xff] }
 0x284   : > { %8670 = vmatpush1.bf16.msra.mxu1 %v8446_v0  ;;  %8658 = vmatprep.mubr.bf16.mxu0 %v15926_v11  ;;  %v16156_v0 = vld [vmem:[#allocation10_spill] sm:$0xff] }
 0x285   : > { %8701 = vmatprep.mubr.bf16.mxu1 %v15926_v11  ;;  %v5858_v24 = vpop.f32.mrb[84].mxu0  ;;  %11910 = vmatprep.subr.bf16.mxu0 %v15921_v19 }
 0x286   : > { %8857 = vmatprep.subr.bf16.mxu1 %v16150_v35  ;;  %v11866_v58 = vpop.f32.mrb[85].mxu0  ;;  %v16158_v35 = vld [vmem:[#allocation38_spill] sm:$0xff] }
 0x287   : > { %v5861_v44 = vpop.f32.mrb[86].mxu0  ;;  %v16159_v58 = vld [vmem:[#allocation40_spill] sm:$0xff] }
 0x288   : > { %v11867_v26 = vpop.f32.mrb[87].mxu0 }
 0x289   : > { %v16160_v26 = vld [vmem:[#allocation6_spill] sm:$0xff] }
 0x28a   : > { %11643 = vmatmul.mubr.msk.bf16.vlgmr.msra.gmra.mrb[116].mxu0 %vm432_vm2, %v14864_v54 }
 0x28b   : > { %11644 = vmatmul.mubr.msk.bf16.vlgmr.msra.gmra.mrb[116].mxu1 %vm432_vm2, %v14864_v54  ;;  %11911 = vmatpush3.bf16.msra.mxu0 %v8452_v25 }
 0x28c   : > { %8858 = vmatpush1.bf16.msra.mxu1 %v16151_v63  ;;  %11912 = vmatprep.mubr.msk.bf16.mxu0 %vm12672_vm3, %v15921_v19 }
 0x28d   : > { %8889 = vmatprep.mubr.bf16.mxu1 %v15926_v11  ;;  %8900 = vmatprep.subr.bf16.mxu0 %v16152_v10 }
 0x28e   : > { %8943 = vmatprep.subr.bf16.mxu1 %v16153_v56 }
 0x292   : > { %11913 = vmatmul.mubr.msk.bf16.vlgmr.msra.gmra.mrb[124].mxu0 %vm432_vm2, %v14864_v54 }
 0x293   : > { %11646 = vmatmul.mubr.msk.bf16.vlgmr.msra.gmra.mrb[124].mxu1 %vm432_vm2, %v14682_v22  ;;  %8901 = vmatpush1.bf16.msra.mxu0 %v16154_v5 }
 0x294   : > { %8944 = vmatpush1.bf16.msra.mxu1 %v16155_v9  ;;  %8932 = vmatprep.mubr.bf16.mxu0 %v15926_v11 }
 0x295   : > { %8975 = vmatprep.mubr.bf16.mxu1 %v15926_v11  ;;  %8986 = vmatprep.subr.bf16.mxu0 %v16156_v0  ;;  %v9464_v0 = vshrl.u32 %v14663_v1, 16 }
 0x296   : > { %9029 = vmatprep.subr.bf16.mxu1 %v16157_v13  ;;  %v9467_v13 = vshll.u32 %v14663_v1, 16 }
 0x29a   : > { %11647 = vmatmul.mubr.msk.bf16.vlgmr.msra.gmra.mrb[128].mxu0 %vm432_vm2, %v14682_v22 }
 0x29b   : > { %11648 = vmatmul.mubr.msk.bf16.vlgmr.msra.gmra.mrb[128].mxu1 %vm432_vm2, %v14682_v22  ;;  %8987 = vmatpush1.bf16.msra.mxu0 %v16158_v35  ;;  %v9456_v35 = vshrl.u32 %v14760_v18, 16 }
 0x29c   : > { %9030 = vmatpush1.bf16.msra.mxu1 %v16159_v58  ;;  %9018 = vmatprep.mubr.bf16.mxu0 %v15926_v11  ;;  %v9459_v58 = vshll.u32 %v14760_v18, 16  ;;  %v16164_v18 = vld [vmem:[#allocation43_spill] sm:$0xff] }
 0x29d   : > { %9061 = vmatprep.mubr.bf16.mxu1 %v15926_v11  ;;  %9072 = vmatprep.subr.bf16.mxu0 %v16160_v26  ;;  %v16163_v26 = vld [vmem:[#allocation45_spill] sm:$0xff] }
 0x29e   : > { %v6157_v25 = vpop.f32.mrb[84].mxu1  ;;  %11916 = vmatprep.subr.bf16.mxu1 %v15921_v19 }
 0x29f   : > { %v14906_v63 = vadd.f32 %v6157_v25, %v5858_v24  ;;  %v11872_v10 = vpop.f32.mrb[85].mxu1  ;;  %v16161_v24 = vld [vmem:[#allocation35_spill] sm:$0xff]  ;;  %v16162_v25 = vld [vmem:[#allocation37_spill] sm:$0xff] }
 0x2a0   : > { %v6160_v56 = vpop.f32.mrb[86].mxu1  ;;  %v14925_v10 = vrot.slane %v9464_v0, 2 }
 0x2a1   : > { %v14908_v5 = vadd.f32 %v6160_v56, %v5861_v44  ;;  %v11873_v9 = vpop.f32.mrb[87].mxu1  ;;  %v14927_v56 = vrot.slane %v9467_v13, 3 }
 0x2a2   : > { %11649 = vmatmul.mubr.msk.bf16.vlgmr.msra.gmra.mrb[132].mxu0 %vm432_vm2, %v14682_v22  ;;  %v14929_v9 = vrot.slane %v9456_v35, 2  ;;  %v9496_v35 = vshrl.u32 %v14775_v52, 16 }
 0x2a3   : > { %11650 = vmatmul.mubr.msk.bf16.vlgmr.msra.gmra.mrb[132].mxu1 %vm432_vm2, %v14682_v22  ;;  %9073 = vmatpush1.bf16.msra.mxu0 %v16161_v24  ;;  %v14931_v24 = vrot.slane %v9459_v58, 3  ;;  %v9499_v58 = vshll.u32 %v14775_v52, 16 }
 0x2a4   : > { %11917 = vmatpush3.bf16.msra.mxu1 %v16162_v25  ;;  %9104 = vmatprep.mubr.bf16.mxu0 %v15926_v11 }
 0x2a5   : > { %11918 = vmatprep.mubr.msk.bf16.mxu1 %vm12672_vm3, %v15921_v19  ;;  %v6277_v1 = vpop.f32.mrb[72].mxu0  ;;  %9199 = vmatprep.subr.bf16.mxu0 %v16163_v26  ;;  %v9483_v26 = vshll.u32 %v14667_v29, 16 }
 0x2a6   : > { %v6320_v44 = vpop.f32.mrb[72].mxu1  ;;  %9156 = vmatprep.subr.bf16.mxu1 %v16164_v18  ;;  %v6568_v25 = vadd.f32 %v6277_v1, %v13895_v15  ;;  %v6279_v3 = vpop.f32.mrb[73].mxu0 }
 0x2a7   : > { %v6570_v32 = vadd.f32 %v6320_v44, %v13895_v15  ;;  %v6322_v39 = vpop.f32.mrb[73].mxu1  ;;  %v6569_v18 = vadd.f32 %v6279_v3, %v13895_v15  ;;  %v6281_v13 = vpop.f32.mrb[74].mxu0 }
 0x2a8   : > { %v6571_v0 = vadd.f32 %v6322_v39, %v13895_v15  ;;  %v6324_v51 = vpop.f32.mrb[74].mxu1  ;;  %v6594_v4 = vmax.f32 %v6568_v25, 0.0  ;;  %v6581_v44 = vadd.f32 %v6281_v13, %v13908_v14  ;;  %v6283_v41 = vpop.f32.mrb[75].mxu0  ;;  %v16168_v13 = vld [vmem:[#allocation46_spill] sm:$0xff] }
 0x2a9   : > { %v6596_v1 = vmax.f32 %v6570_v32, 0.0  ;;  %v6583_v54 = vadd.f32 %v6324_v51, %v13908_v14  ;;  %v6326_v61 = vpop.f32.mrb[75].mxu1  ;;  %v6595_v16 = vmax.f32 %v6569_v18, 0.0  ;;  %v6582_v3 = vadd.f32 %v6283_v41, %v13908_v14 }
 0x2aa   : > { %v6597_v29 = vmax.f32 %v6571_v0, 0.0  ;;  %v6584_v39 = vadd.f32 %v6326_v61, %v13908_v14  ;;  %v14946_v38 = vmax.f32 %v14629_v7, %v6594_v4  ;;  %v6607_v52 = vmax.f32 %v6581_v44, 0.0  ;;  %11651 = vmatmul.mubr.msk.bf16.vlgmr.msra.gmra.mrb[136].mxu0 %vm432_vm2, %v14682_v22  ;;  %v16165_v4 = vld [vmem:[#allocation47_spill] sm:$0xff] }
 0x2ab   : > { %v14949_v55 = vmax.f32 %v14674_v49, %v6596_v1  ;;  %v6609_v32 = vmax.f32 %v6583_v54, 0.0  ;;  %11919 = vmatmul.mubr.msk.bf16.vlgmr.msra.gmra.mrb[136].mxu1 %vm432_vm2, %v14682_v22  ;;  %v14956_v51 = vmax.f32 %v14636_v17, %v6595_v16  ;;  %v6608_v61 = vmax.f32 %v6582_v3, 0.0  ;;  %9200 = vmatpush1.bf16.msra.mxu0 %v16165_v4  ;;  %v16166_v49 = vld [vmem:[#allocation44_spill] sm:$0xff] }
 0x2ac   : > { %v14959_v41 = vmax.f32 %v14689_v34, %v6597_v29  ;;  %v6610_v7 = vmax.f32 %v6584_v39, 0.0  ;;  %9157 = vmatpush1.bf16.msra.mxu1 %v16166_v49  ;;  %v14964_v54 = vmax.f32 %v14641_v36, %v6607_v52  ;;  %9188 = vmatprep.mubr.bf16.mxu1 %v15926_v11  ;;  %v9470_v17 = vor.u32 %v14927_v56, %v14925_v10  ;;  %v16167_v36 = vld [vmem:[#allocation49_spill] sm:$0xff] }
 0x2ad   : > { %v14967_v25 = vmax.f32 %v14697_v30, %v6609_v32  ;;  %9231 = vmatprep.mubr.bf16.mxu0 %v15926_v11  ;;  %v14974_v34 = vmax.f32 %v14653_v2, %v6608_v61  ;;  %v6363_v18 = vpop.f32.mrb[76].mxu0  ;;  %9285 = vmatprep.subr.bf16.mxu0 %v16167_v36  ;;  %v14985_v2 = vrot.slane %v9480_v28, 2  ;;  %v14987_v29 = vrot.slane %v9483_v26, 3 }
 0x2ae   : > { %v14977_v16 = vmax.f32 %v14705_v40, %v6610_v7  ;;  %v6406_v0 = vpop.f32.mrb[76].mxu1  ;;  %9242 = vmatprep.subr.bf16.mxu1 %v16168_v13  ;;  %v6572_v1 = vadd.f32 %v6363_v18, %v13895_v15  ;;  %v6365_v10 = vpop.f32.mrb[77].mxu0  ;;  %v14991_v32 = vrot.slane %v9496_v35, 2  ;;  %v14993_v61 = vrot.slane %v9499_v58, 3 }
 0x2af   : > { %v6574_v44 = vadd.f32 %v6406_v0, %v13895_v15  ;;  %v6408_v56 = vpop.f32.mrb[77].mxu1  ;;  %v6573_v40 = vadd.f32 %v6365_v10, %v13895_v15  ;;  %v6367_v39 = vpop.f32.mrb[78].mxu0 }
 0x2b0   : > { %v6575_v3 = vadd.f32 %v6408_v56, %v13895_v15  ;;  %v6410_v52 = vpop.f32.mrb[78].mxu1  ;;  %v6598_v7 = vmax.f32 %v6572_v1, 0.0  ;;  %v6585_v49 = vadd.f32 %v6367_v39, %v13908_v14  ;;  %v6369_v28 = vpop.f32.mrb[79].mxu0  ;;  %v16169_v39 = vld [vmem:[#allocation51_spill] sm:$0xff] }
 0x2b1   : > { %v6600_v4 = vmax.f32 %v6574_v44, 0.0  ;;  %v6587_v18 = vadd.f32 %v6410_v52, %v13908_v14  ;;  %v6412_v0 = vpop.f32.mrb[79].mxu1  ;;  %v6599_v26 = vmax.f32 %v6573_v40, 0.0  ;;  %v6586_v13 = vadd.f32 %v6369_v28, %v13908_v14  ;;  %v16172_v28 = vld [vmem:[#allocation53_spill] sm:$0xff] }
 0x2b2   : > { %v6601_v36 = vmax.f32 %v6575_v3, 0.0  ;;  %v6588_v10 = vadd.f32 %v6412_v0, %v13908_v14  ;;  %v15000_v56 = vmax.f32 %v14677_v43, %v6598_v7  ;;  %v6611_v58 = vmax.f32 %v6585_v49, 0.0  ;;  %11654 = vmatmul.mubr.msk.bf16.vlgmr.msra.gmra.mrb[128].mxu0 %vm432_vm2, %v14828_v57 }
 0x2b3   : > { %v15003_v35 = vmax.f32 %v14723_v53, %v6600_v4  ;;  %v6613_v1 = vmax.f32 %v6587_v18, 0.0  ;;  %11653 = vmatmul.mubr.msk.bf16.vlgmr.msra.gmra.mrb[124].mxu1 %vm432_vm2, %v14828_v57  ;;  %v15010_v44 = vmax.f32 %v14692_v12, %v6599_v26  ;;  %v6612_v3 = vmax.f32 %v6586_v13, 0.0  ;;  %9286 = vmatpush1.bf16.msra.mxu0 %v16169_v39  ;;  %v16170_v53 = vld [vmem:[#allocation48_spill] sm:$0xff] }
 0x2b4   : > { %v15013_v40 = vmax.f32 %v14733_v33, %v6601_v36  ;;  %v6614_v43 = vmax.f32 %v6588_v10, 0.0  ;;  %9243 = vmatpush1.bf16.msra.mxu1 %v16170_v53  ;;  %v15018_v52 = vmax.f32 %v14700_v37, %v6611_v58  ;;  %9274 = vmatprep.mubr.bf16.mxu1 %v15926_v11  ;;  %v9563_v12 = vand.u32 %v9470_v17, %v12826_v31  ;;  %v16173_v37 = vld [vmem:[#allocation50_spill] sm:$0xff] }
 0x2b5   : > { %v15021_v7 = vmax.f32 %v14741_v46, %v6613_v1  ;;  %9317 = vmatprep.mubr.bf16.mxu0 %v15926_v11  ;;  %v15027_v33 = vmax.f32 %v14708_v6, %v6612_v3  ;;  %v6449_v49 = vpop.f32.mrb[80].mxu0  ;;  %9371 = vmatprep.subr.bf16.mxu0 %v16172_v28  ;;  %v9472_v46 = vshrl.u32 %v14768_v45, 16  ;;  %v9475_v0 = vshll.u32 %v14768_v45, 16 }
 0x2b6   : > { %v15030_v4 = vmax.f32 %v14749_v42, %v6614_v43  ;;  %v6492_v18 = vpop.f32.mrb[80].mxu1  ;;  %9328 = vmatprep.subr.bf16.mxu1 %v16173_v37  ;;  %v6576_v26 = vadd.f32 %v6449_v49, %v13895_v15  ;;  %v6451_v36 = vpop.f32.mrb[81].mxu0  ;;  %v9488_v13 = vshrl.u32 %v14815_v27, 16  ;;  %v9491_v42 = vshll.u32 %v14815_v27, 16 }
 0x2b7   : > { %v6578_v17 = vadd.f32 %v6492_v18, %v13895_v15  ;;  %v6494_v6 = vpop.f32.mrb[81].mxu1  ;;  %v6577_v10 = vadd.f32 %v6451_v36, %v13895_v15  ;;  %v6453_v1 = vpop.f32.mrb[82].mxu0  ;;  %v9486_v43 = vor.u32 %v14987_v29, %v14985_v2  ;;  %v9502_v45 = vor.u32 %v14993_v61, %v14991_v32 }
 0x2b8   : > { %16171 = vst [vmem:[#allocation15_spill] sm:$0xff] %v15030_v4  ;;  %v6579_v58 = vadd.f32 %v6494_v6, %v13895_v15  ;;  %v6496_v3 = vpop.f32.mrb[82].mxu1  ;;  %v6602_v39 = vmax.f32 %v6576_v26, 0.0  ;;  %v6589_v49 = vadd.f32 %v6453_v1, %v13908_v14  ;;  %v6455_v28 = vpop.f32.mrb[83].mxu0 }
 0x2b9   : > { %v6604_v53 = vmax.f32 %v6578_v17, 0.0  ;;  %v6591_v18 = vadd.f32 %v6496_v3, %v13908_v14  ;;  %v6498_v27 = vpop.f32.mrb[83].mxu1  ;;  %v6603_v37 = vmax.f32 %v6577_v10, 0.0  ;;  %v6590_v6 = vadd.f32 %v6455_v28, %v13908_v14  ;;  %v16174_v10 = vld [vmem:[#allocation54_spill] sm:$0xff] }
 0x2ba   : > { %v6605_v36 = vmax.f32 %v6579_v58, 0.0  ;;  %v6592_v30 = vadd.f32 %v6498_v27, %v13908_v14  ;;  %v15051_v4 = vmax.f32 %v14726_v47, %v6602_v39  ;;  %v6615_v29 = vmax.f32 %v6589_v49, 0.0  ;;  %11656 = vmatmul.mubr.msk.bf16.vlgmr.msra.gmra.mrb[132].mxu0 %vm432_vm2, %v14828_v57 }
 0x2bb   : > { %v15054_v2 = vmax.f32 %v14780_v20, %v6604_v53  ;;  %v6617_v32 = vmax.f32 %v6591_v18, 0.0  ;;  %11655 = vmatmul.mubr.msk.bf16.vlgmr.msra.gmra.mrb[128].mxu1 %vm432_vm2, %v14828_v57  ;;  %v15061_v61 = vmax.f32 %v14736_v8, %v6603_v37  ;;  %v6616_v17 = vmax.f32 %v6590_v6, 0.0  ;;  %9372 = vmatpush1.bf16.msra.mxu0 %v16174_v10  ;;  %v16175_v20 = vld [vmem:[#allocation52_spill] sm:$0xff] }
 0x2bc   : > { %v15064_v26 = vmax.f32 %v14788_v59, %v6605_v36  ;;  %v6618_v47 = vmax.f32 %v6592_v30, 0.0  ;;  %9329 = vmatpush1.bf16.msra.mxu1 %v16175_v20  ;;  %v15069_v58 = vmax.f32 %v14744_v23, %v6615_v29  ;;  %9360 = vmatprep.mubr.bf16.mxu1 %v15926_v11  ;;  %v9512_v8 = vshrl.u32 %v14777_v21, 16  ;;  %v16177_v29 = vld [vmem:[#allocation11_spill] sm:$0xff] }
 0x2bd   : > { %v15072_v1 = vmax.f32 %v14798_v48, %v6617_v32  ;;  %9403 = vmatprep.mubr.bf16.mxu0 %v15926_v11  ;;  %v9515_v59 = vshll.u32 %v14777_v21, 16  ;;  %v15079_v30 = vmax.f32 %v14752_v60, %v6616_v17  ;;  %v6535_v39 = vpop.f32.mrb[88].mxu0  ;;  %11922 = vmatprep.subr.bf16.mxu0 %v15921_v19  ;;  %v9528_v23 = vshrl.u32 %v14821_v50, 16 }
 0x2be   : > { %v15082_v3 = vmax.f32 %v14804_v62, %v6618_v47  ;;  %9598 = vmatprep.subr.bf16.mxu1 %v9563_v12  ;;  %v9531_v48 = vshll.u32 %v14821_v50, 16  ;;  %v6554_v53 = vadd.f32 %v6535_v39, %v14906_v63  ;;  %v11878_v49 = vpop.f32.mrb[89].mxu0  ;;  %v16176_v21 = vor.u32 %v14931_v24, %v14929_v9 }
 0x2bf   : > { %v9474_v18 = vrot.slane %v9472_v46, 2  ;;  %v9477_v28 = vrot.slane %v9475_v0, 3  ;;  %v6538_v62 = vpop.f32.mrb[90].mxu0  ;;  %v9569_v27 = vand.u32 %v9486_v43, %v12826_v31  ;;  %v9575_v37 = vand.u32 %v9502_v45, %v12826_v31  ;;  %v16179_v45 = vld [vmem:[#allocation55_spill] sm:$0xff]  ;;  %v16181_v49 = vld [vmem:[#allocation29_spill] sm:$0xff] }
 0x2c0   : > { %v9560_v60 = vand.u32 %v16176_v21, %v12826_v31  ;;  %v9490_v12 = vrot.slane %v9488_v13, 2  ;;  %v9493_v36 = vrot.slane %v9491_v42, 3  ;;  %v6580_v6 = vadd.f32 %v6554_v53, %v13895_v15  ;;  %v11879_v63 = vpop.f32.mrb[91].mxu0  ;;  %v16178_v13 = vld [vmem:[#allocation41_spill] sm:$0xff] }
 0x2c1   : > { %v6567_v50 = vadd.f32 %v6538_v62, %v14908_v5  ;;  %v9504_v32 = vshrl.u32 %v16177_v29, 16  ;;  %v9507_v17 = vshll.u32 %v16177_v29, 16  ;;  %v9514_v9 = vrot.slane %v9512_v8, 2  ;;  %v16180_v8 = vld [vmem:[#allocation68_spill] sm:$0xff] }
 0x2c2   : > { %v9517_v24 = vrot.slane %v9515_v59, 3  ;;  %v9530_v46 = vrot.slane %v9528_v23, 2  ;;  %v9533_v0 = vrot.slane %v9531_v48, 3  ;;  %v6606_v47 = vmax.f32 %v6580_v6, 0.0  ;;  %11658 = vmatmul.mubr.msk.bf16.vlgmr.msra.gmra.mrb[136].mxu0 %vm432_vm2, %v14828_v57 }
 0x2c3   : > { %v6593_v43 = vadd.f32 %v6567_v50, %v13908_v14  ;;  %11657 = vmatmul.mubr.msk.bf16.vlgmr.msra.gmra.mrb[132].mxu1 %vm432_vm2, %v14828_v57  ;;  %v9520_v5 = vshrl.u32 %v16178_v13, 16  ;;  %v9523_v42 = vshll.u32 %v16178_v13, 16  ;;  %11923 = vmatpush3.bf16.msra.mxu0 %v16179_v45  ;;  %v9478_v10 = vor.u32 %v9477_v28, %v9474_v18  ;;  %v16182_v18 = vld [vmem:[#allocation34_spill] sm:$0xff] }
 0x2c4   : > { %9599 = vmatpush1.bf16.msra.mxu1 %v9560_v60  ;;  %v9494_v20 = vor.u32 %v9493_v36, %v9490_v12  ;;  %v15107_v59 = vmax.f32 %v16180_v8, %v6606_v47  ;;  %11924 = vmatprep.mubr.msk.bf16.mxu0 %vm12672_vm3, %v15921_v19  ;;  %v9506_v23 = vrot.slane %v9504_v32, 2  ;;  %v9518_v48 = vor.u32 %v9517_v24, %v9514_v9  ;;  %v16183_v32 = vld [vmem:[#allocation14_spill] sm:$0xff]  ;;  %v16184_v24 = vld [vmem:[#allocation33_spill] sm:$0xff]  ;;  %v16185_v47 = vld [vmem:[#allocation8_spill] sm:$0xff] }
 0x2c5   : > { %v6619_v39 = vmax.f32 %v6593_v43, 0.0  ;;  %9630 = vmatprep.mubr.bf16.mxu1 %v15926_v11  ;;  %9641 = vmatprep.subr.bf16.mxu0 %v9569_v27  ;;  %v9534_v53 = vor.u32 %v9533_v0, %v9530_v46  ;;  %v9544_v21 = vshrl.u32 %v16181_v49, 16  ;;  %v9547_v60 = vshll.u32 %v16181_v49, 16 }
 0x2c6   : > { %9684 = vmatprep.subr.bf16.mxu1 %v9575_v37  ;;  %v9509_v62 = vrot.slane %v9507_v17, 3  ;;  %v9522_v12 = vrot.slane %v9520_v5, 2  ;;  %v9525_v36 = vrot.slane %v9523_v42, 3  ;;  %v9566_v6 = vand.u32 %v9478_v10, %v12826_v31 }
 0x2c7   : > { %v15115_v28 = vmax.f32 %v16182_v18, %v6619_v39  ;;  %v9572_v50 = vand.u32 %v9494_v20, %v12826_v31  ;;  %v9581_v63 = vand.u32 %v9518_v48, %v12826_v31  ;;  %v9587_v27 = vand.u32 %v9534_v53, %v12826_v31 }
 0x2c8   : > { %v9546_v37 = vrot.slane %v9544_v21, 2  ;;  %v9549_v29 = vrot.slane %v9547_v60, 3  ;;  %v9510_v9 = vor.u32 %v9509_v62, %v9506_v23  ;;  %v9526_v17 = vor.u32 %v9525_v36, %v9522_v12  ;;  %v16186_v36 = vld [vmem:[#allocation42_spill] sm:$0xff] }
 0x2c9   : > { %v9536_v46 = vshrl.u32 %v16184_v24, 16  ;;  %v9539_v0 = vshll.u32 %v16184_v24, 16  ;;  %v9552_v43 = vshrl.u32 %v16185_v47, 16  ;;  %v9555_v13 = vshll.u32 %v16185_v47, 16  ;;  %v16195_v24 = vld [vmem:[#allocation64_spill] sm:$0xff] }
 0x2ca   : > { %11925 = vmatmul.mubr.msk.bf16.vlgmr.msra.gmra.mrb[140].mxu0 %vm432_vm2, %v14828_v57  ;;  %v9550_v5 = vor.u32 %v9549_v29, %v9546_v37  ;;  %v9578_v42 = vand.u32 %v9510_v9, %v12826_v31  ;;  %v9584_v45 = vand.u32 %v9526_v17, %v12826_v31  ;;  %v16191_v37 = vld [vmem:[#allocation60_spill] sm:$0xff]  ;;  %v16192_v29 = vld [vmem:[#allocation61_spill] sm:$0xff]  ;;  %v16193_v9 = vld [vmem:[#allocation62_spill] sm:$0xff] }
 0x2cb   : > { %11660 = vmatmul.mubr.msk.bf16.vlgmr.msra.gmra.mrb[124].mxu1 %vm432_vm2, %v16183_v32  ;;  %9642 = vmatpush1.bf16.msra.mxu0 %v9566_v6  ;;  %v9538_v10 = vrot.slane %v9536_v46, 2  ;;  %v9541_v20 = vrot.slane %v9539_v0, 3  ;;  %v9554_v8 = vrot.slane %v9552_v43, 2  ;;  %v9557_v39 = vrot.slane %v9555_v13, 3  ;;  %v16187_v6 = vld [vmem:[#allocation56_spill] sm:$0xff]  ;;  %v16194_v17 = vld [vmem:[#allocation63_spill] sm:$0xff] }
 0x2cc   : > { %9685 = vmatpush1.bf16.msra.mxu1 %v9572_v50  ;;  %9673 = vmatprep.mubr.bf16.mxu0 %v15926_v11  ;;  %v9593_v23 = vand.u32 %v9550_v5, %v12826_v31  ;;  %v16188_v50 = vld [vmem:[#allocation57_spill] sm:$0xff]  ;;  %v16197_v0 = vld [vmem:[#allocation67_spill] sm:$0xff]  ;;  %v16198_v13 = vld [vmem:[#allocation70_spill] sm:$0xff] }
 0x2cd   : > { %9716 = vmatprep.mubr.bf16.mxu1 %v15926_v11  ;;  %9727 = vmatprep.subr.bf16.mxu0 %v9581_v63  ;;  %v9542_v48 = vor.u32 %v9541_v20, %v9538_v10  ;;  %v9558_v53 = vor.u32 %v9557_v39, %v9554_v8  ;;  %v16189_v63 = vld [vmem:[#allocation58_spill] sm:$0xff]  ;;  %v16196_v46 = vld [vmem:[#allocation65_spill] sm:$0xff] }
 0x2ce   : > { %9770 = vmatprep.subr.bf16.mxu1 %v9587_v27  ;;  %v16190_v27 = vld [vmem:[#allocation59_spill] sm:$0xff] }
 0x2cf   : > { %v9590_v60 = vand.u32 %v9542_v48, %v12826_v31  ;;  %v9596_v62 = vand.u32 %v9558_v53, %v12826_v31 }
 0x2d2   : > { %11661 = vmatmul.mubr.msk.bf16.vlgmr.msra.gmra.mrb[128].mxu0 %vm432_vm2, %v16183_v32 }
 0x2d3   : > { %11662 = vmatmul.mubr.msk.bf16.vlgmr.msra.gmra.mrb[128].mxu1 %vm432_vm2, %v16183_v32  ;;  %9728 = vmatpush1.bf16.msra.mxu0 %v9578_v42 }
 0x2d4   : > { %9771 = vmatpush1.bf16.msra.mxu1 %v9584_v45  ;;  %9759 = vmatprep.mubr.bf16.mxu0 %v15926_v11 }
 0x2d5   : > { %9802 = vmatprep.mubr.bf16.mxu1 %v15926_v11  ;;  %9813 = vmatprep.subr.bf16.mxu0 %v9593_v23 }
 0x2d6   : > { %v6938_v49 = vpop.f32.mrb[100].mxu1  ;;  %11928 = vmatprep.subr.bf16.mxu1 %v15921_v19 }
 0x2d7   : > { %v11884_v21 = vpop.f32.mrb[101].mxu1 }
 0x2d8   : > { %v6941_v18 = vpop.f32.mrb[102].mxu1 }
 0x2d9   : > { %v11885_v12 = vpop.f32.mrb[103].mxu1 }
 0x2da   : > { %11663 = vmatmul.mubr.msk.bf16.vlgmr.msra.gmra.mrb[132].mxu0 %vm432_vm2, %v16183_v32 }
 0x2db   : > { %11664 = vmatmul.mubr.msk.bf16.vlgmr.msra.gmra.mrb[132].mxu1 %vm432_vm2, %v16183_v32  ;;  %9814 = vmatpush1.bf16.msra.mxu0 %v9590_v60 }
 0x2dc   : > { %11929 = vmatpush3.bf16.msra.mxu1 %v9596_v62  ;;  %9845 = vmatprep.mubr.bf16.mxu0 %v15926_v11 }
 0x2dd   : > { %11930 = vmatprep.mubr.msk.bf16.mxu1 %vm12672_vm3, %v15921_v19  ;;  %10001 = vmatprep.subr.bf16.mxu0 %v16186_v36 }
 0x2de   : > { %10044 = vmatprep.subr.bf16.mxu1 %v16187_v6 }
 0x2e2   : > { %11665 = vmatmul.mubr.msk.bf16.vlgmr.msra.gmra.mrb[136].mxu0 %vm432_vm2, %v16183_v32 }
 0x2e3   : > { %11931 = vmatmul.mubr.msk.bf16.vlgmr.msra.gmra.mrb[140].mxu1 %vm432_vm2, %v16183_v32  ;;  %10002 = vmatpush1.bf16.msra.mxu0 %v16188_v50  ;;  %v16199_v50 = vld [vmem:[#allocation66_spill] sm:$0xff] }
 0x2e4   : > { %10045 = vmatpush1.bf16.msra.mxu1 %v16189_v63  ;;  %10033 = vmatprep.mubr.bf16.mxu0 %v15926_v11  ;;  %v16200_v63 = vld [vmem:[#allocation72_spill] sm:$0xff] }
 0x2e5   : > { %10076 = vmatprep.mubr.bf16.mxu1 %v15926_v11  ;;  %10087 = vmatprep.subr.bf16.mxu0 %v16190_v27 }
 0x2e6   : > { %10130 = vmatprep.subr.bf16.mxu1 %v16191_v37 }
 0x2ea   : > { %11667 = vmatmul.mubr.msk.bf16.vlgmr.msra.gmra.mrb[144].mxu0 %vm432_vm2, %v14682_v22 }
 0x2eb   : > { %11668 = vmatmul.mubr.msk.bf16.vlgmr.msra.gmra.mrb[144].mxu1 %vm432_vm2, %v14682_v22  ;;  %10088 = vmatpush1.bf16.msra.mxu0 %v16192_v29  ;;  %v16202_v29 = vld [vmem:[#allocation74_spill] sm:$0xff] }
 0x2ec   : > { %10131 = vmatpush1.bf16.msra.mxu1 %v16193_v9  ;;  %10119 = vmatprep.mubr.bf16.mxu0 %v15926_v11 }
 0x2ed   : > { %10162 = vmatprep.mubr.bf16.mxu1 %v15926_v11  ;;  %10173 = vmatprep.subr.bf16.mxu0 %v16194_v17 }
 0x2ee   : > { %10216 = vmatprep.subr.bf16.mxu1 %v16195_v24 }
 0x2f2   : > { %11669 = vmatmul.mubr.msk.bf16.vlgmr.msra.gmra.mrb[148].mxu0 %vm432_vm2, %v14682_v22 }
 0x2f3   : > { %11670 = vmatmul.mubr.msk.bf16.vlgmr.msra.gmra.mrb[148].mxu1 %vm432_vm2, %v14682_v22  ;;  %10174 = vmatpush1.bf16.msra.mxu0 %v16196_v46 }
 0x2f4   : > { %10217 = vmatpush1.bf16.msra.mxu1 %v16197_v0  ;;  %10205 = vmatprep.mubr.bf16.mxu0 %v15926_v11 }
 0x2f5   : > { %10248 = vmatprep.mubr.bf16.mxu1 %v15926_v11  ;;  %v7237_v47 = vpop.f32.mrb[104].mxu0  ;;  %11934 = vmatprep.subr.bf16.mxu0 %v15921_v19 }
 0x2f6   : > { %v7395_v43 = vpop.f32.mrb[88].mxu1  ;;  %10343 = vmatprep.subr.bf16.mxu1 %v16198_v13  ;;  %v15182_v5 = vadd.f32 %v7237_v47, %v6938_v49  ;;  %v11890_v45 = vpop.f32.mrb[105].mxu0 }
 0x2f7   : > { %v7686_v42 = vadd.f32 %v7395_v43, %v13895_v15  ;;  %v7397_v10 = vpop.f32.mrb[89].mxu1  ;;  %v7240_v8 = vpop.f32.mrb[106].mxu0 }
 0x2f8   : > { %v7687_v20 = vadd.f32 %v7397_v10, %v13895_v15  ;;  %v7399_v39 = vpop.f32.mrb[90].mxu1  ;;  %v15186_v48 = vadd.f32 %v7240_v8, %v6941_v18  ;;  %v11891_v21 = vpop.f32.mrb[107].mxu0 }
 0x2f9   : > { %v7712_v23 = vmax.f32 %v7686_v42, 0.0  ;;  %v7699_v53 = vadd.f32 %v7399_v39, %v13908_v14  ;;  %v7401_v60 = vpop.f32.mrb[91].mxu1 }
 0x2fa   : > { %v7713_v62 = vmax.f32 %v7687_v20, 0.0  ;;  %v7700_v12 = vadd.f32 %v7401_v60, %v13908_v14  ;;  %11671 = vmatmul.mubr.msk.bf16.vlgmr.msra.gmra.mrb[152].mxu0 %vm432_vm2, %v14682_v22 }
 0x2fb   : > { %v15191_v49 = vmax.f32 %v14946_v38, %v7712_v23  ;;  %v7725_v36 = vmax.f32 %v7699_v53, 0.0  ;;  %11672 = vmatmul.mubr.msk.bf16.vlgmr.msra.gmra.mrb[152].mxu1 %vm432_vm2, %v14682_v22  ;;  %11935 = vmatpush3.bf16.msra.mxu0 %v16199_v50 }
 0x2fc   : > { %v15198_v18 = vmax.f32 %v14956_v51, %v7713_v62  ;;  %v7726_v6 = vmax.f32 %v7700_v12, 0.0  ;;  %10344 = vmatpush1.bf16.msra.mxu1 %v16200_v63  ;;  %11936 = vmatprep.mubr.msk.bf16.mxu0 %vm12672_vm3, %v15921_v19  ;;  %v16201_v51 = vld [vmem:[#allocation69_spill] sm:$0xff]  ;;  %v16203_v63 = vld [vmem:[#allocation71_spill] sm:$0xff] }
 0x2fd   : > { %v15203_v27 = vmax.f32 %v14964_v54, %v7725_v36  ;;  %10375 = vmatprep.mubr.bf16.mxu1 %v15926_v11  ;;  %v7438_v22 = vpop.f32.mrb[92].mxu0  ;;  %10300 = vmatprep.subr.bf16.mxu0 %v16201_v51  ;;  %v12610_v36 = vld [vmem:[%s15725_s1 + $0x8] sm:$0xff]  }
 0x2fe   : > { %v15209_v38 = vmax.f32 %v14974_v34, %v7726_v6  ;;  %v7481_v37 = vpop.f32.mrb[92].mxu1  ;;  %10429 = vmatprep.subr.bf16.mxu1 %v16202_v29  ;;  %v7688_v9 = vadd.f32 %v7438_v22, %v13895_v15  ;;  %v7440_v54 = vpop.f32.mrb[93].mxu0  ;;  %v16204_v22 = vld [vmem:[#allocation76_spill] sm:$0xff] }
 0x2ff   : > { %v7690_v17 = vadd.f32 %v7481_v37, %v13895_v15  ;;  %v7483_v24 = vpop.f32.mrb[93].mxu1  ;;  %v7689_v46 = vadd.f32 %v7440_v54, %v13895_v15  ;;  %v7442_v47 = vpop.f32.mrb[94].mxu0 }
 0x300   : > { %v7691_v0 = vadd.f32 %v7483_v24, %v13895_v15  ;;  %v7485_v43 = vpop.f32.mrb[94].mxu1  ;;  %v7714_v34 = vmax.f32 %v7688_v9, 0.0  ;;  %v7701_v42 = vadd.f32 %v7442_v47, %v13908_v14  ;;  %v7444_v10 = vpop.f32.mrb[95].mxu0 }
 0x301   : > { %v7716_v13 = vmax.f32 %v7690_v17, 0.0  ;;  %v7703_v45 = vadd.f32 %v7485_v43, %v13908_v14  ;;  %v7487_v20 = vpop.f32.mrb[95].mxu1  ;;  %v7715_v8 = vmax.f32 %v7689_v46, 0.0  ;;  %v7702_v23 = vadd.f32 %v7444_v10, %v13908_v14  ;;  %v16205_v17 = vld [vmem:[#allocation73_spill] sm:$0xff] }
 0x302   : > { %v7717_v39 = vmax.f32 %v7691_v0, 0.0  ;;  %v7704_v53 = vadd.f32 %v7487_v20, %v13908_v14  ;;  %v15222_v21 = vmax.f32 %v14949_v55, %v7714_v34  ;;  %v7727_v62 = vmax.f32 %v7701_v42, 0.0  ;;  %11937 = vmatmul.mubr.msk.bf16.vlgmr.msra.gmra.mrb[156].mxu0 %vm432_vm2, %v12610_v36  ;;  %v12584_v43 = vld [vmem:[%s12828_s22 + $0x6c] ss:$52 sps:$4 sm:$0x18]  }
 0x303   : > { %v15225_v60 = vmax.f32 %v15000_v56, %v7716_v13  ;;  %v7729_v12 = vmax.f32 %v7703_v45, 0.0  ;;  %11675 = vmatmul.mubr.msk.bf16.vlgmr.msra.gmra.mrb[144].mxu1 %vm432_vm2, %v14828_v57  ;;  %v15234_v6 = vmax.f32 %v14959_v41, %v7715_v8  ;;  %v7728_v50 = vmax.f32 %v7702_v23, 0.0  ;;  %10301 = vmatpush1.bf16.msra.mxu0 %v16203_v63 }
 0x304   : > { %v15237_v55 = vmax.f32 %v15010_v44, %v7717_v39  ;;  %v7730_v56 = vmax.f32 %v7704_v53, 0.0  ;;  %10430 = vmatpush1.bf16.msra.mxu1 %v16204_v22  ;;  %v15242_v37 = vmax.f32 %v14967_v25, %v7727_v62  ;;  %10332 = vmatprep.mubr.bf16.mxu0 %v15926_v11  ;;  %v16206_v25 = vld [vmem:[#allocation78_spill] sm:$0xff] }
 0x305   : > { %v15245_v51 = vmax.f32 %v15018_v52, %v7729_v12  ;;  %10461 = vmatprep.mubr.bf16.mxu1 %v15926_v11  ;;  %v15250_v41 = vmax.f32 %v14977_v16, %v7728_v50  ;;  %v7524_v29 = vpop.f32.mrb[96].mxu0  ;;  %10386 = vmatprep.subr.bf16.mxu0 %v16205_v17  ;;  %v12587_v62 = vld [vmem:[%s12828_s22 + $0x74] ss:$52 sps:$4 sm:$0x18]  }
 0x306   : > { %v15253_v44 = vmax.f32 %v15027_v33, %v7730_v56  ;;  %v7567_v9 = vpop.f32.mrb[96].mxu1  ;;  %10515 = vmatprep.subr.bf16.mxu1 %v16206_v25  ;;  %v7692_v52 = vadd.f32 %v7524_v29, %v13895_v15  ;;  %v7526_v24 = vpop.f32.mrb[97].mxu0 }
 0x307   : > { %v7694_v54 = vadd.f32 %v7567_v9, %v13895_v15  ;;  %v7569_v46 = vpop.f32.mrb[97].mxu1  ;;  %v7693_v0 = vadd.f32 %v7526_v24, %v13895_v15  ;;  %v7528_v47 = vpop.f32.mrb[98].mxu0  ;;  %v16207_v9 = vld [vmem:[#allocation75_spill] sm:$0xff] }
 0x308   : > { %v7695_v16 = vadd.f32 %v7569_v46, %v13895_v15  ;;  %v7571_v33 = vpop.f32.mrb[98].mxu1  ;;  %v7718_v34 = vmax.f32 %v7692_v52, 0.0  ;;  %v7705_v42 = vadd.f32 %v7528_v47, %v13908_v14  ;;  %v7530_v10 = vpop.f32.mrb[99].mxu0  ;;  %v16210_v46 = vld [vmem:[#allocation77_spill] sm:$0xff] }
 0x309   : > { %v7720_v13 = vmax.f32 %v7694_v54, 0.0  ;;  %v7707_v45 = vadd.f32 %v7571_v33, %v13908_v14  ;;  %v7573_v20 = vpop.f32.mrb[99].mxu1  ;;  %v7719_v8 = vmax.f32 %v7693_v0, 0.0  ;;  %v7706_v23 = vadd.f32 %v7530_v10, %v13908_v14 }
 0x30a   : > { %v7721_v39 = vmax.f32 %v7695_v16, 0.0  ;;  %v7708_v53 = vadd.f32 %v7573_v20, %v13908_v14  ;;  %v15268_v12 = vmax.f32 %v15003_v35, %v7718_v34  ;;  %v7731_v50 = vmax.f32 %v7705_v42, 0.0  ;;  %11674 = vmatmul.mubr.msk.bf16.vlgmr.msra.gmra.mrb[144].mxu0 %vm432_vm2, %v14828_v57  ;;  %v12582_v34 = vld [vmem:[%s12828_s22 + $0x68] ss:$52 sps:$4 sm:$0x18]  }
 0x30b   : > { %v15271_v36 = vmax.f32 %v15051_v4, %v7720_v13  ;;  %v7733_v56 = vmax.f32 %v7707_v45, 0.0  ;;  %11677 = vmatmul.mubr.msk.bf16.vlgmr.msra.gmra.mrb[148].mxu1 %vm432_vm2, %v14828_v57  ;;  %v15278_v63 = vmax.f32 %v15013_v40, %v7719_v8  ;;  %v7732_v29 = vmax.f32 %v7706_v23, 0.0  ;;  %10387 = vmatpush1.bf16.msra.mxu0 %v16207_v9  ;;  %v16208_v4 = vld [vmem:[#allocation80_spill] sm:$0xff]  ;;  %v16209_v40 = vld [vmem:[#allocation15_spill] sm:$0xff] }
 0x30c   : > { %v15281_v22 = vmax.f32 %v15061_v61, %v7721_v39  ;;  %v7734_v35 = vmax.f32 %v7708_v53, 0.0  ;;  %10516 = vmatpush1.bf16.msra.mxu1 %v16208_v4  ;;  %v15286_v17 = vmax.f32 %v15021_v7, %v7731_v50  ;;  %10418 = vmatprep.mubr.bf16.mxu0 %v15926_v11  ;;  %v10667_v7 = vrot.slane %v12584_v43, 3  ;;  %v12585_v45 = vld [vmem:[%s12828_s22 + $0x70] ss:$52 sps:$4 sm:$0x18]  }
 0x30d   : > { %v15289_v25 = vmax.f32 %v15069_v58, %v7733_v56  ;;  %10547 = vmatprep.mubr.bf16.mxu1 %v15926_v11  ;;  %v15294_v61 = vmax.f32 %v16209_v40, %v7732_v29  ;;  %v7610_v54 = vpop.f32.mrb[100].mxu0  ;;  %10472 = vmatprep.subr.bf16.mxu0 %v16210_v46  ;;  %v10669_v58 = vrot.slane %v12587_v62, 3  ;;  %v12590_v53 = vld [vmem:[%s12828_s22 + $0x7c] ss:$52 sps:$4 sm:$0x18]  }
 0x30e   : > { %v15297_v52 = vmax.f32 %v15079_v30, %v7734_v35  ;;  %v7653_v24 = vpop.f32.mrb[104].mxu1  ;;  %11940 = vmatprep.subr.bf16.mxu1 %v15921_v19  ;;  %v7696_v0 = vadd.f32 %v7610_v54, %v13895_v15  ;;  %v7612_v47 = vpop.f32.mrb[101].mxu0  ;;  %v10683_v50 = vand.u32 %v10667_v7, %v12826_v31  ;;  %v12593_v29 = vld [vmem:[%s12828_s22 + $0x84] ss:$52 sps:$4 sm:$0x18]   ;;  %v10668_v7 = vrot.slane %v12585_v45, 3 }
 0x30f   : > { %v7672_v16 = vadd.f32 %v7653_v24, %v15182_v5  ;;  %v11896_v33 = vpop.f32.mrb[105].mxu1  ;;  %v7697_v30 = vadd.f32 %v7612_v47, %v13895_v15  ;;  %v7614_v13 = vpop.f32.mrb[102].mxu0  ;;  %v10689_v56 = vand.u32 %v10669_v58, %v12826_v31  ;;  %v16211_v24 = vld [vmem:[#allocation79_spill] sm:$0xff]  ;;  %v16212_v46 = vld [vmem:[#allocation81_spill] sm:$0xff]  ;;  %v10673_v47 = vrot.slane %v12593_v29, 3 }
 0x310   : > { %v7656_v42 = vpop.f32.mrb[106].mxu1  ;;  %v7722_v10 = vmax.f32 %v7696_v0, 0.0  ;;  %v7709_v43 = vadd.f32 %v7614_v13, %v13908_v14  ;;  %v7616_v39 = vpop.f32.mrb[103].mxu0  ;;  %v10686_v33 = vand.u32 %v10668_v7, %v12826_v31  ;;  %v12596_v45 = vld [vmem:[%s12828_s22 + $0x8c] ss:$52 sps:$4 sm:$0x18]  }
 0x311   : > { %v7698_v20 = vadd.f32 %v7672_v16, %v13895_v15  ;;  %v7685_v8 = vadd.f32 %v7656_v42, %v15186_v48  ;;  %v11897_v23 = vpop.f32.mrb[107].mxu1  ;;  %v7723_v5 = vmax.f32 %v7697_v30, 0.0  ;;  %v7710_v62 = vadd.f32 %v7616_v39, %v13908_v14  ;;  %v12591_v30 = vld [vmem:[%s12828_s22 + $0x80] ss:$52 sps:$4 sm:$0x18]  }
 0x312   : > { %v15315_v35 = vmax.f32 %v15054_v2, %v7722_v10  ;;  %v7735_v4 = vmax.f32 %v7709_v43, 0.0  ;;  %11676 = vmatmul.mubr.msk.bf16.vlgmr.msra.gmra.mrb[148].mxu0 %vm432_vm2, %v14828_v57  ;;  %v10666_v2 = vrot.slane %v12582_v34, 3  ;;  %v10671_v16 = vrot.slane %v12590_v53, 3  ;;  %v12588_v34 = vld [vmem:[%s12828_s22 + $0x78] ss:$52 sps:$4 sm:$0x18]  }
 0x313   : > { %v7724_v9 = vmax.f32 %v7698_v20, 0.0  ;;  %v7711_v40 = vadd.f32 %v7685_v8, %v13908_v14  ;;  %11679 = vmatmul.mubr.msk.bf16.vlgmr.msra.gmra.mrb[152].mxu1 %vm432_vm2, %v14828_v57  ;;  %v15323_v48 = vmax.f32 %v15064_v26, %v7723_v5  ;;  %v7736_v54 = vmax.f32 %v7710_v62, 0.0  ;;  %10473 = vmatpush1.bf16.msra.mxu0 %v16211_v24  ;;  %v12611_v10 = vld [vmem:[%s15725_s1] sm:$0xff]   ;;  %v12594_v53 = vld [vmem:[%s12828_s22 + $0x88] ss:$52 sps:$4 sm:$0x18]  }
 0x314   : > { %11941 = vmatpush3.bf16.msra.mxu1 %v16212_v46  ;;  %v15331_v0 = vmax.f32 %v15072_v1, %v7735_v4  ;;  %10504 = vmatprep.mubr.bf16.mxu0 %v15926_v11  ;;  %v10680_v1 = vand.u32 %v10666_v2, %v12826_v31  ;;  %v10695_v13 = vand.u32 %v10671_v16, %v12826_v31  ;;  %v10672_v20 = vrot.slane %v12591_v30, 3  ;;  %v12597_v5 = vld [vmem:[%s12828_s22 + $0x90] ss:$52 sps:$4 sm:$0x18]  }
 0x315   : > { %v15328_v58 = vmax.f32 %v15107_v59, %v7724_v9  ;;  %v7737_v57 = vmax.f32 %v7711_v40, 0.0  ;;  %11942 = vmatprep.mubr.msk.bf16.mxu1 %vm12672_vm3, %v15921_v19  ;;  %v15337_v26 = vmax.f32 %v15082_v3, %v7736_v54  ;;  %10718 = vmatprep.subr.bf16.mxu0 %v10683_v50  ;;  %v10701_v42 = vand.u32 %v10673_v47, %v12826_v31  ;;  %v12599_v3 = vld [vmem:[%s12828_s22 + $0x94] ss:$52 sps:$4 sm:$0x18]  }
 0x316   : > { %10761 = vmatprep.subr.bf16.mxu1 %v10689_v56  ;;  %v10675_v43 = vrot.slane %v12596_v45, 3  ;;  %v10677_v8 = vrot.slane %v12599_v3, 3  ;;  %v10698_v23 = vand.u32 %v10672_v20, %v12826_v31  ;;  %v10674_v56 = vrot.slane %v12594_v53, 3  ;;  %v12600_v40 = vld [vmem:[%s12828_s22 + $0x98] ss:$52 sps:$4 sm:$0x18]  }
 0x317   : > { %v15340_v59 = vmax.f32 %v15115_v28, %v7737_v57  ;;  %v10670_v28 = vrot.slane %v12588_v34, 3  ;;  %v10676_v29 = vrot.slane %v12597_v5, 3  ;;  %v12612_v54 = vld [vmem:[%s15725_s1 + $0x10] sm:$0xff]   ;;  %s12387_s22 = smul.u32 104, %s244_s11 }
 0x318   : > { %v10707_v62 = vand.u32 %v10675_v43, %v12826_v31  ;;  %v10713_v50 = vand.u32 %v10677_v8, %v12826_v31  ;;  %v10704_v9 = vand.u32 %v10674_v56, %v12826_v31  ;;  %s11222_s11 = smul.u32 (%p12741_p6), 13, %s12651_s14 }
 0x319   : > { %v10692_v39 = vand.u32 %v10670_v28, %v12826_v31  ;;  %v10710_v4 = vand.u32 %v10676_v29, %v12826_v31  ;;  %s15630_s12 = scalar_lea.vmem [#allocation3], %s12387_s22 }
 0x31a   : > { %11678 = vmatmul.mubr.msk.bf16.vlgmr.msra.gmra.mrb[152].mxu0 %vm432_vm2, %v12611_v10  ;;  %s11224_s23 = sadd.s32 (%p12741_p6), %s12388_s4, %s11222_s11 }
 0x31b   : > { %11943 = vmatmul.mubr.msk.bf16.vlgmr.msra.gmra.mrb[156].mxu1 %vm432_vm2, %v12611_v10  ;;  %10719 = vmatpush1.bf16.msra.mxu0 %v10680_v1  ;;  %s11715_s5 = sshll.u32 (%p12741_p6), %s11224_s23, 2 }
 0x31c   : > { %10762 = vmatpush1.bf16.msra.mxu1 %v10686_v33  ;;  %10750 = vmatprep.mubr.bf16.mxu0 %v15926_v11  ;;  %s11226_s15 = scalar_lea.vmem (%p12741_p6), %s15727_s3, %s11715_s5 }
 0x31d   : > { %10793 = vmatprep.mubr.bf16.mxu1 %v15926_v11  ;;  %10804 = vmatprep.subr.bf16.mxu0 %v10695_v13 }
 0x31e   : > { %10847 = vmatprep.subr.bf16.mxu1 %v10701_v42 }
 0x322   : > { %11694 = vmatmul.mubr.msk.bf16.vlgmr.msra.gmra.mrb[144].mxu0 %vm432_vm2, %v16183_v32 }
 0x323   : > { %11695 = vmatmul.mubr.msk.bf16.vlgmr.msra.gmra.mrb[144].mxu1 %vm432_vm2, %v16183_v32  ;;  %10805 = vmatpush1.bf16.msra.mxu0 %v10692_v39  ;;  %v10678_v32 = vrot.slane %v12600_v40, 3 }
 0x324   : > { %10848 = vmatpush1.bf16.msra.mxu1 %v10698_v23  ;;  %10836 = vmatprep.mubr.bf16.mxu0 %v15926_v11 }
 0x325   : > { %10879 = vmatprep.mubr.bf16.mxu1 %v15926_v11  ;;  %10890 = vmatprep.subr.bf16.mxu0 %v10707_v62  ;;  %v10716_v7 = vand.u32 %v10678_v32, %v12826_v31 }
 0x326   : > { %10933 = vmatprep.subr.bf16.mxu1 %v10713_v50 }
 0x32a   : > { %11696 = vmatmul.mubr.msk.bf16.vlgmr.msra.gmra.mrb[148].mxu0 %vm432_vm2, %v12612_v54 }
 0x32b   : > { %11697 = vmatmul.mubr.msk.bf16.vlgmr.msra.gmra.mrb[148].mxu1 %vm432_vm2, %v12612_v54  ;;  %10891 = vmatpush1.bf16.msra.mxu0 %v10704_v9 }
 0x32c   : > { %10934 = vmatpush1.bf16.msra.mxu1 %v10710_v4  ;;  %10922 = vmatprep.mubr.bf16.mxu0 %v15926_v11 }
 0x32d   : > { %10965 = vmatprep.mubr.bf16.mxu1 %v15926_v11  ;;  %v8056_v24 = vpop.f32.mrb[120].mxu0  ;;  %11946 = vmatprep.subr.bf16.mxu0 %v15921_v19 }
 0x32e   : > { %v11902_v46 = vpop.f32.mrb[121].mxu0 }
 0x32f   : > { %v8059_v2 = vpop.f32.mrb[122].mxu0 }
 0x330   : > { %v11903_v57 = vpop.f32.mrb[123].mxu0 }
 0x332   : > { %11698 = vmatmul.mubr.msk.bf16.vlgmr.msra.gmra.mrb[152].mxu0 %vm432_vm2, %v12612_v54 }
 0x333   : > { %11699 = vmatmul.mubr.msk.bf16.vlgmr.msra.gmra.mrb[152].mxu1 %vm432_vm2, %v12612_v54  ;;  %11947 = vmatpush3.bf16.msra.mxu0 %v10716_v7 }
 0x334   : > { %11948 = vmatprep.mubr.msk.bf16.mxu0 %vm12672_vm3, %v15921_v19 }
 0x33a   : > { %11949 = vmatmul.mubr.msk.bf16.vlgmr.msra.gmra.mrb[160].mxu0 %vm432_vm2, %v12612_v54 }
 0x346   : > { %v8355_v16 = vpop.f32.mrb[120].mxu1 }
 0x347   : > { %v15386_v11 = vadd.f32 %v8355_v16, %v8056_v24  ;;  %v11908_v47 = vpop.f32.mrb[121].mxu1 }
 0x348   : > { %v8358_v1 = vpop.f32.mrb[122].mxu1 }
 0x349   : > { %v15388_v33 = vadd.f32 %v8358_v1, %v8059_v2  ;;  %v11909_v34 = vpop.f32.mrb[123].mxu1 }
 0x34d   : > { %v8488_v31 = vpop.f32.mrb[108].mxu0 }
 0x34e   : > { %v8531_v30 = vpop.f32.mrb[108].mxu1  ;;  %v8779_v13 = vadd.f32 %v8488_v31, %v13895_v15  ;;  %v8490_v45 = vpop.f32.mrb[109].mxu0 }
 0x34f   : > { %v8781_v42 = vadd.f32 %v8531_v30, %v13895_v15  ;;  %v8533_v3 = vpop.f32.mrb[109].mxu1  ;;  %v8780_v19 = vadd.f32 %v8490_v45, %v13895_v15  ;;  %v8492_v28 = vpop.f32.mrb[110].mxu0 }
 0x350   : > { %v8782_v10 = vadd.f32 %v8533_v3, %v13895_v15  ;;  %v8535_v20 = vpop.f32.mrb[110].mxu1  ;;  %v8805_v43 = vmax.f32 %v8779_v13, 0.0  ;;  %v8792_v39 = vadd.f32 %v8492_v28, %v13908_v14  ;;  %v8494_v53 = vpop.f32.mrb[111].mxu0 }
 0x351   : > { %v8807_v8 = vmax.f32 %v8781_v42, 0.0  ;;  %v8794_v23 = vadd.f32 %v8535_v20, %v13908_v14  ;;  %v8537_v5 = vpop.f32.mrb[111].mxu1  ;;  %v8806_v62 = vmax.f32 %v8780_v19, 0.0  ;;  %v8793_v56 = vadd.f32 %v8494_v53, %v13908_v14 }
 0x352   : > { %v8808_v50 = vmax.f32 %v8782_v10, 0.0  ;;  %v8795_v29 = vadd.f32 %v8537_v5, %v13908_v14  ;;  %v15399_v9 = vmax.f32 %v15191_v49, %v8805_v43  ;;  %v8818_v40 = vmax.f32 %v8792_v39, 0.0 }
 0x353   : > { %v15402_v4 = vmax.f32 %v15222_v21, %v8807_v8  ;;  %v8820_v54 = vmax.f32 %v8794_v23, 0.0  ;;  %v15405_v32 = vmax.f32 %v15198_v18, %v8806_v62  ;;  %v8819_v46 = vmax.f32 %v8793_v56, 0.0 }
 0x354   : > { %v15408_v24 = vmax.f32 %v15234_v6, %v8808_v50  ;;  %v8821_v2 = vmax.f32 %v8795_v29, 0.0  ;;  %v15411_v7 = vmax.f32 %v15203_v27, %v8818_v40 }
 0x355   : > { %v15414_v57 = vmax.f32 %v15242_v37, %v8820_v54  ;;  %v15417_v49 = vmax.f32 %v15209_v38, %v8819_v46  ;;  %v8574_v16 = vpop.f32.mrb[112].mxu0 }
 0x356   : > { %v15420_v21 = vmax.f32 %v15250_v41, %v8821_v2  ;;  %v8617_v18 = vpop.f32.mrb[112].mxu1  ;;  %v8783_v47 = vadd.f32 %v8574_v16, %v13895_v15  ;;  %v8576_v1 = vpop.f32.mrb[113].mxu0 }
 0x357   : > { %v8785_v6 = vadd.f32 %v8617_v18, %v13895_v15  ;;  %v8619_v34 = vpop.f32.mrb[113].mxu1  ;;  %v8784_v27 = vadd.f32 %v8576_v1, %v13895_v15  ;;  %v8578_v37 = vpop.f32.mrb[114].mxu0 }
 0x358   : > { %v8786_v31 = vadd.f32 %v8619_v34, %v13895_v15  ;;  %v8621_v30 = vpop.f32.mrb[114].mxu1  ;;  %v8809_v13 = vmax.f32 %v8783_v47, 0.0  ;;  %v8796_v42 = vadd.f32 %v8578_v37, %v13908_v14  ;;  %v8580_v45 = vpop.f32.mrb[115].mxu0 }
 0x359   : > { %v8811_v38 = vmax.f32 %v8785_v6, 0.0  ;;  %v8798_v41 = vadd.f32 %v8621_v30, %v13908_v14  ;;  %v8623_v3 = vpop.f32.mrb[115].mxu1  ;;  %v8810_v19 = vmax.f32 %v8784_v27, 0.0  ;;  %v8797_v28 = vadd.f32 %v8580_v45, %v13908_v14 }
 0x35a   : > { %v8812_v10 = vmax.f32 %v8786_v31, 0.0  ;;  %v8799_v20 = vadd.f32 %v8623_v3, %v13908_v14  ;;  %v15431_v43 = vmax.f32 %v15225_v60, %v8809_v13  ;;  %v8822_v39 = vmax.f32 %v8796_v42, 0.0 }
 0x35b   : > { %v15434_v8 = vmax.f32 %v15268_v12, %v8811_v38  ;;  %v8824_v23 = vmax.f32 %v8798_v41, 0.0  ;;  %v15437_v53 = vmax.f32 %v15237_v55, %v8810_v19  ;;  %v8823_v62 = vmax.f32 %v8797_v28, 0.0 }
 0x35c   : > { %v15440_v5 = vmax.f32 %v15278_v63, %v8812_v10  ;;  %v8825_v50 = vmax.f32 %v8799_v20, 0.0  ;;  %v15443_v56 = vmax.f32 %v15245_v51, %v8822_v39 }
 0x35d   : > { %v15446_v29 = vmax.f32 %v15286_v17, %v8824_v23  ;;  %v15449_v60 = vmax.f32 %v15253_v44, %v8823_v62  ;;  %v8660_v40 = vpop.f32.mrb[116].mxu0 }
 0x35e   : > { %v15452_v12 = vmax.f32 %v15294_v61, %v8825_v50  ;;  %v8703_v55 = vpop.f32.mrb[116].mxu1  ;;  %v8787_v54 = vadd.f32 %v8660_v40, %v13895_v15  ;;  %v8662_v46 = vpop.f32.mrb[117].mxu0 }
 0x35f   : > { %v8789_v63 = vadd.f32 %v8703_v55, %v13895_v15  ;;  %v8705_v2 = vpop.f32.mrb[117].mxu1  ;;  %v8788_v51 = vadd.f32 %v8662_v46, %v13895_v15  ;;  %v8664_v17 = vpop.f32.mrb[118].mxu0 }
 0x360   : > { %v8790_v16 = vadd.f32 %v8705_v2, %v13895_v15  ;;  %v8707_v18 = vpop.f32.mrb[118].mxu1  ;;  %v8813_v47 = vmax.f32 %v8787_v54, 0.0  ;;  %v8800_v6 = vadd.f32 %v8664_v17, %v13908_v14  ;;  %v8666_v1 = vpop.f32.mrb[119].mxu0 }
 0x361   : > { %v8815_v44 = vmax.f32 %v8789_v63, 0.0  ;;  %v8802_v61 = vadd.f32 %v8707_v18, %v13908_v14  ;;  %v8709_v34 = vpop.f32.mrb[119].mxu1  ;;  %v8814_v27 = vmax.f32 %v8788_v51, 0.0  ;;  %v8801_v37 = vadd.f32 %v8666_v1, %v13908_v14 }
 0x362   : > { %v8816_v31 = vmax.f32 %v8790_v16, 0.0  ;;  %v8803_v30 = vadd.f32 %v8709_v34, %v13908_v14  ;;  %v15463_v13 = vmax.f32 %v15271_v36, %v8813_v47  ;;  %v8826_v42 = vmax.f32 %v8800_v6, 0.0 }
 0x363   : > { %v15466_v38 = vmax.f32 %v15315_v35, %v8815_v44  ;;  %v8828_v41 = vmax.f32 %v8802_v61, 0.0  ;;  %v15469_v45 = vmax.f32 %v15281_v22, %v8814_v27  ;;  %v8827_v19 = vmax.f32 %v8801_v37, 0.0 }
 0x364   : > { %v15472_v3 = vmax.f32 %v15323_v48, %v8816_v31  ;;  %v8829_v10 = vmax.f32 %v8803_v30, 0.0  ;;  %v15475_v28 = vmax.f32 %v15289_v25, %v8826_v42 }
 0x365   : > { %v15478_v20 = vmax.f32 %v15331_v0, %v8828_v41  ;;  %v15481_v36 = vmax.f32 %v15297_v52, %v8827_v19  ;;  %v8746_v39 = vpop.f32.mrb[124].mxu0 }
 0x366   : > { %v15484_v35 = vmax.f32 %v15337_v26, %v8829_v10  ;;  %v8765_v22 = vadd.f32 %v8746_v39, %v15386_v11  ;;  %v11914_v23 = vpop.f32.mrb[125].mxu0 }
 0x367   : > { %v8749_v48 = vpop.f32.mrb[126].mxu0 }
 0x368   : > { %v8791_v62 = vadd.f32 %v8765_v22, %v13895_v15  ;;  %v8778_v50 = vadd.f32 %v8749_v48, %v15388_v33  ;;  %v11915_v25 = vpop.f32.mrb[127].mxu0 }
 0x36a   : > { %v8817_v40 = vmax.f32 %v8791_v62, 0.0  ;;  %v8804_v0 = vadd.f32 %v8778_v50, %v13908_v14 }
 0x36c   : > { %v15491_v55 = vmax.f32 %v15328_v58, %v8817_v40  ;;  %v8830_v52 = vmax.f32 %v8804_v0, 0.0 }
 0x36e   : > { %v15494_v26 = vmax.f32 %v15340_v59, %v8830_v52 }
 0x37e   : > { %v9149_v54 = vpop.f32.mrb[136].mxu1 }
 0x37f   : > { %v11920_v63 = vpop.f32.mrb[137].mxu1 }
 0x380   : > { %v9152_v11 = vpop.f32.mrb[138].mxu1 }
 0x381   : > { %v11921_v46 = vpop.f32.mrb[139].mxu1 }
 0x39d   : > { %v9448_v2 = vpop.f32.mrb[140].mxu0 }
 0x39e   : > { %v9632_v51 = vpop.f32.mrb[124].mxu1  ;;  %v15496_v16 = vadd.f32 %v9448_v2, %v9149_v54  ;;  %v11926_v17 = vpop.f32.mrb[141].mxu0 }
 0x39f   : > { %v9923_v33 = vadd.f32 %v9632_v51, %v13895_v15  ;;  %v9634_v18 = vpop.f32.mrb[125].mxu1  ;;  %v9451_v58 = vpop.f32.mrb[142].mxu0 }
 0x3a0   : > { %v9924_v47 = vadd.f32 %v9634_v18, %v13895_v15  ;;  %v9636_v44 = vpop.f32.mrb[126].mxu1  ;;  %v15500_v61 = vadd.f32 %v9451_v58, %v9152_v11  ;;  %v11927_v1 = vpop.f32.mrb[143].mxu0 }
 0x3a1   : > { %v9949_v6 = vmax.f32 %v9923_v33, 0.0  ;;  %v9936_v59 = vadd.f32 %v9636_v44, %v13908_v14  ;;  %v9638_v34 = vpop.f32.mrb[127].mxu1 }
 0x3a2   : > { %v9950_v27 = vmax.f32 %v9924_v47, 0.0  ;;  %v9937_v31 = vadd.f32 %v9638_v34, %v13908_v14 }
 0x3a3   : > { %v15505_v37 = vmax.f32 %v15399_v9, %v9949_v6  ;;  %v9962_v30 = vmax.f32 %v9936_v59, 0.0 }
 0x3a4   : > { %v15508_v42 = vmax.f32 %v15405_v32, %v9950_v27  ;;  %v9963_v41 = vmax.f32 %v9937_v31, 0.0 }
 0x3a5   : > { %v15511_v19 = vmax.f32 %v15411_v7, %v9962_v30  ;;  %v9675_v39 = vpop.f32.mrb[128].mxu0 }
 0x3a6   : > { %v15514_v10 = vmax.f32 %v15417_v49, %v9963_v41  ;;  %v9718_v22 = vpop.f32.mrb[128].mxu1  ;;  %v9925_v23 = vadd.f32 %v9675_v39, %v13895_v15  ;;  %v9677_v62 = vpop.f32.mrb[129].mxu0 }
 0x3a7   : > { %v9927_v48 = vadd.f32 %v9718_v22, %v13895_v15  ;;  %v9720_v9 = vpop.f32.mrb[129].mxu1  ;;  %v9926_v50 = vadd.f32 %v9677_v62, %v13895_v15  ;;  %v9679_v25 = vpop.f32.mrb[130].mxu0 }
 0x3a8   : > { %v9928_v32 = vadd.f32 %v9720_v9, %v13895_v15  ;;  %v9722_v40 = vpop.f32.mrb[130].mxu1  ;;  %v9951_v0 = vmax.f32 %v9925_v23, 0.0  ;;  %v9938_v52 = vadd.f32 %v9679_v25, %v13908_v14  ;;  %v9681_v54 = vpop.f32.mrb[131].mxu0 }
 0x3a9   : > { %v9953_v7 = vmax.f32 %v9927_v48, 0.0  ;;  %v9940_v49 = vadd.f32 %v9722_v40, %v13908_v14  ;;  %v9724_v63 = vpop.f32.mrb[131].mxu1  ;;  %v9952_v11 = vmax.f32 %v9926_v50, 0.0  ;;  %v9939_v2 = vadd.f32 %v9681_v54, %v13908_v14 }
 0x3aa   : > { %v9954_v46 = vmax.f32 %v9928_v32, 0.0  ;;  %v9941_v51 = vadd.f32 %v9724_v63, %v13908_v14  ;;  %v15525_v33 = vmax.f32 %v15402_v4, %v9951_v0  ;;  %v9964_v18 = vmax.f32 %v9938_v52, 0.0 }
 0x3ab   : > { %v15528_v17 = vmax.f32 %v15431_v43, %v9953_v7  ;;  %v9966_v47 = vmax.f32 %v9940_v49, 0.0  ;;  %v15531_v58 = vmax.f32 %v15408_v24, %v9952_v11  ;;  %v9965_v6 = vmax.f32 %v9939_v2, 0.0 }
 0x3ac   : > { %v15534_v44 = vmax.f32 %v15437_v53, %v9954_v46  ;;  %v9967_v59 = vmax.f32 %v9941_v51, 0.0  ;;  %v15537_v1 = vmax.f32 %v15414_v57, %v9964_v18 }
 0x3ad   : > { %v15540_v34 = vmax.f32 %v15443_v56, %v9966_v47  ;;  %v15543_v4 = vmax.f32 %v15420_v21, %v9965_v6  ;;  %v9761_v27 = vpop.f32.mrb[132].mxu0 }
 0x3ae   : > { %v15546_v43 = vmax.f32 %v15449_v60, %v9967_v59  ;;  %v9804_v24 = vpop.f32.mrb[132].mxu1  ;;  %v9929_v31 = vadd.f32 %v9761_v27, %v13895_v15  ;;  %v9763_v30 = vpop.f32.mrb[133].mxu0 }
 0x3af   : > { %v9931_v53 = vadd.f32 %v9804_v24, %v13895_v15  ;;  %v9806_v41 = vpop.f32.mrb[133].mxu1  ;;  %v9930_v57 = vadd.f32 %v9763_v30, %v13895_v15  ;;  %v9765_v56 = vpop.f32.mrb[134].mxu0 }
 0x3b0   : > { %v9932_v39 = vadd.f32 %v9806_v41, %v13895_v15  ;;  %v9808_v22 = vpop.f32.mrb[134].mxu1  ;;  %v9955_v23 = vmax.f32 %v9929_v31, 0.0  ;;  %v9942_v48 = vadd.f32 %v9765_v56, %v13908_v14  ;;  %v9767_v62 = vpop.f32.mrb[135].mxu0 }
 0x3b1   : > { %v9957_v21 = vmax.f32 %v9931_v53, 0.0  ;;  %v9944_v60 = vadd.f32 %v9808_v22, %v13908_v14  ;;  %v9810_v9 = vpop.f32.mrb[135].mxu1  ;;  %v9956_v50 = vmax.f32 %v9930_v57, 0.0  ;;  %v9943_v25 = vadd.f32 %v9767_v62, %v13908_v14 }
 0x3b2   : > { %v9958_v32 = vmax.f32 %v9932_v39, 0.0  ;;  %v9945_v40 = vadd.f32 %v9810_v9, %v13908_v14  ;;  %v15557_v0 = vmax.f32 %v15434_v8, %v9955_v23  ;;  %v9968_v52 = vmax.f32 %v9942_v48, 0.0 }
 0x3b3   : > { %v15560_v7 = vmax.f32 %v15463_v13, %v9957_v21  ;;  %v9970_v49 = vmax.f32 %v9944_v60, 0.0  ;;  %v15563_v54 = vmax.f32 %v15440_v5, %v9956_v50  ;;  %v9969_v11 = vmax.f32 %v9943_v25, 0.0 }
 0x3b4   : > { %v15566_v63 = vmax.f32 %v15469_v45, %v9958_v32  ;;  %v9971_v46 = vmax.f32 %v9945_v40, 0.0  ;;  %v15569_v2 = vmax.f32 %v15446_v29, %v9968_v52 }
 0x3b5   : > { %v15572_v51 = vmax.f32 %v15475_v28, %v9970_v49  ;;  %v15575_v8 = vmax.f32 %v15452_v12, %v9969_v11  ;;  %v9847_v18 = vpop.f32.mrb[136].mxu0 }
 0x3b6   : > { %v15578_v13 = vmax.f32 %v15481_v36, %v9971_v46  ;;  %v9890_v5 = vpop.f32.mrb[140].mxu1  ;;  %v9933_v47 = vadd.f32 %v9847_v18, %v13895_v15  ;;  %v9849_v6 = vpop.f32.mrb[137].mxu0 }
 0x3b7   : > { %v9909_v45 = vadd.f32 %v9890_v5, %v15496_v16  ;;  %v11932_v59 = vpop.f32.mrb[141].mxu1  ;;  %v9934_v29 = vadd.f32 %v9849_v6, %v13895_v15  ;;  %v9851_v27 = vpop.f32.mrb[138].mxu0 }
 0x3b8   : > { %v9893_v24 = vpop.f32.mrb[142].mxu1  ;;  %v9959_v28 = vmax.f32 %v9933_v47, 0.0  ;;  %v9946_v12 = vadd.f32 %v9851_v27, %v13908_v14  ;;  %v9853_v53 = vpop.f32.mrb[139].mxu0 }
 0x3b9   : > { %v9935_v31 = vadd.f32 %v9909_v45, %v13895_v15  ;;  %v9922_v36 = vadd.f32 %v9893_v24, %v15500_v61  ;;  %v11933_v30 = vpop.f32.mrb[143].mxu1  ;;  %v9960_v41 = vmax.f32 %v9934_v29, 0.0  ;;  %v9947_v57 = vadd.f32 %v9853_v53, %v13908_v14 }
 0x3ba   : > { %v15588_v16 = vmax.f32 %v15466_v38, %v9959_v28  ;;  %v9972_v56 = vmax.f32 %v9946_v12, 0.0 }
 0x3bb   : > { %v9961_v39 = vmax.f32 %v9935_v31, 0.0  ;;  %v9948_v22 = vadd.f32 %v9922_v36, %v13908_v14  ;;  %v15592_v23 = vmax.f32 %v15472_v3, %v9960_v41  ;;  %v9973_v21 = vmax.f32 %v9947_v57, 0.0 }
 0x3bc   : > { %v15598_v61 = vmax.f32 %v15478_v20, %v9972_v56 }
 0x3bd   : > { %v15595_v48 = vmax.f32 %v15491_v55, %v9961_v39  ;;  %v9974_v60 = vmax.f32 %v9948_v22, 0.0  ;;  %v15601_v62 = vmax.f32 %v15484_v35, %v9973_v21 }
 0x3bf   : > { %v15604_v38 = vmax.f32 %v15494_v26, %v9974_v60 }
 0x3d5   : > { %v10293_v9 = vpop.f32.mrb[156].mxu0 }
 0x3d6   : > { %v11938_v50 = vpop.f32.mrb[157].mxu0 }
 0x3d7   : > { %v10296_v32 = vpop.f32.mrb[158].mxu0 }
 0x3d8   : > { %v11939_v25 = vpop.f32.mrb[159].mxu0 }
 0x3ee   : > { %v10592_v3 = vpop.f32.mrb[156].mxu1 }
 0x3ef   : > { %v15606_v40 = vadd.f32 %v10592_v3, %v10293_v9  ;;  %v11944_v52 = vpop.f32.mrb[157].mxu1 }
 0x3f0   : > { %v10595_v55 = vpop.f32.mrb[158].mxu1 }
 0x3f1   : > { %v15608_v49 = vadd.f32 %v10595_v55, %v10296_v32  ;;  %v11945_v20 = vpop.f32.mrb[159].mxu1 }
 0x3f5   : > { %v10752_v11 = vpop.f32.mrb[144].mxu0 }
 0x3f6   : > { %v10795_v46 = vpop.f32.mrb[144].mxu1  ;;  %v11043_v35 = vadd.f32 %v10752_v11, %v13895_v15  ;;  %v10754_v18 = vpop.f32.mrb[145].mxu0 }
 0x3f7   : > { %v11045_v26 = vadd.f32 %v10795_v46, %v13895_v15  ;;  %v10797_v5 = vpop.f32.mrb[145].mxu1  ;;  %v11044_v47 = vadd.f32 %v10754_v18, %v13895_v15  ;;  %v10756_v6 = vpop.f32.mrb[146].mxu0 }
 0x3f8   : > { %v11046_v45 = vadd.f32 %v10797_v5, %v13895_v15  ;;  %v10799_v59 = vpop.f32.mrb[146].mxu1  ;;  %v11069_v29 = vmax.f32 %v11043_v35, 0.0  ;;  %v11056_v24 = vadd.f32 %v10756_v6, %v13908_v14  ;;  %v10758_v31 = vpop.f32.mrb[147].mxu0 }
 0x3f9   : > { %v11071_v27 = vmax.f32 %v11045_v26, 0.0  ;;  %v11058_v28 = vadd.f32 %v10799_v59, %v13908_v14  ;;  %v10801_v12 = vpop.f32.mrb[147].mxu1  ;;  %v11070_v36 = vmax.f32 %v11044_v47, 0.0  ;;  %v11057_v30 = vadd.f32 %v10758_v31, %v13908_v14 }
 0x3fa   : > { %v11072_v53 = vmax.f32 %v11046_v45, 0.0  ;;  %v11059_v41 = vadd.f32 %v10801_v12, %v13908_v14  ;;  %v11095_v57 = vmax.f32 %v15505_v37, %v11069_v29  ;;  %v11082_v56 = vmax.f32 %v11056_v24, 0.0 }
 0x3fb   : > { %v11097_v39 = vmax.f32 %v15525_v33, %v11071_v27  ;;  %v11084_v22 = vmax.f32 %v11058_v28, 0.0  ;;  %v11096_v21 = vmax.f32 %v15508_v42, %v11070_v36  ;;  %v11083_v9 = vmax.f32 %v11057_v30, 0.0 }
 0x3fc   : > { %v11098_v60 = vmax.f32 %v15531_v58, %v11072_v53  ;;  %v11085_v50 = vmax.f32 %v11059_v41, 0.0  ;;  %v11108_v32 = vmax.f32 %v15511_v19, %v11082_v56 }
 0x3fd   : > { %v11110_v25 = vmax.f32 %v15537_v1, %v11084_v22  ;;  %v11722_v3 = vpack.c.bf16 %v11096_v21, %v11095_v57  ;;  %v11109_v55 = vmax.f32 %v15514_v10, %v11083_v9  ;;  %v10838_v20 = vpop.f32.mrb[148].mxu0 }
 0x3fe   : > { %v11723_v52 = vpack.c.bf16 %v11098_v60, %v11097_v39  ;;  %v11111_v37 = vmax.f32 %v15543_v4, %v11085_v50  ;;  %v10881_v33 = vpop.f32.mrb[148].mxu1  ;;  %v11047_v11 = vadd.f32 %v10838_v20, %v13895_v15  ;;  %v10840_v46 = vpop.f32.mrb[149].mxu0 }
 0x3ff   : > { %v11049_v42 = vadd.f32 %v10881_v33, %v13895_v15  ;;  %v10883_v58 = vpop.f32.mrb[149].mxu1  ;;  %11201 = vst [vmem:[%s15630_s12] sm:$0xff] %v11722_v3  ;;  %v11729_v19 = vpack.c.bf16 %v11109_v55, %v11108_v32  ;;  %v11048_v1 = vadd.f32 %v10840_v46, %v13895_v15  ;;  %v10842_v35 = vpop.f32.mrb[150].mxu0 }
 0x400   : > { %11202 = vst [vmem:[%s15630_s12 + $0x8] sm:$0xff] %v11723_v52  ;;  %v11730_v10 = vpack.c.bf16 %v11111_v37, %v11110_v25  ;;  %v11050_v4 = vadd.f32 %v10883_v58, %v13895_v15  ;;  %v10885_v26 = vpop.f32.mrb[150].mxu1  ;;  %v11073_v18 = vmax.f32 %v11047_v11, 0.0  ;;  %v11060_v47 = vadd.f32 %v10842_v35, %v13908_v14  ;;  %v10844_v6 = vpop.f32.mrb[151].mxu0 }
 0x401   : > { %v11075_v5 = vmax.f32 %v11049_v42, 0.0  ;;  %v11062_v45 = vadd.f32 %v10885_v26, %v13908_v14  ;;  %v10887_v59 = vpop.f32.mrb[151].mxu1  ;;  %11208 = vst [vmem:[%s15630_s12 + $0x34] sm:$0xff] %v11729_v19  ;;  %v11074_v29 = vmax.f32 %v11048_v1, 0.0  ;;  %v11061_v24 = vadd.f32 %v10844_v6, %v13908_v14 }
 0x402   : > { %11209 = vst [vmem:[%s15630_s12 + $0x3c] sm:$0xff] %v11730_v10  ;;  %v11076_v27 = vmax.f32 %v11050_v4, 0.0  ;;  %v11063_v28 = vadd.f32 %v10887_v59, %v13908_v14  ;;  %v11099_v31 = vmax.f32 %v15528_v17, %v11073_v18  ;;  %v11086_v36 = vmax.f32 %v11060_v47, 0.0 }
 0x403   : > { %v11101_v12 = vmax.f32 %v15557_v0, %v11075_v5  ;;  %v11088_v53 = vmax.f32 %v11062_v45, 0.0  ;;  %v11100_v30 = vmax.f32 %v15534_v44, %v11074_v29  ;;  %v11087_v57 = vmax.f32 %v11061_v24, 0.0 }
 0x404   : > { %v11102_v41 = vmax.f32 %v15563_v54, %v11076_v27  ;;  %v11089_v39 = vmax.f32 %v11063_v28, 0.0  ;;  %v11112_v56 = vmax.f32 %v15540_v34, %v11086_v36 }
 0x405   : > { %v11114_v22 = vmax.f32 %v15569_v2, %v11088_v53  ;;  %v11724_v21 = vpack.c.bf16 %v11100_v30, %v11099_v31  ;;  %v11113_v17 = vmax.f32 %v15546_v43, %v11087_v57  ;;  %v10924_v9 = vpop.f32.mrb[152].mxu0 }
 0x406   : > { %v11725_v60 = vpack.c.bf16 %v11102_v41, %v11101_v12  ;;  %v11115_v0 = vmax.f32 %v15575_v8, %v11089_v39  ;;  %v10967_v50 = vpop.f32.mrb[152].mxu1  ;;  %v11051_v44 = vadd.f32 %v10924_v9, %v13895_v15  ;;  %v10926_v54 = vpop.f32.mrb[153].mxu0 }
 0x407   : > { %v11053_v32 = vadd.f32 %v10967_v50, %v13895_v15  ;;  %v10969_v25 = vpop.f32.mrb[153].mxu1  ;;  %11203 = vst [vmem:[%s15630_s12 + $0x10] sm:$0xff] %v11724_v21  ;;  %v11731_v34 = vpack.c.bf16 %v11113_v17, %v11112_v56  ;;  %v11052_v3 = vadd.f32 %v10926_v54, %v13895_v15  ;;  %v10928_v52 = vpop.f32.mrb[154].mxu0 }
 0x408   : > { %11204 = vst [vmem:[%s15630_s12 + $0x18] sm:$0xff] %v11725_v60  ;;  %v11732_v2 = vpack.c.bf16 %v11115_v0, %v11114_v22  ;;  %v11054_v43 = vadd.f32 %v10969_v25, %v13895_v15  ;;  %v10971_v8 = vpop.f32.mrb[154].mxu1  ;;  %v11077_v55 = vmax.f32 %v11051_v44, 0.0  ;;  %v11064_v20 = vadd.f32 %v10928_v52, %v13908_v14  ;;  %v10930_v11 = vpop.f32.mrb[155].mxu0  ;;  %v11253_v56 = vld [vmem:[%s15630_s12 + $0x34] sm:$0xff] (%p12741_p6) }
 0x409   : > { %v11079_v37 = vmax.f32 %v11053_v32, 0.0  ;;  %v11066_v33 = vadd.f32 %v10971_v8, %v13908_v14  ;;  %v10973_v42 = vpop.f32.mrb[155].mxu1  ;;  %11210 = vst [vmem:[%s15630_s12 + $0x44] sm:$0xff] %v11731_v34  ;;  %v11078_v46 = vmax.f32 %v11052_v3, 0.0  ;;  %v11065_v19 = vadd.f32 %v10930_v11, %v13908_v14  ;;  %v11255_v22 = vld [vmem:[%s15630_s12 + $0x3c] sm:$0xff] (%p12741_p6)  ;;  %11254 = vst [vmem:[%s11226_s15 + $0xd0] sm:$0xff] (%p12741_p6), %v11253_v56 }
 0x40a   : > { %11211 = vst [vmem:[%s15630_s12 + $0x4c] sm:$0xff] %v11732_v2  ;;  %v11080_v58 = vmax.f32 %v11054_v43, 0.0  ;;  %v11067_v10 = vadd.f32 %v10973_v42, %v13908_v14  ;;  %v11103_v1 = vmax.f32 %v15560_v7, %v11077_v55  ;;  %v11090_v35 = vmax.f32 %v11064_v20, 0.0  ;;  %11256 = vst [vmem:[%s11226_s15 + $0xd8] sm:$0xff] (%p12741_p6), %v11255_v22 }
 0x40b   : > { %v11105_v4 = vmax.f32 %v15588_v16, %v11079_v37  ;;  %v11092_v26 = vmax.f32 %v11066_v33, 0.0  ;;  %v11104_v18 = vmax.f32 %v15566_v63, %v11078_v46  ;;  %v11091_v47 = vmax.f32 %v11065_v19, 0.0 }
 0x40c   : > { %v11106_v5 = vmax.f32 %v15592_v23, %v11080_v58  ;;  %v11093_v45 = vmax.f32 %v11067_v10, 0.0  ;;  %v11116_v6 = vmax.f32 %v15572_v51, %v11090_v35 }
 0x40d   : > { %v11118_v59 = vmax.f32 %v15598_v61, %v11092_v26  ;;  %v11726_v29 = vpack.c.bf16 %v11104_v18, %v11103_v1  ;;  %v11117_v16 = vmax.f32 %v15578_v13, %v11091_v47  ;;  %v11010_v24 = vpop.f32.mrb[160].mxu0 }
 0x40e   : > { %v11727_v7 = vpack.c.bf16 %v11106_v5, %v11105_v4  ;;  %v11119_v27 = vmax.f32 %v15601_v62, %v11093_v45  ;;  %v11029_v28 = vadd.f32 %v11010_v24, %v15606_v40  ;;  %v11950_v63 = vpop.f32.mrb[161].mxu0 }
 0x40f   : > { %11205 = vst [vmem:[%s15630_s12 + $0x20] sm:$0xff] %v11726_v29  ;;  %v11733_v23 = vpack.c.bf16 %v11117_v16, %v11116_v6  ;;  %v11013_v31 = vpop.f32.mrb[162].mxu0 }
 0x410   : > { %11206 = vst [vmem:[%s15630_s12 + $0x28] sm:$0xff] %v11727_v7  ;;  %v11734_v51 = vpack.c.bf16 %v11119_v27, %v11118_v59  ;;  %v11055_v61 = vadd.f32 %v11029_v28, %v13895_v15  ;;  %v11042_v12 = vadd.f32 %v11013_v31, %v15608_v49  ;;  %v11951_v36 = vpop.f32.mrb[163].mxu0  ;;  %v11241_v15 = vld [vmem:[%s15630_s12] sm:$0xff] (%p12741_p6) }
 0x411   : > { %11212 = vst [vmem:[%s15630_s12 + $0x54] sm:$0xff] %v11733_v23  ;;  %v11257_v21 = vld [vmem:[%s15630_s12 + $0x44] sm:$0xff] (%p12741_p6)  ;;  %v11259_v60 = vld [vmem:[%s15630_s12 + $0x4c] sm:$0xff] (%p12741_p6)  ;;  %11242 = vst [vmem:[%s11226_s15] sm:$0xff] (%p12741_p6), %v11241_v15 }
 0x412   : > { %11213 = vst [vmem:[%s15630_s12 + $0x5c] sm:$0xff] %v11734_v51  ;;  %v11081_v13 = vmax.f32 %v11055_v61, 0.0  ;;  %v11068_v62 = vadd.f32 %v11042_v12, %v13908_v14  ;;  %v11243_v14 = vld [vmem:[%s15630_s12 + $0x8] sm:$0xff] (%p12741_p6)  ;;  %11258 = vst [vmem:[%s11226_s15 + $0xe0] sm:$0xff] (%p12741_p6), %v11257_v21 }
 0x413   : > { %11244 = vst [vmem:[%s11226_s15 + $0x8] sm:$0xff] (%p12741_p6), %v11243_v14  ;;  %11260 = vst [vmem:[%s11226_s15 + $0xe8] sm:$0xff] (%p12741_p6), %v11259_v60 }
 0x414   : > { %v11107_v40 = vmax.f32 %v15595_v48, %v11081_v13  ;;  %v11094_v53 = vmax.f32 %v11068_v62, 0.0  ;;  %11221 = sbr.rel (!%p12741_p6) target bundleno = 1059 (0x423), region = 62  ;;  %v11245_v48 = vld [vmem:[%s15630_s12 + $0x10] sm:$0xff] (%p12741_p6) }
 0x415   : > { %11246 = vst [vmem:[%s11226_s15 + $0x10] sm:$0xff] (%p12741_p6), %v11245_v48 }
 0x416   : > { %v11728_v30 = vpack.c.bf16 %v11107_v40, %v11107_v40  ;;  %v11120_v41 = vmax.f32 %v15604_v38, %v11094_v53  ;;  %v11247_v38 = vld [vmem:[%s15630_s12 + $0x18] sm:$0xff] (%p12741_p6)  ;;  %v11249_v49 = vld [vmem:[%s15630_s12 + $0x20] sm:$0xff] (%p12741_p6) }
 0x417   : > { %v11251_v39 = vld [vmem:[%s15630_s12 + $0x28] sm:$0xff] (%p12741_p6)  ;;  %11248 = vst [vmem:[%s11226_s15 + $0x18] sm:$0xff] (%p12741_p6), %v11247_v38  ;;  %11250 = vst [vmem:[%s11226_s15 + $0x20] sm:$0xff] (%p12741_p6), %v11249_v49 }
 0x418   : > { %11207 = vst [vmem:[%s15630_s12 + $0x30] sm:$0xf] %v11728_v30  ;;  %v11735_v57 = vpack.c.bf16 %v11120_v41, %v11120_v41  ;;  %v11261_v17 = vld [vmem:[%s15630_s12 + $0x54] sm:$0xff] (%p12741_p6)  ;;  %11252 = vst [vmem:[%s11226_s15 + $0x28] sm:$0xff] (%p12741_p6), %v11251_v39 }
 0x419   : > { %v11263_v0 = vld [vmem:[%s15630_s12 + $0x5c] sm:$0xff] (%p12741_p6)  ;;  %11262 = vst [vmem:[%s11226_s15 + $0xf0] sm:$0xff] (%p12741_p6), %v11261_v17 }
 0x41a   : > { %11214 = vst [vmem:[%s15630_s12 + $0x64] sm:$0xf] %v11735_v57  ;;  %11264 = vst [vmem:[%s11226_s15 + $0xf8] sm:$0xff] (%p12741_p6), %v11263_v0 }
 0x41f   : > { %v11716_v9 = vld [vmem:[%s15630_s12 + $0x30] sm:$0xf] }
 0x420   : > { %11717 = vst [vmem:[%s11226_s15 + $0x30] sm:$0xf] %v11716_v9 }
 0x421   : > { %v11718_v50 = vld [vmem:[%s15630_s12 + $0x64] sm:$0xf] }
 0x422   : > { %11719 = vst [vmem:[%s11226_s15 + $0x100] sm:$0xf] %v11718_v50 }
 0x423 PF: > { %s13_s18 = sadd.s32 1, %s12667_s18   ;;  %s16213_s12 = smov %s12647_s13 }
 0x424   : > { %p10_p12 = scmp.ge.s32.totalorder %s13_s18, 10   ;;  %s16214_s13 = smov %s12749_s27 }
 0x425   : > { %s16215_s14 = smov %s12659_s16  ;;  %s16216_s15 = smov %s12663_s17 }
 0x426   : > { %s16217_s16 = smov %s16220_s19  ;;  %s16218_s17 = smov %s16224_s20 }
 0x427   :  { %12 = sbr.rel (!%p10_p12) target bundleno = 4 (0x4), region = 133 }

// kernel: cnn_forward.4
= control target key start
LH: loop header
LB: loop body
LE: loop exit
PB: predicated region body
PF: predicated region fallthrough
CT: control target
= control target key end

     0   :  { %s5025_s12 = smov 0   ;;  %s5027_s13 = smov 0   ;;  %s6174_s0 = inlined_call_operand.vmem [shape: bf16[2,400,768], index: 0, kind: input, shape index: {}]   ;;  %s6175_s1 = inlined_call_operand.vmem [shape: bf16[3,16,48], index: 1, kind: input, shape index: {}]   ;;  %s6176_s2 = inlined_call_operand.vmem [shape: f32[16,1], index: 2, kind: input, shape index: {}]   ;;  %s6177_s3 = inlined_call_operand.vmem [shape: bf16[2,16,768], index: 3, kind: output, shape index: {}]  }
   0x1   :  { %s5029_s14 = smov 0   ;;  %s5031_s15 = smov 0  }
   0x2   :  { %s5033_s16 = smov 0   ;;  %s5035_s17 = smov 0  }
   0x3   :  { %s5037_s18 = smov 0  }
   0x4 LB: > { %s22_s19 = sadd.s32 1, %s4992_s16  ;;  %s25_s20 = sadd.s32 1, %s4996_s17  ;;  %s5000_s18 = sphi %s5037_s18, %s13_s18   ;;  %s4996_s17 = sphi %s5035_s17, %s6184_s17   ;;  %s4992_s16 = sphi %s5033_s16, %s6183_s16   ;;  %s4988_s15 = sphi %s5031_s15, %s6182_s15   ;;  %s4984_s14 = sphi %s5029_s14, %s6181_s14   ;;  %s4980_s13 = sphi %s5027_s13, %s6180_s13   ;;  %s4976_s12 = sphi %s5025_s12, %s6179_s12  }
   0x5   : > { %p23_p0 = scmp.ge.s32.totalorder %s22_s19, 2  ;;  %s3986_s21 = sadd.s32 4294967295, %s5000_s18  }
   0x6   : > { %p41_p1 = scmp.ne.s32.totalorder %s4980_s13, %s4976_s12  ;;  %p42_p2 = scmp.eq.s32.totalorder %s5000_s18, 0 }
   0x7   : > { %s6186_s19 = smov (%p23_p0, %s22_s19), 0  ;;  %s6188_s20 = smov (!%p23_p0, %s25_s20), %s4996_s17 }
   0x8   : > { %p27_p3 = scmp.ge.s32.totalorder %s6188_s20, 2  ;;  %p115_p4 = scmp.eq.s32.totalorder %s3986_s21, 3 }
   0x9   : > { %s30_s22 = ssub.s32 %s4992_s16, %s6186_s19  ;;  %p43_p5 = por %p42_p2, %p41_p1 }
   0xa   : > { %s6190_s20 = smov (%p27_p3, %s6188_s20), 0  ;;  %p5073_p6 = por %p115_p4, %p41_p1 }
   0xb   : > { %s29_s24 = ssub.s32 %s4996_s17, %s6190_s20  ;;  %s34_s26 = sadd.s32 1, %s4980_s13 }
   0xc   : > { %s31_s25 = sor.u32 %s30_s22, %s29_s24  ;;  %p3989_p8 = scmp.ge.s32.totalorder %s5000_s18, 4 }
   0xd   : > { %p32_p7 = scmp.eq.s32.totalorder %s31_s25, 0 }
   0xe   : > { %143 = sbr.rel (%p3989_p8) target bundleno = 88 (0x58), region = 24 }
   0xf   : > { %s5081_s27 = scalar_select %p32_p7, %s4980_s13, %s34_s26  }
  0x15   : > { %146 = sbr.rel (!%p43_p5) target bundleno = 88 (0x58), region = 28  ;;  %s148_s28 = sand.u32 (%p43_p5), 1, %s4980_s13  }
  0x16   : > { %s151_s29 = smul.u32 (%p43_p5), 3, %s4992_s16 }
  0x17   : > { %s4753_s30 = smul.u32 (%p43_p5), 600, %s148_s28 }
  0x18   : > { %s4754_s4 = smul.u32 (%p43_p5), 300, %s4996_s17 }
  0x19   : > { %s5095_s10 = scalar_lea.vmem (%p43_p5), [#allocation2], %s4753_s30 }
  0x1a   : > { %s153_s5 = sadd.s32 (%p43_p5), %s4754_s4, %s151_s29 }
  0x1b   : > { %s3990_s6 = sshll.u32 (%p43_p5), %s153_s5, 2 }
  0x1c   : > { %s5090_s9 = scalar_lea.vmem %s6174_s0, %s3990_s6 }
  0x1d   : > { %v170_v0 = vld [vmem:[%s5090_s9] sm:$0xff]  ;;  %v172_v1 = vld [vmem:[%s5090_s9 + $0x18] sm:$0xff]  ;;  %v174_v2 = vld [vmem:[%s5090_s9 + $0x30] sm:$0xff] }
  0x1e   : > { %171 = vst [vmem:[%s5095_s10] sm:$0xff] %v170_v0  ;;  %173 = vst [vmem:[%s5095_s10 + $0xc] sm:$0xff] %v172_v1  ;;  %v176_v3 = vld [vmem:[%s5090_s9 + $0x48] sm:$0xff]  ;;  %v178_v4 = vld [vmem:[%s5090_s9 + $0x60] sm:$0xff] }
  0x1f   : > { %175 = vst [vmem:[%s5095_s10 + $0x18] sm:$0xff] %v174_v2  ;;  %v180_v5 = vld [vmem:[%s5090_s9 + $0x78] sm:$0xff]  ;;  %177 = vst [vmem:[%s5095_s10 + $0x24] sm:$0xff] %v176_v3  ;;  %v182_v6 = vld [vmem:[%s5090_s9 + $0x90] sm:$0xff] }
  0x20   : > { %179 = vst [vmem:[%s5095_s10 + $0x30] sm:$0xff] %v178_v4  ;;  %181 = vst [vmem:[%s5095_s10 + $0x3c] sm:$0xff] %v180_v5  ;;  %v184_v7 = vld [vmem:[%s5090_s9 + $0xa8] sm:$0xff]  ;;  %v186_v8 = vld [vmem:[%s5090_s9 + $0xc0] sm:$0xff] }
  0x21   : > { %183 = vst [vmem:[%s5095_s10 + $0x48] sm:$0xff] %v182_v6  ;;  %185 = vst [vmem:[%s5095_s10 + $0x54] sm:$0xff] %v184_v7  ;;  %v188_v9 = vld [vmem:[%s5090_s9 + $0xd8] sm:$0xff]  ;;  %v190_v10 = vld [vmem:[%s5090_s9 + $0xf0] sm:$0xff] }
  0x22   : > { %187 = vst [vmem:[%s5095_s10 + $0x60] sm:$0xff] %v186_v8  ;;  %v192_v11 = vld [vmem:[%s5090_s9 + $0x108] sm:$0xff]  ;;  %189 = vst [vmem:[%s5095_s10 + $0x6c] sm:$0xff] %v188_v9  ;;  %v194_v12 = vld [vmem:[%s5090_s9 + $0x120] sm:$0xff] }
  0x23   : > { %191 = vst [vmem:[%s5095_s10 + $0x78] sm:$0xff] %v190_v10  ;;  %193 = vst [vmem:[%s5095_s10 + $0x84] sm:$0xff] %v192_v11  ;;  %v196_v13 = vld [vmem:[%s5090_s9 + $0x138] sm:$0xff]  ;;  %v198_v14 = vld [vmem:[%s5090_s9 + $0x150] sm:$0xff] }
  0x24   : > { %195 = vst [vmem:[%s5095_s10 + $0x90] sm:$0xff] %v194_v12  ;;  %197 = vst [vmem:[%s5095_s10 + $0x9c] sm:$0xff] %v196_v13  ;;  %v200_v15 = vld [vmem:[%s5090_s9 + $0x168] sm:$0xff]  ;;  %v202_v16 = vld [vmem:[%s5090_s9 + $0x180] sm:$0xff] }
  0x25   : > { %199 = vst [vmem:[%s5095_s10 + $0xa8] sm:$0xff] %v198_v14  ;;  %v204_v17 = vld [vmem:[%s5090_s9 + $0x198] sm:$0xff]  ;;  %201 = vst [vmem:[%s5095_s10 + $0xb4] sm:$0xff] %v200_v15  ;;  %v206_v18 = vld [vmem:[%s5090_s9 + $0x1b0] sm:$0xff] }
  0x26   : > { %203 = vst [vmem:[%s5095_s10 + $0xc0] sm:$0xff] %v202_v16  ;;  %205 = vst [vmem:[%s5095_s10 + $0xcc] sm:$0xff] %v204_v17  ;;  %v208_v19 = vld [vmem:[%s5090_s9 + $0x1c8] sm:$0xff]  ;;  %v210_v20 = vld [vmem:[%s5090_s9 + $0x1e0] sm:$0xff] }
  0x27   : > { %207 = vst [vmem:[%s5095_s10 + $0xd8] sm:$0xff] %v206_v18  ;;  %209 = vst [vmem:[%s5095_s10 + $0xe4] sm:$0xff] %v208_v19  ;;  %v212_v21 = vld [vmem:[%s5090_s9 + $0x1f8] sm:$0xff]  ;;  %v214_v22 = vld [vmem:[%s5090_s9 + $0x210] sm:$0xff] }
  0x28   : > { %211 = vst [vmem:[%s5095_s10 + $0xf0] sm:$0xff] %v210_v20  ;;  %v216_v23 = vld [vmem:[%s5090_s9 + $0x228] sm:$0xff]  ;;  %213 = vst [vmem:[%s5095_s10 + $0xfc] sm:$0xff] %v212_v21  ;;  %v218_v24 = vld [vmem:[%s5090_s9 + $0x240] sm:$0xff] }
  0x29   : > { %215 = vst [vmem:[%s5095_s10 + $0x108] sm:$0xff] %v214_v22  ;;  %217 = vst [vmem:[%s5095_s10 + $0x114] sm:$0xff] %v216_v23  ;;  %v220_v25 = vld [vmem:[%s5090_s9 + $0x258] sm:$0xff]  ;;  %v222_v26 = vld [vmem:[%s5090_s9 + $0x270] sm:$0xff] }
  0x2a   : > { %219 = vst [vmem:[%s5095_s10 + $0x120] sm:$0xff] %v218_v24  ;;  %221 = vst [vmem:[%s5095_s10 + $0x12c] sm:$0xff] %v220_v25  ;;  %v224_v27 = vld [vmem:[%s5090_s9 + $0x288] sm:$0xff]  ;;  %v226_v28 = vld [vmem:[%s5090_s9 + $0x2a0] sm:$0xff] }
  0x2b   : > { %223 = vst [vmem:[%s5095_s10 + $0x138] sm:$0xff] %v222_v26  ;;  %v228_v29 = vld [vmem:[%s5090_s9 + $0x2b8] sm:$0xff]  ;;  %225 = vst [vmem:[%s5095_s10 + $0x144] sm:$0xff] %v224_v27  ;;  %v230_v30 = vld [vmem:[%s5090_s9 + $0x2d0] sm:$0xff] }
  0x2c   : > { %227 = vst [vmem:[%s5095_s10 + $0x150] sm:$0xff] %v226_v28  ;;  %229 = vst [vmem:[%s5095_s10 + $0x15c] sm:$0xff] %v228_v29  ;;  %v232_v31 = vld [vmem:[%s5090_s9 + $0x2e8] sm:$0xff]  ;;  %v234_v32 = vld [vmem:[%s5090_s9 + $0x300] sm:$0xff] }
  0x2d   : > { %231 = vst [vmem:[%s5095_s10 + $0x168] sm:$0xff] %v230_v30  ;;  %233 = vst [vmem:[%s5095_s10 + $0x174] sm:$0xff] %v232_v31  ;;  %v236_v33 = vld [vmem:[%s5090_s9 + $0x318] sm:$0xff]  ;;  %v238_v34 = vld [vmem:[%s5090_s9 + $0x330] sm:$0xff] }
  0x2e   : > { %235 = vst [vmem:[%s5095_s10 + $0x180] sm:$0xff] %v234_v32  ;;  %v240_v35 = vld [vmem:[%s5090_s9 + $0x348] sm:$0xff]  ;;  %237 = vst [vmem:[%s5095_s10 + $0x18c] sm:$0xff] %v236_v33  ;;  %v242_v36 = vld [vmem:[%s5090_s9 + $0x360] sm:$0xff] }
  0x2f   : > { %239 = vst [vmem:[%s5095_s10 + $0x198] sm:$0xff] %v238_v34  ;;  %241 = vst [vmem:[%s5095_s10 + $0x1a4] sm:$0xff] %v240_v35  ;;  %v244_v37 = vld [vmem:[%s5090_s9 + $0x378] sm:$0xff]  ;;  %v246_v38 = vld [vmem:[%s5090_s9 + $0x390] sm:$0xff] }
  0x30   : > { %243 = vst [vmem:[%s5095_s10 + $0x1b0] sm:$0xff] %v242_v36  ;;  %245 = vst [vmem:[%s5095_s10 + $0x1bc] sm:$0xff] %v244_v37  ;;  %v248_v39 = vld [vmem:[%s5090_s9 + $0x3a8] sm:$0xff]  ;;  %v250_v40 = vld [vmem:[%s5090_s9 + $0x3c0] sm:$0xff] }
  0x31   : > { %247 = vst [vmem:[%s5095_s10 + $0x1c8] sm:$0xff] %v246_v38  ;;  %v252_v41 = vld [vmem:[%s5090_s9 + $0x3d8] sm:$0xff]  ;;  %249 = vst [vmem:[%s5095_s10 + $0x1d4] sm:$0xff] %v248_v39  ;;  %v254_v42 = vld [vmem:[%s5090_s9 + $0x3f0] sm:$0xff] }
  0x32   : > { %251 = vst [vmem:[%s5095_s10 + $0x1e0] sm:$0xff] %v250_v40  ;;  %253 = vst [vmem:[%s5095_s10 + $0x1ec] sm:$0xff] %v252_v41  ;;  %v256_v43 = vld [vmem:[%s5090_s9 + $0x408] sm:$0xff]  ;;  %v258_v44 = vld [vmem:[%s5090_s9 + $0x420] sm:$0xff] }
  0x33   : > { %255 = vst [vmem:[%s5095_s10 + $0x1f8] sm:$0xff] %v254_v42  ;;  %257 = vst [vmem:[%s5095_s10 + $0x204] sm:$0xff] %v256_v43  ;;  %v260_v45 = vld [vmem:[%s5090_s9 + $0x438] sm:$0xff]  ;;  %v262_v46 = vld [vmem:[%s5090_s9 + $0x450] sm:$0xff] }
  0x34   : > { %259 = vst [vmem:[%s5095_s10 + $0x210] sm:$0xff] %v258_v44  ;;  %v264_v47 = vld [vmem:[%s5090_s9 + $0x468] sm:$0xff]  ;;  %261 = vst [vmem:[%s5095_s10 + $0x21c] sm:$0xff] %v260_v45  ;;  %v266_v48 = vld [vmem:[%s5090_s9 + $0x480] sm:$0xff] }
  0x35   : > { %263 = vst [vmem:[%s5095_s10 + $0x228] sm:$0xff] %v262_v46  ;;  %265 = vst [vmem:[%s5095_s10 + $0x234] sm:$0xff] %v264_v47  ;;  %v268_v49 = vld [vmem:[%s5090_s9 + $0x498] sm:$0xff]  ;;  %v3991_v50 = vld [vmem:[%s5090_s9 + $0x8] sm:$0xf] }
  0x36   : > { %267 = vst [vmem:[%s5095_s10 + $0x240] sm:$0xff] %v266_v48  ;;  %269 = vst [vmem:[%s5095_s10 + $0x24c] sm:$0xff] %v268_v49  ;;  %v3993_v51 = vld [vmem:[%s5090_s9 + $0x20] sm:$0xf]  ;;  %v3995_v52 = vld [vmem:[%s5090_s9 + $0x38] sm:$0xf] }
  0x37   : > { %3992 = vst [vmem:[%s5095_s10 + $0x8] sm:$0xf] %v3991_v50  ;;  %v3997_v53 = vld [vmem:[%s5090_s9 + $0x50] sm:$0xf]  ;;  %3994 = vst [vmem:[%s5095_s10 + $0x14] sm:$0xf] %v3993_v51 }
  0x38   : > { %3996 = vst [vmem:[%s5095_s10 + $0x20] sm:$0xf] %v3995_v52  ;;  %3998 = vst [vmem:[%s5095_s10 + $0x2c] sm:$0xf] %v3997_v53  ;;  %v3999_v54 = vld [vmem:[%s5090_s9 + $0x68] sm:$0xf] }
  0x39   : > { %v4001_v55 = vld [vmem:[%s5090_s9 + $0x80] sm:$0xf]  ;;  %v4003_v56 = vld [vmem:[%s5090_s9 + $0x98] sm:$0xf]  ;;  %4000 = vst [vmem:[%s5095_s10 + $0x38] sm:$0xf] %v3999_v54 }
  0x3a   : > { %4002 = vst [vmem:[%s5095_s10 + $0x44] sm:$0xf] %v4001_v55  ;;  %4004 = vst [vmem:[%s5095_s10 + $0x50] sm:$0xf] %v4003_v56  ;;  %v4005_v57 = vld [vmem:[%s5090_s9 + $0xb0] sm:$0xf] }
  0x3b   : > { %v4007_v58 = vld [vmem:[%s5090_s9 + $0xc8] sm:$0xf]  ;;  %v4009_v59 = vld [vmem:[%s5090_s9 + $0xe0] sm:$0xf]  ;;  %4006 = vst [vmem:[%s5095_s10 + $0x5c] sm:$0xf] %v4005_v57 }
  0x3c   : > { %4008 = vst [vmem:[%s5095_s10 + $0x68] sm:$0xf] %v4007_v58  ;;  %4010 = vst [vmem:[%s5095_s10 + $0x74] sm:$0xf] %v4009_v59  ;;  %v4011_v60 = vld [vmem:[%s5090_s9 + $0xf8] sm:$0xf] }
  0x3d   : > { %v4013_v61 = vld [vmem:[%s5090_s9 + $0x110] sm:$0xf]  ;;  %v4015_v62 = vld [vmem:[%s5090_s9 + $0x128] sm:$0xf]  ;;  %4012 = vst [vmem:[%s5095_s10 + $0x80] sm:$0xf] %v4011_v60 }
  0x3e   : > { %4014 = vst [vmem:[%s5095_s10 + $0x8c] sm:$0xf] %v4013_v61  ;;  %4016 = vst [vmem:[%s5095_s10 + $0x98] sm:$0xf] %v4015_v62  ;;  %v4017_v63 = vld [vmem:[%s5090_s9 + $0x140] sm:$0xf] }
  0x3f   : > { %v4019_v0 = vld [vmem:[%s5090_s9 + $0x158] sm:$0xf]  ;;  %v4021_v1 = vld [vmem:[%s5090_s9 + $0x170] sm:$0xf]  ;;  %4018 = vst [vmem:[%s5095_s10 + $0xa4] sm:$0xf] %v4017_v63 }
  0x40   : > { %4020 = vst [vmem:[%s5095_s10 + $0xb0] sm:$0xf] %v4019_v0  ;;  %4022 = vst [vmem:[%s5095_s10 + $0xbc] sm:$0xf] %v4021_v1  ;;  %v4023_v2 = vld [vmem:[%s5090_s9 + $0x188] sm:$0xf] }
  0x41   : > { %v4025_v3 = vld [vmem:[%s5090_s9 + $0x1a0] sm:$0xf]  ;;  %v4027_v4 = vld [vmem:[%s5090_s9 + $0x1b8] sm:$0xf]  ;;  %4024 = vst [vmem:[%s5095_s10 + $0xc8] sm:$0xf] %v4023_v2 }
  0x42   : > { %4026 = vst [vmem:[%s5095_s10 + $0xd4] sm:$0xf] %v4025_v3  ;;  %4028 = vst [vmem:[%s5095_s10 + $0xe0] sm:$0xf] %v4027_v4  ;;  %v4029_v5 = vld [vmem:[%s5090_s9 + $0x1d0] sm:$0xf] }
  0x43   : > { %v4031_v6 = vld [vmem:[%s5090_s9 + $0x1e8] sm:$0xf]  ;;  %v4033_v7 = vld [vmem:[%s5090_s9 + $0x200] sm:$0xf]  ;;  %4030 = vst [vmem:[%s5095_s10 + $0xec] sm:$0xf] %v4029_v5 }
  0x44   : > { %4032 = vst [vmem:[%s5095_s10 + $0xf8] sm:$0xf] %v4031_v6  ;;  %4034 = vst [vmem:[%s5095_s10 + $0x104] sm:$0xf] %v4033_v7  ;;  %v4035_v8 = vld [vmem:[%s5090_s9 + $0x218] sm:$0xf] }
  0x45   : > { %v4037_v9 = vld [vmem:[%s5090_s9 + $0x230] sm:$0xf]  ;;  %v4039_v10 = vld [vmem:[%s5090_s9 + $0x248] sm:$0xf]  ;;  %4036 = vst [vmem:[%s5095_s10 + $0x110] sm:$0xf] %v4035_v8 }
  0x46   : > { %4038 = vst [vmem:[%s5095_s10 + $0x11c] sm:$0xf] %v4037_v9  ;;  %4040 = vst [vmem:[%s5095_s10 + $0x128] sm:$0xf] %v4039_v10  ;;  %v4041_v11 = vld [vmem:[%s5090_s9 + $0x260] sm:$0xf] }
  0x47   : > { %v4043_v12 = vld [vmem:[%s5090_s9 + $0x278] sm:$0xf]  ;;  %v4045_v13 = vld [vmem:[%s5090_s9 + $0x290] sm:$0xf]  ;;  %4042 = vst [vmem:[%s5095_s10 + $0x134] sm:$0xf] %v4041_v11 }
  0x48   : > { %4044 = vst [vmem:[%s5095_s10 + $0x140] sm:$0xf] %v4043_v12  ;;  %4046 = vst [vmem:[%s5095_s10 + $0x14c] sm:$0xf] %v4045_v13  ;;  %v4047_v14 = vld [vmem:[%s5090_s9 + $0x2a8] sm:$0xf] }
  0x49   : > { %v4049_v15 = vld [vmem:[%s5090_s9 + $0x2c0] sm:$0xf]  ;;  %v4051_v16 = vld [vmem:[%s5090_s9 + $0x2d8] sm:$0xf]  ;;  %4048 = vst [vmem:[%s5095_s10 + $0x158] sm:$0xf] %v4047_v14 }
  0x4a   : > { %4050 = vst [vmem:[%s5095_s10 + $0x164] sm:$0xf] %v4049_v15  ;;  %4052 = vst [vmem:[%s5095_s10 + $0x170] sm:$0xf] %v4051_v16  ;;  %v4053_v17 = vld [vmem:[%s5090_s9 + $0x2f0] sm:$0xf] }
  0x4b   : > { %v4055_v18 = vld [vmem:[%s5090_s9 + $0x308] sm:$0xf]  ;;  %v4057_v19 = vld [vmem:[%s5090_s9 + $0x320] sm:$0xf]  ;;  %4054 = vst [vmem:[%s5095_s10 + $0x17c] sm:$0xf] %v4053_v17 }
  0x4c   : > { %4056 = vst [vmem:[%s5095_s10 + $0x188] sm:$0xf] %v4055_v18  ;;  %4058 = vst [vmem:[%s5095_s10 + $0x194] sm:$0xf] %v4057_v19  ;;  %v4059_v20 = vld [vmem:[%s5090_s9 + $0x338] sm:$0xf] }
  0x4d   : > { %v4061_v21 = vld [vmem:[%s5090_s9 + $0x350] sm:$0xf]  ;;  %v4063_v22 = vld [vmem:[%s5090_s9 + $0x368] sm:$0xf]  ;;  %4060 = vst [vmem:[%s5095_s10 + $0x1a0] sm:$0xf] %v4059_v20 }
  0x4e   : > { %4062 = vst [vmem:[%s5095_s10 + $0x1ac] sm:$0xf] %v4061_v21  ;;  %4064 = vst [vmem:[%s5095_s10 + $0x1b8] sm:$0xf] %v4063_v22  ;;  %v4065_v23 = vld [vmem:[%s5090_s9 + $0x380] sm:$0xf] }
  0x4f   : > { %v4067_v24 = vld [vmem:[%s5090_s9 + $0x398] sm:$0xf]  ;;  %v4069_v25 = vld [vmem:[%s5090_s9 + $0x3b0] sm:$0xf]  ;;  %4066 = vst [vmem:[%s5095_s10 + $0x1c4] sm:$0xf] %v4065_v23 }
  0x50   : > { %4068 = vst [vmem:[%s5095_s10 + $0x1d0] sm:$0xf] %v4067_v24  ;;  %4070 = vst [vmem:[%s5095_s10 + $0x1dc] sm:$0xf] %v4069_v25  ;;  %v4071_v26 = vld [vmem:[%s5090_s9 + $0x3c8] sm:$0xf] }
  0x51   : > { %v4073_v27 = vld [vmem:[%s5090_s9 + $0x3e0] sm:$0xf]  ;;  %v4075_v28 = vld [vmem:[%s5090_s9 + $0x3f8] sm:$0xf]  ;;  %4072 = vst [vmem:[%s5095_s10 + $0x1e8] sm:$0xf] %v4071_v26 }
  0x52   : > { %4074 = vst [vmem:[%s5095_s10 + $0x1f4] sm:$0xf] %v4073_v27  ;;  %4076 = vst [vmem:[%s5095_s10 + $0x200] sm:$0xf] %v4075_v28  ;;  %v4077_v29 = vld [vmem:[%s5090_s9 + $0x410] sm:$0xf] }
  0x53   : > { %v4079_v30 = vld [vmem:[%s5090_s9 + $0x428] sm:$0xf]  ;;  %v4081_v31 = vld [vmem:[%s5090_s9 + $0x440] sm:$0xf]  ;;  %4078 = vst [vmem:[%s5095_s10 + $0x20c] sm:$0xf] %v4077_v29 }
  0x54   : > { %4080 = vst [vmem:[%s5095_s10 + $0x218] sm:$0xf] %v4079_v30  ;;  %4082 = vst [vmem:[%s5095_s10 + $0x224] sm:$0xf] %v4081_v31  ;;  %v4083_v32 = vld [vmem:[%s5090_s9 + $0x458] sm:$0xf] }
  0x55   : > { %v4085_v33 = vld [vmem:[%s5090_s9 + $0x470] sm:$0xf]  ;;  %v4087_v34 = vld [vmem:[%s5090_s9 + $0x488] sm:$0xf]  ;;  %4084 = vst [vmem:[%s5095_s10 + $0x230] sm:$0xf] %v4083_v32 }
  0x56   : > { %4086 = vst [vmem:[%s5095_s10 + $0x23c] sm:$0xf] %v4085_v33  ;;  %4088 = vst [vmem:[%s5095_s10 + $0x248] sm:$0xf] %v4087_v34  ;;  %v4089_v35 = vld [vmem:[%s5090_s9 + $0x4a0] sm:$0xf] }
  0x57   : > { %4090 = vst [vmem:[%s5095_s10 + $0x254] sm:$0xf] %v4089_v35 }
  0x58 PF: > { %p4091_p9 = scmp.ge.s32.totalorder %s5000_s18, 1  ;;  %p381_p10 = scmp.lt.s32.totalorder %s5000_s18, 5 }
  0x5a   : > { %p382_p11 = pnand %p4091_p9, %p381_p10 }
  0x5b   : > { %s388_s11 = sand.u32 (!%p382_p11), 1, %s4976_s12   ;;  %v5002_v36 = vmov (!%p382_p11), 0.0   ;;  %vm5003_vm0 = vmmov (!%p382_p11), 0   ;;  %v5004_v37 = vmov (!%p382_p11), 0   ;;  %v413_v38 = vld [vmem:[%s6176_s2] sm:$0xff] (!%p382_p11)  ;;  %v5349_v49 = vld [vmem:[%s6175_s1 + $0x8] sm:$0xff] (!%p382_p11)  }
  0x5c   : > { %385 = sbr.rel (%p382_p11) target bundleno = 653 (0x28d), region = 54  ;;  %4411 = vmatprep.subr.bf16.mxu1 (!%p382_p11), %v5002_v36  ;;  %4417 = vmatprep.mubr.msk.bf16.mxu1 (!%p382_p11), %vm5003_vm0, %v5002_v36  ;;  %vm497_vm1 = vcmask (!%p382_p11), 392192   ;;  %v5388_v59 = vld [vmem:[%s6175_s1] sm:$0xff] (!%p382_p11)   ;;  %v5435_v4 = vld [vmem:[%s6175_s1 + $0x10] sm:$0xff] (!%p382_p11)   ;;  %v414_v11 = vld [vmem:[%s6176_s2 + $0x8] sm:$0xff] (!%p382_p11) }
  0x5d   : > { %s4755_s21 = smul.u32 (!%p382_p11), 600, %s388_s11  ;;  %533 = vmatprep.mubr.bf16.mxu0 (!%p382_p11), %v5004_v37  ;;  %4817 = vset.pattern.permute.xlu0 (!%p382_p11), %v5004_v37 }
  0x5e   : > { %888 = vperm.xlu0 (!%p382_p11), %4817, %v413_v38  }
  0x5f   : > { %s5307_s25 = scalar_lea.vmem (!%p382_p11), [#allocation2], %s4755_s21 }
  0x60   : > { %v5310_v39 = vld [vmem:[%s5307_s25 + $0x7c] ss:$12 sps:$4 sm:$0xff] (!%p382_p11)   ;;  %v5313_v40 = vld [vmem:[%s5307_s25 + $0x80] ss:$12 sps:$4 sm:$0xff] (!%p382_p11)   ;;  %v5317_v41 = vld [vmem:[%s5307_s25 + $0x78] ss:$12 sps:$4 sm:$0xff] (!%p382_p11)  }
  0x61   : > { %501 = vmatprep.subr.bf16.mxu0 (!%p382_p11), %v5310_v39  ;;  %4412 = vmatpush3.bf16.msra.mxu1 (!%p382_p11), %v5313_v40  ;;  %v5321_v42 = vld [vmem:[%s5307_s25 + $0x94] ss:$12 sps:$4 sm:$0xff] (!%p382_p11)   ;;  %v5326_v43 = vld [vmem:[%s5307_s25 + $0x98] ss:$12 sps:$4 sm:$0xff] (!%p382_p11)   ;;  %v5329_v44 = vld [vmem:[%s5307_s25 + $0x90] ss:$12 sps:$4 sm:$0xff] (!%p382_p11)  }
  0x62   : > { %502 = vmatpush1.bf16.msra.mxu0 (!%p382_p11), %v5317_v41  ;;  %4413 = vmatprep.subr.bf16.mxu1 (!%p382_p11), %v5002_v36  ;;  %v5333_v45 = vld [vmem:[%s5307_s25 + $0xac] ss:$12 sps:$4 sm:$0xff] (!%p382_p11)   ;;  %v5337_v46 = vld [vmem:[%s5307_s25 + $0xb0] ss:$12 sps:$4 sm:$0xff] (!%p382_p11)   ;;  %v5342_v47 = vld [vmem:[%s5307_s25 + $0xa8] ss:$12 sps:$4 sm:$0xff] (!%p382_p11)  }
  0x63   : > { %503 = vmatprep.subr.bf16.mxu0 %v5321_v42  ;;  %v4833_v48 = vld [vmem:[%s5307_s25 + $0x4] ss:$12 sps:$4 sm:$0xff]   ;;  %v4834_v50 = vld [vmem:[%s5307_s25 + $0x8] ss:$12 sps:$4 sm:$0xff]   ;;  %v4831_v51 = vld [vmem:[%s5307_s25] ss:$12 sps:$4 sm:$0xff]   ;;  %893 = vperm.xlu0 %4817, %v414_v11  }
  0x64   : > { %v5357_v52 = vld [vmem:[%s5307_s25 + $0x1c] ss:$12 sps:$4 sm:$0xff]   ;;  %v4838_v53 = vld [vmem:[%s5307_s25 + $0x20] ss:$12 sps:$4 sm:$0xff]   ;;  %v5366_v54 = vld [vmem:[%s5307_s25 + $0x18] ss:$12 sps:$4 sm:$0xff]  }
  0x65   : > { %4414 = vmatpush3.bf16.msra.mxu1 %v5326_v43  ;;  %v5370_v55 = vld [vmem:[%s5307_s25 + $0x34] ss:$12 sps:$4 sm:$0xff]   ;;  %v4842_v56 = vld [vmem:[%s5307_s25 + $0x38] ss:$12 sps:$4 sm:$0xff]   ;;  %v5379_v57 = vld [vmem:[%s5307_s25 + $0x30] ss:$12 sps:$4 sm:$0xff]  }
  0x66   : > { %504 = vmatpush1.bf16.msra.mxu0 %v5329_v44  ;;  %4415 = vmatprep.subr.bf16.mxu1 %v5002_v36  ;;  %v5383_v58 = vld [vmem:[%s5307_s25 + $0xf4] ss:$12 sps:$4 sm:$0xff]   ;;  %v5391_v60 = vld [vmem:[%s5307_s25 + $0xf8] ss:$12 sps:$4 sm:$0xff]   ;;  %v5396_v61 = vld [vmem:[%s5307_s25 + $0xf0] ss:$12 sps:$4 sm:$0xff]  }
  0x67   : > { %505 = vmatprep.subr.bf16.mxu0 %v5333_v45  ;;  %v5400_v62 = vld [vmem:[%s5307_s25 + $0x10c] ss:$12 sps:$4 sm:$0xff]   ;;  %v5408_v63 = vld [vmem:[%s5307_s25 + $0x110] ss:$12 sps:$4 sm:$0xff]   ;;  %v5413_v0 = vld [vmem:[%s5307_s25 + $0x108] ss:$12 sps:$4 sm:$0xff]  }
  0x68   : > { %v5417_v1 = vld [vmem:[%s5307_s25 + $0x124] ss:$12 sps:$4 sm:$0xff]   ;;  %v5424_v2 = vld [vmem:[%s5307_s25 + $0x128] ss:$12 sps:$4 sm:$0xff]   ;;  %v5429_v3 = vld [vmem:[%s5307_s25 + $0x120] ss:$12 sps:$4 sm:$0xff]  }
  0x69   : > { %4416 = vmatpush3.bf16.msra.mxu1 %v5337_v46  ;;  %v5439_v5 = vld [vmem:[%s5307_s25 + $0x98] ss:$12 sps:$4 sm:$0xff]   ;;  %v5450_v6 = vld [vmem:[%s5307_s25 + $0xb0] ss:$12 sps:$4 sm:$0xff]   ;;  %v5463_v8 = vld [vmem:[%s5307_s25 + $0xc8] ss:$12 sps:$4 sm:$0xff]  }
  0x6a   : > { %506 = vmatpush1.bf16.msra.mxu0 %v5342_v47  ;;  %4421 = vmatprep.subr.bf16.mxu1 %v5002_v36  ;;  %v5456_v7 = vld [vmem:[%s5307_s25 + $0xc4] ss:$12 sps:$4 sm:$0xff]   ;;  %v5468_v9 = vld [vmem:[%s5307_s25 + $0xc0] ss:$12 sps:$4 sm:$0xff]   ;;  %v4865_v15 = vld [vmem:[%s5307_s25 + $0x48] ss:$12 sps:$4 sm:$0xff]  }
  0x6b   : > { %641 = vmatprep.subr.bf16.mxu0 %v4833_v48  ;;  %v4863_v10 = vld [vmem:[%s5307_s25 + $0x20] ss:$12 sps:$4 sm:$0xff]   ;;  %v4864_v12 = vld [vmem:[%s5307_s25 + $0x38] ss:$12 sps:$4 sm:$0xff]   ;;  %v4868_v14 = vld [vmem:[%s5307_s25 + $0x50] ss:$12 sps:$4 sm:$0xff]  }
  0x6c   : > { %4418 = vmatmul.mubr.msk.bf16.vlgmr.msra.gmra.mrb[0].mxu1 %vm497_vm1, %v5349_v49  ;;  %v4867_v13 = vld [vmem:[%s5307_s25 + $0x4c] ss:$12 sps:$4 sm:$0xff]   ;;  %v5496_v16 = vld [vmem:[%s5307_s25 + $0x110] ss:$12 sps:$4 sm:$0xff]   ;;  %v5501_v17 = vld [vmem:[%s5307_s25 + $0x128] ss:$12 sps:$4 sm:$0xff]  }
  0x6d   : > { %4104 = vmatmul.mubr.msk.bf16.vlgmr.msra.gmra.mrb[0].mxu0 %vm497_vm1, %v5349_v49  ;;  %4422 = vmatpush3.bf16.msra.mxu1 %v4834_v50  ;;  %v5509_v18 = vld [vmem:[%s5307_s25 + $0x13c] ss:$12 sps:$4 sm:$0xff]   ;;  %v5515_v19 = vld [vmem:[%s5307_s25 + $0x140] ss:$12 sps:$4 sm:$0xff]   ;;  %v5520_v20 = vld [vmem:[%s5307_s25 + $0x138] ss:$12 sps:$4 sm:$0xff]  }
  0x6e   : > { %642 = vmatpush1.bf16.msra.mxu0 %v4831_v51  ;;  %4423 = vmatprep.subr.bf16.mxu1 %v5002_v36  ;;  %v5529_v21 = vld [vmem:[%s5307_s25 + $0xb0] ss:$12 sps:$4 sm:$0xff]   ;;  %v5540_v22 = vld [vmem:[%s5307_s25 + $0xc8] ss:$12 sps:$4 sm:$0xff]   ;;  %v5553_v24 = vld [vmem:[%s5307_s25 + $0xe0] ss:$12 sps:$4 sm:$0xff]  }
  0x6f   : > { %643 = vmatprep.subr.bf16.mxu0 %v5357_v52  ;;  %4427 = vmatprep.mubr.msk.bf16.mxu1 %vm5003_vm0, %v5002_v36  ;;  %v5546_v23 = vld [vmem:[%s5307_s25 + $0xdc] ss:$12 sps:$4 sm:$0xff]   ;;  %v5558_v25 = vld [vmem:[%s5307_s25 + $0xd8] ss:$12 sps:$4 sm:$0xff]   ;;  %v4883_v30 = vld [vmem:[%s5307_s25 + $0x60] ss:$12 sps:$4 sm:$0xff]  }
  0x70   : > { %673 = vmatprep.mubr.bf16.mxu0 %v5004_v37  ;;  %v4881_v26 = vld [vmem:[%s5307_s25 + $0x38] ss:$12 sps:$4 sm:$0xff]   ;;  %v4882_v27 = vld [vmem:[%s5307_s25 + $0x50] ss:$12 sps:$4 sm:$0xff]   ;;  %v4886_v29 = vld [vmem:[%s5307_s25 + $0x68] ss:$12 sps:$4 sm:$0xff]  }
  0x71   : > { %4424 = vmatpush3.bf16.msra.mxu1 %v4838_v53  ;;  %v4885_v28 = vld [vmem:[%s5307_s25 + $0x64] ss:$12 sps:$4 sm:$0xff]   ;;  %v5581_v31 = vld [vmem:[%s5307_s25 + $0x128] ss:$12 sps:$4 sm:$0xff]   ;;  %v5591_v32 = vld [vmem:[%s5307_s25 + $0x140] ss:$12 sps:$4 sm:$0xff]  }
  0x72   : > { %644 = vmatpush1.bf16.msra.mxu0 %v5366_v54  ;;  %4425 = vmatprep.subr.bf16.mxu1 %v5002_v36  ;;  %v5597_v33 = vld [vmem:[%s5307_s25 + $0x154] ss:$12 sps:$4 sm:$0xff]   ;;  %v5604_v34 = vld [vmem:[%s5307_s25 + $0x158] ss:$12 sps:$4 sm:$0xff]   ;;  %v5609_v35 = vld [vmem:[%s5307_s25 + $0x150] ss:$12 sps:$4 sm:$0xff]  }
  0x73   : > { %645 = vmatprep.subr.bf16.mxu0 %v5370_v55  ;;  %v5651_v38 = vld [vmem:[%s5307_s25 + $0x16c] ss:$12 sps:$4 sm:$0xff]   ;;  %v5681_v48 = vld [vmem:[%s5307_s25 + $0x19c] ss:$12 sps:$4 sm:$0xff]   ;;  %s4757_s26 = smul.u32 (%p5073_p6), 12, %s4988_s15 }
  0x74   : > { %v5688_v50 = vld [vmem:[%s5307_s25 + $0x1a0] ss:$12 sps:$4 sm:$0xff]   ;;  %v5693_v51 = vld [vmem:[%s5307_s25 + $0x198] ss:$12 sps:$4 sm:$0xff]  }
  0x75   : > { %4426 = vmatpush3.bf16.msra.mxu1 %v4842_v56  ;;  %v5760_v53 = vld [vmem:[%s5307_s25 + $0x1b8] ss:$12 sps:$4 sm:$0xff]   ;;  %v5832_v56 = vld [vmem:[%s5307_s25 + $0x1d0] ss:$12 sps:$4 sm:$0xff]  }
  0x76   : > { %646 = vmatpush1.bf16.msra.mxu0 %v5379_v57  ;;  %4431 = vmatprep.subr.bf16.mxu1 %v5002_v36 }
  0x77   : > { %796 = vmatprep.subr.bf16.mxu0 %v5383_v58 }
  0x78   : > { %4428 = vmatmul.mubr.msk.bf16.vlgmr.msra.gmra.mrb[4].mxu1 %vm497_vm1, %v5388_v59 }
  0x79   : > { %4116 = vmatmul.mubr.msk.bf16.vlgmr.msra.gmra.mrb[0].mxu0 %vm497_vm1, %v5388_v59  ;;  %4432 = vmatpush3.bf16.msra.mxu1 %v5391_v60 }
  0x7a   : > { %797 = vmatpush1.bf16.msra.mxu0 %v5396_v61  ;;  %4433 = vmatprep.subr.bf16.mxu1 %v5002_v36 }
  0x7b   : > { %798 = vmatprep.subr.bf16.mxu0 %v5400_v62  ;;  %4437 = vmatprep.mubr.msk.bf16.mxu1 %vm5003_vm0, %v5002_v36 }
  0x7c   : > { %828 = vmatprep.mubr.bf16.mxu0 %v5004_v37 }
  0x7d   : > { %4434 = vmatpush3.bf16.msra.mxu1 %v5408_v63 }
  0x7e   : > { %799 = vmatpush1.bf16.msra.mxu0 %v5413_v0  ;;  %4435 = vmatprep.subr.bf16.mxu1 %v5002_v36 }
  0x7f   : > { %800 = vmatprep.subr.bf16.mxu0 %v5417_v1 }
  0x81   : > { %4436 = vmatpush3.bf16.msra.mxu1 %v5424_v2 }
  0x82   : > { %801 = vmatpush1.bf16.msra.mxu0 %v5429_v3  ;;  %4441 = vmatprep.subr.bf16.mxu1 %v5002_v36 }
  0x83   : > { %980 = vmatprep.subr.bf16.mxu0 %v5321_v42 }
  0x84   : > { %4438 = vmatmul.mubr.msk.bf16.vlgmr.msra.gmra.mrb[8].mxu1 %vm497_vm1, %v5435_v4 }
  0x85   : > { %4130 = vmatmul.mubr.msk.bf16.vlgmr.msra.gmra.mrb[0].mxu0 %vm497_vm1, %v5435_v4  ;;  %4442 = vmatpush3.bf16.msra.mxu1 %v5439_v5 }
  0x86   : > { %981 = vmatpush1.bf16.msra.mxu0 %v5329_v44  ;;  %4443 = vmatprep.subr.bf16.mxu1 %v5002_v36 }
  0x87   : > { %982 = vmatprep.subr.bf16.mxu0 %v5333_v45  ;;  %4447 = vmatprep.mubr.msk.bf16.mxu1 %vm5003_vm0, %v5002_v36 }
  0x88   : > { %1012 = vmatprep.mubr.bf16.mxu0 %v5004_v37 }
  0x89   : > { %4444 = vmatpush3.bf16.msra.mxu1 %v5450_v6 }
  0x8a   : > { %983 = vmatpush1.bf16.msra.mxu0 %v5342_v47  ;;  %4445 = vmatprep.subr.bf16.mxu1 %v5002_v36 }
  0x8b   : > { %984 = vmatprep.subr.bf16.mxu0 %v5456_v7 }
  0x8d   : > { %4446 = vmatpush3.bf16.msra.mxu1 %v5463_v8 }
  0x8e   : > { %985 = vmatpush1.bf16.msra.mxu0 %v5468_v9  ;;  %4451 = vmatprep.subr.bf16.mxu1 %v5002_v36 }
  0x8f   : > { %1112 = vmatprep.subr.bf16.mxu0 %v5357_v52  ;;  %v5753_v52 = vld [vmem:[%s5307_s25 + $0x1b4] ss:$12 sps:$4 sm:$0xff]  }
  0x90   : > { %4448 = vmatmul.mubr.msk.bf16.vlgmr.msra.gmra.mrb[12].mxu1 %vm497_vm1, %v5349_v49 }
  0x91   : > { %4141 = vmatmul.mubr.msk.bf16.vlgmr.msra.gmra.mrb[4].mxu0 %vm497_vm1, %v5349_v49  ;;  %4452 = vmatpush3.bf16.msra.mxu1 %v4863_v10  ;;  %v4920_v10 = vld [vmem:[%s5307_s25 + $0x1e8] ss:$12 sps:$4 sm:$0xff]  }
  0x92   : > { %1113 = vmatpush1.bf16.msra.mxu0 %v5366_v54  ;;  %4453 = vmatprep.subr.bf16.mxu1 %v5002_v36  ;;  %v5765_v54 = vld [vmem:[%s5307_s25 + $0x1b0] ss:$12 sps:$4 sm:$0xff]  }
  0x93   : > { %1114 = vmatprep.subr.bf16.mxu0 %v5370_v55  ;;  %4457 = vmatprep.mubr.msk.bf16.mxu1 %vm5003_vm0, %v5002_v36 }
  0x94   : > { %1144 = vmatprep.mubr.bf16.mxu0 %v5004_v37 }
  0x95   : > { %4454 = vmatpush3.bf16.msra.mxu1 %v4864_v12  ;;  %v4917_v12 = vld [vmem:[%s5307_s25 + $0x1e0] ss:$12 sps:$4 sm:$0xff]  }
  0x96   : > { %1115 = vmatpush1.bf16.msra.mxu0 %v5379_v57  ;;  %4455 = vmatprep.subr.bf16.mxu1 %v5002_v36 }
  0x97   : > { %1116 = vmatprep.subr.bf16.mxu0 %v4867_v13 }
  0x99   : > { %4456 = vmatpush3.bf16.msra.mxu1 %v4868_v14  ;;  %v5894_v14 = vld [vmem:[%s5307_s25 + $0x1f8] ss:$12 sps:$4 sm:$0xff]  }
  0x9a   : > { %1117 = vmatpush1.bf16.msra.mxu0 %v4865_v15  ;;  %4461 = vmatprep.subr.bf16.mxu1 %v5002_v36 }
  0x9b   : > { %1256 = vmatprep.subr.bf16.mxu0 %v5400_v62 }
  0x9c   : > { %4458 = vmatmul.mubr.msk.bf16.vlgmr.msra.gmra.mrb[16].mxu1 %vm497_vm1, %v5388_v59 }
  0x9d   : > { %4152 = vmatmul.mubr.msk.bf16.vlgmr.msra.gmra.mrb[4].mxu0 %vm497_vm1, %v5388_v59  ;;  %4462 = vmatpush3.bf16.msra.mxu1 %v5496_v16 }
  0x9e   : > { %1257 = vmatpush1.bf16.msra.mxu0 %v5413_v0  ;;  %4463 = vmatprep.subr.bf16.mxu1 %v5002_v36 }
  0x9f   : > { %1258 = vmatprep.subr.bf16.mxu0 %v5417_v1  ;;  %4467 = vmatprep.mubr.msk.bf16.mxu1 %vm5003_vm0, %v5002_v36 }
  0xa0   : > { %1288 = vmatprep.mubr.bf16.mxu0 %v5004_v37 }
  0xa1   : > { %4464 = vmatpush3.bf16.msra.mxu1 %v5501_v17 }
  0xa2   : > { %1259 = vmatpush1.bf16.msra.mxu0 %v5429_v3  ;;  %4465 = vmatprep.subr.bf16.mxu1 %v5002_v36 }
  0xa3   : > { %1260 = vmatprep.subr.bf16.mxu0 %v5509_v18 }
  0xa5   : > { %4466 = vmatpush3.bf16.msra.mxu1 %v5515_v19 }
  0xa6   : > { %1261 = vmatpush1.bf16.msra.mxu0 %v5520_v20  ;;  %4471 = vmatprep.subr.bf16.mxu1 %v5002_v36 }
  0xa7   : > { %1436 = vmatprep.subr.bf16.mxu0 %v5333_v45 }
  0xa8   : > { %4468 = vmatmul.mubr.msk.bf16.vlgmr.msra.gmra.mrb[20].mxu1 %vm497_vm1, %v5435_v4 }
  0xa9   : > { %4163 = vmatmul.mubr.msk.bf16.vlgmr.msra.gmra.mrb[4].mxu0 %vm497_vm1, %v5435_v4  ;;  %4472 = vmatpush3.bf16.msra.mxu1 %v5529_v21 }
  0xaa   : > { %1437 = vmatpush1.bf16.msra.mxu0 %v5342_v47  ;;  %4473 = vmatprep.subr.bf16.mxu1 %v5002_v36 }
  0xab   : > { %1438 = vmatprep.subr.bf16.mxu0 %v5456_v7  ;;  %4477 = vmatprep.mubr.msk.bf16.mxu1 %vm5003_vm0, %v5002_v36 }
  0xac   : > { %1468 = vmatprep.mubr.bf16.mxu0 %v5004_v37 }
  0xad   : > { %4474 = vmatpush3.bf16.msra.mxu1 %v5540_v22 }
  0xae   : > { %1439 = vmatpush1.bf16.msra.mxu0 %v5468_v9  ;;  %4475 = vmatprep.subr.bf16.mxu1 %v5002_v36 }
  0xaf   : > { %1440 = vmatprep.subr.bf16.mxu0 %v5546_v23 }
  0xb1   : > { %4476 = vmatpush3.bf16.msra.mxu1 %v5553_v24 }
  0xb2   : > { %1441 = vmatpush1.bf16.msra.mxu0 %v5558_v25  ;;  %4481 = vmatprep.subr.bf16.mxu1 %v5002_v36 }
  0xb3   : > { %1568 = vmatprep.subr.bf16.mxu0 %v5370_v55  ;;  %v5825_v55 = vld [vmem:[%s5307_s25 + $0x1cc] ss:$12 sps:$4 sm:$0xff]  }
  0xb4   : > { %4478 = vmatmul.mubr.msk.bf16.vlgmr.msra.gmra.mrb[24].mxu1 %vm497_vm1, %v5349_v49 }
  0xb5   : > { %4174 = vmatmul.mubr.msk.bf16.vlgmr.msra.gmra.mrb[8].mxu0 %vm497_vm1, %v5349_v49  ;;  %4482 = vmatpush3.bf16.msra.mxu1 %v4881_v26 }
  0xb6   : > { %1569 = vmatpush1.bf16.msra.mxu0 %v5379_v57  ;;  %4483 = vmatprep.subr.bf16.mxu1 %v5002_v36  ;;  %v5837_v57 = vld [vmem:[%s5307_s25 + $0x1c8] ss:$12 sps:$4 sm:$0xff]  }
  0xb7   : > { %1570 = vmatprep.subr.bf16.mxu0 %v4867_v13  ;;  %4487 = vmatprep.mubr.msk.bf16.mxu1 %vm5003_vm0, %v5002_v36  ;;  %v5885_v13 = vld [vmem:[%s5307_s25 + $0x1fc] ss:$12 sps:$4 sm:$0xff]  }
  0xb8   : > { %1600 = vmatprep.mubr.bf16.mxu0 %v5004_v37 }
  0xb9   : > { %4484 = vmatpush3.bf16.msra.mxu1 %v4882_v27 }
  0xba   : > { %1571 = vmatpush1.bf16.msra.mxu0 %v4865_v15  ;;  %4485 = vmatprep.subr.bf16.mxu1 %v5002_v36  ;;  %v5898_v15 = vld [vmem:[%s5307_s25 + $0x214] ss:$12 sps:$4 sm:$0xff]  }
  0xbb   : > { %1572 = vmatprep.subr.bf16.mxu0 %v4885_v28 }
  0xbd   : > { %4486 = vmatpush3.bf16.msra.mxu1 %v4886_v29 }
  0xbe   : > { %1573 = vmatpush1.bf16.msra.mxu0 %v4883_v30  ;;  %4491 = vmatprep.subr.bf16.mxu1 %v5002_v36 }
  0xbf   : > { %1712 = vmatprep.subr.bf16.mxu0 %v5417_v1 }
  0xc0   : > { %4488 = vmatmul.mubr.msk.bf16.vlgmr.msra.gmra.mrb[28].mxu1 %vm497_vm1, %v5388_v59 }
  0xc1   : > { %4185 = vmatmul.mubr.msk.bf16.vlgmr.msra.gmra.mrb[8].mxu0 %vm497_vm1, %v5388_v59  ;;  %4492 = vmatpush3.bf16.msra.mxu1 %v5581_v31 }
  0xc2   : > { %1713 = vmatpush1.bf16.msra.mxu0 %v5429_v3  ;;  %4493 = vmatprep.subr.bf16.mxu1 %v5002_v36 }
  0xc3   : > { %1714 = vmatprep.subr.bf16.mxu0 %v5509_v18  ;;  %4497 = vmatprep.mubr.msk.bf16.mxu1 %vm5003_vm0, %v5002_v36 }
  0xc4   : > { %1744 = vmatprep.mubr.bf16.mxu0 %v5004_v37 }
  0xc5   : > { %4494 = vmatpush3.bf16.msra.mxu1 %v5591_v32 }
  0xc6   : > { %1715 = vmatpush1.bf16.msra.mxu0 %v5520_v20  ;;  %4495 = vmatprep.subr.bf16.mxu1 %v5002_v36 }
  0xc7   : > { %1716 = vmatprep.subr.bf16.mxu0 %v5597_v33 }
  0xc9   : > { %4496 = vmatpush3.bf16.msra.mxu1 %v5604_v34 }
  0xca   : > { %1717 = vmatpush1.bf16.msra.mxu0 %v5609_v35  ;;  %4501 = vmatprep.subr.bf16.mxu1 %v5002_v36 }
  0xcb   : > { %1820 = vmatprep.subr.bf16.mxu0 %v5383_v58 }
  0xcc   : > { %4498 = vmatmul.mubr.msk.bf16.vlgmr.msra.gmra.mrb[32].mxu1 %vm497_vm1, %v5435_v4 }
  0xcd   : > { %4196 = vmatmul.mubr.msk.bf16.vlgmr.msra.gmra.mrb[8].mxu0 %vm497_vm1, %v5435_v4  ;;  %4502 = vmatpush3.bf16.msra.mxu1 %v5391_v60 }
  0xce   : > { %1821 = vmatpush1.bf16.msra.mxu0 %v5396_v61  ;;  %4503 = vmatprep.subr.bf16.mxu1 %v5002_v36 }
  0xcf   : > { %1822 = vmatprep.subr.bf16.mxu0 %v5400_v62  ;;  %4507 = vmatprep.mubr.msk.bf16.mxu1 %vm5003_vm0, %v5002_v36 }
  0xd0   : > { %1852 = vmatprep.mubr.bf16.mxu0 %v5004_v37 }
  0xd1   : > { %4504 = vmatpush3.bf16.msra.mxu1 %v5408_v63 }
  0xd2   : > { %1823 = vmatpush1.bf16.msra.mxu0 %v5413_v0  ;;  %4505 = vmatprep.subr.bf16.mxu1 %v5002_v36 }
  0xd3   : > { %1824 = vmatprep.subr.bf16.mxu0 %v5417_v1 }
  0xd5   : > { %4506 = vmatpush3.bf16.msra.mxu1 %v5424_v2 }
  0xd6   : > { %1825 = vmatpush1.bf16.msra.mxu0 %v5429_v3  ;;  %4511 = vmatprep.subr.bf16.mxu1 %v5002_v36 }
  0xd7   : > { %1904 = vmatprep.subr.bf16.mxu0 %v5310_v39  ;;  %v5655_v39 = vld [vmem:[%s5307_s25 + $0x170] ss:$12 sps:$4 sm:$0xff]  }
  0xd8   : > { %4508 = vmatmul.mubr.msk.bf16.vlgmr.msra.gmra.mrb[36].mxu1 %vm497_vm1, %v5349_v49 }
  0xd9   : > { %4198 = vmatmul.mubr.msk.bf16.vlgmr.msra.gmra.mrb[12].mxu0 %vm497_vm1, %v5349_v49  ;;  %4512 = vmatpush3.bf16.msra.mxu1 %v5313_v40  ;;  %v5660_v40 = vld [vmem:[%s5307_s25 + $0x168] ss:$12 sps:$4 sm:$0xff]  }
  0xda   : > { %1905 = vmatpush1.bf16.msra.mxu0 %v5317_v41  ;;  %4513 = vmatprep.subr.bf16.mxu1 %v5002_v36  ;;  %v5664_v41 = vld [vmem:[%s5307_s25 + $0x184] ss:$12 sps:$4 sm:$0xff]  }
  0xdb   : > { %1906 = vmatprep.subr.bf16.mxu0 %v5321_v42  ;;  %4517 = vmatprep.mubr.msk.bf16.mxu1 %vm5003_vm0, %v5002_v36 }
  0xdc   : > { %1936 = vmatprep.mubr.bf16.mxu0 %v5004_v37 }
  0xdd   : > { %4514 = vmatpush3.bf16.msra.mxu1 %v5326_v43  ;;  %v5672_v43 = vld [vmem:[%s5307_s25 + $0x188] ss:$12 sps:$4 sm:$0xff]  }
  0xde   : > { %1907 = vmatpush1.bf16.msra.mxu0 %v5329_v44  ;;  %4515 = vmatprep.subr.bf16.mxu1 %v5002_v36 }
  0xdf   : > { %1908 = vmatprep.subr.bf16.mxu0 %v5333_v45 }
  0xe1   : > { %4516 = vmatpush3.bf16.msra.mxu1 %v5337_v46  ;;  %v5677_v46 = vld [vmem:[%s5307_s25 + $0x180] ss:$12 sps:$4 sm:$0xff]  }
  0xe2   : > { %1909 = vmatpush1.bf16.msra.mxu0 %v5342_v47  ;;  %4521 = vmatprep.subr.bf16.mxu1 %v5002_v36 }
  0xe3   : > { %2048 = vmatprep.subr.bf16.mxu0 %v5651_v38 }
  0xe4   : > { %4518 = vmatmul.mubr.msk.bf16.vlgmr.msra.gmra.mrb[40].mxu1 %vm497_vm1, %v5388_v59 }
  0xe5   : > { %4200 = vmatmul.mubr.msk.bf16.vlgmr.msra.gmra.mrb[12].mxu0 %vm497_vm1, %v5388_v59  ;;  %4522 = vmatpush3.bf16.msra.mxu1 %v5655_v39 }
  0xe6   : > { %2049 = vmatpush1.bf16.msra.mxu0 %v5660_v40  ;;  %4523 = vmatprep.subr.bf16.mxu1 %v5002_v36 }
  0xe7   : > { %2050 = vmatprep.subr.bf16.mxu0 %v5664_v41  ;;  %4527 = vmatprep.mubr.msk.bf16.mxu1 %vm5003_vm0, %v5002_v36 }
  0xe8   : > { %2080 = vmatprep.mubr.bf16.mxu0 %v5004_v37 }
  0xe9   : > { %4524 = vmatpush3.bf16.msra.mxu1 %v5672_v43 }
  0xea   : > { %2051 = vmatpush1.bf16.msra.mxu0 %v5677_v46  ;;  %4525 = vmatprep.subr.bf16.mxu1 %v5002_v36 }
  0xeb   : > { %2052 = vmatprep.subr.bf16.mxu0 %v5681_v48 }
  0xed   : > { %4526 = vmatpush3.bf16.msra.mxu1 %v5688_v50 }
  0xee   : > { %2053 = vmatpush1.bf16.msra.mxu0 %v5693_v51  ;;  %4531 = vmatprep.subr.bf16.mxu1 %v5002_v36 }
  0xef   : > { %2156 = vmatprep.subr.bf16.mxu0 %v5400_v62 }
  0xf0   : > { %4528 = vmatmul.mubr.msk.bf16.vlgmr.msra.gmra.mrb[44].mxu1 %vm497_vm1, %v5435_v4 }
  0xf1   : > { %4211 = vmatmul.mubr.msk.bf16.vlgmr.msra.gmra.mrb[12].mxu0 %vm497_vm1, %v5435_v4  ;;  %4532 = vmatpush3.bf16.msra.mxu1 %v5496_v16 }
  0xf2   : > { %2157 = vmatpush1.bf16.msra.mxu0 %v5413_v0  ;;  %4533 = vmatprep.subr.bf16.mxu1 %v5002_v36 }
  0xf3   : > { %2158 = vmatprep.subr.bf16.mxu0 %v5417_v1  ;;  %4537 = vmatprep.mubr.msk.bf16.mxu1 %vm5003_vm0, %v5002_v36 }
  0xf4   : > { %2188 = vmatprep.mubr.bf16.mxu0 %v5004_v37 }
  0xf5   : > { %4534 = vmatpush3.bf16.msra.mxu1 %v5501_v17 }
  0xf6   : > { %2159 = vmatpush1.bf16.msra.mxu0 %v5429_v3  ;;  %4535 = vmatprep.subr.bf16.mxu1 %v5002_v36 }
  0xf7   : > { %2160 = vmatprep.subr.bf16.mxu0 %v5509_v18 }
  0xf9   : > { %4536 = vmatpush3.bf16.msra.mxu1 %v5515_v19 }
  0xfa   : > { %2161 = vmatpush1.bf16.msra.mxu0 %v5520_v20  ;;  %4541 = vmatprep.subr.bf16.mxu1 %v5002_v36 }
  0xfb   : > { %2240 = vmatprep.subr.bf16.mxu0 %v5321_v42  ;;  %v5736_v42 = vld [vmem:[%s5307_s25 + $0x188] ss:$12 sps:$4 sm:$0xff]  }
  0xfc   : > { %4538 = vmatmul.mubr.msk.bf16.vlgmr.msra.gmra.mrb[48].mxu1 %vm497_vm1, %v5349_v49 }
  0xfd   : > { %4213 = vmatmul.mubr.msk.bf16.vlgmr.msra.gmra.mrb[16].mxu0 %vm497_vm1, %v5349_v49  ;;  %4542 = vmatpush3.bf16.msra.mxu1 %v5439_v5 }
  0xfe   : > { %2241 = vmatpush1.bf16.msra.mxu0 %v5329_v44  ;;  %4543 = vmatprep.subr.bf16.mxu1 %v5002_v36  ;;  %v5747_v44 = vld [vmem:[%s5307_s25 + $0x1a0] ss:$12 sps:$4 sm:$0xff]  }
  0xff   : > { %2242 = vmatprep.subr.bf16.mxu0 %v5333_v45  ;;  %4547 = vmatprep.mubr.msk.bf16.mxu1 %vm5003_vm0, %v5002_v36 }
 0x100   : > { %2272 = vmatprep.mubr.bf16.mxu0 %v5004_v37 }
 0x101   : > { %4544 = vmatpush3.bf16.msra.mxu1 %v5450_v6 }
 0x102   : > { %2243 = vmatpush1.bf16.msra.mxu0 %v5342_v47  ;;  %4545 = vmatprep.subr.bf16.mxu1 %v5002_v36 }
 0x103   : > { %2244 = vmatprep.subr.bf16.mxu0 %v5456_v7 }
 0x105   : > { %4546 = vmatpush3.bf16.msra.mxu1 %v5463_v8 }
 0x106   : > { %2245 = vmatpush1.bf16.msra.mxu0 %v5468_v9  ;;  %4551 = vmatprep.subr.bf16.mxu1 %v5002_v36 }
 0x107   : > { %2384 = vmatprep.subr.bf16.mxu0 %v5664_v41 }
 0x108   : > { %4548 = vmatmul.mubr.msk.bf16.vlgmr.msra.gmra.mrb[52].mxu1 %vm497_vm1, %v5388_v59 }
 0x109   : > { %4215 = vmatmul.mubr.msk.bf16.vlgmr.msra.gmra.mrb[16].mxu0 %vm497_vm1, %v5388_v59  ;;  %4552 = vmatpush3.bf16.msra.mxu1 %v5736_v42 }
 0x10a   : > { %2385 = vmatpush1.bf16.msra.mxu0 %v5677_v46  ;;  %4553 = vmatprep.subr.bf16.mxu1 %v5002_v36 }
 0x10b   : > { %2386 = vmatprep.subr.bf16.mxu0 %v5681_v48  ;;  %4557 = vmatprep.mubr.msk.bf16.mxu1 %vm5003_vm0, %v5002_v36 }
 0x10c   : > { %2416 = vmatprep.mubr.bf16.mxu0 %v5004_v37 }
 0x10d   : > { %4554 = vmatpush3.bf16.msra.mxu1 %v5747_v44 }
 0x10e   : > { %2387 = vmatpush1.bf16.msra.mxu0 %v5693_v51  ;;  %4555 = vmatprep.subr.bf16.mxu1 %v5002_v36 }
 0x10f   : > { %2388 = vmatprep.subr.bf16.mxu0 %v5753_v52 }
 0x111   : > { %4556 = vmatpush3.bf16.msra.mxu1 %v5760_v53 }
 0x112   : > { %2389 = vmatpush1.bf16.msra.mxu0 %v5765_v54  ;;  %4561 = vmatprep.subr.bf16.mxu1 %v5002_v36 }
 0x113   : > { %2492 = vmatprep.subr.bf16.mxu0 %v5417_v1 }
 0x114   : > { %4558 = vmatmul.mubr.msk.bf16.vlgmr.msra.gmra.mrb[56].mxu1 %vm497_vm1, %v5435_v4 }
 0x115   : > { %4226 = vmatmul.mubr.msk.bf16.vlgmr.msra.gmra.mrb[16].mxu0 %vm497_vm1, %v5435_v4  ;;  %4562 = vmatpush3.bf16.msra.mxu1 %v5581_v31 }
 0x116   : > { %2493 = vmatpush1.bf16.msra.mxu0 %v5429_v3  ;;  %4563 = vmatprep.subr.bf16.mxu1 %v5002_v36 }
 0x117   : > { %2494 = vmatprep.subr.bf16.mxu0 %v5509_v18  ;;  %4567 = vmatprep.mubr.msk.bf16.mxu1 %vm5003_vm0, %v5002_v36 }
 0x118   : > { %2524 = vmatprep.mubr.bf16.mxu0 %v5004_v37 }
 0x119   : > { %4564 = vmatpush3.bf16.msra.mxu1 %v5591_v32 }
 0x11a   : > { %2495 = vmatpush1.bf16.msra.mxu0 %v5520_v20  ;;  %4565 = vmatprep.subr.bf16.mxu1 %v5002_v36 }
 0x11b   : > { %2496 = vmatprep.subr.bf16.mxu0 %v5597_v33 }
 0x11d   : > { %4566 = vmatpush3.bf16.msra.mxu1 %v5604_v34 }
 0x11e   : > { %2497 = vmatpush1.bf16.msra.mxu0 %v5609_v35  ;;  %4571 = vmatprep.subr.bf16.mxu1 %v5002_v36 }
 0x11f   : > { %2576 = vmatprep.subr.bf16.mxu0 %v5333_v45  ;;  %v5808_v45 = vld [vmem:[%s5307_s25 + $0x1a0] ss:$12 sps:$4 sm:$0xff]  }
 0x120   : > { %4568 = vmatmul.mubr.msk.bf16.vlgmr.msra.gmra.mrb[60].mxu1 %vm497_vm1, %v5349_v49 }
 0x121   : > { %4228 = vmatmul.mubr.msk.bf16.vlgmr.msra.gmra.mrb[20].mxu0 %vm497_vm1, %v5349_v49  ;;  %4572 = vmatpush3.bf16.msra.mxu1 %v5529_v21  ;;  %v4928_v21 = vld [vmem:[%s5307_s25 + $0x218] ss:$12 sps:$4 sm:$0xff]  }
 0x122   : > { %2577 = vmatpush1.bf16.msra.mxu0 %v5342_v47  ;;  %4573 = vmatprep.subr.bf16.mxu1 %v5002_v36  ;;  %v5819_v47 = vld [vmem:[%s5307_s25 + $0x1b8] ss:$12 sps:$4 sm:$0xff]  }
 0x123   : > { %2578 = vmatprep.subr.bf16.mxu0 %v5456_v7  ;;  %4577 = vmatprep.mubr.msk.bf16.mxu1 %vm5003_vm0, %v5002_v36 }
 0x124   : > { %2608 = vmatprep.mubr.bf16.mxu0 %v5004_v37 }
 0x125   : > { %4574 = vmatpush3.bf16.msra.mxu1 %v5540_v22 }
 0x126   : > { %2579 = vmatpush1.bf16.msra.mxu0 %v5468_v9  ;;  %4575 = vmatprep.subr.bf16.mxu1 %v5002_v36 }
 0x127   : > { %2580 = vmatprep.subr.bf16.mxu0 %v5546_v23 }
 0x129   : > { %4576 = vmatpush3.bf16.msra.mxu1 %v5553_v24 }
 0x12a   : > { %2581 = vmatpush1.bf16.msra.mxu0 %v5558_v25  ;;  %4581 = vmatprep.subr.bf16.mxu1 %v5002_v36 }
 0x12b   : > { %2720 = vmatprep.subr.bf16.mxu0 %v5681_v48 }
 0x12c   : > { %4578 = vmatmul.mubr.msk.bf16.vlgmr.msra.gmra.mrb[64].mxu1 %vm497_vm1, %v5388_v59 }
 0x12d   : > { %4230 = vmatmul.mubr.msk.bf16.vlgmr.msra.gmra.mrb[20].mxu0 %vm497_vm1, %v5388_v59  ;;  %4582 = vmatpush3.bf16.msra.mxu1 %v5808_v45 }
 0x12e   : > { %2721 = vmatpush1.bf16.msra.mxu0 %v5693_v51  ;;  %4583 = vmatprep.subr.bf16.mxu1 %v5002_v36 }
 0x12f   : > { %2722 = vmatprep.subr.bf16.mxu0 %v5753_v52  ;;  %4587 = vmatprep.mubr.msk.bf16.mxu1 %vm5003_vm0, %v5002_v36 }
 0x130   : > { %2752 = vmatprep.mubr.bf16.mxu0 %v5004_v37 }
 0x131   : > { %4584 = vmatpush3.bf16.msra.mxu1 %v5819_v47 }
 0x132   : > { %2723 = vmatpush1.bf16.msra.mxu0 %v5765_v54  ;;  %4585 = vmatprep.subr.bf16.mxu1 %v5002_v36 }
 0x133   : > { %2724 = vmatprep.subr.bf16.mxu0 %v5825_v55 }
 0x135   : > { %4586 = vmatpush3.bf16.msra.mxu1 %v5832_v56 }
 0x136   : > { %2725 = vmatpush1.bf16.msra.mxu0 %v5837_v57  ;;  %4591 = vmatprep.subr.bf16.mxu1 %v5002_v36 }
 0x137   : > { %2828 = vmatprep.subr.bf16.mxu0 %v5651_v38 }
 0x138   : > { %4588 = vmatmul.mubr.msk.bf16.vlgmr.msra.gmra.mrb[68].mxu1 %vm497_vm1, %v5435_v4 }
 0x139   : > { %4241 = vmatmul.mubr.msk.bf16.vlgmr.msra.gmra.mrb[20].mxu0 %vm497_vm1, %v5435_v4  ;;  %4592 = vmatpush3.bf16.msra.mxu1 %v5655_v39 }
 0x13a   : > { %2829 = vmatpush1.bf16.msra.mxu0 %v5660_v40  ;;  %4593 = vmatprep.subr.bf16.mxu1 %v5002_v36 }
 0x13b   : > { %2830 = vmatprep.subr.bf16.mxu0 %v5664_v41  ;;  %4597 = vmatprep.mubr.msk.bf16.mxu1 %vm5003_vm0, %v5002_v36 }
 0x13c   : > { %2860 = vmatprep.mubr.bf16.mxu0 %v5004_v37 }
 0x13d   : > { %4594 = vmatpush3.bf16.msra.mxu1 %v5672_v43  ;;  %v5947_v43 = vld [vmem:[%s6175_s1 + $0x8] sm:$0xff]  }
 0x13e   : > { %2831 = vmatpush1.bf16.msra.mxu0 %v5677_v46  ;;  %4595 = vmatprep.subr.bf16.mxu1 %v5002_v36 }
 0x13f   : > { %v578_v5 = vpop.f32.mrb[0].mxu1  ;;  %2832 = vmatprep.subr.bf16.mxu0 %v5681_v48 }
 0x140   : > { %v4419_v6 = vpop.f32.mrb[1].mxu1 }
 0x141   : > { %v581_v7 = vpop.f32.mrb[2].mxu1  ;;  %4596 = vmatpush3.bf16.msra.mxu1 %v5688_v50  ;;  %v5966_v50 = vpop.permute.xlu0 %888  ;;  %v4934_v6 = vld [vmem:[%s5307_s25 + $0x230] ss:$12 sps:$4 sm:$0xff]  }
 0x142   : > { %v4420_v8 = vpop.f32.mrb[3].mxu1  ;;  %2833 = vmatpush1.bf16.msra.mxu0 %v5693_v51  ;;  %4601 = vmatprep.subr.bf16.mxu1 %v5002_v36 }
 0x143   : > { %2912 = vmatprep.subr.bf16.mxu0 %v5383_v58  ;;  %v4919_v58 = vld [vmem:[%s5307_s25 + $0x1e4] ss:$12 sps:$4 sm:$0xff]   ;;  %v6000_v8 = vld [vmem:[%s5307_s25 + $0x228] ss:$12 sps:$4 sm:$0xff]  }
 0x144   : > { %4598 = vmatmul.mubr.msk.bf16.vlgmr.msra.gmra.mrb[72].mxu1 %vm497_vm1, %v5349_v49 }
 0x145   : > { %4243 = vmatmul.mubr.msk.bf16.vlgmr.msra.gmra.mrb[24].mxu0 %vm497_vm1, %v5349_v49  ;;  %4602 = vmatpush3.bf16.msra.mxu1 %v5391_v60 }
 0x146   : > { %2913 = vmatpush1.bf16.msra.mxu0 %v5396_v61  ;;  %4603 = vmatprep.subr.bf16.mxu1 %v5002_v36 }
 0x147   : > { %2914 = vmatprep.subr.bf16.mxu0 %v5400_v62  ;;  %4607 = vmatprep.mubr.msk.bf16.mxu1 %vm5003_vm0, %v5002_v36 }
 0x148   : > { %2944 = vmatprep.mubr.bf16.mxu0 %v5004_v37 }
 0x149   : > { %4604 = vmatpush3.bf16.msra.mxu1 %v5408_v63 }
 0x14a   : > { %2915 = vmatpush1.bf16.msra.mxu0 %v5413_v0  ;;  %4605 = vmatprep.subr.bf16.mxu1 %v5002_v36 }
 0x14b   : > { %v718_v49 = vpop.f32.mrb[4].mxu1  ;;  %2916 = vmatprep.subr.bf16.mxu0 %v5417_v1 }
 0x14c   : > { %v719_v60 = vadd.f32 %v718_v49, %v578_v5  ;;  %v4429_v61 = vpop.f32.mrb[5].mxu1 }
 0x14d   : > { %v721_v9 = vpop.f32.mrb[6].mxu1  ;;  %4606 = vmatpush3.bf16.msra.mxu1 %v5424_v2  ;;  %v4924_v2 = vld [vmem:[%s5307_s25 + $0x200] ss:$12 sps:$4 sm:$0xff]  }
 0x14e   : > { %v722_v11 = vadd.f32 %v721_v9, %v581_v7  ;;  %v4430_v63 = vpop.f32.mrb[7].mxu1  ;;  %2917 = vmatpush1.bf16.msra.mxu0 %v5429_v3  ;;  %4611 = vmatprep.subr.bf16.mxu1 %v5002_v36 }
 0x14f   : > { %3056 = vmatprep.subr.bf16.mxu0 %v4919_v58 }
 0x150   : > { %4608 = vmatmul.mubr.msk.bf16.vlgmr.msra.gmra.mrb[76].mxu1 %vm497_vm1, %v5388_v59 }
 0x151   : > { %4245 = vmatmul.mubr.msk.bf16.vlgmr.msra.gmra.mrb[24].mxu0 %vm497_vm1, %v5388_v59  ;;  %4612 = vmatpush3.bf16.msra.mxu1 %v4920_v10  ;;  %v5907_v59 = vld [vmem:[%s5307_s25 + $0x210] ss:$12 sps:$4 sm:$0xff]  }
 0x152   : > { %3057 = vmatpush1.bf16.msra.mxu0 %v4917_v12  ;;  %4613 = vmatprep.subr.bf16.mxu1 %v5002_v36 }
 0x153   : > { %3058 = vmatprep.subr.bf16.mxu0 %v5885_v13  ;;  %4617 = vmatprep.mubr.msk.bf16.mxu1 %vm5003_vm0, %v5002_v36 }
 0x154   : > { %3088 = vmatprep.mubr.bf16.mxu0 %v5004_v37 }
 0x155   : > { %4614 = vmatpush3.bf16.msra.mxu1 %v4924_v2 }
 0x156   : > { %3059 = vmatpush1.bf16.msra.mxu0 %v5894_v14  ;;  %4615 = vmatprep.subr.bf16.mxu1 %v5002_v36 }
 0x157   : > { %v873_v22 = vpop.f32.mrb[8].mxu1  ;;  %3060 = vmatprep.subr.bf16.mxu0 %v5898_v15 }
 0x158   : > { %v5910_v23 = vadd.f32 %v873_v22, %v719_v60  ;;  %v5912_v24 = vpop.f32.mrb[0].mxu0  ;;  %v4439_v25 = vpop.f32.mrb[9].mxu1 }
 0x159   : > { %v5914_v26 = vpop.f32.mrb[1].mxu0  ;;  %v876_v27 = vpop.f32.mrb[10].mxu1  ;;  %4616 = vmatpush3.bf16.msra.mxu1 %v4928_v21  ;;  %v896_v5 = vadd.f32 %v5966_v50, %v5912_v24 }
 0x15a   : > { %v5916_v28 = vadd.f32 %v876_v27, %v722_v11  ;;  %v5918_v29 = vpop.f32.mrb[2].mxu0  ;;  %v4440_v30 = vpop.f32.mrb[11].mxu1  ;;  %3061 = vmatpush1.bf16.msra.mxu0 %v5907_v59  ;;  %4621 = vmatprep.subr.bf16.mxu1 %v5002_v36  ;;  %v898_v7 = vadd.f32 %v5966_v50, %v5910_v23  ;;  %v897_v49 = vadd.f32 %v5966_v50, %v5914_v26 }
 0x15b   : > { %v5922_v38 = vpop.f32.mrb[3].mxu0  ;;  %3164 = vmatprep.subr.bf16.mxu0 %v5664_v41  ;;  %v902_v11 = vmax.f32 %v896_v5, 0.0 }
 0x15c   : > { %4618 = vmatmul.mubr.msk.bf16.vlgmr.msra.gmra.mrb[80].mxu1 %vm497_vm1, %v5435_v4  ;;  %v904_v21 = vmax.f32 %v898_v7, 0.0  ;;  %v903_v27 = vmax.f32 %v897_v49, 0.0 }
 0x15d   : > { %4256 = vmatmul.mubr.msk.bf16.vlgmr.msra.gmra.mrb[24].mxu0 %vm497_vm1, %v5435_v4  ;;  %4622 = vmatpush3.bf16.msra.mxu1 %v5736_v42 }
 0x15e   : > { %3165 = vmatpush1.bf16.msra.mxu0 %v5677_v46  ;;  %4623 = vmatprep.subr.bf16.mxu1 %v5002_v36 }
 0x15f   : > { %3166 = vmatprep.subr.bf16.mxu0 %v5681_v48  ;;  %4627 = vmatprep.mubr.msk.bf16.mxu1 %vm5003_vm0, %v5002_v36 }
 0x160   : > { %3196 = vmatprep.mubr.bf16.mxu0 %v5004_v37 }
 0x161   : > { %4624 = vmatpush3.bf16.msra.mxu1 %v5747_v44 }
 0x162   : > { %3167 = vmatpush1.bf16.msra.mxu0 %v5693_v51  ;;  %4625 = vmatprep.subr.bf16.mxu1 %v5002_v36 }
 0x163   : > { %v1057_v4 = vpop.f32.mrb[12].mxu1  ;;  %3168 = vmatprep.subr.bf16.mxu0 %v5753_v52 }
 0x164   : > { %v4449_v39 = vpop.f32.mrb[13].mxu1 }
 0x165   : > { %v1060_v40 = vpop.f32.mrb[14].mxu1  ;;  %4626 = vmatpush3.bf16.msra.mxu1 %v5760_v53  ;;  %v5989_v53 = vpop.permute.xlu0 %893 }
 0x166   : > { %v4450_v41 = vpop.f32.mrb[15].mxu1  ;;  %3169 = vmatpush1.bf16.msra.mxu0 %v5765_v54  ;;  %4631 = vmatprep.subr.bf16.mxu1 %v5002_v36  ;;  %v899_v58 = vadd.f32 %v5989_v53, %v5918_v29  ;;  %v900_v63 = vadd.f32 %v5989_v53, %v5922_v38  ;;  %v901_v2 = vadd.f32 %v5989_v53, %v5916_v28 }
 0x167   : > { %3248 = vmatprep.subr.bf16.mxu0 %v5400_v62 }
 0x168   : > { %4628 = vmatmul.mubr.msk.bf16.vlgmr.msra.gmra.mrb[84].mxu1 %vm497_vm1, %v5947_v43  ;;  %v905_v29 = vmax.f32 %v899_v58, 0.0  ;;  %v4944_v58 = vld [vmem:[%s5307_s25 + $0x124] ss:$12 sps:$4 sm:$0xff]  }
 0x169   : > { %4258 = vmatmul.mubr.msk.bf16.vlgmr.msra.gmra.mrb[28].mxu0 %vm497_vm1, %v5947_v43  ;;  %4632 = vmatpush3.bf16.msra.mxu1 %v5496_v16 }
 0x16a   : > { %3249 = vmatpush1.bf16.msra.mxu0 %v5413_v0  ;;  %4633 = vmatprep.subr.bf16.mxu1 %v5002_v36 }
 0x16b   : > { %3250 = vmatprep.subr.bf16.mxu0 %v5417_v1  ;;  %4637 = vmatprep.mubr.msk.bf16.mxu1 %vm5003_vm0, %v5002_v36  ;;  %v4929_v1 = vld [vmem:[%s5307_s25 + $0x200] ss:$12 sps:$4 sm:$0xff]  }
 0x16c   : > { %3280 = vmatprep.mubr.bf16.mxu0 %v5004_v37 }
 0x16d   : > { %4634 = vmatpush3.bf16.msra.mxu1 %v5501_v17  ;;  %v4930_v17 = vld [vmem:[%s5307_s25 + $0x218] ss:$12 sps:$4 sm:$0xff]  }
 0x16e   : > { %3251 = vmatpush1.bf16.msra.mxu0 %v5429_v3  ;;  %4635 = vmatprep.subr.bf16.mxu1 %v5002_v36  ;;  %v5974_v3 = vld [vmem:[%s6175_s1] sm:$0xff]  }
 0x16f   : > { %v1189_v62 = vpop.f32.mrb[16].mxu1  ;;  %3252 = vmatprep.subr.bf16.mxu0 %v5509_v18 }
 0x170   : > { %v1190_v0 = vadd.f32 %v1189_v62, %v1057_v4  ;;  %v4459_v16 = vpop.f32.mrb[17].mxu1  ;;  %v6023_v62 = vld [vmem:[%s6175_s1 + $0x10] sm:$0xff]  }
 0x171   : > { %v1192_v46 = vpop.f32.mrb[18].mxu1  ;;  %4636 = vmatpush3.bf16.msra.mxu1 %v5515_v19  ;;  %v5985_v19 = vld [vmem:[%s5307_s25 + $0x22c] ss:$12 sps:$4 sm:$0xff]  }
 0x172   : > { %v1193_v42 = vadd.f32 %v1192_v46, %v1060_v40  ;;  %v4460_v44 = vpop.f32.mrb[19].mxu1  ;;  %3253 = vmatpush1.bf16.msra.mxu0 %v5520_v20  ;;  %4641 = vmatprep.subr.bf16.mxu1 %v5002_v36  ;;  %v907_v46 = vmax.f32 %v901_v2, 0.0 }
 0x173   : > { %3392 = vmatprep.subr.bf16.mxu0 %v5885_v13 }
 0x174   : > { %4638 = vmatmul.mubr.msk.bf16.vlgmr.msra.gmra.mrb[88].mxu1 %vm497_vm1, %v5974_v3 }
 0x175   : > { %4260 = vmatmul.mubr.msk.bf16.vlgmr.msra.gmra.mrb[28].mxu0 %vm497_vm1, %v5974_v3  ;;  %4642 = vmatpush3.bf16.msra.mxu1 %v4929_v1 }
 0x176   : > { %3393 = vmatpush1.bf16.msra.mxu0 %v5894_v14  ;;  %4643 = vmatprep.subr.bf16.mxu1 %v5002_v36 }
 0x177   : > { %3394 = vmatprep.subr.bf16.mxu0 %v5898_v15  ;;  %4647 = vmatprep.mubr.msk.bf16.mxu1 %vm5003_vm0, %v5002_v36 }
 0x178   : > { %3424 = vmatprep.mubr.bf16.mxu0 %v5004_v37 }
 0x179   : > { %4644 = vmatpush3.bf16.msra.mxu1 %v4930_v17 }
 0x17a   : > { %3395 = vmatpush1.bf16.msra.mxu0 %v5907_v59  ;;  %4645 = vmatprep.subr.bf16.mxu1 %v5002_v36 }
 0x17b   : > { %v1333_v60 = vpop.f32.mrb[20].mxu1  ;;  %3396 = vmatprep.subr.bf16.mxu0 %v5985_v19 }
 0x17c   : > { %v1342_v61 = vadd.f32 %v1333_v60, %v1190_v0  ;;  %v1290_v9 = vpop.f32.mrb[4].mxu0  ;;  %v4469_v10 = vpop.f32.mrb[21].mxu1  ;;  %v906_v0 = vmax.f32 %v900_v63, 0.0 }
 0x17d   : > { %v1346_v12 = vadd.f32 %v1290_v9, %v5966_v50  ;;  %v1292_v13 = vpop.f32.mrb[5].mxu0  ;;  %v1336_v14 = vpop.f32.mrb[22].mxu1  ;;  %4646 = vmatpush3.bf16.msra.mxu1 %v4934_v6 }
 0x17e   : > { %v1348_v22 = vadd.f32 %v1342_v61, %v5966_v50  ;;  %v1347_v23 = vadd.f32 %v1292_v13, %v5966_v50  ;;  %v1345_v24 = vadd.f32 %v1336_v14, %v1193_v42  ;;  %v1294_v25 = vpop.f32.mrb[6].mxu0  ;;  %v4470_v26 = vpop.f32.mrb[23].mxu1  ;;  %3397 = vmatpush1.bf16.msra.mxu0 %v6000_v8  ;;  %4651 = vmatprep.subr.bf16.mxu1 %v5002_v36 }
 0x17f   : > { %v1352_v30 = vmax.f32 %v1346_v12, 0.0  ;;  %v1349_v38 = vadd.f32 %v1294_v25, %v5989_v53  ;;  %v1296_v28 = vpop.f32.mrb[7].mxu0  ;;  %3500 = vmatprep.subr.bf16.mxu0 %v5681_v48 }
 0x180   : > { %v1354_v4 = vmax.f32 %v1348_v22, 0.0  ;;  %v1353_v39 = vmax.f32 %v1347_v23, 0.0  ;;  %v1351_v40 = vadd.f32 %v1345_v24, %v5989_v53  ;;  %v1350_v41 = vadd.f32 %v1296_v28, %v5989_v53  ;;  %4648 = vmatmul.mubr.msk.bf16.vlgmr.msra.gmra.mrb[92].mxu1 %vm497_vm1, %v6023_v62 }
 0x181   : > { %v6027_v16 = vmax.f32 %v902_v11, %v1352_v30  ;;  %v1355_v1 = vmax.f32 %v1349_v38, 0.0  ;;  %4271 = vmatmul.mubr.msk.bf16.vlgmr.msra.gmra.mrb[28].mxu0 %vm497_vm1, %v6023_v62  ;;  %4652 = vmatpush3.bf16.msra.mxu1 %v5808_v45 }
 0x182   : > { %v6032_v48 = vmax.f32 %v904_v21, %v1354_v4  ;;  %v6034_v42 = vmax.f32 %v903_v27, %v1353_v39  ;;  %v1357_v44 = vmax.f32 %v1351_v40, 0.0  ;;  %v1356_v17 = vmax.f32 %v1350_v41, 0.0  ;;  %3501 = vmatpush1.bf16.msra.mxu0 %v5693_v51  ;;  %4653 = vmatprep.subr.bf16.mxu1 %v5002_v36 }
 0x183   : > { %v6038_v5 = vmax.f32 %v905_v29, %v1355_v1  ;;  %3502 = vmatprep.subr.bf16.mxu0 %v5753_v52  ;;  %4657 = vmatprep.mubr.msk.bf16.mxu1 %vm5003_vm0, %v5002_v36 }
 0x184   : > { %v6043_v6 = vmax.f32 %v907_v46, %v1357_v44  ;;  %v6045_v45 = vmax.f32 %v906_v0, %v1356_v17  ;;  %3532 = vmatprep.mubr.bf16.mxu0 %v5004_v37 }
 0x185   : > { %4654 = vmatpush3.bf16.msra.mxu1 %v5819_v47 }
 0x186   : > { %3503 = vmatpush1.bf16.msra.mxu0 %v5765_v54  ;;  %4655 = vmatprep.subr.bf16.mxu1 %v5002_v36  ;;  %v4945_v54 = vld [vmem:[%s5307_s25 + $0x120] ss:$12 sps:$4 sm:$0xff]  }
 0x187   : > { %v1513_v51 = vpop.f32.mrb[24].mxu1  ;;  %3504 = vmatprep.subr.bf16.mxu0 %v5825_v55 }
 0x188   : > { %v4479_v52 = vpop.f32.mrb[25].mxu1 }
 0x189   : > { %v1516_v7 = vpop.f32.mrb[26].mxu1  ;;  %4656 = vmatpush3.bf16.msra.mxu1 %v5832_v56 }
 0x18a   : > { %v4480_v49 = vpop.f32.mrb[27].mxu1  ;;  %3505 = vmatpush1.bf16.msra.mxu0 %v5837_v57  ;;  %4661 = vmatprep.subr.bf16.mxu1 %v5002_v36 }
 0x18b   : > { %3584 = vmatprep.subr.bf16.mxu0 %v4944_v58 }
 0x18c   : > { %4658 = vmatmul.mubr.msk.bf16.vlgmr.msra.gmra.mrb[96].mxu1 %vm497_vm1, %v5947_v43 }
 0x18d   : > { %4273 = vmatmul.mubr.msk.bf16.vlgmr.msra.gmra.mrb[32].mxu0 %vm497_vm1, %v5947_v43  ;;  %4662 = vmatpush3.bf16.msra.mxu1 %v5581_v31 }
 0x18e   : > { %3585 = vmatpush1.bf16.msra.mxu0 %v4945_v54  ;;  %4663 = vmatprep.subr.bf16.mxu1 %v5002_v36 }
 0x18f   : > { %3586 = vmatprep.subr.bf16.mxu0 %v5509_v18  ;;  %4667 = vmatprep.mubr.msk.bf16.mxu1 %vm5003_vm0, %v5002_v36  ;;  %v4935_v18 = vld [vmem:[%s5307_s25 + $0x218] ss:$12 sps:$4 sm:$0xff]  }
 0x190   : > { %3616 = vmatprep.mubr.bf16.mxu0 %v5004_v37 }
 0x191   : > { %4664 = vmatpush3.bf16.msra.mxu1 %v5591_v32  ;;  %v4939_v32 = vld [vmem:[%s5307_s25 + $0x244] ss:$12 sps:$4 sm:$0xff]  }
 0x192   : > { %3587 = vmatpush1.bf16.msra.mxu0 %v5520_v20  ;;  %4665 = vmatprep.subr.bf16.mxu1 %v5002_v36  ;;  %v4936_v20 = vld [vmem:[%s5307_s25 + $0x230] ss:$12 sps:$4 sm:$0xff]  }
 0x193   : > { %v1645_v31 = vpop.f32.mrb[28].mxu1  ;;  %3588 = vmatprep.subr.bf16.mxu0 %v5597_v33  ;;  %v4940_v33 = vld [vmem:[%s5307_s25 + $0x248] ss:$12 sps:$4 sm:$0xff]  }
 0x194   : > { %v1646_v47 = vadd.f32 %v1645_v31, %v1513_v51  ;;  %v4489_v55 = vpop.f32.mrb[29].mxu1 }
 0x195   : > { %v1648_v56 = vpop.f32.mrb[30].mxu1  ;;  %4666 = vmatpush3.bf16.msra.mxu1 %v5604_v34  ;;  %v4937_v34 = vld [vmem:[%s5307_s25 + $0x240] ss:$12 sps:$4 sm:$0xff]   ;;  %s4756_s25 = smul.u32 24, %s388_s11 }
 0x196   : > { %v1649_v57 = vadd.f32 %v1648_v56, %v1516_v7  ;;  %v4490_v43 = vpop.f32.mrb[31].mxu1  ;;  %3589 = vmatpush1.bf16.msra.mxu0 %v5609_v35  ;;  %4671 = vmatprep.subr.bf16.mxu1 %v5002_v36  ;;  %s3867_s11 = smul.u32 (%p5073_p6), 3, %s4984_s14 }
 0x197   : > { %3728 = vmatprep.subr.bf16.mxu0 %v5898_v15  ;;  %s409_s12 = scalar_lea.vmem [#allocation3], %s4756_s25 }
 0x198   : > { %4668 = vmatmul.mubr.msk.bf16.vlgmr.msra.gmra.mrb[100].mxu1 %vm497_vm1, %v5974_v3  ;;  %s3869_s28 = sadd.s32 (%p5073_p6), %s4757_s26, %s3867_s11 }
 0x199   : > { %4275 = vmatmul.mubr.msk.bf16.vlgmr.msra.gmra.mrb[32].mxu0 %vm497_vm1, %v5974_v3  ;;  %4672 = vmatpush3.bf16.msra.mxu1 %v4935_v18  ;;  %s4292_s29 = sshll.u32 (%p5073_p6), %s3869_s28, 2 }
 0x19a   : > { %3729 = vmatpush1.bf16.msra.mxu0 %v5907_v59  ;;  %4673 = vmatprep.subr.bf16.mxu1 %v5002_v36  ;;  %s3871_s5 = scalar_lea.vmem (%p5073_p6), %s6177_s3, %s4292_s29 }
 0x19b   : > { %3730 = vmatprep.subr.bf16.mxu0 %v5985_v19  ;;  %4677 = vmatprep.mubr.msk.bf16.mxu1 %vm5003_vm0, %v5002_v36 }
 0x19c   : > { %3760 = vmatprep.mubr.bf16.mxu0 %v5004_v37 }
 0x19d   : > { %4674 = vmatpush3.bf16.msra.mxu1 %v4936_v20 }
 0x19e   : > { %3731 = vmatpush1.bf16.msra.mxu0 %v6000_v8  ;;  %4675 = vmatprep.subr.bf16.mxu1 %v5002_v36 }
 0x19f   : > { %v1789_v35 = vpop.f32.mrb[32].mxu1  ;;  %3732 = vmatprep.subr.bf16.mxu0 %v4939_v32 }
 0x1a0   : > { %v1798_v15 = vadd.f32 %v1789_v35, %v1646_v47  ;;  %v1746_v59 = vpop.f32.mrb[8].mxu0  ;;  %v4499_v3 = vpop.f32.mrb[33].mxu1 }
 0x1a1   : > { %v1802_v19 = vadd.f32 %v1746_v59, %v5966_v50  ;;  %v1748_v60 = vpop.f32.mrb[9].mxu0  ;;  %v1792_v61 = vpop.f32.mrb[34].mxu1  ;;  %4676 = vmatpush3.bf16.msra.mxu1 %v4940_v33 }
 0x1a2   : > { %v1804_v9 = vadd.f32 %v1798_v15, %v5966_v50  ;;  %v1803_v37 = vadd.f32 %v1748_v60, %v5966_v50  ;;  %v1801_v10 = vadd.f32 %v1792_v61, %v1649_v57  ;;  %v1750_v11 = vpop.f32.mrb[10].mxu0  ;;  %v4500_v8 = vpop.f32.mrb[35].mxu1  ;;  %3733 = vmatpush1.bf16.msra.mxu0 %v4937_v34 }
 0x1a3   : > { %v1808_v36 = vmax.f32 %v1802_v19, 0.0  ;;  %v1805_v63 = vadd.f32 %v1750_v11, %v5989_v53  ;;  %v1752_v12 = vpop.f32.mrb[11].mxu0 }
 0x1a4   : > { %v1810_v13 = vmax.f32 %v1804_v9, 0.0  ;;  %v1809_v2 = vmax.f32 %v1803_v37, 0.0  ;;  %v1807_v14 = vadd.f32 %v1801_v10, %v5989_v53  ;;  %v1806_v21 = vadd.f32 %v1752_v12, %v5989_v53  ;;  %4678 = vmatmul.mubr.msk.bf16.vlgmr.msra.gmra.mrb[104].mxu1 %vm497_vm1, %v6023_v62 }
 0x1a5   : > { %v1814_v22 = vmax.f32 %v6027_v16, %v1808_v36  ;;  %v1811_v23 = vmax.f32 %v1805_v63, 0.0  ;;  %4286 = vmatmul.mubr.msk.bf16.vlgmr.msra.gmra.mrb[32].mxu0 %vm497_vm1, %v6023_v62 }
 0x1a6   : > { %v1816_v24 = vmax.f32 %v6032_v48, %v1810_v13  ;;  %v1815_v25 = vmax.f32 %v6034_v42, %v1809_v2  ;;  %v1813_v26 = vmax.f32 %v1807_v14, 0.0  ;;  %v1812_v27 = vmax.f32 %v1806_v21, 0.0 }
 0x1a7   : > { %v1817_v29 = vmax.f32 %v6038_v5, %v1811_v23 }
 0x1a8   : > { %v1819_v30 = vmax.f32 %v6043_v6, %v1813_v26  ;;  %v1818_v38 = vmax.f32 %v6045_v45, %v1812_v27 }
 0x1ab   : > { %v1897_v28 = vpop.f32.mrb[36].mxu1 }
 0x1ac   : > { %v4509_v4 = vpop.f32.mrb[37].mxu1 }
 0x1ad   : > { %v1900_v39 = vpop.f32.mrb[38].mxu1 }
 0x1ae   : > { %v4510_v40 = vpop.f32.mrb[39].mxu1 }
 0x1b7   : > { %v1981_v41 = vpop.f32.mrb[40].mxu1 }
 0x1b8   : > { %v1982_v0 = vadd.f32 %v1981_v41, %v1897_v28  ;;  %v4519_v16 = vpop.f32.mrb[41].mxu1 }
 0x1b9   : > { %v1984_v62 = vpop.f32.mrb[42].mxu1 }
 0x1ba   : > { %v1985_v46 = vadd.f32 %v1984_v62, %v1900_v39  ;;  %v4520_v1 = vpop.f32.mrb[43].mxu1 }
 0x1c3   : > { %v2125_v48 = vpop.f32.mrb[44].mxu1 }
 0x1c4   : > { %v2134_v42 = vadd.f32 %v2125_v48, %v1982_v0  ;;  %v2082_v44 = vpop.f32.mrb[12].mxu0  ;;  %v4529_v17 = vpop.f32.mrb[45].mxu1 }
 0x1c5   : > { %v2138_v5 = vadd.f32 %v2082_v44, %v5966_v50  ;;  %v2084_v51 = vpop.f32.mrb[13].mxu0  ;;  %v2128_v6 = vpop.f32.mrb[46].mxu1 }
 0x1c6   : > { %v2140_v45 = vadd.f32 %v2134_v42, %v5966_v50  ;;  %v2139_v52 = vadd.f32 %v2084_v51, %v5966_v50  ;;  %v2137_v7 = vadd.f32 %v2128_v6, %v1985_v46  ;;  %v2086_v49 = vpop.f32.mrb[14].mxu0  ;;  %v4530_v58 = vpop.f32.mrb[47].mxu1 }
 0x1c7   : > { %v2144_v54 = vmax.f32 %v2138_v5, 0.0  ;;  %v2141_v31 = vadd.f32 %v2086_v49, %v5989_v53  ;;  %v2088_v47 = vpop.f32.mrb[15].mxu0 }
 0x1c8   : > { %v2146_v55 = vmax.f32 %v2140_v45, 0.0  ;;  %v2145_v56 = vmax.f32 %v2139_v52, 0.0  ;;  %v2143_v18 = vadd.f32 %v2137_v7, %v5989_v53  ;;  %v2142_v57 = vadd.f32 %v2088_v47, %v5989_v53 }
 0x1c9   : > { %v2150_v43 = vmax.f32 %v1814_v22, %v2144_v54  ;;  %v2147_v20 = vmax.f32 %v2141_v31, 0.0 }
 0x1ca   : > { %v2152_v32 = vmax.f32 %v1816_v24, %v2146_v55  ;;  %v2151_v33 = vmax.f32 %v1815_v25, %v2145_v56  ;;  %v2149_v34 = vmax.f32 %v2143_v18, 0.0  ;;  %v2148_v35 = vmax.f32 %v2142_v57, 0.0 }
 0x1cb   : > { %v2153_v15 = vmax.f32 %v1817_v29, %v2147_v20 }
 0x1cc   : > { %v2155_v59 = vmax.f32 %v1819_v30, %v2149_v34  ;;  %v2154_v3 = vmax.f32 %v1818_v38, %v2148_v35 }
 0x1cf   : > { %v2233_v19 = vpop.f32.mrb[48].mxu1 }
 0x1d0   : > { %v4539_v60 = vpop.f32.mrb[49].mxu1 }
 0x1d1   : > { %v2236_v61 = vpop.f32.mrb[50].mxu1 }
 0x1d2   : > { %v4540_v9 = vpop.f32.mrb[51].mxu1 }
 0x1db   : > { %v2317_v37 = vpop.f32.mrb[52].mxu1 }
 0x1dc   : > { %v2318_v10 = vadd.f32 %v2317_v37, %v2233_v19  ;;  %v4549_v11 = vpop.f32.mrb[53].mxu1 }
 0x1dd   : > { %v2320_v8 = vpop.f32.mrb[54].mxu1 }
 0x1de   : > { %v2321_v36 = vadd.f32 %v2320_v8, %v2236_v61  ;;  %v4550_v63 = vpop.f32.mrb[55].mxu1 }
 0x1e7   : > { %v2461_v12 = vpop.f32.mrb[56].mxu1 }
 0x1e8   : > { %v2470_v13 = vadd.f32 %v2461_v12, %v2318_v10  ;;  %v2418_v2 = vpop.f32.mrb[16].mxu0  ;;  %v4559_v14 = vpop.f32.mrb[57].mxu1 }
 0x1e9   : > { %v2474_v21 = vadd.f32 %v2418_v2, %v5966_v50  ;;  %v2420_v22 = vpop.f32.mrb[17].mxu0  ;;  %v2464_v23 = vpop.f32.mrb[58].mxu1 }
 0x1ea   : > { %v2476_v24 = vadd.f32 %v2470_v13, %v5966_v50  ;;  %v2475_v25 = vadd.f32 %v2420_v22, %v5966_v50  ;;  %v2473_v26 = vadd.f32 %v2464_v23, %v2321_v36  ;;  %v2422_v27 = vpop.f32.mrb[18].mxu0  ;;  %v4560_v29 = vpop.f32.mrb[59].mxu1 }
 0x1eb   : > { %v2480_v30 = vmax.f32 %v2474_v21, 0.0  ;;  %v2477_v38 = vadd.f32 %v2422_v27, %v5989_v53  ;;  %v2424_v28 = vpop.f32.mrb[19].mxu0 }
 0x1ec   : > { %v2482_v4 = vmax.f32 %v2476_v24, 0.0  ;;  %v2481_v39 = vmax.f32 %v2475_v25, 0.0  ;;  %v2479_v40 = vadd.f32 %v2473_v26, %v5989_v53  ;;  %v2478_v41 = vadd.f32 %v2424_v28, %v5989_v53 }
 0x1ed   : > { %v2486_v0 = vmax.f32 %v2150_v43, %v2480_v30  ;;  %v2483_v16 = vmax.f32 %v2477_v38, 0.0 }
 0x1ee   : > { %v2488_v62 = vmax.f32 %v2152_v32, %v2482_v4  ;;  %v2487_v46 = vmax.f32 %v2151_v33, %v2481_v39  ;;  %v2485_v1 = vmax.f32 %v2479_v40, 0.0  ;;  %v2484_v48 = vmax.f32 %v2478_v41, 0.0 }
 0x1ef   : > { %v2489_v42 = vmax.f32 %v2153_v15, %v2483_v16 }
 0x1f0   : > { %v2491_v44 = vmax.f32 %v2155_v59, %v2485_v1  ;;  %v2490_v17 = vmax.f32 %v2154_v3, %v2484_v48 }
 0x1f3   : > { %v2569_v5 = vpop.f32.mrb[60].mxu1 }
 0x1f4   : > { %v4569_v51 = vpop.f32.mrb[61].mxu1 }
 0x1f5   : > { %v2572_v6 = vpop.f32.mrb[62].mxu1 }
 0x1f6   : > { %v4570_v45 = vpop.f32.mrb[63].mxu1 }
 0x1ff   : > { %v2653_v52 = vpop.f32.mrb[64].mxu1 }
 0x200   : > { %v2654_v7 = vadd.f32 %v2653_v52, %v2569_v5  ;;  %v4579_v49 = vpop.f32.mrb[65].mxu1 }
 0x201   : > { %v2656_v58 = vpop.f32.mrb[66].mxu1 }
 0x202   : > { %v2657_v54 = vadd.f32 %v2656_v58, %v2572_v6  ;;  %v4580_v31 = vpop.f32.mrb[67].mxu1 }
 0x20b   : > { %v2797_v47 = vpop.f32.mrb[68].mxu1 }
 0x20c   : > { %v2806_v55 = vadd.f32 %v2797_v47, %v2654_v7  ;;  %v2754_v56 = vpop.f32.mrb[20].mxu0  ;;  %v4589_v18 = vpop.f32.mrb[69].mxu1 }
 0x20d   : > { %v2810_v57 = vadd.f32 %v2754_v56, %v5966_v50  ;;  %v2756_v43 = vpop.f32.mrb[21].mxu0  ;;  %v2800_v20 = vpop.f32.mrb[70].mxu1 }
 0x20e   : > { %v2812_v32 = vadd.f32 %v2806_v55, %v5966_v50  ;;  %v2811_v33 = vadd.f32 %v2756_v43, %v5966_v50  ;;  %v2809_v34 = vadd.f32 %v2800_v20, %v2657_v54  ;;  %v2758_v35 = vpop.f32.mrb[22].mxu0  ;;  %v4590_v15 = vpop.f32.mrb[71].mxu1 }
 0x20f   : > { %v2816_v59 = vmax.f32 %v2810_v57, 0.0  ;;  %v2813_v3 = vadd.f32 %v2758_v35, %v5989_v53  ;;  %v2760_v19 = vpop.f32.mrb[23].mxu0 }
 0x210   : > { %v2818_v60 = vmax.f32 %v2812_v32, 0.0  ;;  %v2817_v61 = vmax.f32 %v2811_v33, 0.0  ;;  %v2815_v9 = vadd.f32 %v2809_v34, %v5989_v53  ;;  %v2814_v37 = vadd.f32 %v2760_v19, %v5989_v53 }
 0x211   : > { %v2822_v10 = vmax.f32 %v2486_v0, %v2816_v59  ;;  %v2819_v11 = vmax.f32 %v2813_v3, 0.0 }
 0x212   : > { %v2824_v8 = vmax.f32 %v2488_v62, %v2818_v60  ;;  %v2823_v36 = vmax.f32 %v2487_v46, %v2817_v61  ;;  %v2821_v63 = vmax.f32 %v2815_v9, 0.0  ;;  %v2820_v12 = vmax.f32 %v2814_v37, 0.0 }
 0x213   : > { %v2825_v13 = vmax.f32 %v2489_v42, %v2819_v11 }
 0x214   : > { %v2827_v2 = vmax.f32 %v2491_v44, %v2821_v63  ;;  %v2826_v14 = vmax.f32 %v2490_v17, %v2820_v12 }
 0x217   : > { %v2905_v21 = vpop.f32.mrb[72].mxu1 }
 0x218   : > { %v4599_v22 = vpop.f32.mrb[73].mxu1 }
 0x219   : > { %v2908_v23 = vpop.f32.mrb[74].mxu1 }
 0x21a   : > { %v4600_v24 = vpop.f32.mrb[75].mxu1 }
 0x223   : > { %v2989_v25 = vpop.f32.mrb[76].mxu1 }
 0x224   : > { %v2990_v26 = vadd.f32 %v2989_v25, %v2905_v21  ;;  %v4609_v27 = vpop.f32.mrb[77].mxu1 }
 0x225   : > { %v2992_v29 = vpop.f32.mrb[78].mxu1 }
 0x226   : > { %v2993_v30 = vadd.f32 %v2992_v29, %v2908_v23  ;;  %v4610_v38 = vpop.f32.mrb[79].mxu1 }
 0x22f   : > { %v3133_v28 = vpop.f32.mrb[80].mxu1 }
 0x230   : > { %v3142_v4 = vadd.f32 %v3133_v28, %v2990_v26  ;;  %v3090_v39 = vpop.f32.mrb[24].mxu0  ;;  %v4619_v40 = vpop.f32.mrb[81].mxu1 }
 0x231   : > { %v3146_v41 = vadd.f32 %v3090_v39, %v5966_v50  ;;  %v3092_v0 = vpop.f32.mrb[25].mxu0  ;;  %v3136_v16 = vpop.f32.mrb[82].mxu1 }
 0x232   : > { %v3148_v62 = vadd.f32 %v3142_v4, %v5966_v50  ;;  %v3147_v46 = vadd.f32 %v3092_v0, %v5966_v50  ;;  %v3145_v1 = vadd.f32 %v3136_v16, %v2993_v30  ;;  %v3094_v48 = vpop.f32.mrb[26].mxu0  ;;  %v4620_v42 = vpop.f32.mrb[83].mxu1 }
 0x233   : > { %v3152_v44 = vmax.f32 %v3146_v41, 0.0  ;;  %v3149_v17 = vadd.f32 %v3094_v48, %v5989_v53  ;;  %v3096_v5 = vpop.f32.mrb[27].mxu0 }
 0x234   : > { %v3154_v51 = vmax.f32 %v3148_v62, 0.0  ;;  %v3153_v6 = vmax.f32 %v3147_v46, 0.0  ;;  %v3151_v45 = vadd.f32 %v3145_v1, %v5989_v53  ;;  %v3150_v52 = vadd.f32 %v3096_v5, %v5989_v53 }
 0x235   : > { %v3158_v7 = vmax.f32 %v2822_v10, %v3152_v44  ;;  %v3155_v49 = vmax.f32 %v3149_v17, 0.0 }
 0x236   : > { %v3160_v58 = vmax.f32 %v2824_v8, %v3154_v51  ;;  %v3159_v54 = vmax.f32 %v2823_v36, %v3153_v6  ;;  %v3157_v31 = vmax.f32 %v3151_v45, 0.0  ;;  %v3156_v47 = vmax.f32 %v3150_v52, 0.0 }
 0x237   : > { %v3161_v55 = vmax.f32 %v2825_v13, %v3155_v49 }
 0x238   : > { %v3163_v56 = vmax.f32 %v2827_v2, %v3157_v31  ;;  %v3162_v18 = vmax.f32 %v2826_v14, %v3156_v47 }
 0x23b   : > { %v3241_v57 = vpop.f32.mrb[84].mxu1 }
 0x23c   : > { %v4629_v43 = vpop.f32.mrb[85].mxu1 }
 0x23d   : > { %v3244_v20 = vpop.f32.mrb[86].mxu1 }
 0x23e   : > { %v4630_v32 = vpop.f32.mrb[87].mxu1 }
 0x247   : > { %v3325_v33 = vpop.f32.mrb[88].mxu1 }
 0x248   : > { %v3326_v34 = vadd.f32 %v3325_v33, %v3241_v57  ;;  %v4639_v35 = vpop.f32.mrb[89].mxu1 }
 0x249   : > { %v3328_v15 = vpop.f32.mrb[90].mxu1 }
 0x24a   : > { %v3329_v59 = vadd.f32 %v3328_v15, %v3244_v20  ;;  %v4640_v3 = vpop.f32.mrb[91].mxu1 }
 0x253   : > { %v3469_v19 = vpop.f32.mrb[92].mxu1 }
 0x254   : > { %v3478_v60 = vadd.f32 %v3469_v19, %v3326_v34  ;;  %v3426_v61 = vpop.f32.mrb[28].mxu0  ;;  %v4649_v9 = vpop.f32.mrb[93].mxu1 }
 0x255   : > { %v3482_v37 = vadd.f32 %v3426_v61, %v5966_v50  ;;  %v3428_v10 = vpop.f32.mrb[29].mxu0  ;;  %v3472_v11 = vpop.f32.mrb[94].mxu1 }
 0x256   : > { %v3484_v8 = vadd.f32 %v3478_v60, %v5966_v50  ;;  %v3483_v36 = vadd.f32 %v3428_v10, %v5966_v50  ;;  %v3481_v63 = vadd.f32 %v3472_v11, %v3329_v59  ;;  %v3430_v12 = vpop.f32.mrb[30].mxu0  ;;  %v4650_v13 = vpop.f32.mrb[95].mxu1 }
 0x257   : > { %v3488_v2 = vmax.f32 %v3482_v37, 0.0  ;;  %v3485_v14 = vadd.f32 %v3430_v12, %v5989_v53  ;;  %v3432_v21 = vpop.f32.mrb[31].mxu0 }
 0x258   : > { %v3490_v22 = vmax.f32 %v3484_v8, 0.0  ;;  %v3489_v23 = vmax.f32 %v3483_v36, 0.0  ;;  %v3487_v24 = vadd.f32 %v3481_v63, %v5989_v53  ;;  %v3486_v25 = vadd.f32 %v3432_v21, %v5989_v53 }
 0x259   : > { %v3494_v26 = vmax.f32 %v3158_v7, %v3488_v2  ;;  %v3491_v27 = vmax.f32 %v3485_v14, 0.0 }
 0x25a   : > { %v3496_v29 = vmax.f32 %v3160_v58, %v3490_v22  ;;  %v3495_v30 = vmax.f32 %v3159_v54, %v3489_v23  ;;  %v3493_v38 = vmax.f32 %v3487_v24, 0.0  ;;  %v3492_v28 = vmax.f32 %v3486_v25, 0.0 }
 0x25b   : > { %v3497_v4 = vmax.f32 %v3161_v55, %v3491_v27 }
 0x25c   : > { %v3499_v39 = vmax.f32 %v3163_v56, %v3493_v38  ;;  %v3498_v40 = vmax.f32 %v3162_v18, %v3492_v28 }
 0x25f   : > { %v3577_v41 = vpop.f32.mrb[96].mxu1 }
 0x260   : > { %v4659_v0 = vpop.f32.mrb[97].mxu1 }
 0x261   : > { %v3580_v16 = vpop.f32.mrb[98].mxu1 }
 0x262   : > { %v4660_v62 = vpop.f32.mrb[99].mxu1 }
 0x26b   : > { %v3661_v46 = vpop.f32.mrb[100].mxu1 }
 0x26c   : > { %v3662_v1 = vadd.f32 %v3661_v46, %v3577_v41  ;;  %v4669_v48 = vpop.f32.mrb[101].mxu1 }
 0x26d   : > { %v3664_v42 = vpop.f32.mrb[102].mxu1 }
 0x26e   : > { %v3665_v44 = vadd.f32 %v3664_v42, %v3580_v16  ;;  %v4670_v17 = vpop.f32.mrb[103].mxu1 }
 0x277   : > { %v3805_v5 = vpop.f32.mrb[104].mxu1 }
 0x278   : > { %v3814_v51 = vadd.f32 %v3805_v5, %v3662_v1  ;;  %v3762_v6 = vpop.f32.mrb[32].mxu0  ;;  %v4679_v45 = vpop.f32.mrb[105].mxu1 }
 0x279   : > { %v3818_v52 = vadd.f32 %v3762_v6, %v5966_v50  ;;  %v3764_v7 = vpop.f32.mrb[33].mxu0  ;;  %v3808_v49 = vpop.f32.mrb[106].mxu1 }
 0x27a   : > { %v3820_v58 = vadd.f32 %v3814_v51, %v5966_v50  ;;  %v3819_v54 = vadd.f32 %v3764_v7, %v5966_v50  ;;  %v3817_v31 = vadd.f32 %v3808_v49, %v3665_v44  ;;  %v3766_v47 = vpop.f32.mrb[34].mxu0  ;;  %v4680_v55 = vpop.f32.mrb[107].mxu1 }
 0x27b   : > { %v3824_v56 = vmax.f32 %v3818_v52, 0.0  ;;  %v3821_v18 = vadd.f32 %v3766_v47, %v5989_v53  ;;  %v3768_v57 = vpop.f32.mrb[35].mxu0 }
 0x27c   : > { %v3826_v43 = vmax.f32 %v3820_v58, 0.0  ;;  %v3825_v20 = vmax.f32 %v3819_v54, 0.0  ;;  %v3823_v32 = vadd.f32 %v3817_v31, %v5989_v53  ;;  %v3822_v33 = vadd.f32 %v3768_v57, %v5989_v53 }
 0x27d   : > { %v3830_v34 = vmax.f32 %v3494_v26, %v3824_v56  ;;  %v3827_v35 = vmax.f32 %v3821_v18, 0.0 }
 0x27e   : > { %v3832_v15 = vmax.f32 %v3496_v29, %v3826_v43  ;;  %v3831_v59 = vmax.f32 %v3495_v30, %v3825_v20  ;;  %v3829_v50 = vmax.f32 %v3823_v32, 0.0  ;;  %v3828_v3 = vmax.f32 %v3822_v33, 0.0  ;;  %3866 = sbr.rel (!%p5073_p6) target bundleno = 653 (0x28d), region = 62 }
 0x27f   : > { %v3833_v19 = vmax.f32 %v3497_v4, %v3827_v35 }
 0x280   : > { %v4300_v60 = vpack.c.bf16 %v3832_v15, %v3832_v15  ;;  %v4299_v61 = vpack.c.bf16 %v3831_v59, %v3830_v34  ;;  %v3835_v9 = vmax.f32 %v3499_v39, %v3829_v50  ;;  %v3834_v37 = vmax.f32 %v3498_v40, %v3828_v3 }
 0x282   : > { %3857 = vst [vmem:[%s409_s12 + $0x8] sm:$0xf] %v4300_v60  ;;  %3856 = vst [vmem:[%s409_s12] sm:$0xff] %v4299_v61  ;;  %v4302_v10 = vpack.c.bf16 %v3835_v9, %v3835_v9  ;;  %v4301_v11 = vpack.c.bf16 %v3834_v37, %v3833_v19 }
 0x284   : > { %3859 = vst [vmem:[%s409_s12 + $0x14] sm:$0xf] %v4302_v10  ;;  %3858 = vst [vmem:[%s409_s12 + $0xc] sm:$0xff] %v4301_v11 }
 0x289   : > { %v3886_v53 = vld [vmem:[%s409_s12] sm:$0xff]  ;;  %v4293_v36 = vld [vmem:[%s409_s12 + $0x8] sm:$0xf] }
 0x28a   : > { %3887 = vst [vmem:[%s3871_s5] sm:$0xff] %v3886_v53  ;;  %4294 = vst [vmem:[%s3871_s5 + $0x8] sm:$0xf] %v4293_v36 }
 0x28b   : > { %v3888_v8 = vld [vmem:[%s409_s12 + $0xc] sm:$0xff]  ;;  %v4295_v63 = vld [vmem:[%s409_s12 + $0x14] sm:$0xf] }
 0x28c   : > { %3889 = vst [vmem:[%s3871_s5 + $0x18] sm:$0xff] %v3888_v8  ;;  %4296 = vst [vmem:[%s3871_s5 + $0x20] sm:$0xf] %v4295_v63 }
 0x28d PF: > { %s13_s18 = sadd.s32 1, %s5000_s18   ;;  %s6179_s12 = smov %s4980_s13 }
 0x28e   : > { %p10_p12 = scmp.ge.s32.totalorder %s13_s18, 6   ;;  %s6180_s13 = smov %s5081_s27 }
 0x28f   : > { %s6181_s14 = smov %s4992_s16  ;;  %s6182_s15 = smov %s4996_s17 }
 0x290   : > { %s6183_s16 = smov %s6186_s19  ;;  %s6184_s17 = smov %s6190_s20 }
 0x291   :  { %12 = sbr.rel (!%p10_p12) target bundleno = 4 (0x4), region = 133 }

// kernel: cnn_forward.5
= control target key start
LH: loop header
LB: loop body
LE: loop exit
PB: predicated region body
PF: predicated region fallthrough
CT: control target
= control target key end

     0   :  { %v1459_v28 = vlaneseq  ;;  %v10637_v36 = vmov 1966171168   ;;  %vm6293_vm0 = vcmask 785408   ;;  %s13057_s0 = inlined_call_operand.vmem [shape: bf16[2,11232], index: 0, kind: input, shape index: {}]   ;;  %s13058_s1 = inlined_call_operand.vmem [shape: bf16[11232,128], index: 1, kind: input, shape index: {}]   ;;  %s13059_s2 = inlined_call_operand.vmem [shape: f32[1,128], index: 2, kind: input, shape index: {}]   ;;  %s13060_s3 = inlined_call_operand.vmem [shape: f32[128,10], index: 3, kind: input, shape index: {}]   ;;  %s13061_s4 = inlined_call_operand.vmem [shape: f32[1,10], index: 4, kind: input, shape index: {}]   ;;  %s13062_s5 = inlined_call_operand.hbm [shape: f32[2,10], index: 5, kind: output, shape index: {}]  }
   0x1   :  { %v9900_v0 = vld [vmem:[%s13058_s1 + $0x40] sm:$0xff]   ;;  %v9904_v4 = vld [vmem:[%s13058_s1 + $0x48] sm:$0xff]   ;;  %v9908_v8 = vld [vmem:[%s13058_s1 + $0x50] sm:$0xff]   ;;  %v1457_v37 = vunpack.c.l.s4 %v10637_v36 }
   0x2   :  { %v9901_v1 = vld [vmem:[%s13058_s1 + $0xc0] sm:$0xff]   ;;  %8872 = vmatprep.subr.bf16.mxu0 %v9900_v0  ;;  %v9905_v5 = vld [vmem:[%s13058_s1 + $0xc8] sm:$0xff]   ;;  %v9909_v9 = vld [vmem:[%s13058_s1 + $0xd0] sm:$0xff]   ;;  %v1460_v33 = vshrl.u32 %v1459_v28, 7 }
   0x3   :  { %v9902_v2 = vld [vmem:[%s13058_s1] sm:$0xff]   ;;  %8894 = vmatprep.subr.bf16.mxu1 %v9901_v1  ;;  %v9906_v6 = vld [vmem:[%s13058_s1 + $0x8] sm:$0xff]   ;;  %v9910_v10 = vld [vmem:[%s13058_s1 + $0x10] sm:$0xff]   ;;  %v1458_v40 = vunpack.c.0.s8 %v1457_v37 }
   0x4   :  { %v9903_v3 = vld [vmem:[%s13058_s1 + $0x80] sm:$0xff]   ;;  %8873 = vmatpush3.bf16.msra.mxu0 %v9902_v2  ;;  %v9907_v7 = vld [vmem:[%s13058_s1 + $0x88] sm:$0xff]   ;;  %v9911_v11 = vld [vmem:[%s13058_s1 + $0x90] sm:$0xff]  }
   0x5   :  { %8895 = vmatpush3.bf16.msra.mxu1 %v9903_v3  ;;  %8874 = vmatprep.subr.bf16.mxu0 %v9904_v4  ;;  %v9912_v12 = vld [vmem:[%s13058_s1 + $0x58] sm:$0xff]   ;;  %v9916_v16 = vld [vmem:[%s13058_s1 + $0x60] sm:$0xff]   ;;  %v9920_v20 = vld [vmem:[%s13058_s1 + $0x68] sm:$0xff]   ;;  %v10778_v41 = vsub.s32 %v1458_v40, %v1460_v33 }
   0x6   :  { %8896 = vmatprep.subr.bf16.mxu1 %v9905_v5  ;;  %v9913_v13 = vld [vmem:[%s13058_s1 + $0xd8] sm:$0xff]   ;;  %v9917_v17 = vld [vmem:[%s13058_s1 + $0xe0] sm:$0xff]   ;;  %v9921_v21 = vld [vmem:[%s13058_s1 + $0xe8] sm:$0xff]  }
   0x7   :  { %v9914_v14 = vld [vmem:[%s13058_s1 + $0x18] sm:$0xff]   ;;  %v9918_v18 = vld [vmem:[%s13058_s1 + $0x20] sm:$0xff]   ;;  %v9922_v22 = vld [vmem:[%s13058_s1 + $0x28] sm:$0xff]  }
   0x8   :  { %8875 = vmatpush3.bf16.msra.mxu0 %v9906_v6  ;;  %v9915_v15 = vld [vmem:[%s13058_s1 + $0x98] sm:$0xff]   ;;  %v9919_v19 = vld [vmem:[%s13058_s1 + $0xa0] sm:$0xff]   ;;  %v9923_v23 = vld [vmem:[%s13058_s1 + $0xa8] sm:$0xff]  }
   0x9   :  { %8897 = vmatpush3.bf16.msra.mxu1 %v9907_v7  ;;  %8876 = vmatprep.subr.bf16.mxu0 %v9908_v8  ;;  %v9924_v24 = vld [vmem:[%s13058_s1 + $0x70] sm:$0xff]   ;;  %v9928_v29 = vld [vmem:[%s13058_s1 + $0x78] sm:$0xff]   ;;  %v22_v34 = vld [vmem:[%s13057_s0] sm:$0xff] }
   0xa   :  { %8898 = vmatprep.subr.bf16.mxu1 %v9909_v9  ;;  %v9925_v25 = vld [vmem:[%s13058_s1 + $0xf0] sm:$0xff]   ;;  %v9929_v30 = vld [vmem:[%s13058_s1 + $0xf8] sm:$0xff]   ;;  %v9933_v35 = vld [vmem:[%s13058_s1 + $0x140] sm:$0xff]   ;;  %v1455_v39 = vcombine.high %v22_v34, %v22_v34  ;;  %v1462_v42 = vrot.slane %v22_v34, %v10778_v41 }
   0xb   :  { %v9926_v26 = vld [vmem:[%s13058_s1 + $0x30] sm:$0xff]   ;;  %v9930_v31 = vld [vmem:[%s13058_s1 + $0x38] sm:$0xff]   ;;  %v9934_v38 = vld [vmem:[%s13058_s1 + $0x1c0] sm:$0xff]  }
   0xc   :  { %8877 = vmatpush3.bf16.msra.mxu0 %v9910_v10  ;;  %v9927_v27 = vld [vmem:[%s13058_s1 + $0xb0] sm:$0xff]   ;;  %v9931_v32 = vld [vmem:[%s13058_s1 + $0xb8] sm:$0xff]   ;;  %v10782_v43 = vrot.slane %v1455_v39, %v10778_v41  ;;  %v1470_v44 = vcombine.high %v1462_v42, %v1462_v42  ;;  %v1478_v45 = vrot.slane %v1462_v42, %v10778_v41  ;;  %v9935_v47 = vld [vmem:[%s13058_s1 + $0x100] sm:$0xff]  }
   0xd   :  { %8899 = vmatpush3.bf16.msra.mxu1 %v9911_v11  ;;  %8878 = vmatprep.subr.bf16.mxu0 %v9912_v12  ;;  %v9936_v49 = vld [vmem:[%s13058_s1 + $0x180] sm:$0xff]   ;;  %v9937_v52 = vld [vmem:[%s13058_s1 + $0x148] sm:$0xff]   ;;  %v9941_v58 = vld [vmem:[%s13058_s1 + $0x150] sm:$0xff]  }
   0xe   :  { %8900 = vmatprep.subr.bf16.mxu1 %v9913_v13  ;;  %v1471_v46 = vcombine.high %v10782_v43, %v10782_v43  ;;  %v1492_v48 = vrot.slane %v1470_v44, %v10778_v41  ;;  %v1500_v51 = vcombine.high %v1478_v45, %v1478_v45  ;;  %v9938_v54 = vld [vmem:[%s13058_s1 + $0x1c8] sm:$0xff]   ;;  %v9942_v59 = vld [vmem:[%s13058_s1 + $0x1d0] sm:$0xff]   ;;  %v9945_v62 = vld [vmem:[%s13058_s1 + $0x158] sm:$0xff]  }
   0xf   :  { %v9939_v55 = vld [vmem:[%s13058_s1 + $0x108] sm:$0xff]   ;;  %v9943_v60 = vld [vmem:[%s13058_s1 + $0x110] sm:$0xff]   ;;  %v9946_v63 = vld [vmem:[%s13058_s1 + $0x1d8] sm:$0xff]  }
  0x10   :  { %8879 = vmatpush3.bf16.msra.mxu0 %v9914_v14  ;;  %v1499_v50 = vrot.slane %v1471_v46, %v10778_v41  ;;  %6329 = vmatprep.mubr.bf16.mxu0 %v1492_v48  ;;  %v1502_v53 = vcombine.high %v1492_v48, %v1492_v48  ;;  %v9940_v57 = vld [vmem:[%s13058_s1 + $0x188] sm:$0xff]   ;;  %v9944_v61 = vld [vmem:[%s13058_s1 + $0x190] sm:$0xff]   ;;  %v9947_v0 = vld [vmem:[%s13058_s1 + $0x118] sm:$0xff]  }
  0x11   :  { %8901 = vmatpush3.bf16.msra.mxu1 %v9915_v15  ;;  %8880 = vmatprep.subr.bf16.mxu0 %v9916_v16  ;;  %v9948_v1 = vld [vmem:[%s13058_s1 + $0x198] sm:$0xff]   ;;  %v9949_v2 = vld [vmem:[%s13058_s1 + $0x160] sm:$0xff]   ;;  %v9953_v6 = vld [vmem:[%s13058_s1 + $0x168] sm:$0xff]  }
  0x12   :  { %8902 = vmatprep.subr.bf16.mxu1 %v9917_v17  ;;  %v1503_v56 = vcombine.high %v1499_v50, %v1499_v50  ;;  %6369 = vmatprep.mubr.bf16.mxu1 %v1502_v53  ;;  %v9950_v3 = vld [vmem:[%s13058_s1 + $0x1e0] sm:$0xff]   ;;  %v9954_v7 = vld [vmem:[%s13058_s1 + $0x1e8] sm:$0xff]   ;;  %v9957_v10 = vld [vmem:[%s13058_s1 + $0x170] sm:$0xff]  }
  0x13   :  { %v9951_v4 = vld [vmem:[%s13058_s1 + $0x120] sm:$0xff]   ;;  %v9955_v8 = vld [vmem:[%s13058_s1 + $0x128] sm:$0xff]   ;;  %v9958_v11 = vld [vmem:[%s13058_s1 + $0x1f0] sm:$0xff]  }
  0x14   :  { %8881 = vmatpush3.bf16.msra.mxu0 %v9918_v18  ;;  %v9952_v5 = vld [vmem:[%s13058_s1 + $0x1a0] sm:$0xff]   ;;  %v9956_v9 = vld [vmem:[%s13058_s1 + $0x1a8] sm:$0xff]   ;;  %v9959_v12 = vld [vmem:[%s13058_s1 + $0x130] sm:$0xff]   ;;  %v1485_v18 = vrot.slane %v10782_v43, %v10778_v41 }
  0x15   :  { %8903 = vmatpush3.bf16.msra.mxu1 %v9919_v19  ;;  %8882 = vmatprep.subr.bf16.mxu0 %v9920_v20  ;;  %v9960_v13 = vld [vmem:[%s13058_s1 + $0x1b0] sm:$0xff]   ;;  %v9961_v14 = vld [vmem:[%s13058_s1 + $0x178] sm:$0xff]   ;;  %v9965_v19 = vld [vmem:[%s13058_s1 + $0x240] sm:$0xff]  }
  0x16   :  { %8904 = vmatprep.subr.bf16.mxu1 %v9921_v21  ;;  %v9962_v15 = vld [vmem:[%s13058_s1 + $0x1f8] sm:$0xff]   ;;  %v9966_v20 = vld [vmem:[%s13058_s1 + $0x2c0] sm:$0xff]   ;;  %v9973_v28 = vld [vmem:[%s13058_s1 + $0x250] sm:$0xff]  }
  0x17   :  { %v9963_v16 = vld [vmem:[%s13058_s1 + $0x138] sm:$0xff]   ;;  %v9967_v21 = vld [vmem:[%s13058_s1 + $0x200] sm:$0xff]   ;;  %v9985_v40 = vld [vmem:[%s13058_s1 + $0x268] sm:$0xff]  }
  0x18   :  { %8883 = vmatpush3.bf16.msra.mxu0 %v9922_v22  ;;  %v9964_v17 = vld [vmem:[%s13058_s1 + $0x1b8] sm:$0xff]   ;;  %v9968_v22 = vld [vmem:[%s13058_s1 + $0x280] sm:$0xff]   ;;  %v9986_v42 = vld [vmem:[%s13058_s1 + $0x2e8] sm:$0xff]  }
  0x19   :  { %8905 = vmatpush3.bf16.msra.mxu1 %v9923_v23  ;;  %8884 = vmatprep.subr.bf16.mxu0 %v9924_v24  ;;  %v1501_v23 = vcombine.high %v1485_v18, %v1485_v18  ;;  %v9969_v24 = vld [vmem:[%s13058_s1 + $0x248] sm:$0xff]   ;;  %v9978_v33 = vld [vmem:[%s13058_s1 + $0x2d8] sm:$0xff]   ;;  %v9981_v36 = vld [vmem:[%s13058_s1 + $0x260] sm:$0xff]  }
  0x1a   :  { %8906 = vmatprep.subr.bf16.mxu1 %v9925_v25  ;;  %v9970_v25 = vld [vmem:[%s13058_s1 + $0x2c8] sm:$0xff]   ;;  %v9979_v34 = vld [vmem:[%s13058_s1 + $0x218] sm:$0xff]   ;;  %v9982_v37 = vld [vmem:[%s13058_s1 + $0x2e0] sm:$0xff]  }
  0x1b   :  { %v9984_v39 = vld [vmem:[%s13058_s1 + $0x2a0] sm:$0xff]   ;;  %v9987_v43 = vld [vmem:[%s13058_s1 + $0x228] sm:$0xff]  }
  0x1c   :  { %8885 = vmatpush3.bf16.msra.mxu0 %v9926_v26  ;;  %v9971_v26 = vld [vmem:[%s13058_s1 + $0x208] sm:$0xff]  }
  0x1d   :  { %8907 = vmatpush3.bf16.msra.mxu1 %v9927_v27  ;;  %8886 = vmatprep.subr.bf16.mxu0 %v9928_v29  ;;  %v9972_v27 = vld [vmem:[%s13058_s1 + $0x288] sm:$0xff]   ;;  %v9974_v29 = vld [vmem:[%s13058_s1 + $0x2d0] sm:$0xff]  }
  0x1e   :  { %8908 = vmatprep.subr.bf16.mxu1 %v9929_v30  ;;  %v9975_v30 = vld [vmem:[%s13058_s1 + $0x210] sm:$0xff]   ;;  %v9988_v44 = vld [vmem:[%s13058_s1 + $0x2a8] sm:$0xff]  }
  0x1f   :  { %v23_v46 = vld [vmem:[%s13057_s0 + $0x8] sm:$0xff] }
  0x20   :  { %8887 = vmatpush3.bf16.msra.mxu0 %v9930_v31  ;;  %v9976_v31 = vld [vmem:[%s13058_s1 + $0x290] sm:$0xff]   ;;  %v1511_v48 = vrot.slane %v23_v46, %v10778_v41 }
  0x21   :  { %8909 = vmatpush3.bf16.msra.mxu1 %v9931_v32  ;;  %8916 = vmatprep.subr.bf16.mxu0 %v9933_v35  ;;  %v9977_v32 = vld [vmem:[%s13058_s1 + $0x258] sm:$0xff]  }
  0x22   :  { %8938 = vmatprep.subr.bf16.mxu1 %v9934_v38  ;;  %v9980_v35 = vld [vmem:[%s13058_s1 + $0x298] sm:$0xff]   ;;  %v9983_v38 = vld [vmem:[%s13058_s1 + $0x220] sm:$0xff]  }
  0x23   :  { %6330 = vmatmul.mubr.bf16.vlgmr.msra.gmra.mrb[0].mxu0 %v1478_v45  ;;  %v9989_v45 = vld [vmem:[%s13058_s1 + $0x270] sm:$0xff]  }
  0x24   :  { %8917 = vmatpush3.bf16.msra.mxu0 %v9935_v47  ;;  %6370 = vmatmul.mubr.bf16.vlgmr.msra.gmra.mrb[0].mxu1 %v1500_v51  ;;  %v9990_v47 = vld [vmem:[%s13058_s1 + $0x2f0] sm:$0xff]  }
  0x25   :  { %8918 = vmatprep.subr.bf16.mxu0 %v9937_v52  ;;  %8939 = vmatpush3.bf16.msra.mxu1 %v9936_v49  ;;  %v1504_v49 = vcombine.high %v23_v46, %v23_v46  ;;  %v9992_v51 = vld [vmem:[%s13058_s1 + $0x2b0] sm:$0xff]   ;;  %v1519_v52 = vcombine.high %v1511_v48, %v1511_v48 }
  0x26   :  { %6409 = vmatprep.mubr.bf16.mxu0 %v1499_v50  ;;  %8940 = vmatprep.subr.bf16.mxu1 %v9938_v54  ;;  %v9991_v50 = vld [vmem:[%s13058_s1 + $0x230] sm:$0xff]   ;;  %v9993_v54 = vld [vmem:[%s13058_s1 + $0x278] sm:$0xff]  }
  0x27   :  { %6449 = vmatprep.mubr.bf16.mxu1 %v1503_v56  ;;  %v10970_v53 = vrot.slane %v1504_v49, %v10778_v41  ;;  %v1541_v56 = vrot.slane %v1519_v52, %v10778_v41  ;;  %v10040_v46 = vld [vmem:[%s13058_s1 + $0x410] sm:$0xff]   ;;  %v10043_v49 = vld [vmem:[%s13058_s1 + $0x4d8] sm:$0xff]   ;;  %v10046_v52 = vld [vmem:[%s13058_s1 + $0x460] sm:$0xff]  }
  0x28   :  { %8919 = vmatpush3.bf16.msra.mxu0 %v9939_v55  ;;  %v9994_v55 = vld [vmem:[%s13058_s1 + $0x2f8] sm:$0xff]  }
  0x29   :  { %8920 = vmatprep.subr.bf16.mxu0 %v9941_v58  ;;  %8941 = vmatpush3.bf16.msra.mxu1 %v9940_v57  ;;  %v1520_v57 = vcombine.high %v10970_v53, %v10970_v53  ;;  %v9995_v58 = vld [vmem:[%s13058_s1 + $0x238] sm:$0xff]  }
  0x2a   :  { %8942 = vmatprep.subr.bf16.mxu1 %v9942_v59  ;;  %v9996_v59 = vld [vmem:[%s13058_s1 + $0x2b8] sm:$0xff]  }
  0x2c   :  { %8921 = vmatpush3.bf16.msra.mxu0 %v9943_v60  ;;  %v1551_v60 = vcombine.high %v1541_v56, %v1541_v56 }
  0x2d   :  { %8922 = vmatprep.subr.bf16.mxu0 %v9945_v62  ;;  %8943 = vmatpush3.bf16.msra.mxu1 %v9944_v61  ;;  %v1527_v61 = vrot.slane %v1511_v48, %v10778_v41  ;;  %v9997_v62 = vld [vmem:[%s13058_s1 + $0x340] sm:$0xff]   ;;  %v10042_v48 = vld [vmem:[%s13058_s1 + $0x458] sm:$0xff]  }
  0x2e   :  { %8944 = vmatprep.subr.bf16.mxu1 %v9946_v63  ;;  %v9998_v63 = vld [vmem:[%s13058_s1 + $0x3c0] sm:$0xff]  }
  0x30   :  { %8923 = vmatpush3.bf16.msra.mxu0 %v9947_v0  ;;  %v1548_v0 = vrot.slane %v1520_v57, %v10778_v41  ;;  %v10051_v57 = vld [vmem:[%s13058_s1 + $0x4e8] sm:$0xff]  }
  0x31   :  { %8924 = vmatprep.subr.bf16.mxu0 %v9949_v2  ;;  %8945 = vmatpush3.bf16.msra.mxu1 %v9948_v1  ;;  %v9999_v1 = vld [vmem:[%s13058_s1 + $0x300] sm:$0xff]  }
  0x32   :  { %8946 = vmatprep.subr.bf16.mxu1 %v9950_v3  ;;  %v10000_v2 = vld [vmem:[%s13058_s1 + $0x380] sm:$0xff]   ;;  %v1549_v3 = vcombine.high %v1527_v61, %v1527_v61 }
  0x34   :  { %8925 = vmatpush3.bf16.msra.mxu0 %v9951_v4  ;;  %v10001_v4 = vld [vmem:[%s13058_s1 + $0x348] sm:$0xff]  }
  0x35   :  { %8926 = vmatprep.subr.bf16.mxu0 %v9953_v6  ;;  %8947 = vmatpush3.bf16.msra.mxu1 %v9952_v5  ;;  %v10002_v5 = vld [vmem:[%s13058_s1 + $0x3c8] sm:$0xff]   ;;  %v1552_v6 = vcombine.high %v1548_v0, %v1548_v0 }
  0x36   :  { %8948 = vmatprep.subr.bf16.mxu1 %v9954_v7  ;;  %v10003_v7 = vld [vmem:[%s13058_s1 + $0x308] sm:$0xff]  }
  0x38   :  { %8927 = vmatpush3.bf16.msra.mxu0 %v9955_v8  ;;  %v10004_v8 = vld [vmem:[%s13058_s1 + $0x388] sm:$0xff]  }
  0x39   :  { %8928 = vmatprep.subr.bf16.mxu0 %v9957_v10  ;;  %8949 = vmatpush3.bf16.msra.mxu1 %v9956_v9  ;;  %v10005_v9 = vld [vmem:[%s13058_s1 + $0x350] sm:$0xff]  }
  0x3a   :  { %8950 = vmatprep.subr.bf16.mxu1 %v9958_v11  ;;  %v10006_v10 = vld [vmem:[%s13058_s1 + $0x3d0] sm:$0xff]  }
  0x3b   :  { %v10007_v11 = vld [vmem:[%s13058_s1 + $0x310] sm:$0xff]  }
  0x3c   :  { %8929 = vmatpush3.bf16.msra.mxu0 %v9959_v12  ;;  %v10008_v12 = vld [vmem:[%s13058_s1 + $0x390] sm:$0xff]  }
  0x3d   :  { %8930 = vmatprep.subr.bf16.mxu0 %v9961_v14  ;;  %8951 = vmatpush3.bf16.msra.mxu1 %v9960_v13  ;;  %v10009_v13 = vld [vmem:[%s13058_s1 + $0x358] sm:$0xff]  }
  0x3e   :  { %8952 = vmatprep.subr.bf16.mxu1 %v9962_v15  ;;  %v10010_v14 = vld [vmem:[%s13058_s1 + $0x3d8] sm:$0xff]  }
  0x3f   :  { %v10011_v15 = vld [vmem:[%s13058_s1 + $0x318] sm:$0xff]  }
  0x40   :  { %8931 = vmatpush3.bf16.msra.mxu0 %v9963_v16  ;;  %v10012_v16 = vld [vmem:[%s13058_s1 + $0x398] sm:$0xff]  }
  0x41   :  { %8960 = vmatprep.subr.bf16.mxu0 %v9965_v19  ;;  %8953 = vmatpush3.bf16.msra.mxu1 %v9964_v17  ;;  %v10013_v17 = vld [vmem:[%s13058_s1 + $0x360] sm:$0xff]  }
  0x42   :  { %8982 = vmatprep.subr.bf16.mxu1 %v9966_v20  ;;  %v10015_v19 = vld [vmem:[%s13058_s1 + $0x320] sm:$0xff]  }
  0x43   :  { %6410 = vmatmul.mubr.bf16.vlgmr.msra.gmra.mrb[4].mxu0 %v1485_v18  ;;  %v10014_v18 = vld [vmem:[%s13058_s1 + $0x3e0] sm:$0xff]  }
  0x44   :  { %8961 = vmatpush3.bf16.msra.mxu0 %v9967_v21  ;;  %6450 = vmatmul.mubr.bf16.vlgmr.msra.gmra.mrb[4].mxu1 %v1501_v23  ;;  %v10016_v20 = vld [vmem:[%s13058_s1 + $0x3a0] sm:$0xff]   ;;  %v10017_v21 = vld [vmem:[%s13058_s1 + $0x368] sm:$0xff]  }
  0x45   :  { %8962 = vmatprep.subr.bf16.mxu0 %v9969_v24  ;;  %8983 = vmatpush3.bf16.msra.mxu1 %v9968_v22  ;;  %v10018_v22 = vld [vmem:[%s13058_s1 + $0x3e8] sm:$0xff]  }
  0x46   :  { %8984 = vmatprep.subr.bf16.mxu1 %v9970_v25  ;;  %6489 = vmatprep.mubr.bf16.mxu0 %v1541_v56  ;;  %v10019_v23 = vld [vmem:[%s13058_s1 + $0x328] sm:$0xff]   ;;  %v10021_v25 = vld [vmem:[%s13058_s1 + $0x370] sm:$0xff]  }
  0x47   :  { %6529 = vmatprep.mubr.bf16.mxu1 %v1551_v60  ;;  %v10020_v24 = vld [vmem:[%s13058_s1 + $0x3a8] sm:$0xff]   ;;  %v10054_v60 = vld [vmem:[%s13058_s1 + $0x470] sm:$0xff]  }
  0x48   :  { %8963 = vmatpush3.bf16.msra.mxu0 %v9971_v26  ;;  %v10022_v26 = vld [vmem:[%s13058_s1 + $0x3f0] sm:$0xff]   ;;  %v10050_v56 = vld [vmem:[%s13058_s1 + $0x468] sm:$0xff]  }
  0x49   :  { %8964 = vmatprep.subr.bf16.mxu0 %v9973_v28  ;;  %8985 = vmatpush3.bf16.msra.mxu1 %v9972_v27  ;;  %v10023_v27 = vld [vmem:[%s13058_s1 + $0x330] sm:$0xff]  }
  0x4a   :  { %8986 = vmatprep.subr.bf16.mxu1 %v9974_v29  ;;  %v10024_v28 = vld [vmem:[%s13058_s1 + $0x3b0] sm:$0xff]   ;;  %v10025_v29 = vld [vmem:[%s13058_s1 + $0x378] sm:$0xff]  }
  0x4c   :  { %8965 = vmatpush3.bf16.msra.mxu0 %v9975_v30  ;;  %v10026_v30 = vld [vmem:[%s13058_s1 + $0x3f8] sm:$0xff]  }
  0x4d   :  { %8966 = vmatprep.subr.bf16.mxu0 %v9977_v32  ;;  %8987 = vmatpush3.bf16.msra.mxu1 %v9976_v31  ;;  %v10027_v31 = vld [vmem:[%s13058_s1 + $0x338] sm:$0xff]  }
  0x4e   :  { %8988 = vmatprep.subr.bf16.mxu1 %v9978_v33  ;;  %v10028_v32 = vld [vmem:[%s13058_s1 + $0x3b8] sm:$0xff]   ;;  %v1534_v33 = vrot.slane %v10970_v53, %v10778_v41  ;;  %v10047_v53 = vld [vmem:[%s13058_s1 + $0x4e0] sm:$0xff]  }
  0x50   :  { %8967 = vmatpush3.bf16.msra.mxu0 %v9979_v34  ;;  %v10030_v34 = vld [vmem:[%s13058_s1 + $0x440] sm:$0xff]  }
  0x51   :  { %8968 = vmatprep.subr.bf16.mxu0 %v9981_v36  ;;  %8989 = vmatpush3.bf16.msra.mxu1 %v9980_v35  ;;  %v10031_v35 = vld [vmem:[%s13058_s1 + $0x4c0] sm:$0xff]  }
  0x52   :  { %8990 = vmatprep.subr.bf16.mxu1 %v9982_v37  ;;  %v10032_v36 = vld [vmem:[%s13058_s1 + $0x400] sm:$0xff]  }
  0x53   :  { %v10033_v37 = vld [vmem:[%s13058_s1 + $0x480] sm:$0xff]  }
  0x54   :  { %8969 = vmatpush3.bf16.msra.mxu0 %v9983_v38  ;;  %v1550_v38 = vcombine.high %v1534_v33, %v1534_v33 }
  0x55   :  { %8970 = vmatprep.subr.bf16.mxu0 %v9985_v40  ;;  %8991 = vmatpush3.bf16.msra.mxu1 %v9984_v39  ;;  %v10034_v39 = vld [vmem:[%s13058_s1 + $0x448] sm:$0xff]  }
  0x56   :  { %8992 = vmatprep.subr.bf16.mxu1 %v9986_v42  ;;  %v10035_v40 = vld [vmem:[%s13058_s1 + $0x4c8] sm:$0xff]  }
  0x57   :  { %v10036_v42 = vld [vmem:[%s13058_s1 + $0x408] sm:$0xff]  }
  0x58   :  { %8971 = vmatpush3.bf16.msra.mxu0 %v9987_v43  ;;  %v10037_v43 = vld [vmem:[%s13058_s1 + $0x488] sm:$0xff]  }
  0x59   :  { %8972 = vmatprep.subr.bf16.mxu0 %v9989_v45  ;;  %8993 = vmatpush3.bf16.msra.mxu1 %v9988_v44  ;;  %v10038_v44 = vld [vmem:[%s13058_s1 + $0x450] sm:$0xff]  }
  0x5a   :  { %8994 = vmatprep.subr.bf16.mxu1 %v9990_v47  ;;  %v10039_v45 = vld [vmem:[%s13058_s1 + $0x4d0] sm:$0xff]  }
  0x5b   :  { %v10041_v47 = vld [vmem:[%s13058_s1 + $0x490] sm:$0xff]  }
  0x5c   :  { %8973 = vmatpush3.bf16.msra.mxu0 %v9991_v50  ;;  %v10044_v50 = vld [vmem:[%s13058_s1 + $0x418] sm:$0xff]  }
  0x5d   :  { %8974 = vmatprep.subr.bf16.mxu0 %v9993_v54  ;;  %8995 = vmatpush3.bf16.msra.mxu1 %v9992_v51  ;;  %v10045_v51 = vld [vmem:[%s13058_s1 + $0x498] sm:$0xff]   ;;  %v10048_v54 = vld [vmem:[%s13058_s1 + $0x420] sm:$0xff]  }
  0x5e   :  { %8996 = vmatprep.subr.bf16.mxu1 %v9994_v55  ;;  %v10049_v55 = vld [vmem:[%s13058_s1 + $0x4a0] sm:$0xff]  }
  0x60   :  { %8975 = vmatpush3.bf16.msra.mxu0 %v9995_v58  ;;  %v10052_v58 = vld [vmem:[%s13058_s1 + $0x428] sm:$0xff]  }
  0x61   :  { %9004 = vmatprep.subr.bf16.mxu0 %v9997_v62  ;;  %8997 = vmatpush3.bf16.msra.mxu1 %v9996_v59  ;;  %v10053_v59 = vld [vmem:[%s13058_s1 + $0x4a8] sm:$0xff]   ;;  %v10055_v62 = vld [vmem:[%s13058_s1 + $0x4f0] sm:$0xff]  }
  0x62   :  { %9026 = vmatprep.subr.bf16.mxu1 %v9998_v63 }
  0x63   :  { %6490 = vmatmul.mubr.bf16.vlgmr.msra.gmra.mrb[8].mxu0 %v1527_v61  ;;  %v24_v61 = vld [vmem:[%s13057_s0 + $0x10] sm:$0xff] }
  0x64   :  { %9005 = vmatpush3.bf16.msra.mxu0 %v9999_v1  ;;  %6569 = vmatprep.mubr.bf16.mxu0 %v1548_v0  ;;  %v1560_v63 = vrot.slane %v24_v61, %v10778_v41  ;;  %v1553_v0 = vcombine.high %v24_v61, %v24_v61  ;;  %v10056_v1 = vld [vmem:[%s13058_s1 + $0x430] sm:$0xff]  }
  0x65   :  { %6530 = vmatmul.mubr.bf16.vlgmr.msra.gmra.mrb[8].mxu1 %v1549_v3  ;;  %9006 = vmatprep.subr.bf16.mxu0 %v10001_v4  ;;  %v10105_v61 = vld [vmem:[%s13058_s1 + $0x610] sm:$0xff]  }
  0x66   :  { %9027 = vmatpush3.bf16.msra.mxu1 %v10000_v2  ;;  %6609 = vmatprep.mubr.bf16.mxu1 %v1552_v6  ;;  %v10057_v2 = vld [vmem:[%s13058_s1 + $0x4b0] sm:$0xff]   ;;  %v1568_v3 = vcombine.high %v1560_v63, %v1560_v63  ;;  %v11176_v4 = vrot.slane %v1553_v0, %v10778_v41  ;;  %v10059_v6 = vld [vmem:[%s13058_s1 + $0x4f8] sm:$0xff]  }
  0x67   :  { %9028 = vmatprep.subr.bf16.mxu1 %v10002_v5  ;;  %v10058_v5 = vld [vmem:[%s13058_s1 + $0x478] sm:$0xff]  }
  0x68   :  { %9007 = vmatpush3.bf16.msra.mxu0 %v10003_v7  ;;  %v1590_v7 = vrot.slane %v1568_v3, %v10778_v41  ;;  %v10108_v0 = vld [vmem:[%s13058_s1 + $0x6d8] sm:$0xff]   ;;  %v10111_v3 = vld [vmem:[%s13058_s1 + $0x660] sm:$0xff]  }
  0x69   :  { %9008 = vmatprep.subr.bf16.mxu0 %v10005_v9  ;;  %v10060_v9 = vld [vmem:[%s13058_s1 + $0x438] sm:$0xff]  }
  0x6a   :  { %9029 = vmatpush3.bf16.msra.mxu1 %v10004_v8  ;;  %v1569_v8 = vcombine.high %v11176_v4, %v11176_v4 }
  0x6b   :  { %9030 = vmatprep.subr.bf16.mxu1 %v10006_v10  ;;  %v10061_v10 = vld [vmem:[%s13058_s1 + $0x4b8] sm:$0xff]  }
  0x6c   :  { %9009 = vmatpush3.bf16.msra.mxu0 %v10007_v11  ;;  %v1600_v11 = vcombine.high %v1590_v7, %v1590_v7 }
  0x6d   :  { %9010 = vmatprep.subr.bf16.mxu0 %v10009_v13  ;;  %v10062_v13 = vld [vmem:[%s13058_s1 + $0x540] sm:$0xff]  }
  0x6e   :  { %9031 = vmatpush3.bf16.msra.mxu1 %v10008_v12  ;;  %v1576_v12 = vrot.slane %v1560_v63, %v10778_v41  ;;  %v10107_v63 = vld [vmem:[%s13058_s1 + $0x658] sm:$0xff]  }
  0x6f   :  { %9032 = vmatprep.subr.bf16.mxu1 %v10010_v14  ;;  %v10063_v14 = vld [vmem:[%s13058_s1 + $0x5c0] sm:$0xff]  }
  0x70   :  { %9011 = vmatpush3.bf16.msra.mxu0 %v10011_v15  ;;  %v1597_v15 = vrot.slane %v1569_v8, %v10778_v41  ;;  %v10116_v8 = vld [vmem:[%s13058_s1 + $0x6e8] sm:$0xff]  }
  0x71   :  { %9012 = vmatprep.subr.bf16.mxu0 %v10013_v17  ;;  %v10065_v17 = vld [vmem:[%s13058_s1 + $0x580] sm:$0xff]  }
  0x72   :  { %9033 = vmatpush3.bf16.msra.mxu1 %v10012_v16  ;;  %v10064_v16 = vld [vmem:[%s13058_s1 + $0x500] sm:$0xff]  }
  0x73   :  { %9034 = vmatprep.subr.bf16.mxu1 %v10014_v18  ;;  %v1598_v18 = vcombine.high %v1576_v12, %v1576_v12 }
  0x74   :  { %9013 = vmatpush3.bf16.msra.mxu0 %v10015_v19  ;;  %v10066_v19 = vld [vmem:[%s13058_s1 + $0x548] sm:$0xff]  }
  0x75   :  { %9014 = vmatprep.subr.bf16.mxu0 %v10017_v21  ;;  %v1601_v21 = vcombine.high %v1597_v15, %v1597_v15 }
  0x76   :  { %9035 = vmatpush3.bf16.msra.mxu1 %v10016_v20  ;;  %v10067_v20 = vld [vmem:[%s13058_s1 + $0x5c8] sm:$0xff]  }
  0x77   :  { %9036 = vmatprep.subr.bf16.mxu1 %v10018_v22  ;;  %v10068_v22 = vld [vmem:[%s13058_s1 + $0x508] sm:$0xff]  }
  0x78   :  { %9015 = vmatpush3.bf16.msra.mxu0 %v10019_v23  ;;  %v10069_v23 = vld [vmem:[%s13058_s1 + $0x588] sm:$0xff]  }
  0x79   :  { %9016 = vmatprep.subr.bf16.mxu0 %v10021_v25  ;;  %v10071_v25 = vld [vmem:[%s13058_s1 + $0x5d0] sm:$0xff]  }
  0x7a   :  { %9037 = vmatpush3.bf16.msra.mxu1 %v10020_v24  ;;  %v10070_v24 = vld [vmem:[%s13058_s1 + $0x550] sm:$0xff]  }
  0x7b   :  { %9038 = vmatprep.subr.bf16.mxu1 %v10022_v26  ;;  %v10072_v26 = vld [vmem:[%s13058_s1 + $0x510] sm:$0xff]  }
  0x7c   :  { %9017 = vmatpush3.bf16.msra.mxu0 %v10023_v27  ;;  %v10073_v27 = vld [vmem:[%s13058_s1 + $0x590] sm:$0xff]  }
  0x7d   :  { %9018 = vmatprep.subr.bf16.mxu0 %v10025_v29  ;;  %v10075_v29 = vld [vmem:[%s13058_s1 + $0x5d8] sm:$0xff]  }
  0x7e   :  { %9039 = vmatpush3.bf16.msra.mxu1 %v10024_v28  ;;  %v10074_v28 = vld [vmem:[%s13058_s1 + $0x558] sm:$0xff]  }
  0x7f   :  { %9040 = vmatprep.subr.bf16.mxu1 %v10026_v30  ;;  %v10076_v30 = vld [vmem:[%s13058_s1 + $0x518] sm:$0xff]  }
  0x80   :  { %9019 = vmatpush3.bf16.msra.mxu0 %v10027_v31  ;;  %v10077_v31 = vld [vmem:[%s13058_s1 + $0x598] sm:$0xff]  }
  0x81   :  { %9048 = vmatprep.subr.bf16.mxu0 %v10030_v34  ;;  %v10080_v34 = vld [vmem:[%s13058_s1 + $0x520] sm:$0xff]  }
  0x82   :  { %9041 = vmatpush3.bf16.msra.mxu1 %v10028_v32  ;;  %v10078_v32 = vld [vmem:[%s13058_s1 + $0x560] sm:$0xff]  }
  0x83   :  { %6570 = vmatmul.mubr.bf16.vlgmr.msra.gmra.mrb[12].mxu0 %v1534_v33  ;;  %9070 = vmatprep.subr.bf16.mxu1 %v10031_v35  ;;  %v10079_v33 = vld [vmem:[%s13058_s1 + $0x5e0] sm:$0xff]  }
  0x84   :  { %9049 = vmatpush3.bf16.msra.mxu0 %v10032_v36  ;;  %6649 = vmatprep.mubr.bf16.mxu0 %v1590_v7  ;;  %v10081_v35 = vld [vmem:[%s13058_s1 + $0x5a0] sm:$0xff]   ;;  %v10082_v36 = vld [vmem:[%s13058_s1 + $0x568] sm:$0xff]  }
  0x85   :  { %6610 = vmatmul.mubr.bf16.vlgmr.msra.gmra.mrb[12].mxu1 %v1550_v38  ;;  %9050 = vmatprep.subr.bf16.mxu0 %v10034_v39  ;;  %v10084_v38 = vld [vmem:[%s13058_s1 + $0x528] sm:$0xff]  }
  0x86   :  { %9071 = vmatpush3.bf16.msra.mxu1 %v10033_v37  ;;  %6689 = vmatprep.mubr.bf16.mxu1 %v1600_v11  ;;  %v10083_v37 = vld [vmem:[%s13058_s1 + $0x5e8] sm:$0xff]   ;;  %v10119_v11 = vld [vmem:[%s13058_s1 + $0x670] sm:$0xff]  }
  0x87   :  { %9072 = vmatprep.subr.bf16.mxu1 %v10035_v40  ;;  %v10085_v39 = vld [vmem:[%s13058_s1 + $0x5a8] sm:$0xff]   ;;  %v10086_v40 = vld [vmem:[%s13058_s1 + $0x570] sm:$0xff]  }
  0x88   :  { %9051 = vmatpush3.bf16.msra.mxu0 %v10036_v42  ;;  %v10087_v42 = vld [vmem:[%s13058_s1 + $0x5f0] sm:$0xff]   ;;  %v10115_v7 = vld [vmem:[%s13058_s1 + $0x668] sm:$0xff]  }
  0x89   :  { %9052 = vmatprep.subr.bf16.mxu0 %v10038_v44  ;;  %v10089_v44 = vld [vmem:[%s13058_s1 + $0x5b0] sm:$0xff]  }
  0x8a   :  { %9073 = vmatpush3.bf16.msra.mxu1 %v10037_v43  ;;  %v10088_v43 = vld [vmem:[%s13058_s1 + $0x530] sm:$0xff]  }
  0x8b   :  { %9074 = vmatprep.subr.bf16.mxu1 %v10039_v45  ;;  %v10090_v45 = vld [vmem:[%s13058_s1 + $0x578] sm:$0xff]  }
  0x8c   :  { %9053 = vmatpush3.bf16.msra.mxu0 %v10040_v46  ;;  %v10091_v46 = vld [vmem:[%s13058_s1 + $0x5f8] sm:$0xff]  }
  0x8d   :  { %9054 = vmatprep.subr.bf16.mxu0 %v10042_v48  ;;  %v10093_v48 = vld [vmem:[%s13058_s1 + $0x5b8] sm:$0xff]  }
  0x8e   :  { %9075 = vmatpush3.bf16.msra.mxu1 %v10041_v47  ;;  %v10092_v47 = vld [vmem:[%s13058_s1 + $0x538] sm:$0xff]  }
  0x8f   :  { %9076 = vmatprep.subr.bf16.mxu1 %v10043_v49  ;;  %v1583_v49 = vrot.slane %v11176_v4, %v10778_v41  ;;  %v10112_v4 = vld [vmem:[%s13058_s1 + $0x6e0] sm:$0xff]  }
  0x90   :  { %9055 = vmatpush3.bf16.msra.mxu0 %v10044_v50  ;;  %v10095_v50 = vld [vmem:[%s13058_s1 + $0x640] sm:$0xff]  }
  0x91   :  { %9056 = vmatprep.subr.bf16.mxu0 %v10046_v52  ;;  %v10097_v52 = vld [vmem:[%s13058_s1 + $0x600] sm:$0xff]  }
  0x92   :  { %9077 = vmatpush3.bf16.msra.mxu1 %v10045_v51  ;;  %v10096_v51 = vld [vmem:[%s13058_s1 + $0x6c0] sm:$0xff]  }
  0x93   :  { %9078 = vmatprep.subr.bf16.mxu1 %v10047_v53  ;;  %v10098_v53 = vld [vmem:[%s13058_s1 + $0x680] sm:$0xff]  }
  0x94   :  { %9057 = vmatpush3.bf16.msra.mxu0 %v10048_v54  ;;  %v1599_v54 = vcombine.high %v1583_v49, %v1583_v49 }
  0x95   :  { %9058 = vmatprep.subr.bf16.mxu0 %v10050_v56  ;;  %v10100_v56 = vld [vmem:[%s13058_s1 + $0x6c8] sm:$0xff]  }
  0x96   :  { %9079 = vmatpush3.bf16.msra.mxu1 %v10049_v55  ;;  %v10099_v55 = vld [vmem:[%s13058_s1 + $0x648] sm:$0xff]  }
  0x97   :  { %9080 = vmatprep.subr.bf16.mxu1 %v10051_v57  ;;  %v10101_v57 = vld [vmem:[%s13058_s1 + $0x608] sm:$0xff]  }
  0x98   :  { %9059 = vmatpush3.bf16.msra.mxu0 %v10052_v58  ;;  %v10102_v58 = vld [vmem:[%s13058_s1 + $0x688] sm:$0xff]  }
  0x99   :  { %9060 = vmatprep.subr.bf16.mxu0 %v10054_v60  ;;  %v10104_v60 = vld [vmem:[%s13058_s1 + $0x6d0] sm:$0xff]  }
  0x9a   :  { %9081 = vmatpush3.bf16.msra.mxu1 %v10053_v59  ;;  %v10103_v59 = vld [vmem:[%s13058_s1 + $0x650] sm:$0xff]  }
  0x9b   :  { %9082 = vmatprep.subr.bf16.mxu1 %v10055_v62  ;;  %v10106_v62 = vld [vmem:[%s13058_s1 + $0x690] sm:$0xff]  }
  0x9c   :  { %9061 = vmatpush3.bf16.msra.mxu0 %v10056_v1  ;;  %v10109_v1 = vld [vmem:[%s13058_s1 + $0x618] sm:$0xff]  }
  0x9d   :  { %9062 = vmatprep.subr.bf16.mxu0 %v10058_v5  ;;  %v10113_v5 = vld [vmem:[%s13058_s1 + $0x620] sm:$0xff]  }
  0x9e   :  { %9083 = vmatpush3.bf16.msra.mxu1 %v10057_v2  ;;  %v10110_v2 = vld [vmem:[%s13058_s1 + $0x698] sm:$0xff]  }
  0x9f   :  { %9084 = vmatprep.subr.bf16.mxu1 %v10059_v6  ;;  %v10114_v6 = vld [vmem:[%s13058_s1 + $0x6a0] sm:$0xff]  }
  0xa0   :  { %9063 = vmatpush3.bf16.msra.mxu0 %v10060_v9  ;;  %v10117_v9 = vld [vmem:[%s13058_s1 + $0x628] sm:$0xff]  }
  0xa1   :  { %9092 = vmatprep.subr.bf16.mxu0 %v10062_v13  ;;  %v10120_v13 = vld [vmem:[%s13058_s1 + $0x6f0] sm:$0xff]  }
  0xa2   :  { %9085 = vmatpush3.bf16.msra.mxu1 %v10061_v10  ;;  %v10118_v10 = vld [vmem:[%s13058_s1 + $0x6a8] sm:$0xff]  }
  0xa3   :  { %6650 = vmatmul.mubr.bf16.vlgmr.msra.gmra.mrb[16].mxu0 %v1576_v12  ;;  %9114 = vmatprep.subr.bf16.mxu1 %v10063_v14  ;;  %v25_v12 = vld [vmem:[%s13057_s0 + $0x18] sm:$0xff] }
  0xa4   :  { %9093 = vmatpush3.bf16.msra.mxu0 %v10064_v16  ;;  %6729 = vmatprep.mubr.bf16.mxu0 %v1597_v15  ;;  %v1609_v14 = vrot.slane %v25_v12, %v10778_v41  ;;  %v1602_v15 = vcombine.high %v25_v12, %v25_v12  ;;  %v10121_v16 = vld [vmem:[%s13058_s1 + $0x630] sm:$0xff]  }
  0xa5   :  { %6690 = vmatmul.mubr.bf16.vlgmr.msra.gmra.mrb[16].mxu1 %v1598_v18  ;;  %9094 = vmatprep.subr.bf16.mxu0 %v10066_v19 }
  0xa6   :  { %9115 = vmatpush3.bf16.msra.mxu1 %v10065_v17  ;;  %6769 = vmatprep.mubr.bf16.mxu1 %v1601_v21  ;;  %v10123_v17 = vld [vmem:[%s13058_s1 + $0x678] sm:$0xff]   ;;  %v1617_v18 = vcombine.high %v1609_v14, %v1609_v14  ;;  %v11382_v19 = vrot.slane %v1602_v15, %v10778_v41  ;;  %v10161_v15 = vld [vmem:[%s13058_s1 + $0x8c0] sm:$0xff]  }
  0xa7   :  { %9116 = vmatprep.subr.bf16.mxu1 %v10067_v20  ;;  %v10122_v20 = vld [vmem:[%s13058_s1 + $0x6b0] sm:$0xff]   ;;  %v10124_v21 = vld [vmem:[%s13058_s1 + $0x6f8] sm:$0xff]  }
  0xa8   :  { %9095 = vmatpush3.bf16.msra.mxu0 %v10068_v22  ;;  %v1639_v22 = vrot.slane %v1617_v18, %v10778_v41  ;;  %v1632_v12 = vrot.slane %v11382_v19, %v10778_v41 }
  0xa9   :  { %9096 = vmatprep.subr.bf16.mxu0 %v10070_v24  ;;  %v10125_v24 = vld [vmem:[%s13058_s1 + $0x638] sm:$0xff]  }
  0xaa   :  { %9117 = vmatpush3.bf16.msra.mxu1 %v10069_v23  ;;  %v1618_v23 = vcombine.high %v11382_v19, %v11382_v19  ;;  %v1648_v18 = vcombine.high %v1632_v12, %v1632_v12  ;;  %v10164_v19 = vld [vmem:[%s13058_s1 + $0x848] sm:$0xff]  }
  0xab   :  { %9118 = vmatprep.subr.bf16.mxu1 %v10071_v25  ;;  %v1649_v25 = vcombine.high %v1639_v22, %v1639_v22 }
  0xac   :  { %9097 = vmatpush3.bf16.msra.mxu0 %v10072_v26  ;;  %v1625_v26 = vrot.slane %v1609_v14, %v10778_v41 }
  0xad   :  { %9098 = vmatprep.subr.bf16.mxu0 %v10074_v28  ;;  %v10126_v28 = vld [vmem:[%s13058_s1 + $0x6b8] sm:$0xff]  }
  0xae   :  { %9119 = vmatpush3.bf16.msra.mxu1 %v10073_v27  ;;  %v10127_v27 = vld [vmem:[%s13058_s1 + $0x740] sm:$0xff]  }
  0xaf   :  { %9120 = vmatprep.subr.bf16.mxu1 %v10075_v29  ;;  %v1646_v29 = vrot.slane %v1618_v23, %v10778_v41  ;;  %v10168_v23 = vld [vmem:[%s13058_s1 + $0x850] sm:$0xff]  }
  0xb0   :  { %9099 = vmatpush3.bf16.msra.mxu0 %v10076_v30  ;;  %v10128_v30 = vld [vmem:[%s13058_s1 + $0x7c0] sm:$0xff]  }
  0xb1   :  { %9100 = vmatprep.subr.bf16.mxu0 %v10078_v32  ;;  %v1647_v32 = vcombine.high %v1625_v26, %v1625_v26 }
  0xb2   :  { %9121 = vmatpush3.bf16.msra.mxu1 %v10077_v31  ;;  %v10129_v31 = vld [vmem:[%s13058_s1 + $0x700] sm:$0xff]  }
  0xb3   :  { %9122 = vmatprep.subr.bf16.mxu1 %v10079_v33  ;;  %v10131_v33 = vld [vmem:[%s13058_s1 + $0x748] sm:$0xff]  }
  0xb4   :  { %9101 = vmatpush3.bf16.msra.mxu0 %v10080_v34  ;;  %v10130_v34 = vld [vmem:[%s13058_s1 + $0x780] sm:$0xff]  }
  0xb5   :  { %9102 = vmatprep.subr.bf16.mxu0 %v10082_v36  ;;  %v10132_v36 = vld [vmem:[%s13058_s1 + $0x7c8] sm:$0xff]  }
  0xb6   :  { %9123 = vmatpush3.bf16.msra.mxu1 %v10081_v35  ;;  %v1650_v35 = vcombine.high %v1646_v29, %v1646_v29 }
  0xb7   :  { %9124 = vmatprep.subr.bf16.mxu1 %v10083_v37  ;;  %v10133_v37 = vld [vmem:[%s13058_s1 + $0x708] sm:$0xff]  }
  0xb8   :  { %9103 = vmatpush3.bf16.msra.mxu0 %v10084_v38  ;;  %v10135_v38 = vld [vmem:[%s13058_s1 + $0x750] sm:$0xff]  }
  0xb9   :  { %9104 = vmatprep.subr.bf16.mxu0 %v10086_v40  ;;  %v10136_v40 = vld [vmem:[%s13058_s1 + $0x7d0] sm:$0xff]  }
  0xba   :  { %9125 = vmatpush3.bf16.msra.mxu1 %v10085_v39  ;;  %v10134_v39 = vld [vmem:[%s13058_s1 + $0x788] sm:$0xff]  }
  0xbb   :  { %9126 = vmatprep.subr.bf16.mxu1 %v10087_v42  ;;  %v10137_v42 = vld [vmem:[%s13058_s1 + $0x710] sm:$0xff]  }
  0xbc   :  { %9105 = vmatpush3.bf16.msra.mxu0 %v10088_v43  ;;  %v10139_v43 = vld [vmem:[%s13058_s1 + $0x758] sm:$0xff]  }
  0xbd   :  { %9106 = vmatprep.subr.bf16.mxu0 %v10090_v45  ;;  %v10140_v45 = vld [vmem:[%s13058_s1 + $0x7d8] sm:$0xff]  }
  0xbe   :  { %9127 = vmatpush3.bf16.msra.mxu1 %v10089_v44  ;;  %v10138_v44 = vld [vmem:[%s13058_s1 + $0x790] sm:$0xff]  }
  0xbf   :  { %9128 = vmatprep.subr.bf16.mxu1 %v10091_v46  ;;  %v10141_v46 = vld [vmem:[%s13058_s1 + $0x718] sm:$0xff]  }
  0xc0   :  { %9107 = vmatpush3.bf16.msra.mxu0 %v10092_v47  ;;  %v10142_v47 = vld [vmem:[%s13058_s1 + $0x798] sm:$0xff]  }
  0xc1   :  { %9136 = vmatprep.subr.bf16.mxu0 %v10095_v50  ;;  %v10145_v50 = vld [vmem:[%s13058_s1 + $0x720] sm:$0xff]  }
  0xc2   :  { %9129 = vmatpush3.bf16.msra.mxu1 %v10093_v48  ;;  %v10143_v48 = vld [vmem:[%s13058_s1 + $0x760] sm:$0xff]  }
  0xc3   :  { %6730 = vmatmul.mubr.bf16.vlgmr.msra.gmra.mrb[20].mxu0 %v1583_v49  ;;  %9158 = vmatprep.subr.bf16.mxu1 %v10096_v51  ;;  %v10144_v49 = vld [vmem:[%s13058_s1 + $0x7e0] sm:$0xff]  }
  0xc4   :  { %9137 = vmatpush3.bf16.msra.mxu0 %v10097_v52  ;;  %6809 = vmatprep.mubr.bf16.mxu0 %v1639_v22  ;;  %v10146_v51 = vld [vmem:[%s13058_s1 + $0x7a0] sm:$0xff]   ;;  %v10147_v52 = vld [vmem:[%s13058_s1 + $0x768] sm:$0xff]  }
  0xc5   :  { %6770 = vmatmul.mubr.bf16.vlgmr.msra.gmra.mrb[20].mxu1 %v1599_v54  ;;  %9138 = vmatprep.subr.bf16.mxu0 %v10099_v55  ;;  %v10149_v54 = vld [vmem:[%s13058_s1 + $0x728] sm:$0xff]  }
  0xc6   :  { %9159 = vmatpush3.bf16.msra.mxu1 %v10098_v53  ;;  %6849 = vmatprep.mubr.bf16.mxu1 %v1649_v25  ;;  %v10148_v53 = vld [vmem:[%s13058_s1 + $0x7e8] sm:$0xff]   ;;  %v10170_v25 = vld [vmem:[%s13058_s1 + $0x810] sm:$0xff]  }
  0xc7   :  { %9160 = vmatprep.subr.bf16.mxu1 %v10100_v56  ;;  %v10150_v55 = vld [vmem:[%s13058_s1 + $0x7a8] sm:$0xff]   ;;  %v8167_v56 = vld [vmem:[%s13059_s2] ss:$0 sm:$0xff] }
  0xc8   :  { %9139 = vmatpush3.bf16.msra.mxu0 %v10101_v57  ;;  %v10151_v57 = vld [vmem:[%s13058_s1 + $0x770] sm:$0xff]   ;;  %v10167_v22 = vld [vmem:[%s13058_s1 + $0x888] sm:$0xff]  }
  0xc9   :  { %9140 = vmatprep.subr.bf16.mxu0 %v10103_v59  ;;  %v10152_v59 = vld [vmem:[%s13058_s1 + $0x7f0] sm:$0xff]  }
  0xca   :  { %9161 = vmatpush3.bf16.msra.mxu1 %v10102_v58 }
  0xcb   :  { %9162 = vmatprep.subr.bf16.mxu1 %v10104_v60 }
  0xcc   :  { %9141 = vmatpush3.bf16.msra.mxu0 %v10105_v61  ;;  %v10153_v61 = vld [vmem:[%s13058_s1 + $0x730] sm:$0xff]  }
  0xcd   :  { %9142 = vmatprep.subr.bf16.mxu0 %v10107_v63 }
  0xce   :  { %9163 = vmatpush3.bf16.msra.mxu1 %v10106_v62 }
  0xcf   :  { %9164 = vmatprep.subr.bf16.mxu1 %v10108_v0  ;;  %v10154_v0 = vld [vmem:[%s13058_s1 + $0x7b0] sm:$0xff]  }
  0xd0   :  { %9143 = vmatpush3.bf16.msra.mxu0 %v10109_v1 }
  0xd1   :  { %9144 = vmatprep.subr.bf16.mxu0 %v10111_v3 }
  0xd2   :  { %9165 = vmatpush3.bf16.msra.mxu1 %v10110_v2  ;;  %v10155_v2 = vld [vmem:[%s13058_s1 + $0x778] sm:$0xff]  }
  0xd3   :  { %9166 = vmatprep.subr.bf16.mxu1 %v10112_v4 }
  0xd4   :  { %9145 = vmatpush3.bf16.msra.mxu0 %v10113_v5 }
  0xd5   :  { %9146 = vmatprep.subr.bf16.mxu0 %v10115_v7 }
  0xd6   :  { %9167 = vmatpush3.bf16.msra.mxu1 %v10114_v6  ;;  %v10156_v6 = vld [vmem:[%s13058_s1 + $0x7f8] sm:$0xff]  }
  0xd7   :  { %9168 = vmatprep.subr.bf16.mxu1 %v10116_v8  ;;  %v10157_v8 = vld [vmem:[%s13058_s1 + $0x738] sm:$0xff]  }
  0xd8   :  { %9147 = vmatpush3.bf16.msra.mxu0 %v10117_v9 }
  0xd9   :  { %9148 = vmatprep.subr.bf16.mxu0 %v10119_v11 }
  0xda   :  { %9169 = vmatpush3.bf16.msra.mxu1 %v10118_v10  ;;  %v10158_v10 = vld [vmem:[%s13058_s1 + $0x7b8] sm:$0xff]  }
  0xdb   :  { %9170 = vmatprep.subr.bf16.mxu1 %v10120_v13  ;;  %v10160_v13 = vld [vmem:[%s13058_s1 + $0x840] sm:$0xff]  }
  0xdc   :  { %9149 = vmatpush3.bf16.msra.mxu0 %v10121_v16  ;;  %v10162_v16 = vld [vmem:[%s13058_s1 + $0x800] sm:$0xff]  }
  0xdd   :  { %9150 = vmatprep.subr.bf16.mxu0 %v10123_v17  ;;  %v10163_v17 = vld [vmem:[%s13058_s1 + $0x880] sm:$0xff]  }
  0xde   :  { %9171 = vmatpush3.bf16.msra.mxu1 %v10122_v20  ;;  %v10165_v20 = vld [vmem:[%s13058_s1 + $0x8c8] sm:$0xff]  }
  0xdf   :  { %9172 = vmatprep.subr.bf16.mxu1 %v10124_v21  ;;  %v10166_v21 = vld [vmem:[%s13058_s1 + $0x808] sm:$0xff]  }
  0xe0   :  { %9151 = vmatpush3.bf16.msra.mxu0 %v10125_v24  ;;  %v10169_v24 = vld [vmem:[%s13058_s1 + $0x8d0] sm:$0xff]  }
  0xe1   :  { %9180 = vmatprep.subr.bf16.mxu0 %v10127_v27  ;;  %v10172_v27 = vld [vmem:[%s13058_s1 + $0x858] sm:$0xff]  }
  0xe2   :  { %9173 = vmatpush3.bf16.msra.mxu1 %v10126_v28  ;;  %v10173_v28 = vld [vmem:[%s13058_s1 + $0x8d8] sm:$0xff]  }
  0xe3   :  { %6810 = vmatmul.mubr.bf16.vlgmr.msra.gmra.mrb[24].mxu0 %v1625_v26  ;;  %9202 = vmatprep.subr.bf16.mxu1 %v10128_v30  ;;  %v10171_v26 = vld [vmem:[%s13058_s1 + $0x890] sm:$0xff]   ;;  %v10175_v30 = vld [vmem:[%s13058_s1 + $0x898] sm:$0xff]  }
  0xe4   :  { %9181 = vmatpush3.bf16.msra.mxu0 %v10129_v31  ;;  %6889 = vmatprep.mubr.bf16.mxu0 %v1646_v29  ;;  %v10174_v29 = vld [vmem:[%s13058_s1 + $0x818] sm:$0xff]   ;;  %v10176_v31 = vld [vmem:[%s13058_s1 + $0x860] sm:$0xff]  }
  0xe5   :  { %6850 = vmatmul.mubr.bf16.vlgmr.msra.gmra.mrb[24].mxu1 %v1647_v32  ;;  %9182 = vmatprep.subr.bf16.mxu0 %v10131_v33  ;;  %v10177_v32 = vld [vmem:[%s13058_s1 + $0x8e0] sm:$0xff]  }
  0xe6   :  { %9203 = vmatpush3.bf16.msra.mxu1 %v10130_v34  ;;  %6929 = vmatprep.mubr.bf16.mxu1 %v1650_v35  ;;  %v10178_v33 = vld [vmem:[%s13058_s1 + $0x820] sm:$0xff]   ;;  %v10180_v35 = vld [vmem:[%s13058_s1 + $0x868] sm:$0xff]  }
  0xe7   :  { %9204 = vmatprep.subr.bf16.mxu1 %v10132_v36  ;;  %v10179_v34 = vld [vmem:[%s13058_s1 + $0x8a0] sm:$0xff]   ;;  %v10181_v36 = vld [vmem:[%s13058_s1 + $0x8e8] sm:$0xff]  }
  0xe8   :  { %9183 = vmatpush3.bf16.msra.mxu0 %v10133_v37  ;;  %v10182_v37 = vld [vmem:[%s13058_s1 + $0x828] sm:$0xff]  }
  0xe9   :  { %9184 = vmatprep.subr.bf16.mxu0 %v10135_v38  ;;  %v10183_v38 = vld [vmem:[%s13058_s1 + $0x8a8] sm:$0xff]  }
  0xea   :  { %9205 = vmatpush3.bf16.msra.mxu1 %v10134_v39  ;;  %v10184_v39 = vld [vmem:[%s13058_s1 + $0x870] sm:$0xff]  }
  0xeb   :  { %9206 = vmatprep.subr.bf16.mxu1 %v10136_v40 }
  0xec   :  { %9185 = vmatpush3.bf16.msra.mxu0 %v10137_v42  ;;  %v10185_v42 = vld [vmem:[%s13058_s1 + $0x8f0] sm:$0xff]  }
  0xed   :  { %9186 = vmatprep.subr.bf16.mxu0 %v10139_v43  ;;  %v26_v43 = vld [vmem:[%s13057_s0 + $0x20] sm:$0xff] }
  0xee   :  { %9207 = vmatpush3.bf16.msra.mxu1 %v10138_v44 }
  0xef   :  { %9208 = vmatprep.subr.bf16.mxu1 %v10140_v45  ;;  %v10186_v45 = vld [vmem:[%s13058_s1 + $0x830] sm:$0xff]  }
  0xf0   :  { %9187 = vmatpush3.bf16.msra.mxu0 %v10141_v46  ;;  %v1658_v46 = vrot.slane %v26_v43, %v10778_v41 }
  0xf1   :  { %9188 = vmatprep.subr.bf16.mxu0 %v10143_v48 }
  0xf2   :  { %9209 = vmatpush3.bf16.msra.mxu1 %v10142_v47  ;;  %v1651_v47 = vcombine.high %v26_v43, %v26_v43 }
  0xf3   :  { %9210 = vmatprep.subr.bf16.mxu1 %v10144_v49 }
  0xf4   :  { %9189 = vmatpush3.bf16.msra.mxu0 %v10145_v50  ;;  %v10187_v50 = vld [vmem:[%s13058_s1 + $0x8b0] sm:$0xff]  }
  0xf5   :  { %9190 = vmatprep.subr.bf16.mxu0 %v10147_v52  ;;  %v10188_v52 = vld [vmem:[%s13058_s1 + $0x878] sm:$0xff]  }
  0xf6   :  { %9211 = vmatpush3.bf16.msra.mxu1 %v10146_v51  ;;  %v8888_v58 = vpop.f32.mrb[0].mxu0 }
  0xf7   :  { %v8889_v60 = vpop.f32.mrb[1].mxu0  ;;  %9212 = vmatprep.subr.bf16.mxu1 %v10148_v53  ;;  %v8910_v62 = vpop.f32.mrb[0].mxu1  ;;  %v1666_v53 = vcombine.high %v1658_v46, %v1658_v46 }
  0xf8   :  { %v8890_v63 = vadd.f32 %v8889_v60, %v8888_v58  ;;  %9191 = vmatpush3.bf16.msra.mxu0 %v10149_v54  ;;  %v8911_v1 = vpop.f32.mrb[1].mxu1  ;;  %v8891_v11 = vpop.f32.mrb[2].mxu0  ;;  %v11596_v54 = vrot.slane %v1651_v47, %v10778_v41  ;;  %v10189_v58 = vld [vmem:[%s13058_s1 + $0x8f8] sm:$0xff]  }
  0xf9   :  { %9192 = vmatprep.subr.bf16.mxu0 %v10151_v57  ;;  %v8912_v4 = vadd.f32 %v8911_v1, %v8910_v62  ;;  %v8913_v5 = vpop.f32.mrb[2].mxu1  ;;  %v8892_v14 = vpop.f32.mrb[3].mxu0  ;;  %v10190_v60 = vld [vmem:[%s13058_s1 + $0x838] sm:$0xff]   ;;  %v10196_v11 = vld [vmem:[%s13058_s1 + $0x948] sm:$0xff]  }
  0xfa   :  { %v6332_v3 = vadd.f32 %v8890_v63, %v8167_v56  ;;  %9213 = vmatpush3.bf16.msra.mxu1 %v10150_v55  ;;  %v8914_v7 = vpop.f32.mrb[3].mxu1  ;;  %v1667_v62 = vcombine.high %v11596_v54, %v11596_v54  ;;  %v10198_v14 = vld [vmem:[%s13058_s1 + $0x908] sm:$0xff]  }
  0xfb   :  { %9214 = vmatprep.subr.bf16.mxu1 %v10152_v59 }
  0xfc   :  { %v11497_v9 = vadd.f32 %v8912_v4, %v6332_v3  ;;  %9193 = vmatpush3.bf16.msra.mxu0 %v10153_v61  ;;  %v1688_v61 = vrot.slane %v1666_v53, %v10778_v41  ;;  %v1674_v3 = vrot.slane %v1658_v46, %v10778_v41  ;;  %v10192_v4 = vld [vmem:[%s13058_s1 + $0x940] sm:$0xff]   ;;  %v1695_v7 = vrot.slane %v1667_v62, %v10778_v41  ;;  %v10221_v46 = vld [vmem:[%s13058_s1 + $0x9f8] sm:$0xff]   ;;  %v10232_v62 = vld [vmem:[%s13058_s1 + $0xa88] sm:$0xff]  }
  0xfd   :  { %9194 = vmatprep.subr.bf16.mxu0 %v10155_v2  ;;  %v10225_v53 = vld [vmem:[%s13058_s1 + $0xa40] sm:$0xff]  }
  0xfe   :  { %9215 = vmatpush3.bf16.msra.mxu1 %v10154_v0  ;;  %v10191_v0 = vld [vmem:[%s13058_s1 + $0x8b8] sm:$0xff]   ;;  %v1698_v2 = vcombine.high %v1688_v61, %v1688_v61 }
  0xff   :  { %9216 = vmatprep.subr.bf16.mxu1 %v10156_v6  ;;  %v10193_v6 = vld [vmem:[%s13058_s1 + $0x9c0] sm:$0xff]  }
 0x100   :  { %9195 = vmatpush3.bf16.msra.mxu0 %v10157_v8  ;;  %v10194_v8 = vld [vmem:[%s13058_s1 + $0x900] sm:$0xff]  }
 0x101   :  { %9224 = vmatprep.subr.bf16.mxu0 %v10160_v13  ;;  %v1699_v13 = vcombine.high %v1695_v7, %v1695_v7 }
 0x102   :  { %9217 = vmatpush3.bf16.msra.mxu1 %v10158_v10  ;;  %v1696_v10 = vcombine.high %v1674_v3, %v1674_v3 }
 0x103   :  { %6890 = vmatmul.mubr.bf16.vlgmr.msra.gmra.mrb[28].mxu0 %v1632_v12  ;;  %9246 = vmatprep.subr.bf16.mxu1 %v10161_v15  ;;  %v10197_v12 = vld [vmem:[%s13058_s1 + $0x9c8] sm:$0xff]  }
 0x104   :  { %9225 = vmatpush3.bf16.msra.mxu0 %v10162_v16  ;;  %6969 = vmatprep.mubr.bf16.mxu0 %v1688_v61  ;;  %v10199_v15 = vld [vmem:[%s13058_s1 + $0x988] sm:$0xff]   ;;  %v10200_v16 = vld [vmem:[%s13058_s1 + $0x950] sm:$0xff]  }
 0x105   :  { %6930 = vmatmul.mubr.bf16.vlgmr.msra.gmra.mrb[28].mxu1 %v1648_v18  ;;  %9226 = vmatprep.subr.bf16.mxu0 %v10164_v19  ;;  %v10202_v18 = vld [vmem:[%s13058_s1 + $0x910] sm:$0xff]   ;;  %v10231_v61 = vld [vmem:[%s13058_s1 + $0xa08] sm:$0xff]  }
 0x106   :  { %9247 = vmatpush3.bf16.msra.mxu1 %v10163_v17  ;;  %7009 = vmatprep.mubr.bf16.mxu1 %v1698_v2  ;;  %v10201_v17 = vld [vmem:[%s13058_s1 + $0x9d0] sm:$0xff]  }
 0x107   :  { %9248 = vmatprep.subr.bf16.mxu1 %v10165_v20  ;;  %v10203_v19 = vld [vmem:[%s13058_s1 + $0x990] sm:$0xff]   ;;  %v10204_v20 = vld [vmem:[%s13058_s1 + $0x958] sm:$0xff]  }
 0x108   :  { %9227 = vmatpush3.bf16.msra.mxu0 %v10166_v21  ;;  %v10205_v21 = vld [vmem:[%s13058_s1 + $0x9d8] sm:$0xff]   ;;  %v10236_v2 = vld [vmem:[%s13058_s1 + $0xa90] sm:$0xff]  }
 0x109   :  { %9228 = vmatprep.subr.bf16.mxu0 %v10168_v23  ;;  %v10207_v23 = vld [vmem:[%s13058_s1 + $0x998] sm:$0xff]  }
 0x10a   :  { %9249 = vmatpush3.bf16.msra.mxu1 %v10167_v22  ;;  %v10206_v22 = vld [vmem:[%s13058_s1 + $0x918] sm:$0xff]  }
 0x10b   :  { %9250 = vmatprep.subr.bf16.mxu1 %v10169_v24  ;;  %v10208_v24 = vld [vmem:[%s13058_s1 + $0x960] sm:$0xff]  }
 0x10c   :  { %9229 = vmatpush3.bf16.msra.mxu0 %v10170_v25  ;;  %v10209_v25 = vld [vmem:[%s13058_s1 + $0x9e0] sm:$0xff]  }
 0x10d   :  { %9230 = vmatprep.subr.bf16.mxu0 %v10172_v27  ;;  %v10211_v27 = vld [vmem:[%s13058_s1 + $0x9a0] sm:$0xff]  }
 0x10e   :  { %9251 = vmatpush3.bf16.msra.mxu1 %v10171_v26  ;;  %v10210_v26 = vld [vmem:[%s13058_s1 + $0x920] sm:$0xff]  }
 0x10f   :  { %9252 = vmatprep.subr.bf16.mxu1 %v10173_v28  ;;  %v10212_v28 = vld [vmem:[%s13058_s1 + $0x968] sm:$0xff]  }
 0x110   :  { %9231 = vmatpush3.bf16.msra.mxu0 %v10174_v29  ;;  %v10213_v29 = vld [vmem:[%s13058_s1 + $0x9e8] sm:$0xff]  }
 0x111   :  { %9232 = vmatprep.subr.bf16.mxu0 %v10176_v31  ;;  %v10215_v31 = vld [vmem:[%s13058_s1 + $0x9a8] sm:$0xff]  }
 0x112   :  { %9253 = vmatpush3.bf16.msra.mxu1 %v10175_v30  ;;  %v10214_v30 = vld [vmem:[%s13058_s1 + $0x928] sm:$0xff]  }
 0x113   :  { %9254 = vmatprep.subr.bf16.mxu1 %v10177_v32  ;;  %v10216_v32 = vld [vmem:[%s13058_s1 + $0x970] sm:$0xff]  }
 0x114   :  { %9233 = vmatpush3.bf16.msra.mxu0 %v10178_v33 }
 0x115   :  { %9234 = vmatprep.subr.bf16.mxu0 %v10180_v35 }
 0x116   :  { %9255 = vmatpush3.bf16.msra.mxu1 %v10179_v34  ;;  %v8932_v40 = vpop.f32.mrb[4].mxu0  ;;  %v10217_v34 = vld [vmem:[%s13058_s1 + $0x9f0] sm:$0xff]  }
 0x117   :  { %v8933_v44 = vpop.f32.mrb[5].mxu0  ;;  %9256 = vmatprep.subr.bf16.mxu1 %v10181_v36  ;;  %v8954_v48 = vpop.f32.mrb[4].mxu1  ;;  %v10218_v36 = vld [vmem:[%s13058_s1 + $0x930] sm:$0xff]  }
 0x118   :  { %v8934_v49 = vadd.f32 %v8933_v44, %v8932_v40  ;;  %9235 = vmatpush3.bf16.msra.mxu0 %v10182_v37  ;;  %v8955_v51 = vpop.f32.mrb[5].mxu1  ;;  %v8935_v1 = vpop.f32.mrb[6].mxu0 }
 0x119   :  { %9236 = vmatprep.subr.bf16.mxu0 %v10184_v39  ;;  %v8956_v56 = vadd.f32 %v8955_v51, %v8954_v48  ;;  %v8957_v57 = vpop.f32.mrb[6].mxu1  ;;  %v8936_v5 = vpop.f32.mrb[7].mxu0  ;;  %v10219_v39 = vld [vmem:[%s13058_s1 + $0x9b0] sm:$0xff]   ;;  %v10222_v48 = vld [vmem:[%s13058_s1 + $0x938] sm:$0xff]  }
 0x11a   :  { %v6412_v55 = vadd.f32 %v8934_v49, %v11497_v9  ;;  %9257 = vmatpush3.bf16.msra.mxu1 %v10183_v38  ;;  %v8958_v59 = vpop.f32.mrb[7].mxu1  ;;  %v10195_v9 = vld [vmem:[%s13058_s1 + $0x980] sm:$0xff]   ;;  %v10235_v1 = vld [vmem:[%s13058_s1 + $0xa10] sm:$0xff]   ;;  %v10239_v5 = vld [vmem:[%s13058_s1 + $0xa18] sm:$0xff]  }
 0x11b   :  { %9258 = vmatprep.subr.bf16.mxu1 %v10185_v42  ;;  %v10220_v42 = vld [vmem:[%s13058_s1 + $0x978] sm:$0xff]   ;;  %v10227_v57 = vld [vmem:[%s13058_s1 + $0xa00] sm:$0xff]   ;;  %v10229_v59 = vld [vmem:[%s13058_s1 + $0xa48] sm:$0xff]  }
 0x11c   :  { %v11608_v63 = vadd.f32 %v8956_v56, %v6412_v55  ;;  %9237 = vmatpush3.bf16.msra.mxu0 %v10186_v45  ;;  %v10226_v56 = vld [vmem:[%s13058_s1 + $0xac0] sm:$0xff]  }
 0x11d   :  { %9238 = vmatprep.subr.bf16.mxu0 %v10188_v52  ;;  %v1681_v52 = vrot.slane %v11596_v54, %v10778_v41  ;;  %v10228_v54 = vld [vmem:[%s13058_s1 + $0xa80] sm:$0xff]  }
 0x11e   :  { %9259 = vmatpush3.bf16.msra.mxu1 %v10187_v50  ;;  %v10223_v50 = vld [vmem:[%s13058_s1 + $0x9b8] sm:$0xff]  }
 0x11f   :  { %9260 = vmatprep.subr.bf16.mxu1 %v10189_v58  ;;  %v1697_v58 = vcombine.high %v1681_v52, %v1681_v52 }
 0x120   :  { %9239 = vmatpush3.bf16.msra.mxu0 %v10190_v60  ;;  %v10230_v60 = vld [vmem:[%s13058_s1 + $0xac8] sm:$0xff]  }
 0x121   :  { %9268 = vmatprep.subr.bf16.mxu0 %v10192_v4  ;;  %v10238_v4 = vld [vmem:[%s13058_s1 + $0xad8] sm:$0xff]  }
 0x122   :  { %9261 = vmatpush3.bf16.msra.mxu1 %v10191_v0  ;;  %v10234_v0 = vld [vmem:[%s13058_s1 + $0xad0] sm:$0xff]  }
 0x123   :  { %6970 = vmatmul.mubr.bf16.vlgmr.msra.gmra.mrb[32].mxu0 %v1674_v3  ;;  %9290 = vmatprep.subr.bf16.mxu1 %v10193_v6  ;;  %v10237_v3 = vld [vmem:[%s13058_s1 + $0xa58] sm:$0xff]  }
 0x124   :  { %9269 = vmatpush3.bf16.msra.mxu0 %v10194_v8  ;;  %7049 = vmatprep.mubr.bf16.mxu0 %v1695_v7  ;;  %v10240_v6 = vld [vmem:[%s13058_s1 + $0xa98] sm:$0xff]   ;;  %v10241_v7 = vld [vmem:[%s13058_s1 + $0xa60] sm:$0xff]  }
 0x125   :  { %7010 = vmatmul.mubr.bf16.vlgmr.msra.gmra.mrb[32].mxu1 %v1696_v10  ;;  %9270 = vmatprep.subr.bf16.mxu0 %v10196_v11  ;;  %v10242_v8 = vld [vmem:[%s13058_s1 + $0xae0] sm:$0xff]   ;;  %v10245_v11 = vld [vmem:[%s13058_s1 + $0xa68] sm:$0xff]  }
 0x126   :  { %9291 = vmatpush3.bf16.msra.mxu1 %v10195_v9  ;;  %7089 = vmatprep.mubr.bf16.mxu1 %v1699_v13  ;;  %v10243_v9 = vld [vmem:[%s13058_s1 + $0xa20] sm:$0xff]   ;;  %v10247_v13 = vld [vmem:[%s13058_s1 + $0xa28] sm:$0xff]  }
 0x127   :  { %9292 = vmatprep.subr.bf16.mxu1 %v10197_v12  ;;  %v10244_v10 = vld [vmem:[%s13058_s1 + $0xaa0] sm:$0xff]   ;;  %v10246_v12 = vld [vmem:[%s13058_s1 + $0xae8] sm:$0xff]  }
 0x128   :  { %9271 = vmatpush3.bf16.msra.mxu0 %v10198_v14  ;;  %v10248_v14 = vld [vmem:[%s13058_s1 + $0xaa8] sm:$0xff]  }
 0x129   :  { %9272 = vmatprep.subr.bf16.mxu0 %v10200_v16  ;;  %v10250_v16 = vld [vmem:[%s13058_s1 + $0xaf0] sm:$0xff]  }
 0x12a   :  { %9293 = vmatpush3.bf16.msra.mxu1 %v10199_v15  ;;  %v10249_v15 = vld [vmem:[%s13058_s1 + $0xa70] sm:$0xff]  }
 0x12b   :  { %9294 = vmatprep.subr.bf16.mxu1 %v10201_v17 }
 0x12c   :  { %9273 = vmatpush3.bf16.msra.mxu0 %v10202_v18  ;;  %v10251_v18 = vld [vmem:[%s13058_s1 + $0xa30] sm:$0xff]  }
 0x12d   :  { %9274 = vmatprep.subr.bf16.mxu0 %v10204_v20  ;;  %v27_v20 = vld [vmem:[%s13057_s0 + $0x28] sm:$0xff] }
 0x12e   :  { %9295 = vmatpush3.bf16.msra.mxu1 %v10203_v19 }
 0x12f   :  { %9296 = vmatprep.subr.bf16.mxu1 %v10205_v21 }
 0x130   :  { %9275 = vmatpush3.bf16.msra.mxu0 %v10206_v22 }
 0x131   :  { %9276 = vmatprep.subr.bf16.mxu0 %v10208_v24  ;;  %v1707_v24 = vrot.slane %v27_v20, %v10778_v41 }
 0x132   :  { %9297 = vmatpush3.bf16.msra.mxu1 %v10207_v23  ;;  %v10252_v23 = vld [vmem:[%s13058_s1 + $0xab0] sm:$0xff]  }
 0x133   :  { %9298 = vmatprep.subr.bf16.mxu1 %v10209_v25  ;;  %v1700_v25 = vcombine.high %v27_v20, %v27_v20 }
 0x134   :  { %9277 = vmatpush3.bf16.msra.mxu0 %v10210_v26 }
 0x135   :  { %9278 = vmatprep.subr.bf16.mxu0 %v10212_v28 }
 0x136   :  { %9299 = vmatpush3.bf16.msra.mxu1 %v10211_v27  ;;  %v8976_v33 = vpop.f32.mrb[8].mxu0  ;;  %v10253_v27 = vld [vmem:[%s13058_s1 + $0xa78] sm:$0xff]  }
 0x137   :  { %v8977_v35 = vpop.f32.mrb[9].mxu0  ;;  %9300 = vmatprep.subr.bf16.mxu1 %v10213_v29 }
 0x138   :  { %v8998_v37 = vpop.f32.mrb[8].mxu1  ;;  %v8978_v38 = vadd.f32 %v8977_v35, %v8976_v33  ;;  %9279 = vmatpush3.bf16.msra.mxu0 %v10214_v30  ;;  %v8979_v51 = vpop.f32.mrb[10].mxu0  ;;  %v11815_v35 = vrot.slane %v1700_v25, %v10778_v41  ;;  %v10288_v25 = vld [vmem:[%s13058_s1 + $0xbb8] sm:$0xff]  }
 0x139   :  { %v8999_v40 = vpop.f32.mrb[9].mxu1  ;;  %9280 = vmatprep.subr.bf16.mxu0 %v10216_v32  ;;  %v8980_v55 = vpop.f32.mrb[11].mxu0  ;;  %v1715_v32 = vcombine.high %v1707_v24, %v1707_v24  ;;  %v10261_v51 = vld [vmem:[%s13058_s1 + $0xb48] sm:$0xff]  }
 0x13a   :  { %v6492_v43 = vadd.f32 %v8978_v38, %v11608_v63  ;;  %v9000_v44 = vadd.f32 %v8999_v40, %v8998_v37  ;;  %v9001_v45 = vpop.f32.mrb[10].mxu1  ;;  %9301 = vmatpush3.bf16.msra.mxu1 %v10215_v31  ;;  %v10233_v63 = vld [vmem:[%s13058_s1 + $0xa50] sm:$0xff]   ;;  %v10254_v31 = vld [vmem:[%s13058_s1 + $0xaf8] sm:$0xff]   ;;  %v1723_v40 = vrot.slane %v1707_v24, %v10778_v41  ;;  %v10263_v55 = vld [vmem:[%s13058_s1 + $0xb08] sm:$0xff]  }
 0x13b   :  { %v9002_v47 = vpop.f32.mrb[11].mxu1  ;;  %9302 = vmatprep.subr.bf16.mxu1 %v10217_v34  ;;  %v10255_v34 = vld [vmem:[%s13058_s1 + $0xa38] sm:$0xff]   ;;  %v1737_v38 = vrot.slane %v1715_v32, %v10778_v41  ;;  %v10293_v32 = vld [vmem:[%s13058_s1 + $0xc80] sm:$0xff]  }
 0x13c   :  { %v11709_v49 = vadd.f32 %v9000_v44, %v6492_v43  ;;  %9281 = vmatpush3.bf16.msra.mxu0 %v10218_v36  ;;  %v10256_v37 = vld [vmem:[%s13058_s1 + $0xab8] sm:$0xff]   ;;  %v1716_v44 = vcombine.high %v11815_v35, %v11815_v35  ;;  %v10259_v47 = vld [vmem:[%s13058_s1 + $0xb00] sm:$0xff]  }
 0x13d   :  { %9282 = vmatprep.subr.bf16.mxu0 %v10220_v42  ;;  %v10257_v42 = vld [vmem:[%s13058_s1 + $0xb40] sm:$0xff]   ;;  %v1747_v45 = vcombine.high %v1737_v38, %v1737_v38 }
 0x13e   :  { %9303 = vmatpush3.bf16.msra.mxu1 %v10219_v39 }
 0x13f   :  { %9304 = vmatprep.subr.bf16.mxu1 %v10221_v46  ;;  %v10258_v46 = vld [vmem:[%s13058_s1 + $0xbc0] sm:$0xff]  }
 0x140   :  { %9283 = vmatpush3.bf16.msra.mxu0 %v10222_v48  ;;  %v1744_v48 = vrot.slane %v1716_v44, %v10778_v41  ;;  %v10303_v44 = vld [vmem:[%s13058_s1 + $0xcd8] sm:$0xff]  }
 0x141   :  { %9312 = vmatprep.subr.bf16.mxu0 %v10225_v53 }
 0x142   :  { %9305 = vmatpush3.bf16.msra.mxu1 %v10223_v50  ;;  %v1745_v50 = vcombine.high %v1723_v40, %v1723_v40  ;;  %v1748_v53 = vcombine.high %v1744_v48, %v1744_v48 }
 0x143   :  { %7050 = vmatmul.mubr.bf16.vlgmr.msra.gmra.mrb[36].mxu0 %v1681_v52  ;;  %9334 = vmatprep.subr.bf16.mxu1 %v10226_v56  ;;  %v10262_v52 = vld [vmem:[%s13058_s1 + $0xbc8] sm:$0xff]  }
 0x144   :  { %9313 = vmatpush3.bf16.msra.mxu0 %v10227_v57  ;;  %7129 = vmatprep.mubr.bf16.mxu0 %v1737_v38  ;;  %v10264_v56 = vld [vmem:[%s13058_s1 + $0xb88] sm:$0xff]   ;;  %v10265_v57 = vld [vmem:[%s13058_s1 + $0xb50] sm:$0xff]  }
 0x145   :  { %7090 = vmatmul.mubr.bf16.vlgmr.msra.gmra.mrb[36].mxu1 %v1697_v58  ;;  %9314 = vmatprep.subr.bf16.mxu0 %v10229_v59  ;;  %v10267_v58 = vld [vmem:[%s13058_s1 + $0xb10] sm:$0xff]  }
 0x146   :  { %9335 = vmatpush3.bf16.msra.mxu1 %v10228_v54  ;;  %7169 = vmatprep.mubr.bf16.mxu1 %v1747_v45  ;;  %v10266_v54 = vld [vmem:[%s13058_s1 + $0xbd0] sm:$0xff]   ;;  %v10304_v45 = vld [vmem:[%s13058_s1 + $0xc18] sm:$0xff]  }
 0x147   :  { %9336 = vmatprep.subr.bf16.mxu1 %v10230_v60  ;;  %v10268_v59 = vld [vmem:[%s13058_s1 + $0xb90] sm:$0xff]   ;;  %v10269_v60 = vld [vmem:[%s13058_s1 + $0xb58] sm:$0xff]  }
 0x148   :  { %9315 = vmatpush3.bf16.msra.mxu0 %v10231_v61  ;;  %v10270_v61 = vld [vmem:[%s13058_s1 + $0xbd8] sm:$0xff]   ;;  %v10298_v38 = vld [vmem:[%s13058_s1 + $0xc50] sm:$0xff]  }
 0x149   :  { %9316 = vmatprep.subr.bf16.mxu0 %v10233_v63  ;;  %v10272_v63 = vld [vmem:[%s13058_s1 + $0xb98] sm:$0xff]  }
 0x14a   :  { %9337 = vmatpush3.bf16.msra.mxu1 %v10232_v62  ;;  %v10271_v62 = vld [vmem:[%s13058_s1 + $0xb18] sm:$0xff]  }
 0x14b   :  { %9338 = vmatprep.subr.bf16.mxu1 %v10234_v0  ;;  %v10273_v0 = vld [vmem:[%s13058_s1 + $0xb60] sm:$0xff]  }
 0x14c   :  { %9317 = vmatpush3.bf16.msra.mxu0 %v10235_v1  ;;  %v10274_v1 = vld [vmem:[%s13058_s1 + $0xbe0] sm:$0xff]  }
 0x14d   :  { %9318 = vmatprep.subr.bf16.mxu0 %v10237_v3  ;;  %v10276_v3 = vld [vmem:[%s13058_s1 + $0xba0] sm:$0xff]  }
 0x14e   :  { %9339 = vmatpush3.bf16.msra.mxu1 %v10236_v2  ;;  %v10275_v2 = vld [vmem:[%s13058_s1 + $0xb20] sm:$0xff]  }
 0x14f   :  { %9340 = vmatprep.subr.bf16.mxu1 %v10238_v4  ;;  %v10277_v4 = vld [vmem:[%s13058_s1 + $0xb68] sm:$0xff]  }
 0x150   :  { %9319 = vmatpush3.bf16.msra.mxu0 %v10239_v5  ;;  %v10278_v5 = vld [vmem:[%s13058_s1 + $0xbe8] sm:$0xff]  }
 0x151   :  { %9320 = vmatprep.subr.bf16.mxu0 %v10241_v7  ;;  %v10280_v7 = vld [vmem:[%s13058_s1 + $0xba8] sm:$0xff]  }
 0x152   :  { %9341 = vmatpush3.bf16.msra.mxu1 %v10240_v6  ;;  %v10279_v6 = vld [vmem:[%s13058_s1 + $0xb28] sm:$0xff]  }
 0x153   :  { %9342 = vmatprep.subr.bf16.mxu1 %v10242_v8  ;;  %v10281_v8 = vld [vmem:[%s13058_s1 + $0xb70] sm:$0xff]  }
 0x154   :  { %9321 = vmatpush3.bf16.msra.mxu0 %v10243_v9 }
 0x155   :  { %9322 = vmatprep.subr.bf16.mxu0 %v10245_v11 }
 0x156   :  { %9343 = vmatpush3.bf16.msra.mxu1 %v10244_v10  ;;  %v9020_v17 = vpop.f32.mrb[12].mxu0  ;;  %v10282_v10 = vld [vmem:[%s13058_s1 + $0xbf0] sm:$0xff]  }
 0x157   :  { %v9021_v19 = vpop.f32.mrb[13].mxu0  ;;  %9344 = vmatprep.subr.bf16.mxu1 %v10246_v12  ;;  %v10283_v12 = vld [vmem:[%s13058_s1 + $0xb30] sm:$0xff]  }
 0x158   :  { %v9042_v21 = vpop.f32.mrb[12].mxu1  ;;  %v9022_v22 = vadd.f32 %v9021_v19, %v9020_v17  ;;  %9323 = vmatpush3.bf16.msra.mxu0 %v10247_v13  ;;  %v9023_v39 = vpop.f32.mrb[14].mxu0  ;;  %v10285_v17 = vld [vmem:[%s13058_s1 + $0xb78] sm:$0xff]  }
 0x159   :  { %v9043_v26 = vpop.f32.mrb[13].mxu1  ;;  %9324 = vmatprep.subr.bf16.mxu0 %v10249_v15  ;;  %v9024_v43 = vpop.f32.mrb[15].mxu0  ;;  %v10284_v15 = vld [vmem:[%s13058_s1 + $0xbb0] sm:$0xff]  }
 0x15a   :  { %v6572_v28 = vadd.f32 %v9022_v22, %v11709_v49  ;;  %v9044_v29 = vadd.f32 %v9043_v26, %v9042_v21  ;;  %v9045_v30 = vpop.f32.mrb[14].mxu1  ;;  %9345 = vmatpush3.bf16.msra.mxu1 %v10248_v14  ;;  %v10260_v49 = vld [vmem:[%s13058_s1 + $0xb80] sm:$0xff]   ;;  %v10286_v21 = vld [vmem:[%s13058_s1 + $0xbf8] sm:$0xff]   ;;  %v10299_v39 = vld [vmem:[%s13058_s1 + $0xcd0] sm:$0xff]  }
 0x15b   :  { %v9046_v33 = vpop.f32.mrb[15].mxu1  ;;  %9346 = vmatprep.subr.bf16.mxu1 %v10250_v16  ;;  %v10291_v30 = vld [vmem:[%s13058_s1 + $0xcc0] sm:$0xff]   ;;  %v10302_v43 = vld [vmem:[%s13058_s1 + $0xc58] sm:$0xff]  }
 0x15c   :  { %v11817_v36 = vadd.f32 %v9044_v29, %v6572_v28  ;;  %9325 = vmatpush3.bf16.msra.mxu0 %v10251_v18  ;;  %v10290_v28 = vld [vmem:[%s13058_s1 + $0xc40] sm:$0xff]  }
 0x15d   :  { %9326 = vmatprep.subr.bf16.mxu0 %v10253_v27  ;;  %v1730_v27 = vrot.slane %v11815_v35, %v10778_v41  ;;  %v10295_v35 = vld [vmem:[%s13058_s1 + $0xcc8] sm:$0xff]  }
 0x15e   :  { %9347 = vmatpush3.bf16.msra.mxu1 %v10252_v23  ;;  %v10287_v23 = vld [vmem:[%s13058_s1 + $0xb38] sm:$0xff]  }
 0x15f   :  { %9348 = vmatprep.subr.bf16.mxu1 %v10254_v31  ;;  %v10292_v31 = vld [vmem:[%s13058_s1 + $0xc00] sm:$0xff]   ;;  %v1746_v33 = vcombine.high %v1730_v27, %v1730_v27 }
 0x160   :  { %9327 = vmatpush3.bf16.msra.mxu0 %v10255_v34  ;;  %v10294_v34 = vld [vmem:[%s13058_s1 + $0xc48] sm:$0xff]  }
 0x161   :  { %9356 = vmatprep.subr.bf16.mxu0 %v10257_v42  ;;  %v10301_v42 = vld [vmem:[%s13058_s1 + $0xc90] sm:$0xff]  }
 0x162   :  { %9349 = vmatpush3.bf16.msra.mxu1 %v10256_v37  ;;  %v10297_v37 = vld [vmem:[%s13058_s1 + $0xc88] sm:$0xff]  }
 0x163   :  { %7130 = vmatmul.mubr.bf16.vlgmr.msra.gmra.mrb[40].mxu0 %v1723_v40  ;;  %9378 = vmatprep.subr.bf16.mxu1 %v10258_v46  ;;  %v10300_v40 = vld [vmem:[%s13058_s1 + $0xc10] sm:$0xff]   ;;  %v10305_v46 = vld [vmem:[%s13058_s1 + $0xc98] sm:$0xff]  }
 0x164   :  { %9357 = vmatpush3.bf16.msra.mxu0 %v10259_v47  ;;  %7209 = vmatprep.mubr.bf16.mxu0 %v1744_v48  ;;  %v10306_v47 = vld [vmem:[%s13058_s1 + $0xc60] sm:$0xff]  }
 0x165   :  { %7170 = vmatmul.mubr.bf16.vlgmr.msra.gmra.mrb[40].mxu1 %v1745_v50  ;;  %9358 = vmatprep.subr.bf16.mxu0 %v10261_v51  ;;  %v10307_v48 = vld [vmem:[%s13058_s1 + $0xce0] sm:$0xff]   ;;  %v10310_v51 = vld [vmem:[%s13058_s1 + $0xc68] sm:$0xff]  }
 0x166   :  { %9379 = vmatpush3.bf16.msra.mxu1 %v10260_v49  ;;  %7249 = vmatprep.mubr.bf16.mxu1 %v1748_v53  ;;  %v10308_v49 = vld [vmem:[%s13058_s1 + $0xc20] sm:$0xff]   ;;  %v10312_v53 = vld [vmem:[%s13058_s1 + $0xc28] sm:$0xff]  }
 0x167   :  { %9380 = vmatprep.subr.bf16.mxu1 %v10262_v52  ;;  %v10309_v50 = vld [vmem:[%s13058_s1 + $0xca0] sm:$0xff]   ;;  %v10311_v52 = vld [vmem:[%s13058_s1 + $0xce8] sm:$0xff]  }
 0x168   :  { %9359 = vmatpush3.bf16.msra.mxu0 %v10263_v55  ;;  %v10313_v55 = vld [vmem:[%s13058_s1 + $0xca8] sm:$0xff]  }
 0x169   :  { %9360 = vmatprep.subr.bf16.mxu0 %v10265_v57 }
 0x16a   :  { %9381 = vmatpush3.bf16.msra.mxu1 %v10264_v56  ;;  %v10314_v56 = vld [vmem:[%s13058_s1 + $0xc70] sm:$0xff]  }
 0x16b   :  { %9382 = vmatprep.subr.bf16.mxu1 %v10266_v54  ;;  %v10315_v54 = vld [vmem:[%s13058_s1 + $0xcf0] sm:$0xff]  }
 0x16c   :  { %9361 = vmatpush3.bf16.msra.mxu0 %v10267_v58 }
 0x16d   :  { %9362 = vmatprep.subr.bf16.mxu0 %v10269_v60  ;;  %v28_v60 = vld [vmem:[%s13057_s0 + $0x30] sm:$0xff] }
 0x16e   :  { %9383 = vmatpush3.bf16.msra.mxu1 %v10268_v59  ;;  %v10316_v59 = vld [vmem:[%s13058_s1 + $0xc30] sm:$0xff]  }
 0x16f   :  { %9384 = vmatprep.subr.bf16.mxu1 %v10270_v61 }
 0x170   :  { %9363 = vmatpush3.bf16.msra.mxu0 %v10271_v62 }
 0x171   :  { %9364 = vmatprep.subr.bf16.mxu0 %v10273_v0  ;;  %v1756_v0 = vrot.slane %v28_v60, %v10778_v41 }
 0x172   :  { %9385 = vmatpush3.bf16.msra.mxu1 %v10272_v63  ;;  %v10317_v63 = vld [vmem:[%s13058_s1 + $0xcb0] sm:$0xff]  }
 0x173   :  { %9386 = vmatprep.subr.bf16.mxu1 %v10274_v1  ;;  %v1749_v1 = vcombine.high %v28_v60, %v28_v60 }
 0x174   :  { %9365 = vmatpush3.bf16.msra.mxu0 %v10275_v2 }
 0x175   :  { %9366 = vmatprep.subr.bf16.mxu0 %v10277_v4 }
 0x176   :  { %9387 = vmatpush3.bf16.msra.mxu1 %v10276_v3  ;;  %v9064_v9 = vpop.f32.mrb[16].mxu0  ;;  %v10318_v3 = vld [vmem:[%s13058_s1 + $0xc78] sm:$0xff]  }
 0x177   :  { %v9065_v11 = vpop.f32.mrb[17].mxu0  ;;  %9388 = vmatprep.subr.bf16.mxu1 %v10278_v5 }
 0x178   :  { %v9086_v13 = vpop.f32.mrb[16].mxu1  ;;  %v9066_v14 = vadd.f32 %v9065_v11, %v9064_v9  ;;  %9367 = vmatpush3.bf16.msra.mxu0 %v10279_v6  ;;  %v9067_v26 = vpop.f32.mrb[18].mxu0  ;;  %v12027_v11 = vrot.slane %v1749_v1, %v10778_v41  ;;  %v10353_v1 = vld [vmem:[%s13058_s1 + $0xdb8] sm:$0xff]  }
 0x179   :  { %v9087_v16 = vpop.f32.mrb[17].mxu1  ;;  %9368 = vmatprep.subr.bf16.mxu0 %v10281_v8  ;;  %v9068_v29 = vpop.f32.mrb[19].mxu0  ;;  %v1764_v8 = vcombine.high %v1756_v0, %v1756_v0  ;;  %v10326_v26 = vld [vmem:[%s13058_s1 + $0xd48] sm:$0xff]  }
 0x17a   :  { %v6652_v18 = vadd.f32 %v9066_v14, %v11817_v36  ;;  %v9088_v19 = vadd.f32 %v9087_v16, %v9086_v13  ;;  %v9089_v20 = vpop.f32.mrb[18].mxu1  ;;  %9389 = vmatpush3.bf16.msra.mxu1 %v10280_v7  ;;  %v10296_v36 = vld [vmem:[%s13058_s1 + $0xc08] sm:$0xff]   ;;  %v10319_v7 = vld [vmem:[%s13058_s1 + $0xcf8] sm:$0xff]   ;;  %v1772_v16 = vrot.slane %v1756_v0, %v10778_v41 }
 0x17b   :  { %v9090_v22 = vpop.f32.mrb[19].mxu1  ;;  %9390 = vmatprep.subr.bf16.mxu1 %v10282_v10  ;;  %v10320_v10 = vld [vmem:[%s13058_s1 + $0xc38] sm:$0xff]   ;;  %v1786_v14 = vrot.slane %v1764_v8, %v10778_v41  ;;  %v10328_v29 = vld [vmem:[%s13058_s1 + $0xd08] sm:$0xff]   ;;  %v10358_v8 = vld [vmem:[%s13058_s1 + $0xe80] sm:$0xff]  }
 0x17c   :  { %v11921_v24 = vadd.f32 %v9088_v19, %v6652_v18  ;;  %9369 = vmatpush3.bf16.msra.mxu0 %v10283_v12  ;;  %v10321_v13 = vld [vmem:[%s13058_s1 + $0xcb8] sm:$0xff]   ;;  %v1765_v19 = vcombine.high %v12027_v11, %v12027_v11  ;;  %v10324_v22 = vld [vmem:[%s13058_s1 + $0xd00] sm:$0xff]  }
 0x17d   :  { %9370 = vmatprep.subr.bf16.mxu0 %v10285_v17  ;;  %v10322_v17 = vld [vmem:[%s13058_s1 + $0xd40] sm:$0xff]   ;;  %v1796_v20 = vcombine.high %v1786_v14, %v1786_v14 }
 0x17e   :  { %9391 = vmatpush3.bf16.msra.mxu1 %v10284_v15 }
 0x17f   :  { %9392 = vmatprep.subr.bf16.mxu1 %v10286_v21  ;;  %v10323_v21 = vld [vmem:[%s13058_s1 + $0xdc0] sm:$0xff]  }
 0x180   :  { %9371 = vmatpush3.bf16.msra.mxu0 %v10287_v23  ;;  %v1793_v23 = vrot.slane %v1765_v19, %v10778_v41  ;;  %v10368_v19 = vld [vmem:[%s13058_s1 + $0xed8] sm:$0xff]  }
 0x181   :  { %9400 = vmatprep.subr.bf16.mxu0 %v10290_v28 }
 0x182   :  { %9393 = vmatpush3.bf16.msra.mxu1 %v10288_v25  ;;  %v1794_v25 = vcombine.high %v1772_v16, %v1772_v16  ;;  %v1797_v28 = vcombine.high %v1793_v23, %v1793_v23 }
 0x183   :  { %7210 = vmatmul.mubr.bf16.vlgmr.msra.gmra.mrb[44].mxu0 %v1730_v27  ;;  %9422 = vmatprep.subr.bf16.mxu1 %v10291_v30  ;;  %v10327_v27 = vld [vmem:[%s13058_s1 + $0xdc8] sm:$0xff]  }
 0x184   :  { %9401 = vmatpush3.bf16.msra.mxu0 %v10292_v31  ;;  %7289 = vmatprep.mubr.bf16.mxu0 %v1786_v14  ;;  %v10329_v30 = vld [vmem:[%s13058_s1 + $0xd88] sm:$0xff]   ;;  %v10330_v31 = vld [vmem:[%s13058_s1 + $0xd50] sm:$0xff]  }
 0x185   :  { %7250 = vmatmul.mubr.bf16.vlgmr.msra.gmra.mrb[44].mxu1 %v1746_v33  ;;  %9402 = vmatprep.subr.bf16.mxu0 %v10294_v34  ;;  %v10332_v33 = vld [vmem:[%s13058_s1 + $0xd10] sm:$0xff]  }
 0x186   :  { %9423 = vmatpush3.bf16.msra.mxu1 %v10293_v32  ;;  %7329 = vmatprep.mubr.bf16.mxu1 %v1796_v20  ;;  %v10331_v32 = vld [vmem:[%s13058_s1 + $0xdd0] sm:$0xff]   ;;  %v10369_v20 = vld [vmem:[%s13058_s1 + $0xe18] sm:$0xff]  }
 0x187   :  { %9424 = vmatprep.subr.bf16.mxu1 %v10295_v35  ;;  %v10333_v34 = vld [vmem:[%s13058_s1 + $0xd90] sm:$0xff]   ;;  %v10334_v35 = vld [vmem:[%s13058_s1 + $0xd58] sm:$0xff]  }
 0x188   :  { %9403 = vmatpush3.bf16.msra.mxu0 %v10296_v36  ;;  %v10335_v36 = vld [vmem:[%s13058_s1 + $0xdd8] sm:$0xff]   ;;  %v10363_v14 = vld [vmem:[%s13058_s1 + $0xe50] sm:$0xff]  }
 0x189   :  { %9404 = vmatprep.subr.bf16.mxu0 %v10298_v38  ;;  %v10337_v38 = vld [vmem:[%s13058_s1 + $0xd98] sm:$0xff]  }
 0x18a   :  { %9425 = vmatpush3.bf16.msra.mxu1 %v10297_v37  ;;  %v10336_v37 = vld [vmem:[%s13058_s1 + $0xd18] sm:$0xff]  }
 0x18b   :  { %9426 = vmatprep.subr.bf16.mxu1 %v10299_v39  ;;  %v10338_v39 = vld [vmem:[%s13058_s1 + $0xd60] sm:$0xff]  }
 0x18c   :  { %9405 = vmatpush3.bf16.msra.mxu0 %v10300_v40  ;;  %v10339_v40 = vld [vmem:[%s13058_s1 + $0xde0] sm:$0xff]  }
 0x18d   :  { %9406 = vmatprep.subr.bf16.mxu0 %v10302_v43  ;;  %v10341_v43 = vld [vmem:[%s13058_s1 + $0xda0] sm:$0xff]  }
 0x18e   :  { %9427 = vmatpush3.bf16.msra.mxu1 %v10301_v42  ;;  %v10340_v42 = vld [vmem:[%s13058_s1 + $0xd20] sm:$0xff]  }
 0x18f   :  { %9428 = vmatprep.subr.bf16.mxu1 %v10303_v44  ;;  %v10342_v44 = vld [vmem:[%s13058_s1 + $0xd68] sm:$0xff]  }
 0x190   :  { %9407 = vmatpush3.bf16.msra.mxu0 %v10304_v45  ;;  %v10343_v45 = vld [vmem:[%s13058_s1 + $0xde8] sm:$0xff]  }
 0x191   :  { %9408 = vmatprep.subr.bf16.mxu0 %v10306_v47  ;;  %v10345_v47 = vld [vmem:[%s13058_s1 + $0xda8] sm:$0xff]  }
 0x192   :  { %9429 = vmatpush3.bf16.msra.mxu1 %v10305_v46  ;;  %v10344_v46 = vld [vmem:[%s13058_s1 + $0xd28] sm:$0xff]  }
 0x193   :  { %9430 = vmatprep.subr.bf16.mxu1 %v10307_v48  ;;  %v10346_v48 = vld [vmem:[%s13058_s1 + $0xd70] sm:$0xff]  }
 0x194   :  { %9409 = vmatpush3.bf16.msra.mxu0 %v10308_v49 }
 0x195   :  { %9410 = vmatprep.subr.bf16.mxu0 %v10310_v51 }
 0x196   :  { %9431 = vmatpush3.bf16.msra.mxu1 %v10309_v50  ;;  %v9108_v57 = vpop.f32.mrb[20].mxu0  ;;  %v10347_v50 = vld [vmem:[%s13058_s1 + $0xdf0] sm:$0xff]  }
 0x197   :  { %v9109_v58 = vpop.f32.mrb[21].mxu0  ;;  %9432 = vmatprep.subr.bf16.mxu1 %v10311_v52  ;;  %v10348_v52 = vld [vmem:[%s13058_s1 + $0xd30] sm:$0xff]  }
 0x198   :  { %v9130_v61 = vpop.f32.mrb[20].mxu1  ;;  %v9110_v62 = vadd.f32 %v9109_v58, %v9108_v57  ;;  %9411 = vmatpush3.bf16.msra.mxu0 %v10312_v53  ;;  %v9111_v15 = vpop.f32.mrb[22].mxu0 }
 0x199   :  { %v9131_v2 = vpop.f32.mrb[21].mxu1  ;;  %9412 = vmatprep.subr.bf16.mxu0 %v10314_v56  ;;  %v9112_v18 = vpop.f32.mrb[23].mxu0  ;;  %v10349_v56 = vld [vmem:[%s13058_s1 + $0xdb0] sm:$0xff]  }
 0x19a   :  { %v6732_v4 = vadd.f32 %v9110_v62, %v11921_v24  ;;  %v9132_v5 = vadd.f32 %v9131_v2, %v9130_v61  ;;  %v9133_v6 = vpop.f32.mrb[22].mxu1  ;;  %9433 = vmatpush3.bf16.msra.mxu1 %v10313_v55  ;;  %v10325_v24 = vld [vmem:[%s13058_s1 + $0xd80] sm:$0xff]   ;;  %v10351_v61 = vld [vmem:[%s13058_s1 + $0xdf8] sm:$0xff]   ;;  %v10364_v15 = vld [vmem:[%s13058_s1 + $0xed0] sm:$0xff]  }
 0x19b   :  { %v9134_v9 = vpop.f32.mrb[23].mxu1  ;;  %9434 = vmatprep.subr.bf16.mxu1 %v10315_v54  ;;  %v10350_v54 = vld [vmem:[%s13058_s1 + $0xd78] sm:$0xff]   ;;  %v10356_v6 = vld [vmem:[%s13058_s1 + $0xec0] sm:$0xff]  }
 0x19c   :  { %v12029_v12 = vadd.f32 %v9132_v5, %v6732_v4  ;;  %9413 = vmatpush3.bf16.msra.mxu0 %v10316_v59  ;;  %v10355_v4 = vld [vmem:[%s13058_s1 + $0xe40] sm:$0xff]   ;;  %v10367_v18 = vld [vmem:[%s13058_s1 + $0xe58] sm:$0xff]  }
 0x19d   :  { %9414 = vmatprep.subr.bf16.mxu0 %v10318_v3  ;;  %v1779_v3 = vrot.slane %v12027_v11, %v10778_v41  ;;  %v10360_v11 = vld [vmem:[%s13058_s1 + $0xec8] sm:$0xff]  }
 0x19e   :  { %9435 = vmatpush3.bf16.msra.mxu1 %v10317_v63  ;;  %v10352_v63 = vld [vmem:[%s13058_s1 + $0xd38] sm:$0xff]  }
 0x19f   :  { %9436 = vmatprep.subr.bf16.mxu1 %v10319_v7  ;;  %v10357_v7 = vld [vmem:[%s13058_s1 + $0xe00] sm:$0xff]   ;;  %v1795_v9 = vcombine.high %v1779_v3, %v1779_v3 }
 0x1a0   :  { %9415 = vmatpush3.bf16.msra.mxu0 %v10320_v10  ;;  %v10359_v10 = vld [vmem:[%s13058_s1 + $0xe48] sm:$0xff]  }
 0x1a1   :  { %9444 = vmatprep.subr.bf16.mxu0 %v10322_v17  ;;  %v10366_v17 = vld [vmem:[%s13058_s1 + $0xe90] sm:$0xff]  }
 0x1a2   :  { %9437 = vmatpush3.bf16.msra.mxu1 %v10321_v13  ;;  %v10362_v13 = vld [vmem:[%s13058_s1 + $0xe88] sm:$0xff]  }
 0x1a3   :  { %7290 = vmatmul.mubr.bf16.vlgmr.msra.gmra.mrb[48].mxu0 %v1772_v16  ;;  %9466 = vmatprep.subr.bf16.mxu1 %v10323_v21  ;;  %v10365_v16 = vld [vmem:[%s13058_s1 + $0xe10] sm:$0xff]   ;;  %v10370_v21 = vld [vmem:[%s13058_s1 + $0xe98] sm:$0xff]  }
 0x1a4   :  { %9445 = vmatpush3.bf16.msra.mxu0 %v10324_v22  ;;  %7369 = vmatprep.mubr.bf16.mxu0 %v1793_v23  ;;  %v10371_v22 = vld [vmem:[%s13058_s1 + $0xe60] sm:$0xff]  }
 0x1a5   :  { %7330 = vmatmul.mubr.bf16.vlgmr.msra.gmra.mrb[48].mxu1 %v1794_v25  ;;  %9446 = vmatprep.subr.bf16.mxu0 %v10326_v26  ;;  %v10372_v23 = vld [vmem:[%s13058_s1 + $0xee0] sm:$0xff]   ;;  %v10375_v26 = vld [vmem:[%s13058_s1 + $0xe68] sm:$0xff]  }
 0x1a6   :  { %9467 = vmatpush3.bf16.msra.mxu1 %v10325_v24  ;;  %7409 = vmatprep.mubr.bf16.mxu1 %v1797_v28  ;;  %v10373_v24 = vld [vmem:[%s13058_s1 + $0xe20] sm:$0xff]   ;;  %v10377_v28 = vld [vmem:[%s13058_s1 + $0xe28] sm:$0xff]  }
 0x1a7   :  { %9468 = vmatprep.subr.bf16.mxu1 %v10327_v27  ;;  %v10374_v25 = vld [vmem:[%s13058_s1 + $0xea0] sm:$0xff]   ;;  %v10376_v27 = vld [vmem:[%s13058_s1 + $0xee8] sm:$0xff]  }
 0x1a8   :  { %9447 = vmatpush3.bf16.msra.mxu0 %v10328_v29  ;;  %v10378_v29 = vld [vmem:[%s13058_s1 + $0xea8] sm:$0xff]  }
 0x1a9   :  { %9448 = vmatprep.subr.bf16.mxu0 %v10330_v31 }
 0x1aa   :  { %9469 = vmatpush3.bf16.msra.mxu1 %v10329_v30  ;;  %v10379_v30 = vld [vmem:[%s13058_s1 + $0xe70] sm:$0xff]  }
 0x1ab   :  { %9470 = vmatprep.subr.bf16.mxu1 %v10331_v32  ;;  %v10380_v32 = vld [vmem:[%s13058_s1 + $0xef0] sm:$0xff]  }
 0x1ac   :  { %9449 = vmatpush3.bf16.msra.mxu0 %v10332_v33 }
 0x1ad   :  { %9450 = vmatprep.subr.bf16.mxu0 %v10334_v35  ;;  %v29_v35 = vld [vmem:[%s13057_s0 + $0x38] sm:$0xff] }
 0x1ae   :  { %9471 = vmatpush3.bf16.msra.mxu1 %v10333_v34  ;;  %v10381_v34 = vld [vmem:[%s13058_s1 + $0xe30] sm:$0xff]  }
 0x1af   :  { %9472 = vmatprep.subr.bf16.mxu1 %v10335_v36 }
 0x1b0   :  { %9451 = vmatpush3.bf16.msra.mxu0 %v10336_v37 }
 0x1b1   :  { %9452 = vmatprep.subr.bf16.mxu0 %v10338_v39  ;;  %v1805_v39 = vrot.slane %v29_v35, %v10778_v41 }
 0x1b2   :  { %9473 = vmatpush3.bf16.msra.mxu1 %v10337_v38  ;;  %v10382_v38 = vld [vmem:[%s13058_s1 + $0xeb0] sm:$0xff]  }
 0x1b3   :  { %9474 = vmatprep.subr.bf16.mxu1 %v10339_v40  ;;  %v1798_v40 = vcombine.high %v29_v35, %v29_v35 }
 0x1b4   :  { %9453 = vmatpush3.bf16.msra.mxu0 %v10340_v42 }
 0x1b5   :  { %9454 = vmatprep.subr.bf16.mxu0 %v10342_v44 }
 0x1b6   :  { %9475 = vmatpush3.bf16.msra.mxu1 %v10341_v43  ;;  %v9152_v49 = vpop.f32.mrb[24].mxu0  ;;  %v10383_v43 = vld [vmem:[%s13058_s1 + $0xe78] sm:$0xff]  }
 0x1b7   :  { %v9153_v51 = vpop.f32.mrb[25].mxu0  ;;  %9476 = vmatprep.subr.bf16.mxu1 %v10343_v45 }
 0x1b8   :  { %v9174_v53 = vpop.f32.mrb[24].mxu1  ;;  %v9154_v55 = vadd.f32 %v9153_v51, %v9152_v49  ;;  %9455 = vmatpush3.bf16.msra.mxu0 %v10344_v46  ;;  %v9155_v2 = vpop.f32.mrb[26].mxu0  ;;  %v12239_v51 = vrot.slane %v1798_v40, %v10778_v41  ;;  %v10418_v40 = vld [vmem:[%s13058_s1 + $0xfb8] sm:$0xff]  }
 0x1b9   :  { %v9175_v57 = vpop.f32.mrb[25].mxu1  ;;  %9456 = vmatprep.subr.bf16.mxu0 %v10346_v48  ;;  %v9156_v5 = vpop.f32.mrb[27].mxu0  ;;  %v1813_v48 = vcombine.high %v1805_v39, %v1805_v39  ;;  %v10391_v2 = vld [vmem:[%s13058_s1 + $0xf48] sm:$0xff]  }
 0x1ba   :  { %v6812_v58 = vadd.f32 %v9154_v55, %v12029_v12  ;;  %v9176_v59 = vadd.f32 %v9175_v57, %v9174_v53  ;;  %v9177_v60 = vpop.f32.mrb[26].mxu1  ;;  %9477 = vmatpush3.bf16.msra.mxu1 %v10345_v47  ;;  %v10361_v12 = vld [vmem:[%s13058_s1 + $0xe08] sm:$0xff]   ;;  %v10384_v47 = vld [vmem:[%s13058_s1 + $0xef8] sm:$0xff]   ;;  %v1821_v57 = vrot.slane %v1805_v39, %v10778_v41 }
 0x1bb   :  { %v9178_v62 = vpop.f32.mrb[27].mxu1  ;;  %9478 = vmatprep.subr.bf16.mxu1 %v10347_v50  ;;  %v10385_v50 = vld [vmem:[%s13058_s1 + $0xe38] sm:$0xff]   ;;  %v1835_v55 = vrot.slane %v1813_v48, %v10778_v41  ;;  %v10393_v5 = vld [vmem:[%s13058_s1 + $0xf08] sm:$0xff]   ;;  %v10423_v48 = vld [vmem:[%s13058_s1 + $0x1080] sm:$0xff]  }
 0x1bc   :  { %v12133_v0 = vadd.f32 %v9176_v59, %v6812_v58  ;;  %9457 = vmatpush3.bf16.msra.mxu0 %v10348_v52  ;;  %v10386_v53 = vld [vmem:[%s13058_s1 + $0xeb8] sm:$0xff]   ;;  %v1814_v59 = vcombine.high %v12239_v51, %v12239_v51  ;;  %v10389_v62 = vld [vmem:[%s13058_s1 + $0xf00] sm:$0xff]  }
 0x1bd   :  { %9458 = vmatprep.subr.bf16.mxu0 %v10350_v54  ;;  %v10387_v54 = vld [vmem:[%s13058_s1 + $0xf40] sm:$0xff]   ;;  %v1845_v60 = vcombine.high %v1835_v55, %v1835_v55 }
 0x1be   :  { %9479 = vmatpush3.bf16.msra.mxu1 %v10349_v56 }
 0x1bf   :  { %9480 = vmatprep.subr.bf16.mxu1 %v10351_v61  ;;  %v10388_v61 = vld [vmem:[%s13058_s1 + $0xfc0] sm:$0xff]  }
 0x1c0   :  { %9459 = vmatpush3.bf16.msra.mxu0 %v10352_v63  ;;  %v1842_v63 = vrot.slane %v1814_v59, %v10778_v41  ;;  %v10433_v59 = vld [vmem:[%s13058_s1 + $0x10d8] sm:$0xff]  }
 0x1c1   :  { %9488 = vmatprep.subr.bf16.mxu0 %v10355_v4 }
 0x1c2   :  { %9481 = vmatpush3.bf16.msra.mxu1 %v10353_v1  ;;  %v1843_v1 = vcombine.high %v1821_v57, %v1821_v57  ;;  %v1846_v4 = vcombine.high %v1842_v63, %v1842_v63 }
 0x1c3   :  { %7370 = vmatmul.mubr.bf16.vlgmr.msra.gmra.mrb[52].mxu0 %v1779_v3  ;;  %9510 = vmatprep.subr.bf16.mxu1 %v10356_v6  ;;  %v10392_v3 = vld [vmem:[%s13058_s1 + $0xfc8] sm:$0xff]  }
 0x1c4   :  { %9489 = vmatpush3.bf16.msra.mxu0 %v10357_v7  ;;  %7449 = vmatprep.mubr.bf16.mxu0 %v1835_v55  ;;  %v10394_v6 = vld [vmem:[%s13058_s1 + $0xf88] sm:$0xff]   ;;  %v10395_v7 = vld [vmem:[%s13058_s1 + $0xf50] sm:$0xff]  }
 0x1c5   :  { %7410 = vmatmul.mubr.bf16.vlgmr.msra.gmra.mrb[52].mxu1 %v1795_v9  ;;  %9490 = vmatprep.subr.bf16.mxu0 %v10359_v10  ;;  %v10397_v9 = vld [vmem:[%s13058_s1 + $0xf10] sm:$0xff]  }
 0x1c6   :  { %9511 = vmatpush3.bf16.msra.mxu1 %v10358_v8  ;;  %7489 = vmatprep.mubr.bf16.mxu1 %v1845_v60  ;;  %v10396_v8 = vld [vmem:[%s13058_s1 + $0xfd0] sm:$0xff]   ;;  %v10434_v60 = vld [vmem:[%s13058_s1 + $0x1018] sm:$0xff]  }
 0x1c7   :  { %9512 = vmatprep.subr.bf16.mxu1 %v10360_v11  ;;  %v10398_v10 = vld [vmem:[%s13058_s1 + $0xf90] sm:$0xff]   ;;  %v10399_v11 = vld [vmem:[%s13058_s1 + $0xf58] sm:$0xff]  }
 0x1c8   :  { %9491 = vmatpush3.bf16.msra.mxu0 %v10361_v12  ;;  %v10400_v12 = vld [vmem:[%s13058_s1 + $0xfd8] sm:$0xff]   ;;  %v10428_v55 = vld [vmem:[%s13058_s1 + $0x1050] sm:$0xff]  }
 0x1c9   :  { %9492 = vmatprep.subr.bf16.mxu0 %v10363_v14  ;;  %v10402_v14 = vld [vmem:[%s13058_s1 + $0xf98] sm:$0xff]  }
 0x1ca   :  { %9513 = vmatpush3.bf16.msra.mxu1 %v10362_v13  ;;  %v10401_v13 = vld [vmem:[%s13058_s1 + $0xf18] sm:$0xff]  }
 0x1cb   :  { %9514 = vmatprep.subr.bf16.mxu1 %v10364_v15  ;;  %v10403_v15 = vld [vmem:[%s13058_s1 + $0xf60] sm:$0xff]  }
 0x1cc   :  { %9493 = vmatpush3.bf16.msra.mxu0 %v10365_v16  ;;  %v10404_v16 = vld [vmem:[%s13058_s1 + $0xfe0] sm:$0xff]  }
 0x1cd   :  { %9494 = vmatprep.subr.bf16.mxu0 %v10367_v18  ;;  %v10406_v18 = vld [vmem:[%s13058_s1 + $0xfa0] sm:$0xff]  }
 0x1ce   :  { %9515 = vmatpush3.bf16.msra.mxu1 %v10366_v17  ;;  %v10405_v17 = vld [vmem:[%s13058_s1 + $0xf20] sm:$0xff]  }
 0x1cf   :  { %9516 = vmatprep.subr.bf16.mxu1 %v10368_v19  ;;  %v10407_v19 = vld [vmem:[%s13058_s1 + $0xf68] sm:$0xff]  }
 0x1d0   :  { %9495 = vmatpush3.bf16.msra.mxu0 %v10369_v20  ;;  %v10408_v20 = vld [vmem:[%s13058_s1 + $0xfe8] sm:$0xff]  }
 0x1d1   :  { %9496 = vmatprep.subr.bf16.mxu0 %v10371_v22  ;;  %v10410_v22 = vld [vmem:[%s13058_s1 + $0xfa8] sm:$0xff]  }
 0x1d2   :  { %9517 = vmatpush3.bf16.msra.mxu1 %v10370_v21  ;;  %v10409_v21 = vld [vmem:[%s13058_s1 + $0xf28] sm:$0xff]  }
 0x1d3   :  { %9518 = vmatprep.subr.bf16.mxu1 %v10372_v23  ;;  %v10411_v23 = vld [vmem:[%s13058_s1 + $0xf70] sm:$0xff]  }
 0x1d4   :  { %9497 = vmatpush3.bf16.msra.mxu0 %v10373_v24 }
 0x1d5   :  { %9498 = vmatprep.subr.bf16.mxu0 %v10375_v26 }
 0x1d6   :  { %9519 = vmatpush3.bf16.msra.mxu1 %v10374_v25  ;;  %v9196_v31 = vpop.f32.mrb[28].mxu0  ;;  %v10412_v25 = vld [vmem:[%s13058_s1 + $0xff0] sm:$0xff]  }
 0x1d7   :  { %v9197_v33 = vpop.f32.mrb[29].mxu0  ;;  %9520 = vmatprep.subr.bf16.mxu1 %v10376_v27  ;;  %v10413_v27 = vld [vmem:[%s13058_s1 + $0xf30] sm:$0xff]  }
 0x1d8   :  { %v9218_v36 = vpop.f32.mrb[28].mxu1  ;;  %v9198_v37 = vadd.f32 %v9197_v33, %v9196_v31  ;;  %9499 = vmatpush3.bf16.msra.mxu0 %v10377_v28  ;;  %v9199_v56 = vpop.f32.mrb[30].mxu0 }
 0x1d9   :  { %v9219_v42 = vpop.f32.mrb[29].mxu1  ;;  %9500 = vmatprep.subr.bf16.mxu0 %v10379_v30  ;;  %v9200_v58 = vpop.f32.mrb[31].mxu0  ;;  %v10414_v30 = vld [vmem:[%s13058_s1 + $0xfb0] sm:$0xff]  }
 0x1da   :  { %v6892_v44 = vadd.f32 %v9198_v37, %v12133_v0  ;;  %v9220_v45 = vadd.f32 %v9219_v42, %v9218_v36  ;;  %v9221_v46 = vpop.f32.mrb[30].mxu1  ;;  %9521 = vmatpush3.bf16.msra.mxu1 %v10378_v29  ;;  %v10390_v0 = vld [vmem:[%s13058_s1 + $0xf80] sm:$0xff]   ;;  %v10416_v36 = vld [vmem:[%s13058_s1 + $0xff8] sm:$0xff]   ;;  %v10429_v56 = vld [vmem:[%s13058_s1 + $0x10d0] sm:$0xff]  }
 0x1db   :  { %v9222_v49 = vpop.f32.mrb[31].mxu1  ;;  %9522 = vmatprep.subr.bf16.mxu1 %v10380_v32  ;;  %v10415_v32 = vld [vmem:[%s13058_s1 + $0xf78] sm:$0xff]   ;;  %v10421_v46 = vld [vmem:[%s13058_s1 + $0x10c0] sm:$0xff]  }
 0x1dc   :  { %v12241_v52 = vadd.f32 %v9220_v45, %v6892_v44  ;;  %9501 = vmatpush3.bf16.msra.mxu0 %v10381_v34  ;;  %v10420_v44 = vld [vmem:[%s13058_s1 + $0x1040] sm:$0xff]   ;;  %v10432_v58 = vld [vmem:[%s13058_s1 + $0x1058] sm:$0xff]  }
 0x1dd   :  { %9502 = vmatprep.subr.bf16.mxu0 %v10383_v43  ;;  %v1828_v43 = vrot.slane %v12239_v51, %v10778_v41  ;;  %v10425_v51 = vld [vmem:[%s13058_s1 + $0x10c8] sm:$0xff]  }
 0x1de   :  { %9523 = vmatpush3.bf16.msra.mxu1 %v10382_v38  ;;  %v10417_v38 = vld [vmem:[%s13058_s1 + $0xf38] sm:$0xff]  }
 0x1df   :  { %9524 = vmatprep.subr.bf16.mxu1 %v10384_v47  ;;  %v10422_v47 = vld [vmem:[%s13058_s1 + $0x1000] sm:$0xff]   ;;  %v1844_v49 = vcombine.high %v1828_v43, %v1828_v43 }
 0x1e0   :  { %9503 = vmatpush3.bf16.msra.mxu0 %v10385_v50  ;;  %v10424_v50 = vld [vmem:[%s13058_s1 + $0x1048] sm:$0xff]  }
 0x1e1   :  { %9532 = vmatprep.subr.bf16.mxu0 %v10387_v54  ;;  %v10431_v54 = vld [vmem:[%s13058_s1 + $0x1090] sm:$0xff]  }
 0x1e2   :  { %9525 = vmatpush3.bf16.msra.mxu1 %v10386_v53  ;;  %v10427_v53 = vld [vmem:[%s13058_s1 + $0x1088] sm:$0xff]  }
 0x1e3   :  { %7450 = vmatmul.mubr.bf16.vlgmr.msra.gmra.mrb[56].mxu0 %v1821_v57  ;;  %9554 = vmatprep.subr.bf16.mxu1 %v10388_v61  ;;  %v10430_v57 = vld [vmem:[%s13058_s1 + $0x1010] sm:$0xff]   ;;  %v10435_v61 = vld [vmem:[%s13058_s1 + $0x1098] sm:$0xff]  }
 0x1e4   :  { %9533 = vmatpush3.bf16.msra.mxu0 %v10389_v62  ;;  %7529 = vmatprep.mubr.bf16.mxu0 %v1842_v63  ;;  %v10436_v62 = vld [vmem:[%s13058_s1 + $0x1060] sm:$0xff]  }
 0x1e5   :  { %7490 = vmatmul.mubr.bf16.vlgmr.msra.gmra.mrb[56].mxu1 %v1843_v1  ;;  %9534 = vmatprep.subr.bf16.mxu0 %v10391_v2  ;;  %v10437_v63 = vld [vmem:[%s13058_s1 + $0x10e0] sm:$0xff]   ;;  %v10440_v2 = vld [vmem:[%s13058_s1 + $0x1068] sm:$0xff]  }
 0x1e6   :  { %9555 = vmatpush3.bf16.msra.mxu1 %v10390_v0  ;;  %7569 = vmatprep.mubr.bf16.mxu1 %v1846_v4  ;;  %v10438_v0 = vld [vmem:[%s13058_s1 + $0x1020] sm:$0xff]   ;;  %v10442_v4 = vld [vmem:[%s13058_s1 + $0x1028] sm:$0xff]  }
 0x1e7   :  { %9556 = vmatprep.subr.bf16.mxu1 %v10392_v3  ;;  %v10439_v1 = vld [vmem:[%s13058_s1 + $0x10a0] sm:$0xff]   ;;  %v10441_v3 = vld [vmem:[%s13058_s1 + $0x10e8] sm:$0xff]  }
 0x1e8   :  { %9535 = vmatpush3.bf16.msra.mxu0 %v10393_v5  ;;  %v10443_v5 = vld [vmem:[%s13058_s1 + $0x10a8] sm:$0xff]  }
 0x1e9   :  { %9536 = vmatprep.subr.bf16.mxu0 %v10395_v7 }
 0x1ea   :  { %9557 = vmatpush3.bf16.msra.mxu1 %v10394_v6  ;;  %v10444_v6 = vld [vmem:[%s13058_s1 + $0x1070] sm:$0xff]  }
 0x1eb   :  { %9558 = vmatprep.subr.bf16.mxu1 %v10396_v8  ;;  %v10445_v8 = vld [vmem:[%s13058_s1 + $0x10f0] sm:$0xff]  }
 0x1ec   :  { %9537 = vmatpush3.bf16.msra.mxu0 %v10397_v9 }
 0x1ed   :  { %9538 = vmatprep.subr.bf16.mxu0 %v10399_v11 }
 0x1ee   :  { %9559 = vmatpush3.bf16.msra.mxu1 %v10398_v10  ;;  %v10446_v10 = vld [vmem:[%s13058_s1 + $0x1030] sm:$0xff]  }
 0x1ef   :  { %9560 = vmatprep.subr.bf16.mxu1 %v10400_v12 }
 0x1f0   :  { %9539 = vmatpush3.bf16.msra.mxu0 %v10401_v13  ;;  %v30_v13 = vld [vmem:[%s13057_s0 + $0x40] sm:$0xff] }
 0x1f1   :  { %9540 = vmatprep.subr.bf16.mxu0 %v10403_v15  ;;  %v10448_v15 = vld [vmem:[%s13058_s1 + $0x1078] sm:$0xff]  }
 0x1f2   :  { %9561 = vmatpush3.bf16.msra.mxu1 %v10402_v14 }
 0x1f3   :  { %9562 = vmatprep.subr.bf16.mxu1 %v10404_v16  ;;  %v1854_v16 = vrot.slane %v30_v13, %v10778_v41 }
 0x1f4   :  { %9541 = vmatpush3.bf16.msra.mxu0 %v10405_v17  ;;  %v1847_v17 = vcombine.high %v30_v13, %v30_v13  ;;  %v10481_v13 = vld [vmem:[%s13058_s1 + $0x11f8] sm:$0xff]  }
 0x1f5   :  { %9542 = vmatprep.subr.bf16.mxu0 %v10407_v19 }
 0x1f6   :  { %9563 = vmatpush3.bf16.msra.mxu1 %v10406_v18  ;;  %v9240_v24 = vpop.f32.mrb[32].mxu0 }
 0x1f7   :  { %v9241_v26 = vpop.f32.mrb[33].mxu0  ;;  %9564 = vmatprep.subr.bf16.mxu1 %v10408_v20 }
 0x1f8   :  { %v9262_v28 = vpop.f32.mrb[32].mxu1  ;;  %v9242_v29 = vadd.f32 %v9241_v26, %v9240_v24  ;;  %9543 = vmatpush3.bf16.msra.mxu0 %v10409_v21  ;;  %v9243_v42 = vpop.f32.mrb[34].mxu0  ;;  %v10447_v21 = vld [vmem:[%s13058_s1 + $0x10b0] sm:$0xff]   ;;  %v1862_v24 = vcombine.high %v1854_v16, %v1854_v16 }
 0x1f9   :  { %v9263_v31 = vpop.f32.mrb[33].mxu1  ;;  %9544 = vmatprep.subr.bf16.mxu0 %v10411_v23  ;;  %v9244_v45 = vpop.f32.mrb[35].mxu0  ;;  %v10449_v23 = vld [vmem:[%s13058_s1 + $0x10f8] sm:$0xff]   ;;  %v10455_v42 = vld [vmem:[%s13058_s1 + $0x1180] sm:$0xff]  }
 0x1fa   :  { %v6972_v33 = vadd.f32 %v9242_v29, %v12241_v52  ;;  %v9264_v34 = vadd.f32 %v9263_v31, %v9262_v28  ;;  %v9265_v35 = vpop.f32.mrb[34].mxu1  ;;  %9565 = vmatpush3.bf16.msra.mxu1 %v10410_v22  ;;  %v10426_v52 = vld [vmem:[%s13058_s1 + $0x1008] sm:$0xff]   ;;  %v1884_v29 = vrot.slane %v1862_v24, %v10778_v41  ;;  %v10452_v31 = vld [vmem:[%s13058_s1 + $0x1140] sm:$0xff]  }
 0x1fb   :  { %v9266_v37 = vpop.f32.mrb[35].mxu1  ;;  %9566 = vmatprep.subr.bf16.mxu1 %v10412_v25  ;;  %v12448_v25 = vrot.slane %v1847_v17, %v10778_v41  ;;  %v10458_v45 = vld [vmem:[%s13058_s1 + $0x1108] sm:$0xff]  }
 0x1fc   :  { %v12345_v39 = vadd.f32 %v9264_v34, %v6972_v33  ;;  %9545 = vmatpush3.bf16.msra.mxu0 %v10413_v27  ;;  %v10450_v27 = vld [vmem:[%s13058_s1 + $0x1038] sm:$0xff]   ;;  %v1894_v35 = vcombine.high %v1884_v29, %v1884_v29  ;;  %v10489_v24 = vld [vmem:[%s13058_s1 + $0x1248] sm:$0xff]  }
 0x1fd   :  { %9546 = vmatprep.subr.bf16.mxu0 %v10415_v32  ;;  %v1863_v33 = vcombine.high %v12448_v25, %v12448_v25  ;;  %v10451_v34 = vld [vmem:[%s13058_s1 + $0x10b8] sm:$0xff]   ;;  %v1877_v17 = vrot.slane %v12448_v25, %v10778_v41  ;;  %v10488_v25 = vld [vmem:[%s13058_s1 + $0x1280] sm:$0xff]  }
 0x1fe   :  { %9567 = vmatpush3.bf16.msra.mxu1 %v10414_v30  ;;  %v1870_v30 = vrot.slane %v1854_v16, %v10778_v41 }
 0x1ff   :  { %9568 = vmatprep.subr.bf16.mxu1 %v10416_v36  ;;  %v10453_v36 = vld [vmem:[%s13058_s1 + $0x11c0] sm:$0xff]   ;;  %v1891_v37 = vrot.slane %v1863_v33, %v10778_v41  ;;  %v10496_v33 = vld [vmem:[%s13058_s1 + $0x1290] sm:$0xff]  }
 0x200   :  { %9547 = vmatpush3.bf16.msra.mxu0 %v10417_v38  ;;  %v10454_v38 = vld [vmem:[%s13058_s1 + $0x1100] sm:$0xff]  }
 0x201   :  { %9576 = vmatprep.subr.bf16.mxu0 %v10420_v44  ;;  %v10457_v44 = vld [vmem:[%s13058_s1 + $0x11c8] sm:$0xff]  }
 0x202   :  { %9569 = vmatpush3.bf16.msra.mxu1 %v10418_v40  ;;  %v10456_v40 = vld [vmem:[%s13058_s1 + $0x1148] sm:$0xff]  }
 0x203   :  { %7530 = vmatmul.mubr.bf16.vlgmr.msra.gmra.mrb[60].mxu0 %v1828_v43  ;;  %9598 = vmatprep.subr.bf16.mxu1 %v10421_v46  ;;  %v1895_v43 = vcombine.high %v1891_v37, %v1891_v37  ;;  %v10460_v46 = vld [vmem:[%s13058_s1 + $0x1150] sm:$0xff]  }
 0x204   :  { %9577 = vmatpush3.bf16.msra.mxu0 %v10422_v47  ;;  %7609 = vmatprep.mubr.bf16.mxu0 %v1884_v29  ;;  %v10459_v47 = vld [vmem:[%s13058_s1 + $0x1188] sm:$0xff]  }
 0x205   :  { %7570 = vmatmul.mubr.bf16.vlgmr.msra.gmra.mrb[60].mxu1 %v1844_v49  ;;  %9578 = vmatprep.subr.bf16.mxu0 %v10424_v50  ;;  %v10462_v49 = vld [vmem:[%s13058_s1 + $0x1110] sm:$0xff]   ;;  %v10464_v50 = vld [vmem:[%s13058_s1 + $0x1158] sm:$0xff]   ;;  %v10492_v29 = vld [vmem:[%s13058_s1 + $0x1288] sm:$0xff]  }
 0x206   :  { %9599 = vmatpush3.bf16.msra.mxu1 %v10423_v48  ;;  %7649 = vmatprep.mubr.bf16.mxu1 %v1894_v35  ;;  %v10461_v48 = vld [vmem:[%s13058_s1 + $0x11d0] sm:$0xff]   ;;  %v10499_v35 = vld [vmem:[%s13058_s1 + $0x1218] sm:$0xff]  }
 0x207   :  { %9600 = vmatprep.subr.bf16.mxu1 %v10425_v51  ;;  %v10463_v51 = vld [vmem:[%s13058_s1 + $0x1190] sm:$0xff]  }
 0x208   :  { %9579 = vmatpush3.bf16.msra.mxu0 %v10426_v52  ;;  %v10465_v52 = vld [vmem:[%s13058_s1 + $0x11d8] sm:$0xff]  }
 0x209   :  { %9580 = vmatprep.subr.bf16.mxu0 %v10428_v55  ;;  %v10468_v55 = vld [vmem:[%s13058_s1 + $0x1160] sm:$0xff]  }
 0x20a   :  { %9601 = vmatpush3.bf16.msra.mxu1 %v10427_v53  ;;  %v10466_v53 = vld [vmem:[%s13058_s1 + $0x1118] sm:$0xff]  }
 0x20b   :  { %9602 = vmatprep.subr.bf16.mxu1 %v10429_v56  ;;  %v10467_v56 = vld [vmem:[%s13058_s1 + $0x1198] sm:$0xff]  }
 0x20c   :  { %9581 = vmatpush3.bf16.msra.mxu0 %v10430_v57  ;;  %v10469_v57 = vld [vmem:[%s13058_s1 + $0x11e0] sm:$0xff]  }
 0x20d   :  { %9582 = vmatprep.subr.bf16.mxu0 %v10432_v58  ;;  %v10472_v58 = vld [vmem:[%s13058_s1 + $0x1168] sm:$0xff]  }
 0x20e   :  { %9603 = vmatpush3.bf16.msra.mxu1 %v10431_v54  ;;  %v10470_v54 = vld [vmem:[%s13058_s1 + $0x1120] sm:$0xff]  }
 0x20f   :  { %9604 = vmatprep.subr.bf16.mxu1 %v10433_v59  ;;  %v10471_v59 = vld [vmem:[%s13058_s1 + $0x11a0] sm:$0xff]  }
 0x210   :  { %9583 = vmatpush3.bf16.msra.mxu0 %v10434_v60  ;;  %v10473_v60 = vld [vmem:[%s13058_s1 + $0x11e8] sm:$0xff]  }
 0x211   :  { %9584 = vmatprep.subr.bf16.mxu0 %v10436_v62  ;;  %v10476_v62 = vld [vmem:[%s13058_s1 + $0x1170] sm:$0xff]  }
 0x212   :  { %9605 = vmatpush3.bf16.msra.mxu1 %v10435_v61  ;;  %v10474_v61 = vld [vmem:[%s13058_s1 + $0x1128] sm:$0xff]  }
 0x213   :  { %9606 = vmatprep.subr.bf16.mxu1 %v10437_v63 }
 0x214   :  { %9585 = vmatpush3.bf16.msra.mxu0 %v10438_v0  ;;  %v10475_v0 = vld [vmem:[%s13058_s1 + $0x11a8] sm:$0xff]  }
 0x215   :  { %9586 = vmatprep.subr.bf16.mxu0 %v10440_v2  ;;  %v10477_v2 = vld [vmem:[%s13058_s1 + $0x11f0] sm:$0xff]  }
 0x216   :  { %9607 = vmatpush3.bf16.msra.mxu1 %v10439_v1  ;;  %v9284_v7 = vpop.f32.mrb[36].mxu0 }
 0x217   :  { %v9285_v9 = vpop.f32.mrb[37].mxu0  ;;  %9608 = vmatprep.subr.bf16.mxu1 %v10441_v3 }
 0x218   :  { %v9306_v11 = vpop.f32.mrb[36].mxu1  ;;  %v9286_v12 = vadd.f32 %v9285_v9, %v9284_v7  ;;  %9587 = vmatpush3.bf16.msra.mxu0 %v10442_v4  ;;  %v9287_v28 = vpop.f32.mrb[38].mxu0  ;;  %v10480_v7 = vld [vmem:[%s13058_s1 + $0x1178] sm:$0xff]  }
 0x219   :  { %v9307_v14 = vpop.f32.mrb[37].mxu1  ;;  %9588 = vmatprep.subr.bf16.mxu0 %v10444_v6  ;;  %v9288_v32 = vpop.f32.mrb[39].mxu0  ;;  %v10493_v28 = vld [vmem:[%s13058_s1 + $0x1250] sm:$0xff]  }
 0x21a   :  { %v7052_v18 = vadd.f32 %v9286_v12, %v12345_v39  ;;  %v9308_v19 = vadd.f32 %v9307_v14, %v9306_v11  ;;  %v9309_v20 = vpop.f32.mrb[38].mxu1  ;;  %9609 = vmatpush3.bf16.msra.mxu1 %v10443_v5  ;;  %v1892_v39 = vcombine.high %v1870_v30, %v1870_v30  ;;  %v10478_v5 = vld [vmem:[%s13058_s1 + $0x1130] sm:$0xff]   ;;  %v10497_v32 = vld [vmem:[%s13058_s1 + $0x1258] sm:$0xff]  }
 0x21b   :  { %v9310_v22 = vpop.f32.mrb[39].mxu1  ;;  %9610 = vmatprep.subr.bf16.mxu1 %v10445_v8  ;;  %v10479_v11 = vld [vmem:[%s13058_s1 + $0x11b0] sm:$0xff]   ;;  %v10483_v20 = vld [vmem:[%s13058_s1 + $0x11b8] sm:$0xff]  }
 0x21c   :  { %v12450_v26 = vadd.f32 %v9308_v19, %v7052_v18  ;;  %9589 = vmatpush3.bf16.msra.mxu0 %v10446_v10  ;;  %v10485_v18 = vld [vmem:[%s13058_s1 + $0x1240] sm:$0xff]  }
 0x21d   :  { %9590 = vmatprep.subr.bf16.mxu0 %v10448_v15  ;;  %v10482_v15 = vld [vmem:[%s13058_s1 + $0x1138] sm:$0xff]   ;;  %v10487_v22 = vld [vmem:[%s13058_s1 + $0x1200] sm:$0xff]  }
 0x21e   :  { %9611 = vmatpush3.bf16.msra.mxu1 %v10447_v21  ;;  %v10486_v21 = vld [vmem:[%s13058_s1 + $0x12c0] sm:$0xff]  }
 0x21f   :  { %9612 = vmatprep.subr.bf16.mxu1 %v10449_v23  ;;  %v1893_v23 = vcombine.high %v1877_v17, %v1877_v17 }
 0x220   :  { %9591 = vmatpush3.bf16.msra.mxu0 %v10450_v27  ;;  %v10491_v27 = vld [vmem:[%s13058_s1 + $0x1208] sm:$0xff]  }
 0x221   :  { %9620 = vmatprep.subr.bf16.mxu0 %v10452_v31  ;;  %v10495_v31 = vld [vmem:[%s13058_s1 + $0x1210] sm:$0xff]  }
 0x222   :  { %9613 = vmatpush3.bf16.msra.mxu1 %v10451_v34  ;;  %v10498_v34 = vld [vmem:[%s13058_s1 + $0x12d8] sm:$0xff]  }
 0x223   :  { %7610 = vmatmul.mubr.bf16.vlgmr.msra.gmra.mrb[64].mxu0 %v1870_v30  ;;  %9642 = vmatprep.subr.bf16.mxu1 %v10453_v36  ;;  %v10494_v30 = vld [vmem:[%s13058_s1 + $0x12d0] sm:$0xff]   ;;  %v10501_v36 = vld [vmem:[%s13058_s1 + $0x1260] sm:$0xff]  }
 0x224   :  { %9621 = vmatpush3.bf16.msra.mxu0 %v10454_v38  ;;  %7689 = vmatprep.mubr.bf16.mxu0 %v1891_v37  ;;  %v10500_v37 = vld [vmem:[%s13058_s1 + $0x1298] sm:$0xff]   ;;  %v10502_v38 = vld [vmem:[%s13058_s1 + $0x12e0] sm:$0xff]  }
 0x225   :  { %7650 = vmatmul.mubr.bf16.vlgmr.msra.gmra.mrb[64].mxu1 %v1892_v39  ;;  %9622 = vmatprep.subr.bf16.mxu0 %v10456_v40  ;;  %v10503_v39 = vld [vmem:[%s13058_s1 + $0x1220] sm:$0xff]   ;;  %v10505_v40 = vld [vmem:[%s13058_s1 + $0x1268] sm:$0xff]  }
 0x226   :  { %9643 = vmatpush3.bf16.msra.mxu1 %v10455_v42  ;;  %7729 = vmatprep.mubr.bf16.mxu1 %v1895_v43  ;;  %v10504_v42 = vld [vmem:[%s13058_s1 + $0x12a0] sm:$0xff]   ;;  %v10506_v43 = vld [vmem:[%s13058_s1 + $0x12e8] sm:$0xff]  }
 0x227   :  { %9644 = vmatprep.subr.bf16.mxu1 %v10457_v44  ;;  %v10507_v44 = vld [vmem:[%s13058_s1 + $0x1228] sm:$0xff]  }
 0x228   :  { %9623 = vmatpush3.bf16.msra.mxu0 %v10458_v45  ;;  %v10509_v45 = vld [vmem:[%s13058_s1 + $0x1270] sm:$0xff]  }
 0x229   :  { %9624 = vmatprep.subr.bf16.mxu0 %v10460_v46 }
 0x22a   :  { %9645 = vmatpush3.bf16.msra.mxu1 %v10459_v47  ;;  %v10508_v47 = vld [vmem:[%s13058_s1 + $0x12a8] sm:$0xff]  }
 0x22b   :  { %9646 = vmatprep.subr.bf16.mxu1 %v10461_v48 }
 0x22c   :  { %9625 = vmatpush3.bf16.msra.mxu0 %v10462_v49  ;;  %v10510_v49 = vld [vmem:[%s13058_s1 + $0x12f0] sm:$0xff]  }
 0x22d   :  { %9626 = vmatprep.subr.bf16.mxu0 %v10464_v50 }
 0x22e   :  { %9647 = vmatpush3.bf16.msra.mxu1 %v10463_v51 }
 0x22f   :  { %9648 = vmatprep.subr.bf16.mxu1 %v10465_v52  ;;  %v10511_v52 = vld [vmem:[%s13058_s1 + $0x1230] sm:$0xff]  }
 0x230   :  { %9627 = vmatpush3.bf16.msra.mxu0 %v10466_v53  ;;  %v31_v53 = vld [vmem:[%s13057_s0 + $0x48] sm:$0xff] }
 0x231   :  { %9628 = vmatprep.subr.bf16.mxu0 %v10468_v55 }
 0x232   :  { %9649 = vmatpush3.bf16.msra.mxu1 %v10467_v56 }
 0x233   :  { %9650 = vmatprep.subr.bf16.mxu1 %v10469_v57  ;;  %v10513_v57 = vld [vmem:[%s13058_s1 + $0x1278] sm:$0xff]  }
 0x234   :  { %9629 = vmatpush3.bf16.msra.mxu0 %v10470_v54  ;;  %v1903_v54 = vrot.slane %v31_v53, %v10778_v41 }
 0x235   :  { %9630 = vmatprep.subr.bf16.mxu0 %v10472_v58  ;;  %v1896_v58 = vcombine.high %v31_v53, %v31_v53  ;;  %v10546_v53 = vld [vmem:[%s13058_s1 + $0x13f8] sm:$0xff]  }
 0x236   :  { %9651 = vmatpush3.bf16.msra.mxu1 %v10471_v59  ;;  %v9328_v63 = vpop.f32.mrb[40].mxu0 }
 0x237   :  { %v9329_v1 = vpop.f32.mrb[41].mxu0  ;;  %9652 = vmatprep.subr.bf16.mxu1 %v10473_v60 }
 0x238   :  { %v9350_v3 = vpop.f32.mrb[40].mxu1  ;;  %v9330_v4 = vadd.f32 %v9329_v1, %v9328_v63  ;;  %9631 = vmatpush3.bf16.msra.mxu0 %v10474_v61  ;;  %v9331_v16 = vpop.f32.mrb[42].mxu0  ;;  %v1911_v1 = vcombine.high %v1903_v54, %v1903_v54 }
 0x239   :  { %v9351_v6 = vpop.f32.mrb[41].mxu1  ;;  %9632 = vmatprep.subr.bf16.mxu0 %v10476_v62  ;;  %v9332_v19 = vpop.f32.mrb[43].mxu0  ;;  %v10512_v62 = vld [vmem:[%s13058_s1 + $0x12b0] sm:$0xff]   ;;  %v10521_v16 = vld [vmem:[%s13058_s1 + $0x1348] sm:$0xff]  }
 0x23a   :  { %v7132_v8 = vadd.f32 %v9330_v4, %v12450_v26  ;;  %v9352_v9 = vadd.f32 %v9351_v6, %v9350_v3  ;;  %v9353_v10 = vpop.f32.mrb[42].mxu1  ;;  %9653 = vmatpush3.bf16.msra.mxu1 %v10475_v0  ;;  %v10490_v26 = vld [vmem:[%s13058_s1 + $0x12c8] sm:$0xff]   ;;  %v10514_v0 = vld [vmem:[%s13058_s1 + $0x12f8] sm:$0xff]   ;;  %v1933_v6 = vrot.slane %v1911_v1, %v10778_v41  ;;  %v10553_v1 = vld [vmem:[%s13058_s1 + $0x1480] sm:$0xff]  }
 0x23b   :  { %v9354_v12 = vpop.f32.mrb[43].mxu1  ;;  %9654 = vmatprep.subr.bf16.mxu1 %v10477_v2  ;;  %v12660_v2 = vrot.slane %v1896_v58, %v10778_v41  ;;  %v10515_v4 = vld [vmem:[%s13058_s1 + $0x1238] sm:$0xff]   ;;  %v10522_v19 = vld [vmem:[%s13058_s1 + $0x13c8] sm:$0xff]   ;;  %v10550_v58 = vld [vmem:[%s13058_s1 + $0x1440] sm:$0xff]  }
 0x23c   :  { %v12554_v14 = vadd.f32 %v9352_v9, %v7132_v8  ;;  %9633 = vmatpush3.bf16.msra.mxu0 %v10478_v5  ;;  %v10517_v8 = vld [vmem:[%s13058_s1 + $0x1340] sm:$0xff]   ;;  %v10516_v10 = vld [vmem:[%s13058_s1 + $0x12b8] sm:$0xff]  }
 0x23d   :  { %9634 = vmatprep.subr.bf16.mxu0 %v10480_v7  ;;  %v1919_v7 = vrot.slane %v1903_v54, %v10778_v41  ;;  %v1912_v9 = vcombine.high %v12660_v2, %v12660_v2  ;;  %v10518_v12 = vld [vmem:[%s13058_s1 + $0x13c0] sm:$0xff]   ;;  %v1926_v54 = vrot.slane %v12660_v2, %v10778_v41  ;;  %v10555_v2 = vld [vmem:[%s13058_s1 + $0x14c8] sm:$0xff]  }
 0x23e   :  { %9655 = vmatpush3.bf16.msra.mxu1 %v10479_v11  ;;  %v1943_v11 = vcombine.high %v1933_v6, %v1933_v6 }
 0x23f   :  { %9656 = vmatprep.subr.bf16.mxu1 %v10481_v13  ;;  %v1940_v13 = vrot.slane %v1912_v9, %v10778_v41  ;;  %v10561_v9 = vld [vmem:[%s13058_s1 + $0x1490] sm:$0xff]  }
 0x240   :  { %9635 = vmatpush3.bf16.msra.mxu0 %v10482_v15  ;;  %v1941_v15 = vcombine.high %v1919_v7, %v1919_v7 }
 0x241   :  { %9664 = vmatprep.subr.bf16.mxu0 %v10485_v18  ;;  %v1944_v18 = vcombine.high %v1940_v13, %v1940_v13 }
 0x242   :  { %9657 = vmatpush3.bf16.msra.mxu1 %v10483_v20  ;;  %v10523_v20 = vld [vmem:[%s13058_s1 + $0x1308] sm:$0xff]  }
 0x243   :  { %7690 = vmatmul.mubr.bf16.vlgmr.msra.gmra.mrb[68].mxu0 %v1877_v17  ;;  %9686 = vmatprep.subr.bf16.mxu1 %v10486_v21  ;;  %v10520_v17 = vld [vmem:[%s13058_s1 + $0x1380] sm:$0xff]   ;;  %v10525_v21 = vld [vmem:[%s13058_s1 + $0x1350] sm:$0xff]  }
 0x244   :  { %9665 = vmatpush3.bf16.msra.mxu0 %v10487_v22  ;;  %7769 = vmatprep.mubr.bf16.mxu0 %v1933_v6  ;;  %v10524_v22 = vld [vmem:[%s13058_s1 + $0x1388] sm:$0xff]   ;;  %v10559_v6 = vld [vmem:[%s13058_s1 + $0x14d0] sm:$0xff]  }
 0x245   :  { %7730 = vmatmul.mubr.bf16.vlgmr.msra.gmra.mrb[68].mxu1 %v1893_v23  ;;  %9666 = vmatprep.subr.bf16.mxu0 %v10489_v24  ;;  %v10526_v23 = vld [vmem:[%s13058_s1 + $0x13d0] sm:$0xff]  }
 0x246   :  { %9687 = vmatpush3.bf16.msra.mxu1 %v10488_v25  ;;  %7809 = vmatprep.mubr.bf16.mxu1 %v1943_v11  ;;  %v10527_v24 = vld [vmem:[%s13058_s1 + $0x1310] sm:$0xff]   ;;  %v10529_v25 = vld [vmem:[%s13058_s1 + $0x1358] sm:$0xff]  }
 0x247   :  { %9688 = vmatprep.subr.bf16.mxu1 %v10490_v26  ;;  %v10528_v26 = vld [vmem:[%s13058_s1 + $0x1390] sm:$0xff]   ;;  %v10564_v11 = vld [vmem:[%s13058_s1 + $0x1418] sm:$0xff]  }
 0x248   :  { %9667 = vmatpush3.bf16.msra.mxu0 %v10491_v27  ;;  %v10530_v27 = vld [vmem:[%s13058_s1 + $0x13d8] sm:$0xff]  }
 0x249   :  { %9668 = vmatprep.subr.bf16.mxu0 %v10493_v28  ;;  %v10531_v28 = vld [vmem:[%s13058_s1 + $0x1318] sm:$0xff]  }
 0x24a   :  { %9689 = vmatpush3.bf16.msra.mxu1 %v10492_v29  ;;  %v10533_v29 = vld [vmem:[%s13058_s1 + $0x1360] sm:$0xff]  }
 0x24b   :  { %9690 = vmatprep.subr.bf16.mxu1 %v10494_v30  ;;  %v10532_v30 = vld [vmem:[%s13058_s1 + $0x1398] sm:$0xff]  }
 0x24c   :  { %9669 = vmatpush3.bf16.msra.mxu0 %v10495_v31  ;;  %v10534_v31 = vld [vmem:[%s13058_s1 + $0x13e0] sm:$0xff]  }
 0x24d   :  { %9670 = vmatprep.subr.bf16.mxu0 %v10497_v32  ;;  %v10535_v32 = vld [vmem:[%s13058_s1 + $0x1320] sm:$0xff]  }
 0x24e   :  { %9691 = vmatpush3.bf16.msra.mxu1 %v10496_v33  ;;  %v10537_v33 = vld [vmem:[%s13058_s1 + $0x1368] sm:$0xff]  }
 0x24f   :  { %9692 = vmatprep.subr.bf16.mxu1 %v10498_v34  ;;  %v10536_v34 = vld [vmem:[%s13058_s1 + $0x13a0] sm:$0xff]  }
 0x250   :  { %9671 = vmatpush3.bf16.msra.mxu0 %v10499_v35  ;;  %v10538_v35 = vld [vmem:[%s13058_s1 + $0x13e8] sm:$0xff]  }
 0x251   :  { %9672 = vmatprep.subr.bf16.mxu0 %v10501_v36  ;;  %v10539_v36 = vld [vmem:[%s13058_s1 + $0x1328] sm:$0xff]  }
 0x252   :  { %9693 = vmatpush3.bf16.msra.mxu1 %v10500_v37  ;;  %v10541_v37 = vld [vmem:[%s13058_s1 + $0x1370] sm:$0xff]  }
 0x253   :  { %9694 = vmatprep.subr.bf16.mxu1 %v10502_v38 }
 0x254   :  { %9673 = vmatpush3.bf16.msra.mxu0 %v10503_v39  ;;  %v10540_v39 = vld [vmem:[%s13058_s1 + $0x13a8] sm:$0xff]  }
 0x255   :  { %9674 = vmatprep.subr.bf16.mxu0 %v10505_v40 }
 0x256   :  { %9695 = vmatpush3.bf16.msra.mxu1 %v10504_v42  ;;  %v9372_v46 = vpop.f32.mrb[44].mxu0  ;;  %v10542_v42 = vld [vmem:[%s13058_s1 + $0x13f0] sm:$0xff]  }
 0x257   :  { %v9373_v48 = vpop.f32.mrb[45].mxu0  ;;  %9696 = vmatprep.subr.bf16.mxu1 %v10506_v43 }
 0x258   :  { %v9394_v50 = vpop.f32.mrb[44].mxu1  ;;  %v9374_v51 = vadd.f32 %v9373_v48, %v9372_v46  ;;  %9675 = vmatpush3.bf16.msra.mxu0 %v10507_v44  ;;  %v9375_v55 = vpop.f32.mrb[46].mxu0 }
 0x259   :  { %v9395_v56 = vpop.f32.mrb[45].mxu1  ;;  %9676 = vmatprep.subr.bf16.mxu0 %v10509_v45  ;;  %v9376_v5 = vpop.f32.mrb[47].mxu0  ;;  %v10543_v45 = vld [vmem:[%s13058_s1 + $0x1330] sm:$0xff]  }
 0x25a   :  { %v7212_v59 = vadd.f32 %v9374_v51, %v12554_v14  ;;  %v9396_v60 = vadd.f32 %v9395_v56, %v9394_v50  ;;  %v9397_v61 = vpop.f32.mrb[46].mxu1  ;;  %9697 = vmatpush3.bf16.msra.mxu1 %v10508_v47  ;;  %v10519_v14 = vld [vmem:[%s13058_s1 + $0x1300] sm:$0xff]   ;;  %v10545_v47 = vld [vmem:[%s13058_s1 + $0x1378] sm:$0xff]   ;;  %v10544_v51 = vld [vmem:[%s13058_s1 + $0x13b0] sm:$0xff]  }
 0x25b   :  { %v9398_v63 = vpop.f32.mrb[47].mxu1  ;;  %9698 = vmatprep.subr.bf16.mxu1 %v10510_v49  ;;  %v10547_v56 = vld [vmem:[%s13058_s1 + $0x1338] sm:$0xff]   ;;  %v10551_v61 = vld [vmem:[%s13058_s1 + $0x14c0] sm:$0xff]   ;;  %v10557_v5 = vld [vmem:[%s13058_s1 + $0x1488] sm:$0xff]  }
 0x25c   :  { %v12662_v3 = vadd.f32 %v9396_v60, %v7212_v59  ;;  %9677 = vmatpush3.bf16.msra.mxu0 %v10511_v52  ;;  %v10548_v60 = vld [vmem:[%s13058_s1 + $0x13b8] sm:$0xff]   ;;  %v1942_v63 = vcombine.high %v1926_v54, %v1926_v54 }
 0x25d   :  { %9678 = vmatprep.subr.bf16.mxu0 %v10513_v57 }
 0x25e   :  { %9699 = vmatpush3.bf16.msra.mxu1 %v10512_v62  ;;  %v10552_v62 = vld [vmem:[%s13058_s1 + $0x1400] sm:$0xff]  }
 0x25f   :  { %9700 = vmatprep.subr.bf16.mxu1 %v10514_v0  ;;  %v10554_v0 = vld [vmem:[%s13058_s1 + $0x1448] sm:$0xff]  }
 0x260   :  { %9679 = vmatpush3.bf16.msra.mxu0 %v10515_v4  ;;  %v10558_v4 = vld [vmem:[%s13058_s1 + $0x1450] sm:$0xff]  }
 0x261   :  { %9708 = vmatprep.subr.bf16.mxu0 %v10517_v8  ;;  %v10562_v8 = vld [vmem:[%s13058_s1 + $0x1458] sm:$0xff]  }
 0x262   :  { %9701 = vmatpush3.bf16.msra.mxu1 %v10516_v10  ;;  %v10563_v10 = vld [vmem:[%s13058_s1 + $0x14d8] sm:$0xff]  }
 0x263   :  { %7770 = vmatmul.mubr.bf16.vlgmr.msra.gmra.mrb[72].mxu0 %v1919_v7  ;;  %9730 = vmatprep.subr.bf16.mxu1 %v10518_v12  ;;  %v10560_v7 = vld [vmem:[%s13058_s1 + $0x1410] sm:$0xff]   ;;  %v10566_v12 = vld [vmem:[%s13058_s1 + $0x1460] sm:$0xff]  }
 0x264   :  { %9709 = vmatpush3.bf16.msra.mxu0 %v10519_v14  ;;  %7849 = vmatprep.mubr.bf16.mxu0 %v1940_v13  ;;  %v10565_v13 = vld [vmem:[%s13058_s1 + $0x1498] sm:$0xff]   ;;  %v10567_v14 = vld [vmem:[%s13058_s1 + $0x14e0] sm:$0xff]  }
 0x265   :  { %7810 = vmatmul.mubr.bf16.vlgmr.msra.gmra.mrb[72].mxu1 %v1941_v15  ;;  %9710 = vmatprep.subr.bf16.mxu0 %v10521_v16  ;;  %v10568_v15 = vld [vmem:[%s13058_s1 + $0x1420] sm:$0xff]   ;;  %v10570_v16 = vld [vmem:[%s13058_s1 + $0x1468] sm:$0xff]  }
 0x266   :  { %9731 = vmatpush3.bf16.msra.mxu1 %v10520_v17  ;;  %7889 = vmatprep.mubr.bf16.mxu1 %v1944_v18  ;;  %v10569_v17 = vld [vmem:[%s13058_s1 + $0x14a0] sm:$0xff]   ;;  %v10571_v18 = vld [vmem:[%s13058_s1 + $0x14e8] sm:$0xff]  }
 0x267   :  { %9732 = vmatprep.subr.bf16.mxu1 %v10522_v19  ;;  %v10572_v19 = vld [vmem:[%s13058_s1 + $0x1428] sm:$0xff]  }
 0x268   :  { %9711 = vmatpush3.bf16.msra.mxu0 %v10523_v20  ;;  %v10574_v20 = vld [vmem:[%s13058_s1 + $0x1470] sm:$0xff]  }
 0x269   :  { %9712 = vmatprep.subr.bf16.mxu0 %v10525_v21 }
 0x26a   :  { %9733 = vmatpush3.bf16.msra.mxu1 %v10524_v22  ;;  %v10573_v22 = vld [vmem:[%s13058_s1 + $0x14a8] sm:$0xff]  }
 0x26b   :  { %9734 = vmatprep.subr.bf16.mxu1 %v10526_v23 }
 0x26c   :  { %9713 = vmatpush3.bf16.msra.mxu0 %v10527_v24  ;;  %v10575_v24 = vld [vmem:[%s13058_s1 + $0x14f0] sm:$0xff]  }
 0x26d   :  { %9714 = vmatprep.subr.bf16.mxu0 %v10529_v25 }
 0x26e   :  { %9735 = vmatpush3.bf16.msra.mxu1 %v10528_v26 }
 0x26f   :  { %9736 = vmatprep.subr.bf16.mxu1 %v10530_v27  ;;  %v10576_v27 = vld [vmem:[%s13058_s1 + $0x1430] sm:$0xff]  }
 0x270   :  { %9715 = vmatpush3.bf16.msra.mxu0 %v10531_v28  ;;  %v32_v28 = vld [vmem:[%s13057_s0 + $0x50] sm:$0xff] }
 0x271   :  { %9716 = vmatprep.subr.bf16.mxu0 %v10533_v29 }
 0x272   :  { %9737 = vmatpush3.bf16.msra.mxu1 %v10532_v30 }
 0x273   :  { %9738 = vmatprep.subr.bf16.mxu1 %v10534_v31  ;;  %v10578_v31 = vld [vmem:[%s13058_s1 + $0x1478] sm:$0xff]  }
 0x274   :  { %9717 = vmatpush3.bf16.msra.mxu0 %v10535_v32  ;;  %v1952_v32 = vrot.slane %v32_v28, %v10778_v41 }
 0x275   :  { %9718 = vmatprep.subr.bf16.mxu0 %v10537_v33  ;;  %v1945_v33 = vcombine.high %v32_v28, %v32_v28 }
 0x276   :  { %9739 = vmatpush3.bf16.msra.mxu1 %v10536_v34  ;;  %v9416_v38 = vpop.f32.mrb[48].mxu0 }
 0x277   :  { %v9417_v40 = vpop.f32.mrb[49].mxu0  ;;  %9740 = vmatprep.subr.bf16.mxu1 %v10538_v35 }
 0x278   :  { %v9438_v43 = vpop.f32.mrb[48].mxu1  ;;  %v9418_v44 = vadd.f32 %v9417_v40, %v9416_v38  ;;  %9719 = vmatpush3.bf16.msra.mxu0 %v10539_v36  ;;  %v9419_v57 = vpop.f32.mrb[50].mxu0  ;;  %v1960_v40 = vcombine.high %v1952_v32, %v1952_v32 }
 0x279   :  { %v9439_v46 = vpop.f32.mrb[49].mxu1  ;;  %9720 = vmatprep.subr.bf16.mxu0 %v10541_v37  ;;  %v9420_v59 = vpop.f32.mrb[51].mxu0  ;;  %v10577_v37 = vld [vmem:[%s13058_s1 + $0x14b0] sm:$0xff]   ;;  %v10584_v57 = vld [vmem:[%s13058_s1 + $0x1580] sm:$0xff]  }
 0x27a   :  { %v7292_v48 = vadd.f32 %v9418_v44, %v12662_v3  ;;  %v9440_v49 = vadd.f32 %v9439_v46, %v9438_v43  ;;  %v9441_v50 = vpop.f32.mrb[50].mxu1  ;;  %9741 = vmatpush3.bf16.msra.mxu1 %v10540_v39  ;;  %v10556_v3 = vld [vmem:[%s13058_s1 + $0x1408] sm:$0xff]   ;;  %v10579_v39 = vld [vmem:[%s13058_s1 + $0x14f8] sm:$0xff]   ;;  %v1982_v46 = vrot.slane %v1960_v40, %v10778_v41 }
 0x27b   :  { %v9442_v52 = vpop.f32.mrb[51].mxu1  ;;  %9742 = vmatprep.subr.bf16.mxu1 %v10542_v42  ;;  %v12872_v42 = vrot.slane %v1945_v33, %v10778_v41  ;;  %v10580_v44 = vld [vmem:[%s13058_s1 + $0x1438] sm:$0xff]   ;;  %v10586_v59 = vld [vmem:[%s13058_s1 + $0x1508] sm:$0xff]  }
 0x27c   :  { %v12766_v55 = vadd.f32 %v9440_v49, %v7292_v48  ;;  %9721 = vmatpush3.bf16.msra.mxu0 %v10543_v45  ;;  %v10582_v48 = vld [vmem:[%s13058_s1 + $0x1540] sm:$0xff]   ;;  %v10581_v50 = vld [vmem:[%s13058_s1 + $0x14b8] sm:$0xff]  }
 0x27d   :  { %9722 = vmatprep.subr.bf16.mxu0 %v10545_v47  ;;  %v1968_v47 = vrot.slane %v1952_v32, %v10778_v41  ;;  %v1961_v49 = vcombine.high %v12872_v42, %v12872_v42  ;;  %v10583_v52 = vld [vmem:[%s13058_s1 + $0x1500] sm:$0xff]  }
 0x27e   :  { %9743 = vmatpush3.bf16.msra.mxu1 %v10544_v51  ;;  %v1992_v51 = vcombine.high %v1982_v46, %v1982_v46 }
 0x27f   :  { %9744 = vmatprep.subr.bf16.mxu1 %v10546_v53  ;;  %v1989_v53 = vrot.slane %v1961_v49, %v10778_v41 }
 0x280   :  { %9723 = vmatpush3.bf16.msra.mxu0 %v10547_v56  ;;  %v10585_v56 = vld [vmem:[%s13058_s1 + $0x1548] sm:$0xff]  }
 0x281   :  { %9752 = vmatprep.subr.bf16.mxu0 %v10550_v58  ;;  %v10638_v58 = vmov 0  }
 0x282   :  { %9745 = vmatpush3.bf16.msra.mxu1 %v10548_v60  ;;  %v10588_v60 = vld [vmem:[%s13058_s1 + $0x1550] sm:$0xff]  }
 0x283   :  { %7850 = vmatmul.mubr.bf16.vlgmr.msra.gmra.mrb[76].mxu0 %v1926_v54  ;;  %9774 = vmatprep.subr.bf16.mxu1 %v10551_v61  ;;  %v1993_v54 = vcombine.high %v1989_v53, %v1989_v53  ;;  %v10587_v61 = vld [vmem:[%s13058_s1 + $0x1588] sm:$0xff]  }
 0x284   :  { %9753 = vmatpush3.bf16.msra.mxu0 %v10552_v62  ;;  %7929 = vmatprep.mubr.bf16.mxu0 %v1982_v46  ;;  %v10589_v62 = vld [vmem:[%s13058_s1 + $0x1510] sm:$0xff]  }
 0x285   :  { %7890 = vmatmul.mubr.bf16.vlgmr.msra.gmra.mrb[76].mxu1 %v1942_v63  ;;  %9754 = vmatprep.subr.bf16.mxu0 %v10554_v0  ;;  %v10591_v63 = vld [vmem:[%s13058_s1 + $0x1558] sm:$0xff]   ;;  %v10590_v0 = vld [vmem:[%s13058_s1 + $0x1590] sm:$0xff]  }
 0x286   :  { %9775 = vmatpush3.bf16.msra.mxu1 %v10553_v1  ;;  %7969 = vmatprep.mubr.bf16.mxu1 %v1992_v51  ;;  %v10592_v1 = vld [vmem:[%s13058_s1 + $0x1518] sm:$0xff]  }
 0x287   :  { %9776 = vmatprep.subr.bf16.mxu1 %v10555_v2  ;;  %v10594_v2 = vld [vmem:[%s13058_s1 + $0x1560] sm:$0xff]  }
 0x288   :  { %9755 = vmatpush3.bf16.msra.mxu0 %v10556_v3  ;;  %v10593_v3 = vld [vmem:[%s13058_s1 + $0x1598] sm:$0xff]  }
 0x289   :  { %9756 = vmatprep.subr.bf16.mxu0 %v10558_v4  ;;  %v10595_v4 = vld [vmem:[%s13058_s1 + $0x1520] sm:$0xff]  }
 0x28a   :  { %9777 = vmatpush3.bf16.msra.mxu1 %v10557_v5  ;;  %v10597_v5 = vld [vmem:[%s13058_s1 + $0x1568] sm:$0xff]  }
 0x28b   :  { %9778 = vmatprep.subr.bf16.mxu1 %v10559_v6  ;;  %v10596_v6 = vld [vmem:[%s13058_s1 + $0x15a0] sm:$0xff]  }
 0x28c   :  { %9757 = vmatpush3.bf16.msra.mxu0 %v10560_v7  ;;  %v10598_v7 = vld [vmem:[%s13058_s1 + $0x1528] sm:$0xff]  }
 0x28d   :  { %9758 = vmatprep.subr.bf16.mxu0 %v10562_v8  ;;  %v10600_v8 = vld [vmem:[%s13058_s1 + $0x1570] sm:$0xff]  }
 0x28e   :  { %9779 = vmatpush3.bf16.msra.mxu1 %v10561_v9 }
 0x28f   :  { %9780 = vmatprep.subr.bf16.mxu1 %v10563_v10  ;;  %v10599_v10 = vld [vmem:[%s13058_s1 + $0x15a8] sm:$0xff]  }
 0x290   :  { %9759 = vmatpush3.bf16.msra.mxu0 %v10564_v11 }
 0x291   :  { %9760 = vmatprep.subr.bf16.mxu0 %v10566_v12 }
 0x292   :  { %9781 = vmatpush3.bf16.msra.mxu1 %v10565_v13 }
 0x293   :  { %9782 = vmatprep.subr.bf16.mxu1 %v10567_v14 }
 0x294   :  { %9761 = vmatpush3.bf16.msra.mxu0 %v10568_v15 }
 0x295   :  { %9762 = vmatprep.subr.bf16.mxu0 %v10570_v16 }
 0x296   :  { %9783 = vmatpush3.bf16.msra.mxu1 %v10569_v17  ;;  %v9460_v21 = vpop.f32.mrb[52].mxu0 }
 0x297   :  { %v9461_v23 = vpop.f32.mrb[53].mxu0  ;;  %9784 = vmatprep.subr.bf16.mxu1 %v10571_v18 }
 0x298   :  { %v9482_v25 = vpop.f32.mrb[52].mxu1  ;;  %v9462_v26 = vadd.f32 %v9461_v23, %v9460_v21  ;;  %9763 = vmatpush3.bf16.msra.mxu0 %v10572_v19  ;;  %v9463_v29 = vpop.f32.mrb[54].mxu0 }
 0x299   :  { %v9483_v30 = vpop.f32.mrb[53].mxu1  ;;  %9764 = vmatprep.subr.bf16.mxu0 %v10574_v20  ;;  %v9464_v45 = vpop.f32.mrb[55].mxu0 }
 0x29a   :  { %v7372_v34 = vadd.f32 %v9462_v26, %v12766_v55  ;;  %v9484_v35 = vadd.f32 %v9483_v30, %v9482_v25  ;;  %v9485_v36 = vpop.f32.mrb[54].mxu1  ;;  %9785 = vmatpush3.bf16.msra.mxu1 %v10573_v22  ;;  %v1990_v55 = vcombine.high %v1968_v47, %v1968_v47 }
 0x29b   :  { %v9486_v38 = vpop.f32.mrb[55].mxu1  ;;  %9786 = vmatprep.subr.bf16.mxu1 %v10575_v24 }
 0x29c   :  { %v12874_v43 = vadd.f32 %v9484_v35, %v7372_v34  ;;  %9765 = vmatpush3.bf16.msra.mxu0 %v10576_v27 }
 0x29d   :  { %9766 = vmatprep.subr.bf16.mxu0 %v10578_v31 }
 0x29e   :  { %9787 = vmatpush3.bf16.msra.mxu1 %v10577_v37 }
 0x29f   :  { %9788 = vmatprep.subr.bf16.mxu1 %v10579_v39 }
 0x2a0   :  { %9767 = vmatpush3.bf16.msra.mxu0 %v10580_v44 }
 0x2a1   :  { %9796 = vmatprep.subr.bf16.mxu0 %v10582_v48 }
 0x2a2   :  { %9789 = vmatpush3.bf16.msra.mxu1 %v10581_v50 }
 0x2a3   :  { %7930 = vmatmul.mubr.bf16.vlgmr.msra.gmra.mrb[80].mxu0 %v1968_v47  ;;  %8017 = vmatprep.subr.bf16.mxu1 %v10638_v58 }
 0x2a4   :  { %9797 = vmatpush3.bf16.msra.mxu0 %v10583_v52  ;;  %8009 = vmatprep.mubr.bf16.mxu0 %v1989_v53 }
 0x2a5   :  { %7970 = vmatmul.mubr.bf16.vlgmr.msra.gmra.mrb[80].mxu1 %v1990_v55  ;;  %9798 = vmatprep.subr.bf16.mxu0 %v10585_v56 }
 0x2a6   :  { %8018 = vmatpush1.bf16.msra.mxu1 %v10584_v57  ;;  %8870 = vmatprep.mubr.msk.bf16.mxu1 %vm6293_vm0, %v1993_v54 }
 0x2a7   :  { %8019 = vmatprep.subr.bf16.mxu1 %v10638_v58 }
 0x2a8   :  { %9799 = vmatpush3.bf16.msra.mxu0 %v10586_v59 }
 0x2a9   :  { %9800 = vmatprep.subr.bf16.mxu0 %v10588_v60 }
 0x2aa   :  { %8020 = vmatpush1.bf16.msra.mxu1 %v10587_v61 }
 0x2ab   :  { %8021 = vmatprep.subr.bf16.mxu1 %v10638_v58 }
 0x2ac   :  { %9801 = vmatpush3.bf16.msra.mxu0 %v10589_v62 }
 0x2ad   :  { %9802 = vmatprep.subr.bf16.mxu0 %v10591_v63 }
 0x2ae   :  { %8022 = vmatpush1.bf16.msra.mxu1 %v10590_v0 }
 0x2af   :  { %8023 = vmatprep.subr.bf16.mxu1 %v10638_v58 }
 0x2b0   :  { %9803 = vmatpush3.bf16.msra.mxu0 %v10592_v1 }
 0x2b1   :  { %9804 = vmatprep.subr.bf16.mxu0 %v10594_v2 }
 0x2b2   :  { %8024 = vmatpush1.bf16.msra.mxu1 %v10593_v3 }
 0x2b3   :  { %8025 = vmatprep.subr.bf16.mxu1 %v10638_v58 }
 0x2b4   :  { %9805 = vmatpush3.bf16.msra.mxu0 %v10595_v4 }
 0x2b5   :  { %9806 = vmatprep.subr.bf16.mxu0 %v10597_v5 }
 0x2b6   :  { %8026 = vmatpush1.bf16.msra.mxu1 %v10596_v6  ;;  %v9504_v9 = vpop.f32.mrb[56].mxu0 }
 0x2b7   :  { %v9505_v11 = vpop.f32.mrb[57].mxu0  ;;  %8027 = vmatprep.subr.bf16.mxu1 %v10638_v58 }
 0x2b8   :  { %10 = vsyncpa [#allocation3], 0  ;;  %v9526_v12 = vpop.f32.mrb[56].mxu1  ;;  %v9506_v13 = vadd.f32 %v9505_v11, %v9504_v9  ;;  %9807 = vmatpush3.bf16.msra.mxu0 %v10598_v7  ;;  %v10601_v14 = vld [vmem:[%s13058_s1 + $0x1530] sm:$0xff]   ;;  %v9507_v15 = vpop.f32.mrb[58].mxu0  ;;  %v10603_v17 = vld [vmem:[%s13058_s1 + $0x1578] sm:$0xff]   ;;  %v1975_v27 = vrot.slane %v12872_v42, %v10778_v41 }
 0x2b9   :  { %v9527_v16 = vpop.f32.mrb[57].mxu1  ;;  %9808 = vmatprep.subr.bf16.mxu0 %v10600_v8  ;;  %v9508_v18 = vpop.f32.mrb[59].mxu0  ;;  %v10602_v22 = vld [vmem:[%s13058_s1 + $0x15b0] sm:$0xff]   ;;  %v10604_v25 = vld [vmem:[%s13058_s1 + $0x1538] sm:$0xff]   ;;  %v10607_v28 = vld [vmem:[%s13058_s1 + $0x15c0] sm:$0xff]   ;;  %v10639_v61 = vmov 0.0|0.0  }
 0x2ba   :  { %v7452_v19 = vadd.f32 %v9506_v13, %v12874_v43  ;;  %v9528_v20 = vadd.f32 %v9527_v16, %v9526_v12  ;;  %v9529_v21 = vpop.f32.mrb[58].mxu1  ;;  %8028 = vmatpush1.bf16.msra.mxu1 %v10599_v10  ;;  %v10605_v26 = vld [vmem:[%s13058_s1 + $0x15b8] sm:$0xff]   ;;  %v10608_v29 = vld [vmem:[%s13058_s1 + $0x15c8] sm:$0xff]   ;;  %v10609_v41 = vld [vmem:[%s13058_s1 + $0x15d0] sm:$0xff]   ;;  %v1991_v39 = vcombine.high %v1975_v27, %v1975_v27  ;;  %vm10640_vm1 = vmmov 0   ;;  %s10642_s11 = smov [#allocation2]  }
 0x2bb   :  { %v9530_v23 = vpop.f32.mrb[59].mxu1  ;;  %8029 = vmatprep.subr.bf16.mxu1 %v10638_v58  ;;  %v10610_v30 = vld [vmem:[%s13058_s1 + $0x15d8] sm:$0xff]   ;;  %v10611_v31 = vld [vmem:[%s13058_s1 + $0x15e0] sm:$0xff]   ;;  %v10612_v33 = vld [vmem:[%s13058_s1 + $0x15e8] sm:$0xff]   ;;  %s8159_s12 = sshll.u32 %s10642_s11, 4  ;;  %vm8151_vm2 = vcmask 74752   ;;  %s8160_s12 = int_to_ptr.vmem [resolvable:$true] %s8159_s12 }
 0x2bc   :  { %v7492_v24 = vadd.f32 %v9528_v20, %v7452_v19  ;;  %9809 = vmatpush3.bf16.msra.mxu0 %v10601_v14  ;;  %v8058_v59 = vld [vmem:[%s13060_s3] sm:$0xff]  ;;  %v8059_v60 = vld [vmem:[%s13060_s3 + $0x8] sm:$0xff]  ;;  %v8060_v1 = vld [vmem:[%s13060_s3 + $0x10] sm:$0xff]  ;;  %s10613_s13 = scalar_lea.vmem %s8160_s12, 32  ;;  %p10618_p1 = scmp.lt.s32.totalorder %s8160_s12, %s8160_s12 }
 0x2bd   :  { %9810 = vmatprep.subr.bf16.mxu0 %v10603_v17  ;;  %v9871_v62 = vpack.c.bf16 %v8059_v60, %v8058_v59  ;;  %v8061_v2 = vld [vmem:[%s13060_s3 + $0x18] sm:$0xff]  ;;  %v8062_v7 = vld [vmem:[%s13060_s3 + $0x20] sm:$0xff]  ;;  %v8063_v8 = vld [vmem:[%s13060_s3 + $0x28] sm:$0xff]  ;;  %p10614_p0 = scmp.ne.s32.totalorder %s8160_s12, %s10613_s13  ;;  %p10619_p2 = scmp.lt.s32.totalorder %s10613_s13, %s10613_s13 }
 0x2be   :  { %8030 = vmatpush1.bf16.msra.mxu1 %v10602_v22  ;;  %v9874_v6 = vpack.c.bf16 %v8061_v2, %v8060_v1  ;;  %v9877_v14 = vpack.c.bf16 %v8063_v8, %v8062_v7  ;;  %v8064_v16 = vld [vmem:[%s13060_s3 + $0x30] sm:$0xff]  ;;  %v8065_v17 = vld [vmem:[%s13060_s3 + $0x38] sm:$0xff]  ;;  %v8066_v20 = vld [vmem:[%s13060_s3 + $0x40] sm:$0xff] }
 0x2bf   :  { %8031 = vmatprep.subr.bf16.mxu1 %v10638_v58  ;;  %v9880_v19 = vpack.c.bf16 %v8065_v17, %v8064_v16  ;;  %v8067_v21 = vld [vmem:[%s13060_s3 + $0x48] sm:$0xff]  ;;  %v8068_v23 = vld [vmem:[%s13060_s3 + $0x50] sm:$0xff]  ;;  %v8871_v17 = vld [vmem:[%s13061_s4] ss:$0 sm:$0xff]  ;;  %p10620_p3 = por %p10619_p2, %p10618_p1 }
 0x2c0   :  { %9811 = vmatpush3.bf16.msra.mxu0 %v10604_v25  ;;  %v9883_v22 = vpack.c.bf16 %v8067_v21, %v8066_v20 }
 0x2c1   :  { %9870 = vmatprep.subr.bf16.mxu0 %v10639_v61  ;;  %p10621_p4 = pnand %p10620_p3, %p10614_p0 }
 0x2c2   :  { %8032 = vmatpush1.bf16.msra.mxu1 %v10605_v26  ;;  %v8070_v26 = vld [vmem:[%s13060_s3 + $0x60] sm:$0xff] }
 0x2c3   :  { %8010 = vmatmul.mubr.bf16.vlgmr.msra.gmra.mrb[84].mxu0 %v1975_v27  ;;  %8033 = vmatprep.subr.bf16.mxu1 %v10638_v58  ;;  %v8071_v27 = vld [vmem:[%s13060_s3 + $0x68] sm:$0xff] }
 0x2c4   :  { %9872 = vmatpush3.bf16.msra.mxu0 %v9871_v62 }
 0x2c5   :  { %9873 = vmatprep.subr.bf16.mxu0 %v10639_v61 }
 0x2c6   :  { %8034 = vmatpush1.bf16.msra.mxu1 %v10607_v28  ;;  %v9889_v28 = vpack.c.bf16 %v8071_v27, %v8070_v26 }
 0x2c7   :  { %8035 = vmatprep.subr.bf16.mxu1 %v10638_v58 }
 0x2c8   :  { %9875 = vmatpush3.bf16.msra.mxu0 %v9874_v6 }
 0x2c9   :  { %9876 = vmatprep.subr.bf16.mxu0 %v10639_v61 }
 0x2ca   :  { %8036 = vmatpush1.bf16.msra.mxu1 %v10608_v29  ;;  %v8072_v29 = vld [vmem:[%s13060_s3 + $0x70] sm:$0xff] }
 0x2cb   :  { %8037 = vmatprep.subr.bf16.mxu1 %v10638_v58 }
 0x2cc   :  { %9878 = vmatpush3.bf16.msra.mxu0 %v9877_v14 }
 0x2cd   :  { %9879 = vmatprep.subr.bf16.mxu0 %v10639_v61 }
 0x2ce   :  { %8038 = vmatpush1.bf16.msra.mxu1 %v10609_v41  ;;  %v8073_v41 = vld [vmem:[%s13060_s3 + $0x78] sm:$0xff] }
 0x2cf   :  { %8039 = vmatprep.subr.bf16.mxu1 %v10638_v58 }
 0x2d0   :  { %9881 = vmatpush3.bf16.msra.mxu0 %v9880_v19 }
 0x2d1   :  { %9882 = vmatprep.subr.bf16.mxu0 %v10639_v61 }
 0x2d2   :  { %8040 = vmatpush1.bf16.msra.mxu1 %v10610_v30  ;;  %v9892_v30 = vpack.c.bf16 %v8073_v41, %v8072_v29 }
 0x2d3   :  { %8041 = vmatprep.subr.bf16.mxu1 %v10638_v58 }
 0x2d4   :  { %9884 = vmatpush3.bf16.msra.mxu0 %v9883_v22 }
 0x2d5   :  { %9885 = vmatprep.subr.bf16.mxu0 %v10639_v61 }
 0x2d6   :  { %8042 = vmatpush1.bf16.msra.mxu1 %v10611_v31  ;;  %v9548_v32 = vpop.f32.mrb[60].mxu0  ;;  %v10641_v31 = vmov 0.0  }
 0x2d7   :  { %v9549_v34 = vpop.f32.mrb[61].mxu0  ;;  %8043 = vmatprep.subr.bf16.mxu1 %v10638_v58  ;;  %9867 = vmatprep.mubr.msk.f32.mxu0 %vm10640_vm1, %v10641_v31 }
 0x2d8   :  { %v9570_v35 = vpop.f32.mrb[60].mxu1  ;;  %v9550_v36 = vadd.f32 %v9549_v34, %v9548_v32  ;;  %v9551_v37 = vpop.f32.mrb[62].mxu0 }
 0x2d9   :  { %v9571_v38 = vpop.f32.mrb[61].mxu1  ;;  %v9552_v40 = vpop.f32.mrb[63].mxu0 }
 0x2da   :  { %v7532_v42 = vadd.f32 %v9550_v36, %v7492_v24  ;;  %v9572_v43 = vadd.f32 %v9571_v38, %v9570_v35  ;;  %v9573_v44 = vpop.f32.mrb[62].mxu1  ;;  %8044 = vmatpush1.bf16.msra.mxu1 %v10612_v33  ;;  %v8069_v24 = vld [vmem:[%s13060_s3 + $0x58] sm:$0xff] }
 0x2db   :  { %v9574_v45 = vpop.f32.mrb[63].mxu1  ;;  %v9886_v25 = vpack.c.bf16 %v8069_v24, %v8068_v23 }
 0x2dc   :  { %v7572_v46 = vadd.f32 %v9572_v43, %v7532_v42 }
 0x2dd   :  { %8050 = vmatmul.mubr.bf16.vlgmr.msra.gmra.mrb[84].mxu1 %v1991_v39  ;;  %9887 = vmatpush3.bf16.msra.mxu0 %v9886_v25 }
 0x2de   :  { %9888 = vmatprep.subr.bf16.mxu0 %v10639_v61 }
 0x2e1   :  { %9890 = vmatpush3.bf16.msra.mxu0 %v9889_v28 }
 0x2e2   :  { %9891 = vmatprep.subr.bf16.mxu0 %v10639_v61 }
 0x2e5   :  { %9893 = vmatpush3.bf16.msra.mxu0 %v9892_v30 }
 0x2f6   :  { %v9592_v47 = vpop.f32.mrb[64].mxu0 }
 0x2f7   :  { %v9593_v48 = vpop.f32.mrb[65].mxu0 }
 0x2f8   :  { %v9614_v49 = vpop.f32.mrb[64].mxu1  ;;  %v9594_v50 = vadd.f32 %v9593_v48, %v9592_v47  ;;  %v9595_v51 = vpop.f32.mrb[66].mxu0 }
 0x2f9   :  { %v9615_v52 = vpop.f32.mrb[65].mxu1  ;;  %v9596_v53 = vpop.f32.mrb[67].mxu0 }
 0x2fa   :  { %v7612_v55 = vadd.f32 %v9594_v50, %v7572_v46  ;;  %v9616_v56 = vadd.f32 %v9615_v52, %v9614_v49  ;;  %v9617_v57 = vpop.f32.mrb[66].mxu1 }
 0x2fb   :  { %v9618_v54 = vpop.f32.mrb[67].mxu1 }
 0x2fc   :  { %v7652_v58 = vadd.f32 %v9616_v56, %v7612_v55 }
 0x316   :  { %v9636_v63 = vpop.f32.mrb[68].mxu0 }
 0x317   :  { %v9637_v0 = vpop.f32.mrb[69].mxu0 }
 0x318   :  { %v9658_v3 = vpop.f32.mrb[68].mxu1  ;;  %v9638_v4 = vadd.f32 %v9637_v0, %v9636_v63  ;;  %v9639_v5 = vpop.f32.mrb[70].mxu0 }
 0x319   :  { %v9659_v9 = vpop.f32.mrb[69].mxu1  ;;  %v9640_v10 = vpop.f32.mrb[71].mxu0 }
 0x31a   :  { %v7692_v11 = vadd.f32 %v9638_v4, %v7652_v58  ;;  %v9660_v12 = vadd.f32 %v9659_v9, %v9658_v3  ;;  %v9661_v13 = vpop.f32.mrb[70].mxu1 }
 0x31b   :  { %v9662_v15 = vpop.f32.mrb[71].mxu1 }
 0x31c   :  { %v7732_v18 = vadd.f32 %v9660_v12, %v7692_v11 }
 0x336   :  { %v9680_v32 = vpop.f32.mrb[72].mxu0 }
 0x337   :  { %v9681_v33 = vpop.f32.mrb[73].mxu0 }
 0x338   :  { %v9702_v34 = vpop.f32.mrb[72].mxu1  ;;  %v9682_v35 = vadd.f32 %v9681_v33, %v9680_v32  ;;  %v9683_v36 = vpop.f32.mrb[74].mxu0 }
 0x339   :  { %v9703_v37 = vpop.f32.mrb[73].mxu1  ;;  %v9684_v38 = vpop.f32.mrb[75].mxu0 }
 0x33a   :  { %v7772_v39 = vadd.f32 %v9682_v35, %v7732_v18  ;;  %v9704_v40 = vadd.f32 %v9703_v37, %v9702_v34  ;;  %v9705_v42 = vpop.f32.mrb[74].mxu1 }
 0x33b   :  { %v9706_v43 = vpop.f32.mrb[75].mxu1 }
 0x33c   :  { %v7812_v44 = vadd.f32 %v9704_v40, %v7772_v39 }
 0x356   :  { %v9724_v45 = vpop.f32.mrb[76].mxu0 }
 0x357   :  { %v9725_v46 = vpop.f32.mrb[77].mxu0 }
 0x358   :  { %v9746_v47 = vpop.f32.mrb[76].mxu1  ;;  %v9726_v48 = vadd.f32 %v9725_v46, %v9724_v45  ;;  %v9727_v49 = vpop.f32.mrb[78].mxu0 }
 0x359   :  { %v9747_v50 = vpop.f32.mrb[77].mxu1  ;;  %v9728_v51 = vpop.f32.mrb[79].mxu0 }
 0x35a   :  { %v7852_v52 = vadd.f32 %v9726_v48, %v7812_v44  ;;  %v9748_v53 = vadd.f32 %v9747_v50, %v9746_v47  ;;  %v9749_v55 = vpop.f32.mrb[78].mxu1 }
 0x35b   :  { %v9750_v56 = vpop.f32.mrb[79].mxu1 }
 0x35c   :  { %v7892_v57 = vadd.f32 %v9748_v53, %v7852_v52 }
 0x376   :  { %v9768_v54 = vpop.f32.mrb[80].mxu0 }
 0x377   :  { %v9769_v58 = vpop.f32.mrb[81].mxu0 }
 0x378   :  { %v9790_v59 = vpop.f32.mrb[80].mxu1  ;;  %v9770_v60 = vadd.f32 %v9769_v58, %v9768_v54  ;;  %v9771_v61 = vpop.f32.mrb[82].mxu0 }
 0x379   :  { %v9791_v62 = vpop.f32.mrb[81].mxu1  ;;  %v9772_v63 = vpop.f32.mrb[83].mxu0 }
 0x37a   :  { %v7932_v0 = vadd.f32 %v9770_v60, %v7892_v57  ;;  %v9792_v1 = vadd.f32 %v9791_v62, %v9790_v59  ;;  %v9793_v2 = vpop.f32.mrb[82].mxu1 }
 0x37b   :  { %v9794_v3 = vpop.f32.mrb[83].mxu1 }
 0x37c   :  { %v7972_v4 = vadd.f32 %v9792_v1, %v7932_v0 }
 0x396   :  { %v9812_v5 = vpop.f32.mrb[84].mxu0 }
 0x397   :  { %v9813_v6 = vpop.f32.mrb[85].mxu0 }
 0x398   :  { %v9814_v7 = vadd.f32 %v9813_v6, %v9812_v5  ;;  %v9815_v8 = vpop.f32.mrb[86].mxu0 }
 0x399   :  { %v9816_v9 = vpop.f32.mrb[87].mxu0 }
 0x39a   :  { %v8012_v10 = vadd.f32 %v9814_v7, %v7972_v4 }
 0x3b0   :  { %v8051_v11 = vpop.f32.mrb[84].mxu1 }
 0x3b1   :  { %v8052_v12 = vadd.f32 %v8051_v11, %v8012_v10  ;;  %v8053_v13 = vpop.f32.mrb[85].mxu1 }
 0x3b2   :  { %v8054_v14 = vpop.f32.mrb[86].mxu1 }
 0x3b3   :  { %v8057_v15 = vmax.f32 %v8052_v12, 0.0  ;;  %v8055_v16 = vpop.f32.mrb[87].mxu1 }
 0x3b5   :  { %9868 = vmatmul.mubr.f32.vlgmr.msra.gmra.mrb[88].mxu0 %v8057_v15 }
 0x488   :  { %v8147_v18 = vpop.f32.mrb[88].mxu0 }
 0x489   :  { %v8148_v19 = vadd.f32 %v8871_v17, %v8147_v18  ;;  %v9869_v20 = vpop.f32.mrb[89].mxu0 }
 0x48b   :  { %8152 = vst.msk [vmem:[#allocation2] sm:$0x3] %vm8151_vm2, %v8148_v19 }
 0x48c   :  { %10624 = shalt.err (!%p10621_p4)
}
 0x48d   :  { %s10625_s16 = scalar_lea.hbm %s13062_s5, 32 }
 0x48e   :  { %p10626_p5 = scmp.ne.s32.totalorder %s13062_s5, %s10625_s16  ;;  %p10629_p6 = scmp.lt.u32.totalorder %s10625_s16, %s13062_s5 }
 0x490   :  { %p10631_p7 = pnand %p10629_p6, %p10626_p5 }
 0x492   :  { %10634 = shalt.err (!%p10631_p7)
}
 0x493   :  { %8162 = dma.vmem_to_hbm [thread:$0]  %s8160_s12, 32, %s13062_s5, [#allocation3]  }
 0x494   :  { %10635 = dma.done.wait [#allocation3], 32  }
 0x495   :  { %10636 = vsyncadd [#allocation3], 4294967264 }
 0x496   :  { %8166 = vsyncpa [#allocation3], 1 }

</bundles_post_ra>
